<compile_context>
chip_gen: v7x
topology: tpu7x:2x2x1
jax: 0.10.0
libtpu: 0.0.40
codegen_flags: <defaults>
</compile_context>

<pallas_src>
import numpy as np
import jax
import jax.numpy as jnp
from jax import lax
from jax.experimental import pallas as pl
from jax.experimental.pallas import tpu as pltpu

OUT_H = 512
OUT_W = 512


def _bilinear_matrix(out_size, in_size):
    """Interpolation matrix matching PyTorch bilinear upsample, align_corners=False."""
    scale = in_size / out_size
    dst = np.arange(out_size, dtype=np.float64)
    src = np.maximum((dst + 0.5) * scale - 0.5, 0.0)
    i0 = np.minimum(np.floor(src).astype(np.int64), in_size - 1)
    i1 = np.minimum(i0 + 1, in_size - 1)
    frac = src - i0
    w = np.zeros((out_size, in_size), dtype=np.float64)
    w[np.arange(out_size), i0] += 1.0 - frac
    w[np.arange(out_size), i1] += frac
    return w.astype(np.float32)


def _shifted_rows(mat, tap):
    """Row-shift by (tap-1) with zero fill: folds the conv's zero padding into
    the interpolation matrix.  result[h] = mat[h + tap - 1] (zero if OOB)."""
    res = np.zeros_like(mat)
    s = tap - 1
    if s == 0:
        res[:] = mat
    elif s < 0:
        res[1:] = mat[:-1]
    else:
        res[:-1] = mat[1:]
    return res


def _upconv_kernel(a_ref, wy_ref, alpha_ref, out_ref):
    # a_ref     : (K_PAD, cout*OUT_W)   VMEM bf16  prefolded input (channels + col
    #             taps + BN scale folded; row k_data carries BN shift + conv bias)
    # wy_ref    : (TILE_H, K_PAD)       VMEM bf16  row-interp tile (dy taps + ones col)
    # alpha_ref : (1, cout*OUT_W)       VMEM f32   PReLU alpha lane vector
    # out_ref   : (cout, TILE_H, OUT_W) VMEM
    # Single MXU matmul per tile; BN scale/shift and conv bias live inside it.
    y = jnp.dot(wy_ref[...], a_ref[...], preferred_element_type=jnp.float32)
    w = out_ref.shape[-1]
    for co in range(out_ref.shape[0]):
        yc = y[:, co * w:(co + 1) * w]                      # 512-aligned lane slice
        ac = alpha_ref[:, co * w:(co + 1) * w]
        out_ref[co] = jnp.where(yc >= 0.0, yc, ac * yc).astype(out_ref.dtype)


def _pick_tile_h(n):
    try:
        kind = jax.devices()[0].device_kind.lower()
    except Exception:
        kind = ""
    # v7x has 2 TensorCores: keep >=2 grid steps per core for small batches so
    # the final output writeback stays overlapped with compute.
    if "v7" in kind and n < 4:
        return 256
    return 512


def upsample_final(x, conv_w, conv_b, bn_gamma, bn_beta, bn_mean, bn_var,
                   prelu_alpha, *, eps=1e-5, tile_h=None, out_dtype=jnp.float32):
    n, cin, hin, win = x.shape
    cout = conv_w.shape[0]
    if tile_h is None:
        tile_h = _pick_tile_h(n)
    assert OUT_H % tile_h == 0

    # Interpolation matrices with the 3x3 conv taps folded in.
    wy = _bilinear_matrix(OUT_H, hin)                              # (512, hin)
    wx = _bilinear_matrix(OUT_W, win)                              # (512, win)
    wxt3 = np.stack([_shifted_rows(wx, d).T for d in range(3)])    # (3, win, 512)
    wy_cat = np.concatenate([_shifted_rows(wy, d) for d in range(3)], axis=1)  # (512, 3*hin)

    k_data = 3 * hin
    k_pad = ((k_data + 1 + 15) // 16) * 16   # +1 shift row, pad K to mult of 16 (bf16 sublanes)

    # Ones column pairs with the shift row of A; remaining columns zero.
    wy_full = np.zeros((OUT_H, k_pad), dtype=np.float32)
    wy_full[:, :k_data] = wy_cat
    wy_full[:, k_data] = 1.0

    x = x.astype(jnp.float32)
    # Fold BN scale into the conv weights; fold conv bias into the BN shift.
    scale = (bn_gamma / jnp.sqrt(bn_var + eps)).astype(jnp.float32)
    shift = (bn_beta - bn_mean * scale + scale * conv_b).astype(jnp.float32)
    conv_ws = conv_w.astype(jnp.float32) * scale[:, None, None, None]

    # Hoisted "phase 1": channels + column taps folded on the tiny input.
    # a[n, co, dy, i, W] = sum_{ci,dx} conv_ws[co,ci,dy,dx] * (x[n,ci] @ Wxs_dx^T)[i, W]
    a = jnp.einsum('ocyd,nchw,dwW->noyhW', conv_ws, x, jnp.asarray(wxt3))
    A = a.transpose(0, 2, 3, 1, 4).reshape(n, k_data, cout * OUT_W)   # (n, 3*hin, cout*512)
    shift_row = jnp.broadcast_to(shift[:, None], (cout, OUT_W)).reshape(1, 1, cout * OUT_W)
    shift_rows = jnp.broadcast_to(shift_row, (n, 1, cout * OUT_W))
    pad_rows = jnp.zeros((n, k_pad - k_data - 1, cout * OUT_W), jnp.float32)
    A = jnp.concatenate([A, shift_rows, pad_rows], axis=1).astype(jnp.bfloat16)

    # PReLU alpha (shared scalar or per-channel) -> lane vector of width cout*512.
    alpha_c = jnp.broadcast_to(prelu_alpha.reshape(-1).astype(jnp.float32), (cout,))
    alpha_vec = jnp.broadcast_to(alpha_c[:, None], (cout, OUT_W)).reshape(1, -1)

    grid = (n, OUT_H // tile_h)

    return pl.pallas_call(
        _upconv_kernel,
        out_shape=jax.ShapeDtypeStruct((n, cout, OUT_H, OUT_W), out_dtype),
        grid_spec=pltpu.PrefetchScalarGridSpec(
            num_scalar_prefetch=0,
            grid=grid,
            in_specs=[
                pl.BlockSpec((pl.Squeezed(), k_pad, cout * OUT_W),
                             lambda b, r: (b, 0, 0)),
                pl.BlockSpec((tile_h, k_pad), lambda b, r: (r, 0)),
                pl.BlockSpec((1, cout * OUT_W), lambda b, r: (0, 0)),
            ],
            out_specs=pl.BlockSpec((pl.Squeezed(), cout, tile_h, OUT_W),
                                   lambda b, r: (b, 0, r, 0)),
        ),
        compiler_params=pltpu.CompilerParams(
            # Every grid step is independent -> both axes can shard across TCs.
            dimension_semantics=("parallel", "parallel"),
            vmem_limit_bytes=32 * 1024 * 1024,
        ),
    )(A, jnp.asarray(wy_full, jnp.bfloat16), alpha_vec)


def _reference(x, conv_w, conv_b, gamma, beta, mean, var, alpha, eps=1e-5):
    n, cin, hin, win = x.shape
    wy = jnp.asarray(_bilinear_matrix(OUT_H, hin))
    wx = jnp.asarray(_bilinear_matrix(OUT_W, win))
    up = jnp.einsum('ah,nchw,bw->ncab', wy, x, wx)
    y = lax.conv_general_dilated(up, conv_w, (1, 1), 'SAME',
                                 dimension_numbers=('NCHW', 'OIHW', 'NCHW'))
    y = y + conv_b[None, :, None, None]
    y = (y - mean[None, :, None, None]) / jnp.sqrt(var + eps)[None, :, None, None]
    y = y * gamma[None, :, None, None] + beta[None, :, None, None]
    return jnp.where(y >= 0.0, y, alpha * y)


if __name__ == "__main__":
    key = jax.random.PRNGKey(0)
    ks = jax.random.split(key, 7)
    N, CIN, COUT, H, W = 2, 4, 4, 16, 16

    x = jax.random.normal(ks[0], (N, CIN, H, W), jnp.float32)
    conv_w = 0.1 * jax.random.normal(ks[1], (COUT, CIN, 3, 3), jnp.float32)
    conv_b = 0.1 * jax.random.normal(ks[2], (COUT,), jnp.float32)
    bn_gamma = 1.0 + 0.1 * jax.random.normal(ks[3], (COUT,), jnp.float32)
    bn_beta = 0.1 * jax.random.normal(ks[4], (COUT,), jnp.float32)
    bn_mean = 0.1 * jax.random.normal(ks[5], (COUT,), jnp.float32)
    bn_var = jnp.abs(jax.random.normal(ks[6], (COUT,), jnp.float32)) + 0.5
    prelu_alpha = jnp.full((1,), 0.25, jnp.float32)   # nn.PReLU() default (shared alpha)

    out = upsample_final(x, conv_w, conv_b, bn_gamma, bn_beta, bn_mean, bn_var,
                         prelu_alpha)
    out = jax.block_until_ready(out)

    ref = _reference(x, conv_w, conv_b, bn_gamma, bn_beta, bn_mean, bn_var,
                     prelu_alpha)
    assert out.shape == (N, COUT, OUT_H, OUT_W)
    # Tolerance relaxed vs the pure-fp32 version: A/Wy matmul operands are bf16
    # (accumulation kept in fp32 via preferred_element_type).
    np.testing.assert_allclose(np.asarray(out), np.asarray(ref),
                               rtol=2e-2, atol=2e-2)
    print("KERNEL_OK")
</pallas_src>

<mosaic_0001>
module attributes {stable_mosaic.version = 11 : i64} {
  func.func @_upconv_kernel(%arg0: i32, %arg1: i32, %arg2: memref<1x64x2048xbf16, #tpu.memory_space<vmem>>, %arg3: memref<512x64xbf16, #tpu.memory_space<vmem>>, %arg4: memref<1x2048xf32, #tpu.memory_space<vmem>>, %arg5: memref<1x4x512x512xf32, #tpu.memory_space<vmem>>) attributes {dimension_semantics = [#tpu.dimension_semantics<parallel>, #tpu.dimension_semantics<parallel>], iteration_bounds = array<i64: 2, 1>, scalar_prefetch = 0 : i64, scratch_operands = 0 : i64, tpu.core_type = #tpu.core_type<tc>, window_params = [{transform_indices = @transform_0, window_bounds = array<i64: 1, 64, 2048>}, {transform_indices = @transform_1, window_bounds = array<i64: 512, 64>}, {pipeline_mode = #tpu.pipeline_mode<synchronous>, transform_indices = @transform_2, window_bounds = array<i64: 1, 2048>}, {transform_indices = @transform_3, window_bounds = array<i64: 1, 4, 512, 512>}]} {
    %c0 = arith.constant 0 : index
    %c0_0 = arith.constant 0 : index
    %0 = vector.load %arg3[%c0, %c0_0] : memref<512x64xbf16, #tpu.memory_space<vmem>>, vector<512x64xbf16>
    %c0_1 = arith.constant 0 : index
    %c0_2 = arith.constant 0 : index
    %c0_3 = arith.constant 0 : index
    %1 = vector.load %arg2[%c0_1, %c0_2, %c0_3] : memref<1x64x2048xbf16, #tpu.memory_space<vmem>>, vector<1x64x2048xbf16>
    %2 = vector.shape_cast %1 : vector<1x64x2048xbf16> to vector<64x2048xbf16>
    %cst = arith.constant dense<0.000000e+00> : vector<512x2048xf32>
    %3 = tpu.matmul %0, %2, %cst {dimension_numbers = #tpu.dot_dimension_numbers<[1], [0], [0], [1], [0, 0, 1, 1], [], []>} : vector<512x64xbf16>, vector<64x2048xbf16>, vector<512x2048xf32> -> vector<512x2048xf32>
    %4 = vector.extract_strided_slice %3 {offsets = [0, 0], sizes = [512, 512], strides = [1, 1]} : vector<512x2048xf32> to vector<512x512xf32>
    %c0_4 = arith.constant 0 : index
    %c0_5 = arith.constant 0 : index
    %5 = vector.load %arg4[%c0_4, %c0_5] : memref<1x2048xf32, #tpu.memory_space<vmem>>, vector<1x512xf32>
    %cst_6 = arith.constant 0.000000e+00 : f32
    %6 = vector.broadcast %cst_6 : f32 to vector<512x512xf32>
    %7 = arith.cmpf oge, %4, %6 : vector<512x512xf32>
    %8 = vector.broadcast %5 : vector<1x512xf32> to vector<512x512xf32>
    %9 = arith.mulf %8, %4 : vector<512x512xf32>
    %10 = arith.select %7, %4, %9 : vector<512x512xi1>, vector<512x512xf32>
    %c0_7 = arith.constant 0 : index
    %c0_8 = arith.constant 0 : index
    %c0_9 = arith.constant 0 : index
    %c0_10 = arith.constant 0 : index
    %11 = vector.load %arg5[%c0_7, %c0_8, %c0_9, %c0_10] : memref<1x4x512x512xf32, #tpu.memory_space<vmem>>, vector<1x1x512x512xf32>
    %12 = vector.shape_cast %11 : vector<1x1x512x512xf32> to vector<512x512xf32>
    %13 = vector.shape_cast %10 : vector<512x512xf32> to vector<1x1x512x512xf32>
    tpu.vector_store %arg5[%c0_7, %c0_8, %c0_9, %c0_10], %13 {strides = array<i32>} : memref<1x4x512x512xf32, #tpu.memory_space<vmem>>, vector<1x1x512x512xf32>,
    %14 = vector.extract_strided_slice %3 {offsets = [0, 512], sizes = [512, 512], strides = [1, 1]} : vector<512x2048xf32> to vector<512x512xf32>
    %c0_11 = arith.constant 0 : index
    %c512 = arith.constant 512 : index
    %15 = vector.load %arg4[%c0_11, %c512] : memref<1x2048xf32, #tpu.memory_space<vmem>>, vector<1x512xf32>
    %cst_12 = arith.constant 0.000000e+00 : f32
    %16 = vector.broadcast %cst_12 : f32 to vector<512x512xf32>
    %17 = arith.cmpf oge, %14, %16 : vector<512x512xf32>
    %18 = vector.broadcast %15 : vector<1x512xf32> to vector<512x512xf32>
    %19 = arith.mulf %18, %14 : vector<512x512xf32>
    %20 = arith.select %17, %14, %19 : vector<512x512xi1>, vector<512x512xf32>
    %c0_13 = arith.constant 0 : index
    %c1 = arith.constant 1 : index
    %c0_14 = arith.constant 0 : index
    %c0_15 = arith.constant 0 : index
    %21 = vector.load %arg5[%c0_13, %c1, %c0_14, %c0_15] : memref<1x4x512x512xf32, #tpu.memory_space<vmem>>, vector<1x1x512x512xf32>
    %22 = vector.shape_cast %21 : vector<1x1x512x512xf32> to vector<512x512xf32>
    %23 = vector.shape_cast %20 : vector<512x512xf32> to vector<1x1x512x512xf32>
    tpu.vector_store %arg5[%c0_13, %c1, %c0_14, %c0_15], %23 {strides = array<i32>} : memref<1x4x512x512xf32, #tpu.memory_space<vmem>>, vector<1x1x512x512xf32>,
    %24 = vector.extract_strided_slice %3 {offsets = [0, 1024], sizes = [512, 512], strides = [1, 1]} : vector<512x2048xf32> to vector<512x512xf32>
    %c0_16 = arith.constant 0 : index
    %c1024 = arith.constant 1024 : index
    %25 = vector.load %arg4[%c0_16, %c1024] : memref<1x2048xf32, #tpu.memory_space<vmem>>, vector<1x512xf32>
    %cst_17 = arith.constant 0.000000e+00 : f32
    %26 = vector.broadcast %cst_17 : f32 to vector<512x512xf32>
    %27 = arith.cmpf oge, %24, %26 : vector<512x512xf32>
    %28 = vector.broadcast %25 : vector<1x512xf32> to vector<512x512xf32>
    %29 = arith.mulf %28, %24 : vector<512x512xf32>
    %30 = arith.select %27, %24, %29 : vector<512x512xi1>, vector<512x512xf32>
    %c0_18 = arith.constant 0 : index
    %c2 = arith.constant 2 : index
    %c0_19 = arith.constant 0 : index
    %c0_20 = arith.constant 0 : index
    %31 = vector.load %arg5[%c0_18, %c2, %c0_19, %c0_20] : memref<1x4x512x512xf32, #tpu.memory_space<vmem>>, vector<1x1x512x512xf32>
    %32 = vector.shape_cast %31 : vector<1x1x512x512xf32> to vector<512x512xf32>
    %33 = vector.shape_cast %30 : vector<512x512xf32> to vector<1x1x512x512xf32>
    tpu.vector_store %arg5[%c0_18, %c2, %c0_19, %c0_20], %33 {strides = array<i32>} : memref<1x4x512x512xf32, #tpu.memory_space<vmem>>, vector<1x1x512x512xf32>,
    %34 = vector.extract_strided_slice %3 {offsets = [0, 1536], sizes = [512, 512], strides = [1, 1]} : vector<512x2048xf32> to vector<512x512xf32>
    %c0_21 = arith.constant 0 : index
    %c1536 = arith.constant 1536 : index
    %35 = vector.load %arg4[%c0_21, %c1536] : memref<1x2048xf32, #tpu.memory_space<vmem>>, vector<1x512xf32>
    %cst_22 = arith.constant 0.000000e+00 : f32
    %36 = vector.broadcast %cst_22 : f32 to vector<512x512xf32>
    %37 = arith.cmpf oge, %34, %36 : vector<512x512xf32>
    %38 = vector.broadcast %35 : vector<1x512xf32> to vector<512x512xf32>
    %39 = arith.mulf %38, %34 : vector<512x512xf32>
    %40 = arith.select %37, %34, %39 : vector<512x512xi1>, vector<512x512xf32>
    %c0_23 = arith.constant 0 : index
    %c3 = arith.constant 3 : index
    %c0_24 = arith.constant 0 : index
    %c0_25 = arith.constant 0 : index
    %41 = vector.load %arg5[%c0_23, %c3, %c0_24, %c0_25] : memref<1x4x512x512xf32, #tpu.memory_space<vmem>>, vector<1x1x512x512xf32>
    %42 = vector.shape_cast %41 : vector<1x1x512x512xf32> to vector<512x512xf32>
    %43 = vector.shape_cast %40 : vector<512x512xf32> to vector<1x1x512x512xf32>
    tpu.vector_store %arg5[%c0_23, %c3, %c0_24, %c0_25], %43 {strides = array<i32>} : memref<1x4x512x512xf32, #tpu.memory_space<vmem>>, vector<1x1x512x512xf32>,
    return
  }
  func.func @transform_0(%arg0: i32, %arg1: i32) -> (i32, i32, i32) {
    %c0_i32 = arith.constant 0 : i32
    %c0_i32_0 = arith.constant 0 : i32
    %c0_i32_1 = arith.constant 0 : i32
    return %arg0, %c0_i32, %c0_i32_0 : i32, i32, i32
  }
  func.func @transform_1(%arg0: i32, %arg1: i32) -> (i32, i32) {
    %c0_i32 = arith.constant 0 : i32
    %c0_i32_0 = arith.constant 0 : i32
    return %arg1, %c0_i32 : i32, i32
  }
  func.func @transform_2(%arg0: i32, %arg1: i32) -> (i32, i32) {
    %c0_i32 = arith.constant 0 : i32
    %c0_i32_0 = arith.constant 0 : i32
    %c0_i32_1 = arith.constant 0 : i32
    return %c0_i32, %c0_i32_0 : i32, i32
  }
  func.func @transform_3(%arg0: i32, %arg1: i32) -> (i32, i32, i32, i32) {
    %c0_i32 = arith.constant 0 : i32
    %c0_i32_0 = arith.constant 0 : i32
    %c0_i32_1 = arith.constant 0 : i32
    return %arg0, %c0_i32, %arg1, %c0_i32_0 : i32, i32, i32, i32
  }
}

</mosaic_0001>

<bundles_post_ra>
// kernel: tpu_custom_call.1
= control target key start
LH: loop header
LB: loop body
LE: loop exit
PB: predicated region body
PF: predicated region fallthrough
CT: control target
= control target key end

     0   :  { %8 = vsyncpa [#allocation3], 0  ;;  %s13217_s0 = inlined_call_operand.hbm [shape: bf16[2,64,2048], index: 0, kind: input, shape index: {}]   ;;  %s13218_s1 = inlined_call_operand.vmem [shape: bf16[512,64], index: 1, kind: input, shape index: {}]   ;;  %s13219_s2 = inlined_call_operand.hbm [shape: f32[1,2048], index: 2, kind: input, shape index: {}]   ;;  %s13220_s3 = inlined_call_operand.hbm [shape: f32[2,4,512,512], index: 3, kind: output, shape index: {}]  }
   0x1   :  { %10 = vsyncpa [#allocation3 + $0x1], 0 }
   0x2   :  { %11 = vsyncpa [#allocation6], 0 }
   0x3   :  { %12 = vsyncpa [#allocation4], 0 }
   0x4   :  { %14 = vsyncpa [#allocation4 + $0x1], 0  ;;  %s9602_s12 = smov 0   ;;  %s9604_s13 = smov 0  }
   0x5   :  { %s9606_s14 = smov 0   ;;  %s9608_s15 = smov 0  }
   0x6   :  { %s9610_s16 = smov 0   ;;  %s9612_s17 = smov 0  }
   0x7 LB: > { %s8082_s18 = sadd.s32 4294967295, %s9572_s17   ;;  %s8083_s19 = sadd.s32 4294967294, %s9572_s17   ;;  %s9572_s17 = sphi %s9612_s17, %s20_s17   ;;  %s9568_s16 = sphi %s9610_s16, %s13248_s16   ;;  %s9564_s15 = sphi %s9608_s15, %s13247_s15   ;;  %s9560_s14 = sphi %s9606_s14, %s13246_s14   ;;  %s9556_s13 = sphi %s9604_s13, %s13245_s13   ;;  %s9552_s12 = sphi %s9602_s12, %s13244_s12  }
   0x8   : > { %s39_s20 = sadd.s32 1, %s9560_s14  ;;  %p46_p0 = scmp.ne.s32.totalorder %s9560_s14, %s9556_s13 }
   0x9   : > { %p47_p1 = scmp.eq.s32.totalorder %s9572_s17, 0  ;;  %p52_p2 = scmp.ne.s32.totalorder %s9556_s13, %s9552_s12 }
   0xa   : > { %p9640_p3 = scmp.eq.s32.totalorder %s8082_s18, 0  ;;  %p125_p4 = scmp.eq.s32.totalorder %s8082_s18, 1 }
   0xb   : > { %p9644_p5 = por %p47_p1, %p46_p0  ;;  %p131_p6 = scmp.eq.s32.totalorder %s8083_s19, 1 }
   0xc   : > { %s13227_s21 = scalar_select %p9640_p3, 1, 0 }
   0xd   : > { %p9650_p7 = por %p9640_p3, %p52_p2  ;;  %p9654_p8 = por %p125_p4, %p46_p0 }
   0xe   : > { %p9658_p9 = por %p131_p6, %p52_p2  ;;  %p8084_p10 = scmp.ge.s32.totalorder %s9572_s17, 1 }
   0xf   : > { %s13229_s23 = scalar_select %p9650_p7, 1, 0 }
  0x10   : > { %s13230_s24 = scalar_select %p9654_p8, 1, 0 }
  0x11   : > { %s13231_s25 = scalar_select %p9658_p9, 1, 0 }
  0x12   : > { %p138_p11 = scmp.lt.s32.totalorder %s9572_s17, 3  ;;  %s9574_s27 = smov [#allocation5]  }
  0x13   : > { %s160_s28 = sshll.u32 %s9574_s27, 4  ;;  %p9243_p1 = scmp.lt.s32.totalorder %s9572_s17, 2  ;;  %s161_s28 = int_to_ptr.vmem [resolvable:$true] %s160_s28 }
  0x14   : > { %p9665_p13 = pnand %p8084_p10, %p138_p11  ;;  %s32_s4 = sadd.s32 1, %s9568_s16 }
  0x15   : > { %p9674_p4 = pnand %p9243_p1, %p9644_p5  ;;  %p9685_p6 = scmp.ge.s32.totalorder %s32_s4, 2 }
  0x16   : > { %s13232_s26 = scalar_select %p9665_p13, 1, 0 }
  0x17   : > { %p9230_p0 = pneg %p9665_p13  ;;  %s171_s6 = sand.u32 1, %s9560_s14  }
  0x18   : > { %s13233_s29 = scalar_select %p9674_p4, 1, 0 }
  0x19   : > { %p9680_p2 = pnand %p9230_p0, %p9640_p3  ;;  %s9428_s9 = scalar_lea.hbm %s13219_s2, 256 }
  0x1a   : > { %s13235_s5 = scalar_select %p9685_p6, 1, 0 }
  0x1b   : > { %p9429_p5 = scmp.ne.s32.totalorder %s13219_s2, %s9428_s9  ;;  %p9430_p10 = pneg %p9680_p2 }
  0x1c   : > { %p9435_p0 = scmp.lt.u32.totalorder %s9428_s9, %s13219_s2 }
  0x1d   : > { %p9431_p11 = pnand %p9430_p10, %p9429_p5 }
  0x1f   : > { %p9432_p1 = pneg %p9431_p11 }
  0x21   : > { %p9437_p12 = pnand %p9435_p0, %p9432_p1 }
  0x23   : > { %9440 = shalt.err (!%p9437_p12)
}
  0x24   : > { %s9441_s22 = scalar_lea.vmem %s161_s28, 256  ;;  %p9449_p7 = scmp.lt.s32.totalorder %s161_s28, %s161_s28 }
  0x25   : > { %p9442_p9 = scmp.ne.s32.totalorder %s161_s28, %s9441_s22  ;;  %p9450_p13 = scmp.lt.s32.totalorder %s9441_s22, %s9441_s22 }
  0x27   : > { %p9444_p8 = pnand %p9442_p9, %p9430_p10  ;;  %p9451_p4 = por %p9450_p13, %p9449_p7 }
  0x29   : > { %p9445_p3 = pneg %p9444_p8 }
  0x2b   : > { %p9452_p6 = pnand %p9451_p4, %p9445_p3 }
  0x2d   : > { %9455 = shalt.err (!%p9452_p6)
}
  0x2e   : > { %9233 = dma.hbm_to_vmem [thread:$0]  (!%p9680_p2), %s13219_s2, 256, %s161_s28, [#allocation6]  }
  0x2f   : > { %p13236_p9 = scmp.ne.s32.totalorder %s13235_s5, 0  ;;  %s8088_s8 = sshll.u32 %s171_s6, 9 }
  0x30   : > { %s9220_s10 = sshll.u32 %s9568_s16, 13  ;;  %s175_s19 = scalar_lea.vmem [#allocation2], %s8088_s8 }
  0x31   : > { %s13250_s4 = smov (%p13236_p9, %s32_s4), 0  ;;  %s9716_s18 = scalar_lea.hbm %s13217_s0, %s9220_s10 }
  0x32   : > { %s36_s9 = ssub.s32 %s9568_s16, %s13250_s4  ;;  %s182_s22 = sshll.u32 %s175_s19, 4  ;;  %s9723_s22 = int_to_ptr.vmem [resolvable:$true] %s182_s22 }
  0x33   : > { %p37_p3 = scmp.eq.s32.totalorder %s36_s9, 0  ;;  %s9725_s5 = scalar_lea.sflag [#allocation3], %s171_s6 }
  0x34   : > { %s9456_s27 = scalar_lea.hbm %s9716_s18, 8192  ;;  %p13237_p8 = scmp.ne.s32.totalorder %s13233_s29, 0 }
  0x35   : > { %s9721_s28 = scalar_select %p37_p3, %s9560_s14, %s39_s20  }
  0x36   : > { %p9457_p7 = scmp.ne.s32.totalorder %s9716_s18, %s9456_s27  ;;  %p9458_p12 = pneg %p13237_p8 }
  0x37   : > { %s9461_s8 = scalar_lea.hbm %s13217_s0, 16384  ;;  %p9462_p2 = scmp.lt.u32.totalorder %s9716_s18, %s13217_s0 }
  0x38   : > { %p9459_p13 = pnand %p9458_p12, %p9457_p7  ;;  %p9463_p6 = scmp.lt.u32.totalorder %s9461_s8, %s9456_s27 }
  0x39   : > { %p9465_p10 = scmp.lt.u32.totalorder %s9456_s27, %s9716_s18 }
  0x3a   : > { %p9460_p4 = pneg %p9459_p13  ;;  %p9464_p5 = por %p9463_p6, %p9462_p2 }
  0x3c   : > { %p9466_p11 = por %p9465_p10, %p9464_p5 }
  0x3e   : > { %p9467_p1 = pnand %p9466_p11, %p9460_p4 }
  0x40   : > { %9470 = shalt.err (!%p9467_p1)
}
  0x41   : > { %s9471_s20 = scalar_lea.vmem %s9723_s22, 8192  ;;  %s9575_s6 = smov [#allocation2]  }
  0x42   : > { %p9472_p0 = scmp.ne.s32.totalorder %s9723_s22, %s9471_s20  ;;  %s9476_s11 = sshll.u32 %s9575_s6, 4  ;;  %s9477_s11 = int_to_ptr.vmem [resolvable:$false] %s9476_s11 }
  0x43   : > { %s9478_s19 = scalar_lea.vmem %s9477_s11, 16384  ;;  %p9479_p7 = scmp.lt.s32.totalorder %s9723_s22, %s9477_s11 }
  0x44   : > { %p9474_p9 = pnand %p9472_p0, %p9458_p12  ;;  %p9480_p13 = scmp.lt.s32.totalorder %s9478_s19, %s9471_s20 }
  0x46   : > { %p9475_p3 = pneg %p9474_p9  ;;  %p9481_p2 = por %p9480_p13, %p9479_p7 }
  0x48   : > { %p9482_p6 = pnand %p9481_p2, %p9475_p3 }
  0x4a   : > { %9485 = shalt.err (!%p9482_p6)
}
  0x4b   : > { %s9576_s27 = smov 1024   ;;  %s9577_s7 = smov 64  }
  0x4c   : > { %9237 = dma.hbm_to_vmem [thread:$0]  (!%p13237_p8), %s9716_s18, 8192, %s9723_s22, %s9725_s5, %s9576_s27, %s9576_s27, %s9577_s7  }
  0x4d   : > { %p13238_p12 = scmp.ne.s32.totalorder %s13232_s26, 0 }
  0x4e   : > { %s9756_s9 = sand.u32 (!%p13238_p12), 1, %s9556_s13   ;;  %p13239_p4 = scmp.ne.s32.totalorder (!%p13238_p12), %s13229_s23, 0 }
  0x4f   : > { %194 = sbr.rel (%p13238_p12) target bundleno = 1363 (0x553), region = 32  ;;  %s8092_s8 = sshll.u32 (!%p13238_p12), %s9756_s9, 9 }
  0x50   : > { %s197_s10 = scalar_lea.sflag (!%p13238_p12), [#allocation3], %s9756_s9  ;;  %s9760_s30 = scalar_lea.vmem (!%p13238_p12), [#allocation2], %s8092_s8 }
  0x56   : > { %9539 = dma.done.wait (%p13239_p4), %s197_s10, 8192  }
  0x57   : > { %9541 = vsyncadd (%p13239_p4), %s197_s10, 4294959104  ;;  %p13240_p8 = scmp.ne.s32.totalorder %s13227_s21, 0 }
  0x59   : > { %9543 = dma.done.wait (%p13240_p8), [#allocation6], 256  }
  0x5a   : > { %9545 = vsyncadd (%p13240_p8), [#allocation6], 4294967040  ;;  %v9578_v0 = vmov 0   ;;  %v304_v1 = vld [vmem:[%s9760_s30] sm:$0xff]  ;;  %v305_v3 = vld [vmem:[%s9760_s30 + $0x8] sm:$0xff]  ;;  %vm848_vm0 = vcmask 523264  }
  0x5b   : > { %977 = vmatprep.mubr.bf16.mxu0 %v9578_v0  ;;  %1330 = vmatprep.mubr.bf16.mxu1 %v9578_v0  ;;  %v312_v2 = vld [vmem:[%s9760_s30 + $0x40] sm:$0xff]  ;;  %v313_v5 = vld [vmem:[%s9760_s30 + $0x48] sm:$0xff]  ;;  %v306_v28 = vld [vmem:[%s9760_s30 + $0x10] sm:$0xff]  ;;  %s8094_s11 = sshll.u32 %s9756_s9, 13  ;;  %s9221_s6 = sshll.u32 %s9564_s15, 17 }
  0x5c   : > { %v8128_v4 = vcombine.high %v304_v1, %v312_v2  ;;  %v8127_v6 = vcombine.low %v304_v1, %v312_v2  ;;  %v320_v7 = vld [vmem:[%s9760_s30 + $0x80] sm:$0xff]  ;;  %v8130_v9 = vcombine.high %v305_v3, %v313_v5  ;;  %v8129_v10 = vcombine.low %v305_v3, %v313_v5  ;;  %v321_v12 = vld [vmem:[%s9760_s30 + $0x88] sm:$0xff]  ;;  %v314_v31 = vld [vmem:[%s9760_s30 + $0x50] sm:$0xff]  ;;  %s10045_s7 = scalar_lea.vmem [#allocation7], %s8094_s11  ;;  %s13162_s27 = scalar_lea.hbm %s13220_s3, %s9221_s6 }
  0x5d   : > { %v328_v8 = vld [vmem:[%s9760_s30 + $0xc0] sm:$0xff]  ;;  %v329_v13 = vld [vmem:[%s9760_s30 + $0xc8] sm:$0xff]  ;;  %v307_v33 = vld [vmem:[%s9760_s30 + $0x18] sm:$0xff]  ;;  %v8132_v37 = vcombine.high %v306_v28, %v314_v31  ;;  %v8131_v41 = vcombine.low %v306_v28, %v314_v31  ;;  %s7973_s11 = sshll.u32 %s10045_s7, 4  ;;  %s7957_s8 = scalar_lea.sflag [#allocation4], %s9756_s9  ;;  %s13164_s11 = int_to_ptr.vmem [resolvable:$true] %s7973_s11 }
  0x5e   : > { %v8144_v11 = vcombine.high %v320_v7, %v328_v8  ;;  %v336_v14 = vld [vmem:[%s9760_s30 + $0x100] sm:$0xff]  ;;  %945 = vmatprep.subr.bf16.mxu0 %v8128_v4  ;;  %v8146_v15 = vcombine.high %v321_v12, %v329_v13  ;;  %v337_v17 = vld [vmem:[%s9760_s30 + $0x108] sm:$0xff]  ;;  %1298 = vmatprep.subr.bf16.mxu1 %v8130_v9  ;;  %v8143_v19 = vcombine.low %v320_v7, %v328_v8  ;;  %v315_v34 = vld [vmem:[%s9760_s30 + $0x58] sm:$0xff]  ;;  %s9486_s10 = scalar_lea.vmem %s13164_s11, 131072  ;;  %p13241_p10 = scmp.ne.s32.totalorder %s13230_s24, 0 }
  0x5f   : > { %v344_v16 = vld [vmem:[%s9760_s30 + $0x140] sm:$0xff]  ;;  %v345_v18 = vld [vmem:[%s9760_s30 + $0x148] sm:$0xff]  ;;  %946 = vmatpush1.bf16.msra.mxu0 %v8127_v6  ;;  %1299 = vmatpush1.bf16.msra.mxu1 %v8129_v10  ;;  %v8145_v20 = vcombine.low %v321_v12, %v329_v13  ;;  %v8134_v38 = vcombine.high %v307_v33, %v315_v34  ;;  %v322_v40 = vld [vmem:[%s9760_s30 + $0x90] sm:$0xff]  ;;  %v8133_v45 = vcombine.low %v307_v33, %v315_v34  ;;  %p9487_p5 = scmp.ne.s32.totalorder %s13164_s11, %s9486_s10  ;;  %s9579_s21 = smov [#allocation7]  }
  0x60   : > { %947 = vmatprep.subr.bf16.mxu0 %v8144_v11  ;;  %v8160_v21 = vcombine.high %v336_v14, %v344_v16  ;;  %1300 = vmatprep.subr.bf16.mxu1 %v8146_v15  ;;  %v8162_v22 = vcombine.high %v337_v17, %v345_v18  ;;  %v352_v23 = vld [vmem:[%s9760_s30 + $0x180] sm:$0xff]  ;;  %v353_v25 = vld [vmem:[%s9760_s30 + $0x188] sm:$0xff]  ;;  %v8159_v27 = vcombine.low %v336_v14, %v344_v16  ;;  %v330_v42 = vld [vmem:[%s9760_s30 + $0xd0] sm:$0xff]  ;;  %s9490_s23 = sshll.u32 %s9579_s21, 4  ;;  %s9491_s23 = int_to_ptr.vmem [resolvable:$false] %s9490_s23 }
  0x61   : > { %v360_v24 = vld [vmem:[%s9760_s30 + $0x1c0] sm:$0xff]  ;;  %v361_v26 = vld [vmem:[%s9760_s30 + $0x1c8] sm:$0xff]  ;;  %v8161_v29 = vcombine.low %v337_v17, %v345_v18  ;;  %v323_v43 = vld [vmem:[%s9760_s30 + $0x98] sm:$0xff]  ;;  %v8148_v46 = vcombine.high %v322_v40, %v330_v42  ;;  %v8147_v48 = vcombine.low %v322_v40, %v330_v42  ;;  %p9488_p11 = pnand %p9487_p5, %p13241_p10  ;;  %s9492_s26 = scalar_lea.vmem %s9491_s23, 262144 }
  0x62   : > { %v8176_v30 = vcombine.high %v352_v23, %v360_v24  ;;  %v8178_v32 = vcombine.high %v353_v25, %v361_v26  ;;  %v8175_v35 = vcombine.low %v352_v23, %v360_v24  ;;  %v8177_v36 = vcombine.low %v353_v25, %v361_v26  ;;  %v9795_v39 = vld [vmem:[%s13218_s1] sm:$0xff]   ;;  %v331_v44 = vld [vmem:[%s9760_s30 + $0xd8] sm:$0xff]  ;;  %v9301_v50 = vld [vmem:[%s13218_s1 + $0x8] sm:$0xff]   ;;  %p9493_p0 = scmp.lt.s32.totalorder %s13164_s11, %s9491_s23  ;;  %p9494_p9 = scmp.lt.s32.totalorder %s9492_s26, %s9486_s10 }
  0x63   : > { %948 = vmatpush1.bf16.msra.mxu0 %v8143_v19  ;;  %1301 = vmatpush1.bf16.msra.mxu1 %v8145_v20  ;;  %v8150_v47 = vcombine.high %v323_v43, %v331_v44  ;;  %v8149_v49 = vcombine.low %v323_v43, %v331_v44  ;;  %v338_v51 = vld [vmem:[%s9760_s30 + $0x110] sm:$0xff]  ;;  %v339_v53 = vld [vmem:[%s9760_s30 + $0x118] sm:$0xff]  ;;  %v9304_v61 = vld [vmem:[%s13218_s1 + $0x20] sm:$0xff]   ;;  %p9489_p1 = pneg %p9488_p11 }
  0x64   : > { %949 = vmatprep.subr.bf16.mxu0 %v8160_v21  ;;  %1302 = vmatprep.subr.bf16.mxu1 %v8162_v22  ;;  %v346_v52 = vld [vmem:[%s9760_s30 + $0x150] sm:$0xff]  ;;  %v347_v56 = vld [vmem:[%s9760_s30 + $0x158] sm:$0xff]  ;;  %v9305_v62 = vld [vmem:[%s13218_s1 + $0x28] sm:$0xff]   ;;  %p9495_p3 = por %p9494_p9, %p9493_p0 }
  0x65   : > { %v8163_v54 = vcombine.low %v338_v51, %v346_v52  ;;  %v8164_v55 = vcombine.high %v338_v51, %v346_v52  ;;  %v8165_v57 = vcombine.low %v339_v53, %v347_v56  ;;  %v8166_v58 = vcombine.high %v339_v53, %v347_v56  ;;  %v9302_v59 = vld [vmem:[%s13218_s1 + $0x10] sm:$0xff]   ;;  %v9303_v60 = vld [vmem:[%s13218_s1 + $0x18] sm:$0xff]   ;;  %v9308_v2 = vld [vmem:[%s13218_s1 + $0x40] sm:$0xff]  }
  0x66   : > { %v9306_v63 = vld [vmem:[%s13218_s1 + $0x30] sm:$0xff]   ;;  %v9307_v1 = vld [vmem:[%s13218_s1 + $0x38] sm:$0xff]   ;;  %v9309_v11 = vld [vmem:[%s13218_s1 + $0x48] sm:$0xff]   ;;  %p9496_p7 = pnand %p9495_p3, %p9489_p1 }
  0x67   : > { %950 = vmatpush1.bf16.msra.mxu0 %v8159_v27  ;;  %1303 = vmatpush1.bf16.msra.mxu1 %v8161_v29  ;;  %v354_v3 = vld [vmem:[%s9760_s30 + $0x190] sm:$0xff]  ;;  %v355_v5 = vld [vmem:[%s9760_s30 + $0x198] sm:$0xff]  ;;  %v9312_v14 = vld [vmem:[%s13218_s1 + $0x60] sm:$0xff]  }
  0x68   : > { %951 = vmatprep.subr.bf16.mxu0 %v8176_v30  ;;  %1304 = vmatprep.subr.bf16.mxu1 %v8178_v32  ;;  %v362_v4 = vld [vmem:[%s9760_s30 + $0x1d0] sm:$0xff]  ;;  %v363_v8 = vld [vmem:[%s9760_s30 + $0x1d8] sm:$0xff]  ;;  %v9313_v15 = vld [vmem:[%s13218_s1 + $0x68] sm:$0xff]  }
  0x69   : > { %v8179_v6 = vcombine.low %v354_v3, %v362_v4  ;;  %v8180_v7 = vcombine.high %v354_v3, %v362_v4  ;;  %v8181_v9 = vcombine.low %v355_v5, %v363_v8  ;;  %v8182_v10 = vcombine.high %v355_v5, %v363_v8  ;;  %v9310_v12 = vld [vmem:[%s13218_s1 + $0x50] sm:$0xff]   ;;  %v9311_v13 = vld [vmem:[%s13218_s1 + $0x58] sm:$0xff]   ;;  %v9316_v18 = vld [vmem:[%s13218_s1 + $0x80] sm:$0xff]  }
  0x6a   : > { %v9314_v16 = vld [vmem:[%s13218_s1 + $0x70] sm:$0xff]   ;;  %v9315_v17 = vld [vmem:[%s13218_s1 + $0x78] sm:$0xff]   ;;  %v9317_v19 = vld [vmem:[%s13218_s1 + $0x88] sm:$0xff]  }
  0x6b   : > { %952 = vmatpush1.bf16.msra.mxu0 %v8175_v35  ;;  %1305 = vmatpush1.bf16.msra.mxu1 %v8177_v36  ;;  %v9931_v20 = vld [vmem:[%s9760_s30 + $0x20] sm:$0xff]  ;;  %v9937_v22 = vld [vmem:[%s9760_s30 + $0x28] sm:$0xff]  ;;  %v9318_v28 = vld [vmem:[%s13218_s1 + $0x90] sm:$0xff]   ;;  %v4027_v36 = vlaneseq }
  0x6c   : > { %1651 = vmatprep.subr.bf16.mxu0 %v8132_v37  ;;  %2004 = vmatprep.subr.bf16.mxu1 %v8134_v38  ;;  %v9934_v21 = vld [vmem:[%s9760_s30 + $0x60] sm:$0xff]  ;;  %v9944_v25 = vld [vmem:[%s9760_s30 + $0x68] sm:$0xff]  ;;  %v9319_v29 = vld [vmem:[%s13218_s1 + $0x98] sm:$0xff]  }
  0x6d   : > { %v8135_v23 = vcombine.low %v9931_v20, %v9934_v21  ;;  %v8136_v24 = vcombine.high %v9931_v20, %v9934_v21  ;;  %v8137_v26 = vcombine.low %v9937_v22, %v9944_v25  ;;  %v8138_v27 = vcombine.high %v9937_v22, %v9944_v25  ;;  %v9320_v30 = vld [vmem:[%s13218_s1 + $0xa0] sm:$0xff]   ;;  %v9321_v31 = vld [vmem:[%s13218_s1 + $0xa8] sm:$0xff]   ;;  %v9322_v32 = vld [vmem:[%s13218_s1 + $0xb0] sm:$0xff]  }
  0x6e   : > { %8191 = vmatmul.mubr.msk.bf16.vlgmr.msra.gmra.mrb[0].mxu0 %vm848_vm0, %v9795_v39  ;;  %8223 = vmatmul.mubr.msk.bf16.vlgmr.msra.gmra.mrb[0].mxu1 %vm848_vm0, %v9795_v39  ;;  %v9323_v33 = vld [vmem:[%s13218_s1 + $0xb8] sm:$0xff]   ;;  %v9324_v34 = vld [vmem:[%s13218_s1 + $0xc0] sm:$0xff]   ;;  %v9325_v35 = vld [vmem:[%s13218_s1 + $0xc8] sm:$0xff]   ;;  %v4028_v37 = vshrl.u32 %v4027_v36, 7 }
  0x6f   : > { %1652 = vmatpush1.bf16.msra.mxu0 %v8131_v41  ;;  %2005 = vmatpush1.bf16.msra.mxu1 %v8133_v45  ;;  %v9326_v38 = vld [vmem:[%s13218_s1 + $0xd0] sm:$0xff]   ;;  %v3769_v41 = vld [vmem:[#allocation5] sm:$0xf]  ;;  %v9327_v53 = vld [vmem:[%s13218_s1 + $0xd8] sm:$0xff]  }
  0x70   : > { %987 = vmatprep.mubr.bf16.mxu0 %v9578_v0  ;;  %1340 = vmatprep.mubr.bf16.mxu1 %v9578_v0  ;;  %v10013_v40 = vsub.s32 0, %v4028_v37  ;;  %v10015_v42 = vsub.s32 2, %v4028_v37  ;;  %v10017_v43 = vsub.s32 1, %v4028_v37  ;;  %v10019_v44 = vsub.s32 3, %v4028_v37 }
  0x71   : > { %1653 = vmatprep.subr.bf16.mxu0 %v8148_v46  ;;  %2006 = vmatprep.subr.bf16.mxu1 %v8150_v47 }
  0x72   : > { %v10023_v45 = vrot.slane %v3769_v41, %v10013_v40  ;;  %v10028_v46 = vrot.slane %v3769_v41, %v10015_v42  ;;  %v10031_v47 = vrot.slane %v3769_v41, %v10017_v43 }
  0x73   : > { %1654 = vmatpush1.bf16.msra.mxu0 %v8147_v48  ;;  %2007 = vmatpush1.bf16.msra.mxu1 %v8149_v49  ;;  %v10035_v48 = vrot.slane %v3769_v41, %v10019_v44 }
  0x74   : > { %1655 = vmatprep.subr.bf16.mxu0 %v8164_v55  ;;  %2008 = vmatprep.subr.bf16.mxu1 %v8166_v58 }
  0x76   : > { %8192 = vmatmul.mubr.msk.bf16.gmra.mrb[4].mxu0 %vm848_vm0, %v9301_v50  ;;  %8224 = vmatmul.mubr.msk.bf16.gmra.mrb[4].mxu1 %vm848_vm0, %v9301_v50 }
  0x77   : > { %997 = vmatprep.mubr.bf16.mxu0 %v9578_v0  ;;  %1350 = vmatprep.mubr.bf16.mxu1 %v9578_v0 }
  0x78   : > { %1656 = vmatpush1.bf16.msra.mxu0 %v8163_v54  ;;  %2009 = vmatpush1.bf16.msra.mxu1 %v8165_v57 }
  0x79   : > { %1657 = vmatprep.subr.bf16.mxu0 %v8180_v7  ;;  %2010 = vmatprep.subr.bf16.mxu1 %v8182_v10 }
  0x7c   : > { %1658 = vmatpush1.bf16.msra.mxu0 %v8179_v6  ;;  %2011 = vmatpush1.bf16.msra.mxu1 %v8181_v9 }
  0x7d   : > { %2357 = vmatprep.subr.bf16.mxu0 %v8136_v24  ;;  %2710 = vmatprep.subr.bf16.mxu1 %v8138_v27 }
  0x7e   : > { %8193 = vmatmul.mubr.msk.bf16.gmra.mrb[8].mxu0 %vm848_vm0, %v9302_v59  ;;  %8225 = vmatmul.mubr.msk.bf16.gmra.mrb[8].mxu1 %vm848_vm0, %v9302_v59 }
  0x7f   : > { %1007 = vmatprep.mubr.bf16.mxu0 %v9578_v0  ;;  %1360 = vmatprep.mubr.bf16.mxu1 %v9578_v0 }
  0x86   : > { %8194 = vmatmul.mubr.msk.bf16.gmra.mrb[12].mxu0 %vm848_vm0, %v9303_v60  ;;  %8226 = vmatmul.mubr.msk.bf16.gmra.mrb[12].mxu1 %vm848_vm0, %v9303_v60 }
  0x87   : > { %1017 = vmatprep.mubr.bf16.mxu0 %v9578_v0  ;;  %1370 = vmatprep.mubr.bf16.mxu1 %v9578_v0 }
  0x8e   : > { %8195 = vmatmul.mubr.msk.bf16.gmra.mrb[16].mxu0 %vm848_vm0, %v9304_v61  ;;  %8227 = vmatmul.mubr.msk.bf16.gmra.mrb[16].mxu1 %vm848_vm0, %v9304_v61 }
  0x8f   : > { %1027 = vmatprep.mubr.bf16.mxu0 %v9578_v0  ;;  %1380 = vmatprep.mubr.bf16.mxu1 %v9578_v0 }
  0x96   : > { %8196 = vmatmul.mubr.msk.bf16.gmra.mrb[20].mxu0 %vm848_vm0, %v9305_v62  ;;  %8228 = vmatmul.mubr.msk.bf16.gmra.mrb[20].mxu1 %vm848_vm0, %v9305_v62 }
  0x97   : > { %1037 = vmatprep.mubr.bf16.mxu0 %v9578_v0  ;;  %1390 = vmatprep.mubr.bf16.mxu1 %v9578_v0 }
  0x9e   : > { %8197 = vmatmul.mubr.msk.bf16.gmra.mrb[24].mxu0 %vm848_vm0, %v9306_v63  ;;  %8229 = vmatmul.mubr.msk.bf16.gmra.mrb[24].mxu1 %vm848_vm0, %v9306_v63 }
  0x9f   : > { %1047 = vmatprep.mubr.bf16.mxu0 %v9578_v0  ;;  %1400 = vmatprep.mubr.bf16.mxu1 %v9578_v0 }
  0xa6   : > { %8198 = vmatmul.mubr.msk.bf16.gmra.mrb[28].mxu0 %vm848_vm0, %v9307_v1  ;;  %8230 = vmatmul.mubr.msk.bf16.gmra.mrb[28].mxu1 %vm848_vm0, %v9307_v1 }
  0xa7   : > { %1057 = vmatprep.mubr.bf16.mxu0 %v9578_v0  ;;  %1410 = vmatprep.mubr.bf16.mxu1 %v9578_v0 }
  0xae   : > { %8199 = vmatmul.mubr.msk.bf16.gmra.mrb[32].mxu0 %vm848_vm0, %v9308_v2  ;;  %8231 = vmatmul.mubr.msk.bf16.gmra.mrb[32].mxu1 %vm848_vm0, %v9308_v2 }
  0xaf   : > { %1067 = vmatprep.mubr.bf16.mxu0 %v9578_v0  ;;  %1420 = vmatprep.mubr.bf16.mxu1 %v9578_v0 }
  0xb6   : > { %8200 = vmatmul.mubr.msk.bf16.gmra.mrb[36].mxu0 %vm848_vm0, %v9309_v11  ;;  %8232 = vmatmul.mubr.msk.bf16.gmra.mrb[36].mxu1 %vm848_vm0, %v9309_v11 }
  0xb7   : > { %1077 = vmatprep.mubr.bf16.mxu0 %v9578_v0  ;;  %1430 = vmatprep.mubr.bf16.mxu1 %v9578_v0 }
  0xbe   : > { %8201 = vmatmul.mubr.msk.bf16.gmra.mrb[40].mxu0 %vm848_vm0, %v9310_v12  ;;  %8233 = vmatmul.mubr.msk.bf16.gmra.mrb[40].mxu1 %vm848_vm0, %v9310_v12 }
  0xbf   : > { %1087 = vmatprep.mubr.bf16.mxu0 %v9578_v0  ;;  %1440 = vmatprep.mubr.bf16.mxu1 %v9578_v0 }
  0xc6   : > { %8202 = vmatmul.mubr.msk.bf16.gmra.mrb[44].mxu0 %vm848_vm0, %v9311_v13  ;;  %8234 = vmatmul.mubr.msk.bf16.gmra.mrb[44].mxu1 %vm848_vm0, %v9311_v13 }
  0xc7   : > { %1097 = vmatprep.mubr.bf16.mxu0 %v9578_v0  ;;  %1450 = vmatprep.mubr.bf16.mxu1 %v9578_v0 }
  0xce   : > { %8203 = vmatmul.mubr.msk.bf16.gmra.mrb[48].mxu0 %vm848_vm0, %v9312_v14  ;;  %8235 = vmatmul.mubr.msk.bf16.gmra.mrb[48].mxu1 %vm848_vm0, %v9312_v14 }
  0xcf   : > { %1107 = vmatprep.mubr.bf16.mxu0 %v9578_v0  ;;  %1460 = vmatprep.mubr.bf16.mxu1 %v9578_v0 }
  0xd6   : > { %8204 = vmatmul.mubr.msk.bf16.gmra.mrb[52].mxu0 %vm848_vm0, %v9313_v15  ;;  %8236 = vmatmul.mubr.msk.bf16.gmra.mrb[52].mxu1 %vm848_vm0, %v9313_v15  ;;  %v9328_v15 = vld [vmem:[%s13218_s1 + $0xe0] sm:$0xff]  }
  0xd7   : > { %1117 = vmatprep.mubr.bf16.mxu0 %v9578_v0  ;;  %1470 = vmatprep.mubr.bf16.mxu1 %v9578_v0 }
  0xde   : > { %8205 = vmatmul.mubr.msk.bf16.gmra.mrb[56].mxu0 %vm848_vm0, %v9314_v16  ;;  %8237 = vmatmul.mubr.msk.bf16.gmra.mrb[56].mxu1 %vm848_vm0, %v9314_v16 }
  0xdf   : > { %1127 = vmatprep.mubr.bf16.mxu0 %v9578_v0  ;;  %1480 = vmatprep.mubr.bf16.mxu1 %v9578_v0 }
  0xe6   : > { %8206 = vmatmul.mubr.msk.bf16.gmra.mrb[60].mxu0 %vm848_vm0, %v9315_v17  ;;  %8238 = vmatmul.mubr.msk.bf16.gmra.mrb[60].mxu1 %vm848_vm0, %v9315_v17 }
  0xe7   : > { %1137 = vmatprep.mubr.bf16.mxu0 %v9578_v0  ;;  %1490 = vmatprep.mubr.bf16.mxu1 %v9578_v0 }
  0xee   : > { %8207 = vmatmul.mubr.msk.bf16.gmra.mrb[64].mxu0 %vm848_vm0, %v9316_v18  ;;  %8239 = vmatmul.mubr.msk.bf16.gmra.mrb[64].mxu1 %vm848_vm0, %v9316_v18 }
  0xef   : > { %1147 = vmatprep.mubr.bf16.mxu0 %v9578_v0  ;;  %1500 = vmatprep.mubr.bf16.mxu1 %v9578_v0 }
  0xf6   : > { %8208 = vmatmul.mubr.msk.bf16.gmra.mrb[68].mxu0 %vm848_vm0, %v9317_v19  ;;  %8240 = vmatmul.mubr.msk.bf16.gmra.mrb[68].mxu1 %vm848_vm0, %v9317_v19 }
  0xf7   : > { %1157 = vmatprep.mubr.bf16.mxu0 %v9578_v0  ;;  %1510 = vmatprep.mubr.bf16.mxu1 %v9578_v0 }
  0xfe   : > { %8209 = vmatmul.mubr.msk.bf16.gmra.mrb[72].mxu0 %vm848_vm0, %v9318_v28  ;;  %8241 = vmatmul.mubr.msk.bf16.gmra.mrb[72].mxu1 %vm848_vm0, %v9318_v28 }
  0xff   : > { %1167 = vmatprep.mubr.bf16.mxu0 %v9578_v0  ;;  %1520 = vmatprep.mubr.bf16.mxu1 %v9578_v0 }
 0x106   : > { %8210 = vmatmul.mubr.msk.bf16.gmra.mrb[76].mxu0 %vm848_vm0, %v9319_v29  ;;  %8242 = vmatmul.mubr.msk.bf16.gmra.mrb[76].mxu1 %vm848_vm0, %v9319_v29 }
 0x107   : > { %1177 = vmatprep.mubr.bf16.mxu0 %v9578_v0  ;;  %1530 = vmatprep.mubr.bf16.mxu1 %v9578_v0 }
 0x10e   : > { %8211 = vmatmul.mubr.msk.bf16.gmra.mrb[80].mxu0 %vm848_vm0, %v9320_v30  ;;  %8243 = vmatmul.mubr.msk.bf16.gmra.mrb[80].mxu1 %vm848_vm0, %v9320_v30 }
 0x10f   : > { %1187 = vmatprep.mubr.bf16.mxu0 %v9578_v0  ;;  %1540 = vmatprep.mubr.bf16.mxu1 %v9578_v0 }
 0x116   : > { %8212 = vmatmul.mubr.msk.bf16.gmra.mrb[84].mxu0 %vm848_vm0, %v9321_v31  ;;  %8244 = vmatmul.mubr.msk.bf16.gmra.mrb[84].mxu1 %vm848_vm0, %v9321_v31 }
 0x117   : > { %1197 = vmatprep.mubr.bf16.mxu0 %v9578_v0  ;;  %1550 = vmatprep.mubr.bf16.mxu1 %v9578_v0 }
 0x11e   : > { %8213 = vmatmul.mubr.msk.bf16.gmra.mrb[88].mxu0 %vm848_vm0, %v9322_v32  ;;  %8245 = vmatmul.mubr.msk.bf16.gmra.mrb[88].mxu1 %vm848_vm0, %v9322_v32 }
 0x11f   : > { %1207 = vmatprep.mubr.bf16.mxu0 %v9578_v0  ;;  %1560 = vmatprep.mubr.bf16.mxu1 %v9578_v0 }
 0x126   : > { %8214 = vmatmul.mubr.msk.bf16.gmra.mrb[92].mxu0 %vm848_vm0, %v9323_v33  ;;  %8246 = vmatmul.mubr.msk.bf16.gmra.mrb[92].mxu1 %vm848_vm0, %v9323_v33 }
 0x127   : > { %1217 = vmatprep.mubr.bf16.mxu0 %v9578_v0  ;;  %1570 = vmatprep.mubr.bf16.mxu1 %v9578_v0 }
 0x12e   : > { %8215 = vmatmul.mubr.msk.bf16.gmra.mrb[96].mxu0 %vm848_vm0, %v9324_v34  ;;  %8247 = vmatmul.mubr.msk.bf16.gmra.mrb[96].mxu1 %vm848_vm0, %v9324_v34 }
 0x12f   : > { %1227 = vmatprep.mubr.bf16.mxu0 %v9578_v0  ;;  %1580 = vmatprep.mubr.bf16.mxu1 %v9578_v0 }
 0x136   : > { %8216 = vmatmul.mubr.msk.bf16.gmra.mrb[100].mxu0 %vm848_vm0, %v9325_v35  ;;  %8248 = vmatmul.mubr.msk.bf16.gmra.mrb[100].mxu1 %vm848_vm0, %v9325_v35 }
 0x137   : > { %1237 = vmatprep.mubr.bf16.mxu0 %v9578_v0  ;;  %1590 = vmatprep.mubr.bf16.mxu1 %v9578_v0 }
 0x13e   : > { %8217 = vmatmul.mubr.msk.bf16.gmra.mrb[104].mxu0 %vm848_vm0, %v9326_v38  ;;  %8249 = vmatmul.mubr.msk.bf16.gmra.mrb[104].mxu1 %vm848_vm0, %v9326_v38 }
 0x13f   : > { %1247 = vmatprep.mubr.bf16.mxu0 %v9578_v0  ;;  %1600 = vmatprep.mubr.bf16.mxu1 %v9578_v0 }
 0x141   : > { %v979_v49 = vpop.f32.mrb[0].mxu0  ;;  %v1332_v51 = vpop.f32.mrb[0].mxu1 }
 0x142   : > { %vm3770_vm1 = vcmp.ge.f32.partialorder %v979_v49, 0.0  ;;  %v4047_v50 = vmul.f32 %v10023_v45, %v979_v49  ;;  %v981_v52 = vpop.f32.mrb[1].mxu0  ;;  %vm3772_vm2 = vcmp.ge.f32.partialorder %v1332_v51, 0.0  ;;  %v4049_v54 = vmul.f32 %v10028_v46, %v1332_v51  ;;  %v1334_v56 = vpop.f32.mrb[1].mxu1 }
 0x143   : > { %vm3771_vm3 = vcmp.ge.f32.partialorder %v981_v52, 0.0  ;;  %v4048_v55 = vmul.f32 %v10031_v47, %v981_v52  ;;  %v983_v57 = vpop.f32.mrb[2].mxu0  ;;  %vm3773_vm4 = vcmp.ge.f32.partialorder %v1334_v56, 0.0  ;;  %v4050_v59 = vmul.f32 %v10035_v48, %v1334_v56  ;;  %v1336_v60 = vpop.f32.mrb[2].mxu1 }
 0x144   : > { %v4303_v58 = vsel %vm3770_vm1, %v979_v49, %v4047_v50  ;;  %vm3774_vm5 = vcmp.ge.f32.partialorder %v983_v57, 0.0  ;;  %v985_v61 = vpop.f32.mrb[3].mxu0  ;;  %v4305_v62 = vsel %vm3772_vm2, %v1332_v51, %v4049_v54  ;;  %v4051_v1 = vmul.f32 %v10023_v45, %v983_v57  ;;  %v1338_v2 = vpop.f32.mrb[3].mxu1 }
 0x145   : > { %4559 = vst [vmem:[%s10045_s7] sm:$0xff] %v4303_v58  ;;  %v4304_v63 = vsel %vm3771_vm3, %v981_v52, %v4048_v55  ;;  %vm3776_vm6 = vcmp.ge.f32.partialorder %v1336_v60, 0.0  ;;  %4561 = vst [vmem:[%s10045_s7 + $0x10] sm:$0xff] %v4305_v62  ;;  %v4306_v3 = vsel %vm3773_vm4, %v1334_v56, %v4050_v59  ;;  %v4053_v4 = vmul.f32 %v10028_v46, %v1336_v60  ;;  %v9329_v55 = vld [vmem:[%s13218_s1 + $0xe8] sm:$0xff]  }
 0x146   : > { %4560 = vst [vmem:[%s10045_s7 + $0x8] sm:$0xff] %v4304_v63  ;;  %vm3775_vm7 = vcmp.ge.f32.partialorder %v985_v61, 0.0  ;;  %v4052_v5 = vmul.f32 %v10031_v47, %v985_v61  ;;  %8218 = vmatmul.mubr.msk.bf16.gmra.mrb[108].mxu0 %vm848_vm0, %v9327_v53  ;;  %4562 = vst [vmem:[%s10045_s7 + $0x18] sm:$0xff] %v4306_v3  ;;  %v4307_v6 = vsel %vm3774_vm5, %v983_v57, %v4051_v1  ;;  %vm3777_vm8 = vcmp.ge.f32.partialorder %v1338_v2, 0.0 }
 0x147   : > { %v4054_v7 = vmul.f32 %v10035_v48, %v1338_v2  ;;  %8250 = vmatmul.mubr.msk.bf16.gmra.mrb[108].mxu1 %vm848_vm0, %v9327_v53  ;;  %1257 = vmatprep.mubr.bf16.mxu0 %v9578_v0  ;;  %4563 = vst [vmem:[%s10045_s7 + $0x20] sm:$0xff] %v4307_v6  ;;  %v4309_v8 = vsel %vm3776_vm6, %v1336_v60, %v4053_v4 }
 0x148   : > { %v4308_v9 = vsel %vm3775_vm7, %v985_v61, %v4052_v5  ;;  %1610 = vmatprep.mubr.bf16.mxu1 %v9578_v0  ;;  %4565 = vst [vmem:[%s10045_s7 + $0x30] sm:$0xff] %v4309_v8 }
 0x149   : > { %4564 = vst [vmem:[%s10045_s7 + $0x28] sm:$0xff] %v4308_v9  ;;  %v4310_v10 = vsel %vm3777_vm8, %v1338_v2, %v4054_v7  ;;  %v989_v11 = vpop.f32.mrb[4].mxu0  ;;  %v1342_v13 = vpop.f32.mrb[4].mxu1 }
 0x14a   : > { %4566 = vst [vmem:[%s10045_s7 + $0x38] sm:$0xff] %v4310_v10  ;;  %vm3778_vm9 = vcmp.ge.f32.partialorder %v989_v11, 0.0  ;;  %v4055_v12 = vmul.f32 %v10023_v45, %v989_v11  ;;  %v991_v14 = vpop.f32.mrb[5].mxu0  ;;  %vm3780_vm10 = vcmp.ge.f32.partialorder %v1342_v13, 0.0  ;;  %v4057_v16 = vmul.f32 %v10028_v46, %v1342_v13  ;;  %v1344_v18 = vpop.f32.mrb[5].mxu1 }
 0x14b   : > { %vm3779_vm11 = vcmp.ge.f32.partialorder %v991_v14, 0.0  ;;  %v4056_v17 = vmul.f32 %v10031_v47, %v991_v14  ;;  %v993_v19 = vpop.f32.mrb[6].mxu0  ;;  %vm3781_vm12 = vcmp.ge.f32.partialorder %v1344_v18, 0.0  ;;  %v4058_v27 = vmul.f32 %v10035_v48, %v1344_v18  ;;  %v1346_v28 = vpop.f32.mrb[6].mxu1 }
 0x14c   : > { %v4311_v24 = vsel %vm3778_vm9, %v989_v11, %v4055_v12  ;;  %vm3782_vm13 = vcmp.ge.f32.partialorder %v993_v19, 0.0  ;;  %v995_v29 = vpop.f32.mrb[7].mxu0  ;;  %v4313_v30 = vsel %vm3780_vm10, %v1342_v13, %v4057_v16  ;;  %v4059_v32 = vmul.f32 %v10023_v45, %v993_v19  ;;  %v1348_v33 = vpop.f32.mrb[7].mxu1 }
 0x14d   : > { %4567 = vst [vmem:[%s10045_s7 + $0x40] sm:$0xff] %v4311_v24  ;;  %v4312_v31 = vsel %vm3779_vm11, %v991_v14, %v4056_v17  ;;  %vm3784_vm14 = vcmp.ge.f32.partialorder %v1346_v28, 0.0  ;;  %4569 = vst [vmem:[%s10045_s7 + $0x50] sm:$0xff] %v4313_v30  ;;  %v4314_v34 = vsel %vm3781_vm12, %v1344_v18, %v4058_v27  ;;  %v4061_v35 = vmul.f32 %v10028_v46, %v1346_v28  ;;  %v9330_v17 = vld [vmem:[%s13218_s1 + $0xf0] sm:$0xff]  }
 0x14e   : > { %4568 = vst [vmem:[%s10045_s7 + $0x48] sm:$0xff] %v4312_v31  ;;  %vm3783_vm15 = vcmp.ge.f32.partialorder %v995_v29, 0.0  ;;  %v4060_v36 = vmul.f32 %v10031_v47, %v995_v29  ;;  %8219 = vmatmul.mubr.msk.bf16.gmra.mrb[112].mxu0 %vm848_vm0, %v9328_v15  ;;  %4570 = vst [vmem:[%s10045_s7 + $0x58] sm:$0xff] %v4314_v34  ;;  %v4315_v37 = vsel %vm3782_vm13, %v993_v19, %v4059_v32  ;;  %vm3785_vm1 = vcmp.ge.f32.partialorder %v1348_v33, 0.0 }
 0x14f   : > { %v4062_v38 = vmul.f32 %v10035_v48, %v1348_v33  ;;  %8251 = vmatmul.mubr.msk.bf16.gmra.mrb[112].mxu1 %vm848_vm0, %v9328_v15  ;;  %1267 = vmatprep.mubr.bf16.mxu0 %v9578_v0  ;;  %4571 = vst [vmem:[%s10045_s7 + $0x60] sm:$0xff] %v4315_v37  ;;  %v4317_v41 = vsel %vm3784_vm14, %v1346_v28, %v4061_v35 }
 0x150   : > { %v4316_v49 = vsel %vm3783_vm15, %v995_v29, %v4060_v36  ;;  %1620 = vmatprep.mubr.bf16.mxu1 %v9578_v0  ;;  %4573 = vst [vmem:[%s10045_s7 + $0x70] sm:$0xff] %v4317_v41 }
 0x151   : > { %4572 = vst [vmem:[%s10045_s7 + $0x68] sm:$0xff] %v4316_v49  ;;  %v4318_v50 = vsel %vm3785_vm1, %v1348_v33, %v4062_v38  ;;  %v999_v51 = vpop.f32.mrb[8].mxu0  ;;  %v1352_v53 = vpop.f32.mrb[8].mxu1 }
 0x152   : > { %4574 = vst [vmem:[%s10045_s7 + $0x78] sm:$0xff] %v4318_v50  ;;  %vm3786_vm2 = vcmp.ge.f32.partialorder %v999_v51, 0.0  ;;  %v4063_v52 = vmul.f32 %v10023_v45, %v999_v51  ;;  %v1001_v54 = vpop.f32.mrb[9].mxu0  ;;  %vm3788_vm3 = vcmp.ge.f32.partialorder %v1352_v53, 0.0  ;;  %v4065_v56 = vmul.f32 %v10028_v46, %v1352_v53  ;;  %v1354_v58 = vpop.f32.mrb[9].mxu1 }
 0x153   : > { %vm3787_vm4 = vcmp.ge.f32.partialorder %v1001_v54, 0.0  ;;  %v4064_v57 = vmul.f32 %v10031_v47, %v1001_v54  ;;  %v1003_v59 = vpop.f32.mrb[10].mxu0  ;;  %vm3789_vm5 = vcmp.ge.f32.partialorder %v1354_v58, 0.0  ;;  %v4066_v61 = vmul.f32 %v10035_v48, %v1354_v58  ;;  %v1356_v62 = vpop.f32.mrb[10].mxu1 }
 0x154   : > { %v4319_v60 = vsel %vm3786_vm2, %v999_v51, %v4063_v52  ;;  %vm3790_vm6 = vcmp.ge.f32.partialorder %v1003_v59, 0.0  ;;  %v1005_v63 = vpop.f32.mrb[11].mxu0  ;;  %v4321_v1 = vsel %vm3788_vm3, %v1352_v53, %v4065_v56  ;;  %v4067_v3 = vmul.f32 %v10023_v45, %v1003_v59  ;;  %v1358_v4 = vpop.f32.mrb[11].mxu1 }
 0x155   : > { %4575 = vst [vmem:[%s10045_s7 + $0x80] sm:$0xff] %v4319_v60  ;;  %v4320_v2 = vsel %vm3787_vm4, %v1001_v54, %v4064_v57  ;;  %vm3792_vm7 = vcmp.ge.f32.partialorder %v1356_v62, 0.0  ;;  %4577 = vst [vmem:[%s10045_s7 + $0x90] sm:$0xff] %v4321_v1  ;;  %v4322_v5 = vsel %vm3789_vm5, %v1354_v58, %v4066_v61  ;;  %v4069_v6 = vmul.f32 %v10028_v46, %v1356_v62  ;;  %v9331_v57 = vld [vmem:[%s13218_s1 + $0xf8] sm:$0xff]  }
 0x156   : > { %4576 = vst [vmem:[%s10045_s7 + $0x88] sm:$0xff] %v4320_v2  ;;  %vm3791_vm8 = vcmp.ge.f32.partialorder %v1005_v63, 0.0  ;;  %v4068_v7 = vmul.f32 %v10031_v47, %v1005_v63  ;;  %8220 = vmatmul.mubr.msk.bf16.gmra.mrb[116].mxu0 %vm848_vm0, %v9329_v55  ;;  %4578 = vst [vmem:[%s10045_s7 + $0x98] sm:$0xff] %v4322_v5  ;;  %v4323_v8 = vsel %vm3790_vm6, %v1003_v59, %v4067_v3  ;;  %vm3793_vm9 = vcmp.ge.f32.partialorder %v1358_v4, 0.0 }
 0x157   : > { %v4070_v9 = vmul.f32 %v10035_v48, %v1358_v4  ;;  %8252 = vmatmul.mubr.msk.bf16.gmra.mrb[116].mxu1 %vm848_vm0, %v9329_v55  ;;  %1277 = vmatprep.mubr.bf16.mxu0 %v9578_v0  ;;  %4579 = vst [vmem:[%s10045_s7 + $0xa0] sm:$0xff] %v4323_v8  ;;  %v4325_v10 = vsel %vm3792_vm7, %v1356_v62, %v4069_v6 }
 0x158   : > { %v4324_v11 = vsel %vm3791_vm8, %v1005_v63, %v4068_v7  ;;  %1630 = vmatprep.mubr.bf16.mxu1 %v9578_v0  ;;  %4581 = vst [vmem:[%s10045_s7 + $0xb0] sm:$0xff] %v4325_v10  ;;  %v10155_v10 = vld [vmem:[%s9760_s30 + $0xa0] sm:$0xff] }
 0x159   : > { %4580 = vst [vmem:[%s10045_s7 + $0xa8] sm:$0xff] %v4324_v11  ;;  %v4326_v12 = vsel %vm3793_vm9, %v1358_v4, %v4070_v9  ;;  %v1009_v13 = vpop.f32.mrb[12].mxu0  ;;  %v1362_v15 = vpop.f32.mrb[12].mxu1 }
 0x15a   : > { %4582 = vst [vmem:[%s10045_s7 + $0xb8] sm:$0xff] %v4326_v12  ;;  %vm3794_vm10 = vcmp.ge.f32.partialorder %v1009_v13, 0.0  ;;  %v4071_v14 = vmul.f32 %v10023_v45, %v1009_v13  ;;  %v1011_v16 = vpop.f32.mrb[13].mxu0  ;;  %vm3796_vm11 = vcmp.ge.f32.partialorder %v1362_v15, 0.0  ;;  %v4073_v18 = vmul.f32 %v10028_v46, %v1362_v15  ;;  %v1364_v24 = vpop.f32.mrb[13].mxu1 }
 0x15b   : > { %vm3795_vm12 = vcmp.ge.f32.partialorder %v1011_v16, 0.0  ;;  %v4072_v19 = vmul.f32 %v10031_v47, %v1011_v16  ;;  %v1013_v27 = vpop.f32.mrb[14].mxu0  ;;  %vm3797_vm13 = vcmp.ge.f32.partialorder %v1364_v24, 0.0  ;;  %v4074_v29 = vmul.f32 %v10035_v48, %v1364_v24  ;;  %v1366_v30 = vpop.f32.mrb[14].mxu1 }
 0x15c   : > { %v4327_v28 = vsel %vm3794_vm10, %v1009_v13, %v4071_v14  ;;  %vm3798_vm14 = vcmp.ge.f32.partialorder %v1013_v27, 0.0  ;;  %v1015_v31 = vpop.f32.mrb[15].mxu0  ;;  %v4329_v32 = vsel %vm3796_vm11, %v1362_v15, %v4073_v18  ;;  %v4075_v34 = vmul.f32 %v10023_v45, %v1013_v27  ;;  %v1368_v35 = vpop.f32.mrb[15].mxu1  ;;  %v10163_v13 = vld [vmem:[%s9760_s30 + $0xe0] sm:$0xff]  ;;  %v10166_v14 = vld [vmem:[%s9760_s30 + $0xa8] sm:$0xff] }
 0x15d   : > { %4583 = vst [vmem:[%s10045_s7 + $0xc0] sm:$0xff] %v4327_v28  ;;  %v4328_v33 = vsel %vm3795_vm12, %v1011_v16, %v4072_v19  ;;  %vm3800_vm15 = vcmp.ge.f32.partialorder %v1366_v30, 0.0  ;;  %4585 = vst [vmem:[%s10045_s7 + $0xd0] sm:$0xff] %v4329_v32  ;;  %v4330_v36 = vsel %vm3797_vm13, %v1364_v24, %v4074_v29  ;;  %v4077_v37 = vmul.f32 %v10028_v46, %v1366_v30  ;;  %v10169_v15 = vld [vmem:[%s9760_s30 + $0xe8] sm:$0xff] }
 0x15e   : > { %4584 = vst [vmem:[%s10045_s7 + $0xc8] sm:$0xff] %v4328_v33  ;;  %vm3799_vm1 = vcmp.ge.f32.partialorder %v1015_v31, 0.0  ;;  %v4076_v38 = vmul.f32 %v10031_v47, %v1015_v31  ;;  %8221 = vmatmul.mubr.msk.bf16.gmra.mrb[120].mxu0 %vm848_vm0, %v9330_v17  ;;  %4586 = vst [vmem:[%s10045_s7 + $0xd8] sm:$0xff] %v4330_v36  ;;  %v4331_v41 = vsel %vm3798_vm14, %v1013_v27, %v4075_v34  ;;  %vm3801_vm2 = vcmp.ge.f32.partialorder %v1368_v35, 0.0 }
 0x15f   : > { %v4078_v49 = vmul.f32 %v10035_v48, %v1368_v35  ;;  %8253 = vmatmul.mubr.msk.bf16.gmra.mrb[120].mxu1 %vm848_vm0, %v9330_v17  ;;  %1287 = vmatprep.mubr.bf16.mxu0 %v9578_v0  ;;  %4587 = vst [vmem:[%s10045_s7 + $0xe0] sm:$0xff] %v4331_v41  ;;  %v4333_v50 = vsel %vm3800_vm15, %v1366_v30, %v4077_v37 }
 0x160   : > { %v4332_v51 = vsel %vm3799_vm1, %v1015_v31, %v4076_v38  ;;  %1640 = vmatprep.mubr.bf16.mxu1 %v9578_v0  ;;  %4589 = vst [vmem:[%s10045_s7 + $0xf0] sm:$0xff] %v4333_v50  ;;  %v8152_v29 = vcombine.high %v10155_v10, %v10163_v13  ;;  %v8154_v30 = vcombine.high %v10166_v14, %v10169_v15 }
 0x161   : > { %4588 = vst [vmem:[%s10045_s7 + $0xe8] sm:$0xff] %v4332_v51  ;;  %v4334_v52 = vsel %vm3801_vm2, %v1368_v35, %v4078_v49  ;;  %v1019_v53 = vpop.f32.mrb[16].mxu0  ;;  %v1372_v55 = vpop.f32.mrb[16].mxu1 }
 0x162   : > { %4590 = vst [vmem:[%s10045_s7 + $0xf8] sm:$0xff] %v4334_v52  ;;  %vm3802_vm3 = vcmp.ge.f32.partialorder %v1019_v53, 0.0  ;;  %v4079_v54 = vmul.f32 %v10023_v45, %v1019_v53  ;;  %v1021_v56 = vpop.f32.mrb[17].mxu0  ;;  %vm3804_vm4 = vcmp.ge.f32.partialorder %v1372_v55, 0.0  ;;  %v4081_v58 = vmul.f32 %v10028_v46, %v1372_v55  ;;  %v1374_v60 = vpop.f32.mrb[17].mxu1 }
 0x163   : > { %vm3803_vm5 = vcmp.ge.f32.partialorder %v1021_v56, 0.0  ;;  %v4080_v59 = vmul.f32 %v10031_v47, %v1021_v56  ;;  %v1023_v61 = vpop.f32.mrb[18].mxu0  ;;  %vm3805_vm6 = vcmp.ge.f32.partialorder %v1374_v60, 0.0  ;;  %v4082_v63 = vmul.f32 %v10035_v48, %v1374_v60  ;;  %v1376_v1 = vpop.f32.mrb[18].mxu1 }
 0x164   : > { %v4335_v62 = vsel %vm3802_vm3, %v1019_v53, %v4079_v54  ;;  %vm3806_vm7 = vcmp.ge.f32.partialorder %v1023_v61, 0.0  ;;  %v1025_v2 = vpop.f32.mrb[19].mxu0  ;;  %v4337_v3 = vsel %vm3804_vm4, %v1372_v55, %v4081_v58  ;;  %v4083_v5 = vmul.f32 %v10023_v45, %v1023_v61  ;;  %v1378_v6 = vpop.f32.mrb[19].mxu1 }
 0x165   : > { %4591 = vst [vmem:[%s10045_s7 + $0x100] sm:$0xff] %v4335_v62  ;;  %v4336_v4 = vsel %vm3803_vm5, %v1021_v56, %v4080_v59  ;;  %vm3808_vm8 = vcmp.ge.f32.partialorder %v1376_v1, 0.0  ;;  %4593 = vst [vmem:[%s10045_s7 + $0x110] sm:$0xff] %v4337_v3  ;;  %v4338_v7 = vsel %vm3805_vm6, %v1374_v60, %v4082_v63  ;;  %v4085_v8 = vmul.f32 %v10028_v46, %v1376_v1 }
 0x166   : > { %4592 = vst [vmem:[%s10045_s7 + $0x108] sm:$0xff] %v4336_v4  ;;  %vm3807_vm9 = vcmp.ge.f32.partialorder %v1025_v2, 0.0  ;;  %v4084_v9 = vmul.f32 %v10031_v47, %v1025_v2  ;;  %8222 = vmatmul.mubr.msk.bf16.gmra.mrb[124].mxu0 %vm848_vm0, %v9331_v57  ;;  %4594 = vst [vmem:[%s10045_s7 + $0x118] sm:$0xff] %v4338_v7  ;;  %v4339_v11 = vsel %vm3806_vm7, %v1023_v61, %v4083_v5  ;;  %vm3809_vm10 = vcmp.ge.f32.partialorder %v1378_v6, 0.0  ;;  %v340_v5 = vld [vmem:[%s9760_s30 + $0x120] sm:$0xff] }
 0x167   : > { %v4086_v12 = vmul.f32 %v10035_v48, %v1378_v6  ;;  %8254 = vmatmul.mubr.msk.bf16.gmra.mrb[124].mxu1 %vm848_vm0, %v9331_v57  ;;  %1683 = vmatprep.mubr.bf16.mxu0 %v9578_v0  ;;  %4595 = vst [vmem:[%s10045_s7 + $0x120] sm:$0xff] %v4339_v11  ;;  %v4341_v16 = vsel %vm3808_vm8, %v1376_v1, %v4085_v8  ;;  %v9332_v57 = vld [vmem:[%s13218_s1] sm:$0xff]   ;;  %v341_v11 = vld [vmem:[%s9760_s30 + $0x128] sm:$0xff] }
 0x168   : > { %v4340_v17 = vsel %vm3807_vm9, %v1025_v2, %v4084_v9  ;;  %2036 = vmatprep.mubr.bf16.mxu1 %v9578_v0  ;;  %4597 = vst [vmem:[%s10045_s7 + $0x130] sm:$0xff] %v4341_v16  ;;  %v8153_v60 = vcombine.low %v10166_v14, %v10169_v15  ;;  %v9333_v16 = vld [vmem:[%s13218_s1 + $0x8] sm:$0xff]  }
 0x169   : > { %4596 = vst [vmem:[%s10045_s7 + $0x128] sm:$0xff] %v4340_v17  ;;  %v4342_v18 = vsel %vm3809_vm10, %v1378_v6, %v4086_v12  ;;  %v1029_v19 = vpop.f32.mrb[20].mxu0  ;;  %v1382_v27 = vpop.f32.mrb[20].mxu1  ;;  %v348_v6 = vld [vmem:[%s9760_s30 + $0x160] sm:$0xff]  ;;  %v349_v12 = vld [vmem:[%s9760_s30 + $0x168] sm:$0xff] }
 0x16a   : > { %4598 = vst [vmem:[%s10045_s7 + $0x138] sm:$0xff] %v4342_v18  ;;  %vm3810_vm11 = vcmp.ge.f32.partialorder %v1029_v19, 0.0  ;;  %v4087_v24 = vmul.f32 %v10023_v45, %v1029_v19  ;;  %v1031_v28 = vpop.f32.mrb[21].mxu0  ;;  %vm3812_vm12 = vcmp.ge.f32.partialorder %v1382_v27, 0.0  ;;  %v4089_v31 = vmul.f32 %v10028_v46, %v1382_v27  ;;  %v1384_v33 = vpop.f32.mrb[21].mxu1 }
 0x16b   : > { %vm3811_vm13 = vcmp.ge.f32.partialorder %v1031_v28, 0.0  ;;  %v4088_v32 = vmul.f32 %v10031_v47, %v1031_v28  ;;  %v1033_v34 = vpop.f32.mrb[22].mxu0  ;;  %vm3813_vm14 = vcmp.ge.f32.partialorder %v1384_v33, 0.0  ;;  %v4090_v36 = vmul.f32 %v10035_v48, %v1384_v33  ;;  %v1386_v37 = vpop.f32.mrb[22].mxu1 }
 0x16c   : > { %v4343_v35 = vsel %vm3810_vm11, %v1029_v19, %v4087_v24  ;;  %vm3814_vm15 = vcmp.ge.f32.partialorder %v1033_v34, 0.0  ;;  %v1035_v38 = vpop.f32.mrb[23].mxu0  ;;  %v4345_v41 = vsel %vm3812_vm12, %v1382_v27, %v4089_v31  ;;  %v4091_v50 = vmul.f32 %v10023_v45, %v1033_v34  ;;  %v1388_v51 = vpop.f32.mrb[23].mxu1 }
 0x16d   : > { %4599 = vst [vmem:[%s10045_s7 + $0x140] sm:$0xff] %v4343_v35  ;;  %v4344_v49 = vsel %vm3811_vm13, %v1031_v28, %v4088_v32  ;;  %vm3816_vm1 = vcmp.ge.f32.partialorder %v1386_v37, 0.0  ;;  %4601 = vst [vmem:[%s10045_s7 + $0x150] sm:$0xff] %v4345_v41  ;;  %v4346_v52 = vsel %vm3813_vm14, %v1384_v33, %v4090_v36  ;;  %v4093_v53 = vmul.f32 %v10028_v46, %v1386_v37 }
 0x16e   : > { %4600 = vst [vmem:[%s10045_s7 + $0x148] sm:$0xff] %v4344_v49  ;;  %vm3815_vm2 = vcmp.ge.f32.partialorder %v1035_v38, 0.0  ;;  %v4092_v54 = vmul.f32 %v10031_v47, %v1035_v38  ;;  %8255 = vmatmul.mubr.msk.bf16.vlgmr.msra.gmra.mrb[128].mxu0 %vm848_vm0, %v9795_v39  ;;  %4602 = vst [vmem:[%s10045_s7 + $0x158] sm:$0xff] %v4346_v52  ;;  %v4347_v55 = vsel %vm3814_vm15, %v1033_v34, %v4091_v50  ;;  %vm3817_vm3 = vcmp.ge.f32.partialorder %v1388_v51, 0.0 }
 0x16f   : > { %v4094_v56 = vmul.f32 %v10035_v48, %v1388_v51  ;;  %8287 = vmatmul.mubr.msk.bf16.vlgmr.msra.gmra.mrb[128].mxu1 %vm848_vm0, %v9332_v57  ;;  %2358 = vmatpush1.bf16.msra.mxu0 %v8135_v23  ;;  %v8151_v39 = vcombine.low %v10155_v10, %v10163_v13  ;;  %4603 = vst [vmem:[%s10045_s7 + $0x160] sm:$0xff] %v4347_v55 }
 0x170   : > { %v4349_v58 = vsel %vm3816_vm1, %v1386_v37, %v4093_v53  ;;  %v4348_v59 = vsel %vm3815_vm2, %v1035_v38, %v4092_v54  ;;  %2711 = vmatpush1.bf16.msra.mxu1 %v8137_v26  ;;  %1693 = vmatprep.mubr.bf16.mxu0 %v9578_v0  ;;  %v8167_v19 = vcombine.low %v340_v5, %v348_v6 }
 0x171   : > { %4605 = vst [vmem:[%s10045_s7 + $0x170] sm:$0xff] %v4349_v58  ;;  %4604 = vst [vmem:[%s10045_s7 + $0x168] sm:$0xff] %v4348_v59  ;;  %v4350_v20 = vsel %vm3817_vm3, %v1388_v51, %v4094_v56  ;;  %v1039_v21 = vpop.f32.mrb[24].mxu0  ;;  %2046 = vmatprep.mubr.bf16.mxu1 %v9578_v0  ;;  %2359 = vmatprep.subr.bf16.mxu0 %v8152_v29  ;;  %v1392_v61 = vpop.f32.mrb[24].mxu1  ;;  %v8168_v28 = vcombine.high %v340_v5, %v348_v6  ;;  %v9334_v59 = vld [vmem:[%s13218_s1 + $0x10] sm:$0xff]  }
 0x172   : > { %4606 = vst [vmem:[%s10045_s7 + $0x178] sm:$0xff] %v4350_v20  ;;  %vm3818_vm4 = vcmp.ge.f32.partialorder %v1039_v21, 0.0  ;;  %v4095_v23 = vmul.f32 %v10023_v45, %v1039_v21  ;;  %v1041_v62 = vpop.f32.mrb[25].mxu0  ;;  %2712 = vmatprep.subr.bf16.mxu1 %v8154_v30  ;;  %vm3820_vm5 = vcmp.ge.f32.partialorder %v1392_v61, 0.0  ;;  %v4097_v22 = vmul.f32 %v10028_v46, %v1392_v61  ;;  %v1394_v26 = vpop.f32.mrb[25].mxu1 }
 0x173   : > { %vm3819_vm6 = vcmp.ge.f32.partialorder %v1041_v62, 0.0  ;;  %v4096_v25 = vmul.f32 %v10031_v47, %v1041_v62  ;;  %v1043_v63 = vpop.f32.mrb[26].mxu0  ;;  %2360 = vmatpush1.bf16.msra.mxu0 %v8151_v39  ;;  %vm3821_vm7 = vcmp.ge.f32.partialorder %v1394_v26, 0.0  ;;  %v4098_v2 = vmul.f32 %v10035_v48, %v1394_v26  ;;  %v1396_v3 = vpop.f32.mrb[26].mxu1 }
 0x174   : > { %v4351_v1 = vsel %vm3818_vm4, %v1039_v21, %v4095_v23  ;;  %vm3822_vm8 = vcmp.ge.f32.partialorder %v1043_v63, 0.0  ;;  %v1045_v4 = vpop.f32.mrb[27].mxu0  ;;  %2713 = vmatpush1.bf16.msra.mxu1 %v8153_v60  ;;  %v4353_v7 = vsel %vm3820_vm5, %v1392_v61, %v4097_v22  ;;  %v4099_v9 = vmul.f32 %v10023_v45, %v1043_v63  ;;  %v1398_v10 = vpop.f32.mrb[27].mxu1  ;;  %2361 = vmatprep.subr.bf16.mxu0 %v8168_v28 }
 0x175   : > { %4607 = vst [vmem:[%s10045_s7 + $0x180] sm:$0xff] %v4351_v1  ;;  %v4352_v8 = vsel %vm3819_vm6, %v1041_v62, %v4096_v25  ;;  %vm3824_vm9 = vcmp.ge.f32.partialorder %v1396_v3, 0.0  ;;  %4609 = vst [vmem:[%s10045_s7 + $0x190] sm:$0xff] %v4353_v7  ;;  %v4354_v13 = vsel %vm3821_vm7, %v1394_v26, %v4098_v2  ;;  %v4101_v14 = vmul.f32 %v10028_v46, %v1396_v3 }
 0x176   : > { %4608 = vst [vmem:[%s10045_s7 + $0x188] sm:$0xff] %v4352_v8  ;;  %vm3823_vm10 = vcmp.ge.f32.partialorder %v1045_v4, 0.0  ;;  %v4100_v15 = vmul.f32 %v10031_v47, %v1045_v4  ;;  %8256 = vmatmul.mubr.msk.bf16.gmra.mrb[132].mxu0 %vm848_vm0, %v9333_v16  ;;  %4610 = vst [vmem:[%s10045_s7 + $0x198] sm:$0xff] %v4354_v13  ;;  %v4355_v17 = vsel %vm3822_vm8, %v1043_v63, %v4099_v9  ;;  %vm3825_vm11 = vcmp.ge.f32.partialorder %v1398_v10, 0.0 }
 0x177   : > { %v4102_v18 = vmul.f32 %v10035_v48, %v1398_v10  ;;  %8288 = vmatmul.mubr.msk.bf16.gmra.mrb[132].mxu1 %vm848_vm0, %v9333_v16  ;;  %1703 = vmatprep.mubr.bf16.mxu0 %v9578_v0  ;;  %4611 = vst [vmem:[%s10045_s7 + $0x1a0] sm:$0xff] %v4355_v17  ;;  %v4357_v24 = vsel %vm3824_vm9, %v1396_v3, %v4101_v14 }
 0x178   : > { %v4356_v27 = vsel %vm3823_vm10, %v1045_v4, %v4100_v15  ;;  %2056 = vmatprep.mubr.bf16.mxu1 %v9578_v0  ;;  %v8169_v29 = vcombine.low %v341_v11, %v349_v12  ;;  %4613 = vst [vmem:[%s10045_s7 + $0x1b0] sm:$0xff] %v4357_v24  ;;  %v8170_v32 = vcombine.high %v341_v11, %v349_v12  ;;  %v9335_v15 = vld [vmem:[%s13218_s1 + $0x18] sm:$0xff]  }
 0x179   : > { %4612 = vst [vmem:[%s10045_s7 + $0x1a8] sm:$0xff] %v4356_v27  ;;  %v4358_v30 = vsel %vm3825_vm11, %v1398_v10, %v4102_v18  ;;  %v1049_v31 = vpop.f32.mrb[28].mxu0  ;;  %v1402_v34 = vpop.f32.mrb[28].mxu1  ;;  %2362 = vmatpush1.bf16.msra.mxu0 %v8167_v19 }
 0x17a   : > { %4614 = vst [vmem:[%s10045_s7 + $0x1b8] sm:$0xff] %v4358_v30  ;;  %vm3826_vm12 = vcmp.ge.f32.partialorder %v1049_v31, 0.0  ;;  %v4103_v33 = vmul.f32 %v10023_v45, %v1049_v31  ;;  %v1051_v35 = vpop.f32.mrb[29].mxu0  ;;  %vm3828_vm13 = vcmp.ge.f32.partialorder %v1402_v34, 0.0  ;;  %v4105_v36 = vmul.f32 %v10028_v46, %v1402_v34  ;;  %v1404_v38 = vpop.f32.mrb[29].mxu1  ;;  %2714 = vmatprep.subr.bf16.mxu1 %v8170_v32 }
 0x17b   : > { %vm3827_vm14 = vcmp.ge.f32.partialorder %v1051_v35, 0.0  ;;  %v4104_v37 = vmul.f32 %v10031_v47, %v1051_v35  ;;  %v1053_v41 = vpop.f32.mrb[30].mxu0  ;;  %vm3829_vm15 = vcmp.ge.f32.partialorder %v1404_v38, 0.0  ;;  %v4106_v50 = vmul.f32 %v10035_v48, %v1404_v38  ;;  %v1406_v51 = vpop.f32.mrb[30].mxu1  ;;  %2715 = vmatpush1.bf16.msra.mxu1 %v8169_v29 }
 0x17c   : > { %v4359_v49 = vsel %vm3826_vm12, %v1049_v31, %v4103_v33  ;;  %vm3830_vm1 = vcmp.ge.f32.partialorder %v1053_v41, 0.0  ;;  %v1055_v52 = vpop.f32.mrb[31].mxu0  ;;  %v4361_v53 = vsel %vm3828_vm13, %v1402_v34, %v4105_v36  ;;  %v4107_v55 = vmul.f32 %v10023_v45, %v1053_v41  ;;  %v1408_v56 = vpop.f32.mrb[31].mxu1 }
 0x17d   : > { %4615 = vst [vmem:[%s10045_s7 + $0x1c0] sm:$0xff] %v4359_v49  ;;  %v4360_v54 = vsel %vm3827_vm14, %v1051_v35, %v4104_v37  ;;  %vm3832_vm2 = vcmp.ge.f32.partialorder %v1406_v51, 0.0  ;;  %4617 = vst [vmem:[%s10045_s7 + $0x1d0] sm:$0xff] %v4361_v53  ;;  %v4362_v57 = vsel %vm3829_vm15, %v1404_v38, %v4106_v50  ;;  %v4109_v39 = vmul.f32 %v10028_v46, %v1406_v51 }
 0x17e   : > { %4616 = vst [vmem:[%s10045_s7 + $0x1c8] sm:$0xff] %v4360_v54  ;;  %vm3831_vm3 = vcmp.ge.f32.partialorder %v1055_v52, 0.0  ;;  %v4108_v58 = vmul.f32 %v10031_v47, %v1055_v52  ;;  %8257 = vmatmul.mubr.msk.bf16.gmra.mrb[136].mxu0 %vm848_vm0, %v9334_v59  ;;  %4618 = vst [vmem:[%s10045_s7 + $0x1d8] sm:$0xff] %v4362_v57  ;;  %v4363_v60 = vsel %vm3830_vm1, %v1053_v41, %v4107_v55  ;;  %vm3833_vm4 = vcmp.ge.f32.partialorder %v1408_v56, 0.0  ;;  %v9336_v55 = vld [vmem:[%s13218_s1 + $0x20] sm:$0xff]  }
 0x17f   : > { %v4110_v20 = vmul.f32 %v10035_v48, %v1408_v56  ;;  %8289 = vmatmul.mubr.msk.bf16.gmra.mrb[136].mxu1 %vm848_vm0, %v9334_v59  ;;  %1713 = vmatprep.mubr.bf16.mxu0 %v9578_v0  ;;  %4619 = vst [vmem:[%s10045_s7 + $0x1e0] sm:$0xff] %v4363_v60  ;;  %v4365_v21 = vsel %vm3832_vm2, %v1406_v51, %v4109_v39 }
 0x180   : > { %v4364_v23 = vsel %vm3831_vm3, %v1055_v52, %v4108_v58  ;;  %2066 = vmatprep.mubr.bf16.mxu1 %v9578_v0  ;;  %4621 = vst [vmem:[%s10045_s7 + $0x1f0] sm:$0xff] %v4365_v21 }
 0x181   : > { %4620 = vst [vmem:[%s10045_s7 + $0x1e8] sm:$0xff] %v4364_v23  ;;  %v4366_v61 = vsel %vm3833_vm4, %v1408_v56, %v4110_v20  ;;  %v1059_v62 = vpop.f32.mrb[32].mxu0  ;;  %v1412_v25 = vpop.f32.mrb[32].mxu1 }
 0x182   : > { %4622 = vst [vmem:[%s10045_s7 + $0x1f8] sm:$0xff] %v4366_v61  ;;  %vm3834_vm5 = vcmp.ge.f32.partialorder %v1059_v62, 0.0  ;;  %v4111_v22 = vmul.f32 %v10023_v45, %v1059_v62  ;;  %v1061_v26 = vpop.f32.mrb[33].mxu0  ;;  %vm3836_vm6 = vcmp.ge.f32.partialorder %v1412_v25, 0.0  ;;  %v4113_v63 = vmul.f32 %v10028_v46, %v1412_v25  ;;  %v1414_v2 = vpop.f32.mrb[33].mxu1 }
 0x183   : > { %vm3835_vm7 = vcmp.ge.f32.partialorder %v1061_v26, 0.0  ;;  %v4112_v1 = vmul.f32 %v10031_v47, %v1061_v26  ;;  %v1063_v3 = vpop.f32.mrb[34].mxu0  ;;  %vm3837_vm8 = vcmp.ge.f32.partialorder %v1414_v2, 0.0  ;;  %v4114_v5 = vmul.f32 %v10035_v48, %v1414_v2  ;;  %v1416_v6 = vpop.f32.mrb[34].mxu1 }
 0x184   : > { %v4367_v4 = vsel %vm3834_vm5, %v1059_v62, %v4111_v22  ;;  %vm3838_vm9 = vcmp.ge.f32.partialorder %v1063_v3, 0.0  ;;  %v1065_v7 = vpop.f32.mrb[35].mxu0  ;;  %v4369_v8 = vsel %vm3836_vm6, %v1412_v25, %v4113_v63  ;;  %v4115_v10 = vmul.f32 %v10023_v45, %v1063_v3  ;;  %v1418_v11 = vpop.f32.mrb[35].mxu1 }
 0x185   : > { %4623 = vst [vmem:[%s10045_s7 + $0x200] sm:$0xff] %v4367_v4  ;;  %v4368_v9 = vsel %vm3835_vm7, %v1061_v26, %v4112_v1  ;;  %vm3840_vm10 = vcmp.ge.f32.partialorder %v1416_v6, 0.0  ;;  %4625 = vst [vmem:[%s10045_s7 + $0x210] sm:$0xff] %v4369_v8  ;;  %v4370_v12 = vsel %vm3837_vm8, %v1414_v2, %v4114_v5  ;;  %v4117_v13 = vmul.f32 %v10028_v46, %v1416_v6 }
 0x186   : > { %4624 = vst [vmem:[%s10045_s7 + $0x208] sm:$0xff] %v4368_v9  ;;  %vm3839_vm11 = vcmp.ge.f32.partialorder %v1065_v7, 0.0  ;;  %v4116_v14 = vmul.f32 %v10031_v47, %v1065_v7  ;;  %8258 = vmatmul.mubr.msk.bf16.gmra.mrb[140].mxu0 %vm848_vm0, %v9335_v15  ;;  %4626 = vst [vmem:[%s10045_s7 + $0x218] sm:$0xff] %v4370_v12  ;;  %v4371_v16 = vsel %vm3838_vm9, %v1063_v3, %v4115_v10  ;;  %vm3841_vm12 = vcmp.ge.f32.partialorder %v1418_v11, 0.0  ;;  %v9337_v10 = vld [vmem:[%s13218_s1 + $0x28] sm:$0xff]  }
 0x187   : > { %v4118_v17 = vmul.f32 %v10035_v48, %v1418_v11  ;;  %8290 = vmatmul.mubr.msk.bf16.gmra.mrb[140].mxu1 %vm848_vm0, %v9335_v15  ;;  %1723 = vmatprep.mubr.bf16.mxu0 %v9578_v0  ;;  %4627 = vst [vmem:[%s10045_s7 + $0x220] sm:$0xff] %v4371_v16  ;;  %v4373_v18 = vsel %vm3840_vm10, %v1416_v6, %v4117_v13 }
 0x188   : > { %v4372_v19 = vsel %vm3839_vm11, %v1065_v7, %v4116_v14  ;;  %2076 = vmatprep.mubr.bf16.mxu1 %v9578_v0  ;;  %4629 = vst [vmem:[%s10045_s7 + $0x230] sm:$0xff] %v4373_v18 }
 0x189   : > { %4628 = vst [vmem:[%s10045_s7 + $0x228] sm:$0xff] %v4372_v19  ;;  %v4374_v24 = vsel %vm3841_vm12, %v1418_v11, %v4118_v17  ;;  %v1069_v27 = vpop.f32.mrb[36].mxu0  ;;  %v1422_v29 = vpop.f32.mrb[36].mxu1 }
 0x18a   : > { %4630 = vst [vmem:[%s10045_s7 + $0x238] sm:$0xff] %v4374_v24  ;;  %vm3842_vm13 = vcmp.ge.f32.partialorder %v1069_v27, 0.0  ;;  %v4119_v28 = vmul.f32 %v10023_v45, %v1069_v27  ;;  %v1071_v30 = vpop.f32.mrb[37].mxu0  ;;  %vm3844_vm14 = vcmp.ge.f32.partialorder %v1422_v29, 0.0  ;;  %v4121_v31 = vmul.f32 %v10028_v46, %v1422_v29  ;;  %v1424_v33 = vpop.f32.mrb[37].mxu1 }
 0x18b   : > { %vm3843_vm15 = vcmp.ge.f32.partialorder %v1071_v30, 0.0  ;;  %v4120_v32 = vmul.f32 %v10031_v47, %v1071_v30  ;;  %v1073_v34 = vpop.f32.mrb[38].mxu0  ;;  %vm3845_vm1 = vcmp.ge.f32.partialorder %v1424_v33, 0.0  ;;  %v4122_v36 = vmul.f32 %v10035_v48, %v1424_v33  ;;  %v1426_v37 = vpop.f32.mrb[38].mxu1 }
 0x18c   : > { %v4375_v35 = vsel %vm3842_vm13, %v1069_v27, %v4119_v28  ;;  %vm3846_vm2 = vcmp.ge.f32.partialorder %v1073_v34, 0.0  ;;  %v1075_v38 = vpop.f32.mrb[39].mxu0  ;;  %v4377_v41 = vsel %vm3844_vm14, %v1422_v29, %v4121_v31  ;;  %v4123_v50 = vmul.f32 %v10023_v45, %v1073_v34  ;;  %v1428_v51 = vpop.f32.mrb[39].mxu1 }
 0x18d   : > { %4631 = vst [vmem:[%s10045_s7 + $0x240] sm:$0xff] %v4375_v35  ;;  %v4376_v49 = vsel %vm3843_vm15, %v1071_v30, %v4120_v32  ;;  %vm3848_vm3 = vcmp.ge.f32.partialorder %v1426_v37, 0.0  ;;  %4633 = vst [vmem:[%s10045_s7 + $0x250] sm:$0xff] %v4377_v41  ;;  %v4378_v52 = vsel %vm3845_vm1, %v1424_v33, %v4122_v36  ;;  %v4125_v53 = vmul.f32 %v10028_v46, %v1426_v37 }
 0x18e   : > { %4632 = vst [vmem:[%s10045_s7 + $0x248] sm:$0xff] %v4376_v49  ;;  %vm3847_vm4 = vcmp.ge.f32.partialorder %v1075_v38, 0.0  ;;  %v4124_v54 = vmul.f32 %v10031_v47, %v1075_v38  ;;  %8259 = vmatmul.mubr.msk.bf16.gmra.mrb[144].mxu0 %vm848_vm0, %v9336_v55  ;;  %4634 = vst [vmem:[%s10045_s7 + $0x258] sm:$0xff] %v4378_v52  ;;  %v4379_v56 = vsel %vm3846_vm2, %v1073_v34, %v4123_v50  ;;  %vm3849_vm5 = vcmp.ge.f32.partialorder %v1428_v51, 0.0  ;;  %v9338_v50 = vld [vmem:[%s13218_s1 + $0x30] sm:$0xff]  }
 0x18f   : > { %v4126_v57 = vmul.f32 %v10035_v48, %v1428_v51  ;;  %8291 = vmatmul.mubr.msk.bf16.gmra.mrb[144].mxu1 %vm848_vm0, %v9336_v55  ;;  %1733 = vmatprep.mubr.bf16.mxu0 %v9578_v0  ;;  %4635 = vst [vmem:[%s10045_s7 + $0x260] sm:$0xff] %v4379_v56  ;;  %v4381_v39 = vsel %vm3848_vm3, %v1426_v37, %v4125_v53 }
 0x190   : > { %v4380_v58 = vsel %vm3847_vm4, %v1075_v38, %v4124_v54  ;;  %2086 = vmatprep.mubr.bf16.mxu1 %v9578_v0  ;;  %4637 = vst [vmem:[%s10045_s7 + $0x270] sm:$0xff] %v4381_v39 }
 0x191   : > { %4636 = vst [vmem:[%s10045_s7 + $0x268] sm:$0xff] %v4380_v58  ;;  %v4382_v59 = vsel %vm3849_vm5, %v1428_v51, %v4126_v57  ;;  %v1079_v60 = vpop.f32.mrb[40].mxu0  ;;  %v1432_v21 = vpop.f32.mrb[40].mxu1 }
 0x192   : > { %4638 = vst [vmem:[%s10045_s7 + $0x278] sm:$0xff] %v4382_v59  ;;  %vm3850_vm6 = vcmp.ge.f32.partialorder %v1079_v60, 0.0  ;;  %v4127_v20 = vmul.f32 %v10023_v45, %v1079_v60  ;;  %v1081_v23 = vpop.f32.mrb[41].mxu0  ;;  %vm3852_vm7 = vcmp.ge.f32.partialorder %v1432_v21, 0.0  ;;  %v4129_v61 = vmul.f32 %v10028_v46, %v1432_v21  ;;  %v1434_v22 = vpop.f32.mrb[41].mxu1 }
 0x193   : > { %vm3851_vm8 = vcmp.ge.f32.partialorder %v1081_v23, 0.0  ;;  %v4128_v62 = vmul.f32 %v10031_v47, %v1081_v23  ;;  %v1083_v25 = vpop.f32.mrb[42].mxu0  ;;  %vm3853_vm9 = vcmp.ge.f32.partialorder %v1434_v22, 0.0  ;;  %v4130_v63 = vmul.f32 %v10035_v48, %v1434_v22  ;;  %v1436_v1 = vpop.f32.mrb[42].mxu1 }
 0x194   : > { %v4383_v26 = vsel %vm3850_vm6, %v1079_v60, %v4127_v20  ;;  %vm3854_vm10 = vcmp.ge.f32.partialorder %v1083_v25, 0.0  ;;  %v1085_v2 = vpop.f32.mrb[43].mxu0  ;;  %v4385_v3 = vsel %vm3852_vm7, %v1432_v21, %v4129_v61  ;;  %v4131_v5 = vmul.f32 %v10023_v45, %v1083_v25  ;;  %v1438_v6 = vpop.f32.mrb[43].mxu1 }
 0x195   : > { %4639 = vst [vmem:[%s10045_s7 + $0x280] sm:$0xff] %v4383_v26  ;;  %v4384_v4 = vsel %vm3851_vm8, %v1081_v23, %v4128_v62  ;;  %vm3856_vm11 = vcmp.ge.f32.partialorder %v1436_v1, 0.0  ;;  %4641 = vst [vmem:[%s10045_s7 + $0x290] sm:$0xff] %v4385_v3  ;;  %v4386_v7 = vsel %vm3853_vm9, %v1434_v22, %v4130_v63  ;;  %v4133_v8 = vmul.f32 %v10028_v46, %v1436_v1 }
 0x196   : > { %4640 = vst [vmem:[%s10045_s7 + $0x288] sm:$0xff] %v4384_v4  ;;  %vm3855_vm12 = vcmp.ge.f32.partialorder %v1085_v2, 0.0  ;;  %v4132_v9 = vmul.f32 %v10031_v47, %v1085_v2  ;;  %8260 = vmatmul.mubr.msk.bf16.gmra.mrb[148].mxu0 %vm848_vm0, %v9337_v10  ;;  %4642 = vst [vmem:[%s10045_s7 + $0x298] sm:$0xff] %v4386_v7  ;;  %v4387_v11 = vsel %vm3854_vm10, %v1083_v25, %v4131_v5  ;;  %vm3857_vm13 = vcmp.ge.f32.partialorder %v1438_v6, 0.0  ;;  %v9339_v5 = vld [vmem:[%s13218_s1 + $0x38] sm:$0xff]  }
 0x197   : > { %v4134_v12 = vmul.f32 %v10035_v48, %v1438_v6  ;;  %8292 = vmatmul.mubr.msk.bf16.gmra.mrb[148].mxu1 %vm848_vm0, %v9337_v10  ;;  %1743 = vmatprep.mubr.bf16.mxu0 %v9578_v0  ;;  %4643 = vst [vmem:[%s10045_s7 + $0x2a0] sm:$0xff] %v4387_v11  ;;  %v4389_v13 = vsel %vm3856_vm11, %v1436_v1, %v4133_v8 }
 0x198   : > { %v4388_v14 = vsel %vm3855_vm12, %v1085_v2, %v4132_v9  ;;  %2096 = vmatprep.mubr.bf16.mxu1 %v9578_v0  ;;  %4645 = vst [vmem:[%s10045_s7 + $0x2b0] sm:$0xff] %v4389_v13 }
 0x199   : > { %4644 = vst [vmem:[%s10045_s7 + $0x2a8] sm:$0xff] %v4388_v14  ;;  %v4390_v15 = vsel %vm3857_vm13, %v1438_v6, %v4134_v12  ;;  %v1089_v16 = vpop.f32.mrb[44].mxu0  ;;  %v1442_v18 = vpop.f32.mrb[44].mxu1 }
 0x19a   : > { %4646 = vst [vmem:[%s10045_s7 + $0x2b8] sm:$0xff] %v4390_v15  ;;  %vm3858_vm14 = vcmp.ge.f32.partialorder %v1089_v16, 0.0  ;;  %v4135_v17 = vmul.f32 %v10023_v45, %v1089_v16  ;;  %v1091_v19 = vpop.f32.mrb[45].mxu0  ;;  %vm3860_vm15 = vcmp.ge.f32.partialorder %v1442_v18, 0.0  ;;  %v4137_v24 = vmul.f32 %v10028_v46, %v1442_v18  ;;  %v1444_v28 = vpop.f32.mrb[45].mxu1 }
 0x19b   : > { %vm3859_vm1 = vcmp.ge.f32.partialorder %v1091_v19, 0.0  ;;  %v4136_v27 = vmul.f32 %v10031_v47, %v1091_v19  ;;  %v1093_v29 = vpop.f32.mrb[46].mxu0  ;;  %vm3861_vm2 = vcmp.ge.f32.partialorder %v1444_v28, 0.0  ;;  %v4138_v31 = vmul.f32 %v10035_v48, %v1444_v28  ;;  %v1446_v32 = vpop.f32.mrb[46].mxu1 }
 0x19c   : > { %v4391_v30 = vsel %vm3858_vm14, %v1089_v16, %v4135_v17  ;;  %vm3862_vm3 = vcmp.ge.f32.partialorder %v1093_v29, 0.0  ;;  %v1095_v33 = vpop.f32.mrb[47].mxu0  ;;  %v4393_v34 = vsel %vm3860_vm15, %v1442_v18, %v4137_v24  ;;  %v4139_v36 = vmul.f32 %v10023_v45, %v1093_v29  ;;  %v1448_v37 = vpop.f32.mrb[47].mxu1 }
 0x19d   : > { %4647 = vst [vmem:[%s10045_s7 + $0x2c0] sm:$0xff] %v4391_v30  ;;  %v4392_v35 = vsel %vm3859_vm1, %v1091_v19, %v4136_v27  ;;  %vm3864_vm4 = vcmp.ge.f32.partialorder %v1446_v32, 0.0  ;;  %4649 = vst [vmem:[%s10045_s7 + $0x2d0] sm:$0xff] %v4393_v34  ;;  %v4394_v38 = vsel %vm3861_vm2, %v1444_v28, %v4138_v31  ;;  %v4141_v41 = vmul.f32 %v10028_v46, %v1446_v32 }
 0x19e   : > { %4648 = vst [vmem:[%s10045_s7 + $0x2c8] sm:$0xff] %v4392_v35  ;;  %vm3863_vm5 = vcmp.ge.f32.partialorder %v1095_v33, 0.0  ;;  %v4140_v49 = vmul.f32 %v10031_v47, %v1095_v33  ;;  %8261 = vmatmul.mubr.msk.bf16.gmra.mrb[152].mxu0 %vm848_vm0, %v9338_v50  ;;  %4650 = vst [vmem:[%s10045_s7 + $0x2d8] sm:$0xff] %v4394_v38  ;;  %v4395_v51 = vsel %vm3862_vm3, %v1093_v29, %v4139_v36  ;;  %vm3865_vm6 = vcmp.ge.f32.partialorder %v1448_v37, 0.0  ;;  %v9340_v36 = vld [vmem:[%s13218_s1 + $0x40] sm:$0xff]  }
 0x19f   : > { %v4142_v52 = vmul.f32 %v10035_v48, %v1448_v37  ;;  %8293 = vmatmul.mubr.msk.bf16.gmra.mrb[152].mxu1 %vm848_vm0, %v9338_v50  ;;  %1753 = vmatprep.mubr.bf16.mxu0 %v9578_v0  ;;  %4651 = vst [vmem:[%s10045_s7 + $0x2e0] sm:$0xff] %v4395_v51  ;;  %v4397_v53 = vsel %vm3864_vm4, %v1446_v32, %v4141_v41 }
 0x1a0   : > { %v4396_v54 = vsel %vm3863_vm5, %v1095_v33, %v4140_v49  ;;  %2106 = vmatprep.mubr.bf16.mxu1 %v9578_v0  ;;  %4653 = vst [vmem:[%s10045_s7 + $0x2f0] sm:$0xff] %v4397_v53 }
 0x1a1   : > { %4652 = vst [vmem:[%s10045_s7 + $0x2e8] sm:$0xff] %v4396_v54  ;;  %v4398_v55 = vsel %vm3865_vm6, %v1448_v37, %v4142_v52  ;;  %v1099_v56 = vpop.f32.mrb[48].mxu0  ;;  %v1452_v39 = vpop.f32.mrb[48].mxu1 }
 0x1a2   : > { %4654 = vst [vmem:[%s10045_s7 + $0x2f8] sm:$0xff] %v4398_v55  ;;  %vm3866_vm7 = vcmp.ge.f32.partialorder %v1099_v56, 0.0  ;;  %v4143_v57 = vmul.f32 %v10023_v45, %v1099_v56  ;;  %v1101_v58 = vpop.f32.mrb[49].mxu0  ;;  %vm3868_vm8 = vcmp.ge.f32.partialorder %v1452_v39, 0.0  ;;  %v4145_v59 = vmul.f32 %v10028_v46, %v1452_v39  ;;  %v1454_v20 = vpop.f32.mrb[49].mxu1 }
 0x1a3   : > { %vm3867_vm9 = vcmp.ge.f32.partialorder %v1101_v58, 0.0  ;;  %v4144_v60 = vmul.f32 %v10031_v47, %v1101_v58  ;;  %v1103_v21 = vpop.f32.mrb[50].mxu0  ;;  %vm3869_vm10 = vcmp.ge.f32.partialorder %v1454_v20, 0.0  ;;  %v4146_v61 = vmul.f32 %v10035_v48, %v1454_v20  ;;  %v1456_v62 = vpop.f32.mrb[50].mxu1 }
 0x1a4   : > { %v4399_v23 = vsel %vm3866_vm7, %v1099_v56, %v4143_v57  ;;  %vm3870_vm11 = vcmp.ge.f32.partialorder %v1103_v21, 0.0  ;;  %v1105_v22 = vpop.f32.mrb[51].mxu0  ;;  %v4401_v25 = vsel %vm3868_vm8, %v1452_v39, %v4145_v59  ;;  %v4147_v63 = vmul.f32 %v10023_v45, %v1103_v21  ;;  %v1458_v1 = vpop.f32.mrb[51].mxu1 }
 0x1a5   : > { %4655 = vst [vmem:[%s10045_s7 + $0x300] sm:$0xff] %v4399_v23  ;;  %v4400_v26 = vsel %vm3867_vm9, %v1101_v58, %v4144_v60  ;;  %vm3872_vm12 = vcmp.ge.f32.partialorder %v1456_v62, 0.0  ;;  %4657 = vst [vmem:[%s10045_s7 + $0x310] sm:$0xff] %v4401_v25  ;;  %v4402_v2 = vsel %vm3869_vm10, %v1454_v20, %v4146_v61  ;;  %v4149_v3 = vmul.f32 %v10028_v46, %v1456_v62  ;;  %v364_v23 = vld [vmem:[%s9760_s30 + $0x1e0] sm:$0xff] }
 0x1a6   : > { %4656 = vst [vmem:[%s10045_s7 + $0x308] sm:$0xff] %v4400_v26  ;;  %vm3871_vm13 = vcmp.ge.f32.partialorder %v1105_v22, 0.0  ;;  %v4148_v4 = vmul.f32 %v10031_v47, %v1105_v22  ;;  %8262 = vmatmul.mubr.msk.bf16.gmra.mrb[156].mxu0 %vm848_vm0, %v9339_v5  ;;  %4658 = vst [vmem:[%s10045_s7 + $0x318] sm:$0xff] %v4402_v2  ;;  %v4403_v6 = vsel %vm3870_vm11, %v1103_v21, %v4147_v63  ;;  %vm3873_vm14 = vcmp.ge.f32.partialorder %v1458_v1, 0.0  ;;  %v356_v21 = vld [vmem:[%s9760_s30 + $0x1a0] sm:$0xff]  ;;  %v357_v26 = vld [vmem:[%s9760_s30 + $0x1a8] sm:$0xff] }
 0x1a7   : > { %v4150_v7 = vmul.f32 %v10035_v48, %v1458_v1  ;;  %8294 = vmatmul.mubr.msk.bf16.gmra.mrb[156].mxu1 %vm848_vm0, %v9339_v5  ;;  %1763 = vmatprep.mubr.bf16.mxu0 %v9578_v0  ;;  %4659 = vst [vmem:[%s10045_s7 + $0x320] sm:$0xff] %v4403_v6  ;;  %v4405_v8 = vsel %vm3872_vm12, %v1456_v62, %v4149_v3  ;;  %v365_v63 = vld [vmem:[%s9760_s30 + $0x1e8] sm:$0xff] }
 0x1a8   : > { %v4404_v9 = vsel %vm3871_vm13, %v1105_v22, %v4148_v4  ;;  %2116 = vmatprep.mubr.bf16.mxu1 %v9578_v0  ;;  %4661 = vst [vmem:[%s10045_s7 + $0x330] sm:$0xff] %v4405_v8  ;;  %v9341_v4 = vld [vmem:[%s13218_s1 + $0x48] sm:$0xff]  }
 0x1a9   : > { %4660 = vst [vmem:[%s10045_s7 + $0x328] sm:$0xff] %v4404_v9  ;;  %v4406_v10 = vsel %vm3873_vm14, %v1458_v1, %v4150_v7  ;;  %v1109_v11 = vpop.f32.mrb[52].mxu0  ;;  %v1462_v13 = vpop.f32.mrb[52].mxu1  ;;  %v8183_v7 = vcombine.low %v356_v21, %v364_v23 }
 0x1aa   : > { %4662 = vst [vmem:[%s10045_s7 + $0x338] sm:$0xff] %v4406_v10  ;;  %vm3874_vm15 = vcmp.ge.f32.partialorder %v1109_v11, 0.0  ;;  %v4151_v12 = vmul.f32 %v10023_v45, %v1109_v11  ;;  %v1111_v14 = vpop.f32.mrb[53].mxu0  ;;  %vm3876_vm1 = vcmp.ge.f32.partialorder %v1462_v13, 0.0  ;;  %v4153_v15 = vmul.f32 %v10028_v46, %v1462_v13  ;;  %v1464_v17 = vpop.f32.mrb[53].mxu1 }
 0x1ab   : > { %vm3875_vm2 = vcmp.ge.f32.partialorder %v1111_v14, 0.0  ;;  %v4152_v16 = vmul.f32 %v10031_v47, %v1111_v14  ;;  %v1113_v18 = vpop.f32.mrb[54].mxu0  ;;  %vm3877_vm3 = vcmp.ge.f32.partialorder %v1464_v17, 0.0  ;;  %v4154_v24 = vmul.f32 %v10035_v48, %v1464_v17  ;;  %v1466_v27 = vpop.f32.mrb[54].mxu1 }
 0x1ac   : > { %v4407_v19 = vsel %vm3874_vm15, %v1109_v11, %v4151_v12  ;;  %vm3878_vm4 = vcmp.ge.f32.partialorder %v1113_v18, 0.0  ;;  %v1115_v28 = vpop.f32.mrb[55].mxu0  ;;  %v4409_v29 = vsel %vm3876_vm1, %v1462_v13, %v4153_v15  ;;  %v4155_v31 = vmul.f32 %v10023_v45, %v1113_v18  ;;  %v1468_v32 = vpop.f32.mrb[55].mxu1 }
 0x1ad   : > { %4663 = vst [vmem:[%s10045_s7 + $0x340] sm:$0xff] %v4407_v19  ;;  %v4408_v30 = vsel %vm3875_vm2, %v1111_v14, %v4152_v16  ;;  %vm3880_vm5 = vcmp.ge.f32.partialorder %v1466_v27, 0.0  ;;  %4665 = vst [vmem:[%s10045_s7 + $0x350] sm:$0xff] %v4409_v29  ;;  %v4410_v33 = vsel %vm3877_vm3, %v1464_v17, %v4154_v24  ;;  %v4157_v34 = vmul.f32 %v10028_v46, %v1466_v27 }
 0x1ae   : > { %4664 = vst [vmem:[%s10045_s7 + $0x348] sm:$0xff] %v4408_v30  ;;  %vm3879_vm6 = vcmp.ge.f32.partialorder %v1115_v28, 0.0  ;;  %v4156_v35 = vmul.f32 %v10031_v47, %v1115_v28  ;;  %8263 = vmatmul.mubr.msk.bf16.gmra.mrb[160].mxu0 %vm848_vm0, %v9340_v36  ;;  %4666 = vst [vmem:[%s10045_s7 + $0x358] sm:$0xff] %v4410_v33  ;;  %v4411_v37 = vsel %vm3878_vm4, %v1113_v18, %v4155_v31  ;;  %vm3881_vm7 = vcmp.ge.f32.partialorder %v1468_v32, 0.0 }
 0x1af   : > { %v4158_v38 = vmul.f32 %v10035_v48, %v1468_v32  ;;  %8295 = vmatmul.mubr.msk.bf16.gmra.mrb[160].mxu1 %vm848_vm0, %v9340_v36  ;;  %1773 = vmatprep.mubr.bf16.mxu0 %v9578_v0  ;;  %4667 = vst [vmem:[%s10045_s7 + $0x360] sm:$0xff] %v4411_v37  ;;  %v4413_v41 = vsel %vm3880_vm5, %v1466_v27, %v4157_v34 }
 0x1b0   : > { %v4412_v49 = vsel %vm3879_vm6, %v1115_v28, %v4156_v35  ;;  %2126 = vmatprep.mubr.bf16.mxu1 %v9578_v0  ;;  %4669 = vst [vmem:[%s10045_s7 + $0x370] sm:$0xff] %v4413_v41  ;;  %v8184_v10 = vcombine.high %v356_v21, %v364_v23  ;;  %v8185_v11 = vcombine.low %v357_v26, %v365_v63  ;;  %v9342_v41 = vld [vmem:[%s13218_s1 + $0x50] sm:$0xff]  }
 0x1b1   : > { %4668 = vst [vmem:[%s10045_s7 + $0x368] sm:$0xff] %v4412_v49  ;;  %v4414_v50 = vsel %vm3881_vm7, %v1468_v32, %v4158_v38  ;;  %v1119_v51 = vpop.f32.mrb[56].mxu0  ;;  %v1472_v53 = vpop.f32.mrb[56].mxu1  ;;  %v8186_v14 = vcombine.high %v357_v26, %v365_v63 }
 0x1b2   : > { %4670 = vst [vmem:[%s10045_s7 + $0x378] sm:$0xff] %v4414_v50  ;;  %vm3882_vm8 = vcmp.ge.f32.partialorder %v1119_v51, 0.0  ;;  %v4159_v52 = vmul.f32 %v10023_v45, %v1119_v51  ;;  %v1121_v54 = vpop.f32.mrb[57].mxu0  ;;  %vm3884_vm9 = vcmp.ge.f32.partialorder %v1472_v53, 0.0  ;;  %v4161_v55 = vmul.f32 %v10028_v46, %v1472_v53  ;;  %v1474_v57 = vpop.f32.mrb[57].mxu1  ;;  %2363 = vmatprep.subr.bf16.mxu0 %v8184_v10 }
 0x1b3   : > { %vm3883_vm10 = vcmp.ge.f32.partialorder %v1121_v54, 0.0  ;;  %v4160_v56 = vmul.f32 %v10031_v47, %v1121_v54  ;;  %v1123_v39 = vpop.f32.mrb[58].mxu0  ;;  %vm3885_vm11 = vcmp.ge.f32.partialorder %v1474_v57, 0.0  ;;  %v4162_v59 = vmul.f32 %v10035_v48, %v1474_v57  ;;  %v1476_v60 = vpop.f32.mrb[58].mxu1  ;;  %2716 = vmatprep.subr.bf16.mxu1 %v8186_v14  ;;  %2364 = vmatpush1.bf16.msra.mxu0 %v8183_v7 }
 0x1b4   : > { %v4415_v58 = vsel %vm3882_vm8, %v1119_v51, %v4159_v52  ;;  %vm3886_vm12 = vcmp.ge.f32.partialorder %v1123_v39, 0.0  ;;  %v1125_v20 = vpop.f32.mrb[59].mxu0  ;;  %v4417_v61 = vsel %vm3884_vm9, %v1472_v53, %v4161_v55  ;;  %v4163_v22 = vmul.f32 %v10023_v45, %v1123_v39  ;;  %v1478_v25 = vpop.f32.mrb[59].mxu1  ;;  %2717 = vmatpush1.bf16.msra.mxu1 %v8185_v11 }
 0x1b5   : > { %4671 = vst [vmem:[%s10045_s7 + $0x380] sm:$0xff] %v4415_v58  ;;  %v4416_v62 = vsel %vm3883_vm10, %v1121_v54, %v4160_v56  ;;  %vm3888_vm13 = vcmp.ge.f32.partialorder %v1476_v60, 0.0  ;;  %4673 = vst [vmem:[%s10045_s7 + $0x390] sm:$0xff] %v4417_v61  ;;  %v4418_v1 = vsel %vm3885_vm11, %v1474_v57, %v4162_v59  ;;  %v4165_v2 = vmul.f32 %v10028_v46, %v1476_v60 }
 0x1b6   : > { %4672 = vst [vmem:[%s10045_s7 + $0x388] sm:$0xff] %v4416_v62  ;;  %vm3887_vm14 = vcmp.ge.f32.partialorder %v1125_v20, 0.0  ;;  %v4164_v3 = vmul.f32 %v10031_v47, %v1125_v20  ;;  %8264 = vmatmul.mubr.msk.bf16.gmra.mrb[164].mxu0 %vm848_vm0, %v9341_v4  ;;  %4674 = vst [vmem:[%s10045_s7 + $0x398] sm:$0xff] %v4418_v1  ;;  %v4419_v5 = vsel %vm3886_vm12, %v1123_v39, %v4163_v22  ;;  %vm3889_vm15 = vcmp.ge.f32.partialorder %v1478_v25, 0.0 }
 0x1b7   : > { %v4166_v6 = vmul.f32 %v10035_v48, %v1478_v25  ;;  %8296 = vmatmul.mubr.msk.bf16.gmra.mrb[164].mxu1 %vm848_vm0, %v9341_v4  ;;  %1783 = vmatprep.mubr.bf16.mxu0 %v9578_v0  ;;  %4675 = vst [vmem:[%s10045_s7 + $0x3a0] sm:$0xff] %v4419_v5  ;;  %v4421_v8 = vsel %vm3888_vm13, %v1476_v60, %v4165_v2 }
 0x1b8   : > { %v4420_v9 = vsel %vm3887_vm14, %v1125_v20, %v4164_v3  ;;  %2136 = vmatprep.mubr.bf16.mxu1 %v9578_v0  ;;  %4677 = vst [vmem:[%s10045_s7 + $0x3b0] sm:$0xff] %v4421_v8  ;;  %v9343_v3 = vld [vmem:[%s13218_s1 + $0x58] sm:$0xff]  }
 0x1b9   : > { %4676 = vst [vmem:[%s10045_s7 + $0x3a8] sm:$0xff] %v4420_v9  ;;  %v4422_v12 = vsel %vm3889_vm15, %v1478_v25, %v4166_v6  ;;  %v1129_v13 = vpop.f32.mrb[60].mxu0  ;;  %v1482_v16 = vpop.f32.mrb[60].mxu1 }
 0x1ba   : > { %4678 = vst [vmem:[%s10045_s7 + $0x3b8] sm:$0xff] %v4422_v12  ;;  %vm3890_vm1 = vcmp.ge.f32.partialorder %v1129_v13, 0.0  ;;  %v4167_v15 = vmul.f32 %v10023_v45, %v1129_v13  ;;  %v1131_v17 = vpop.f32.mrb[61].mxu0  ;;  %vm3892_vm2 = vcmp.ge.f32.partialorder %v1482_v16, 0.0  ;;  %v4169_v18 = vmul.f32 %v10028_v46, %v1482_v16  ;;  %v1484_v24 = vpop.f32.mrb[61].mxu1 }
 0x1bb   : > { %vm3891_vm3 = vcmp.ge.f32.partialorder %v1131_v17, 0.0  ;;  %v4168_v19 = vmul.f32 %v10031_v47, %v1131_v17  ;;  %v1133_v27 = vpop.f32.mrb[62].mxu0  ;;  %vm3893_vm4 = vcmp.ge.f32.partialorder %v1484_v24, 0.0  ;;  %v4170_v29 = vmul.f32 %v10035_v48, %v1484_v24  ;;  %v1486_v30 = vpop.f32.mrb[62].mxu1 }
 0x1bc   : > { %v4423_v28 = vsel %vm3890_vm1, %v1129_v13, %v4167_v15  ;;  %vm3894_vm5 = vcmp.ge.f32.partialorder %v1133_v27, 0.0  ;;  %v1135_v31 = vpop.f32.mrb[63].mxu0  ;;  %v4425_v32 = vsel %vm3892_vm2, %v1482_v16, %v4169_v18  ;;  %v4171_v34 = vmul.f32 %v10023_v45, %v1133_v27  ;;  %v1488_v35 = vpop.f32.mrb[63].mxu1 }
 0x1bd   : > { %4679 = vst [vmem:[%s10045_s7 + $0x3c0] sm:$0xff] %v4423_v28  ;;  %v4424_v33 = vsel %vm3891_vm3, %v1131_v17, %v4168_v19  ;;  %vm3896_vm6 = vcmp.ge.f32.partialorder %v1486_v30, 0.0  ;;  %4681 = vst [vmem:[%s10045_s7 + $0x3d0] sm:$0xff] %v4425_v32  ;;  %v4426_v36 = vsel %vm3893_vm4, %v1484_v24, %v4170_v29  ;;  %v4173_v37 = vmul.f32 %v10028_v46, %v1486_v30 }
 0x1be   : > { %4680 = vst [vmem:[%s10045_s7 + $0x3c8] sm:$0xff] %v4424_v33  ;;  %vm3895_vm7 = vcmp.ge.f32.partialorder %v1135_v31, 0.0  ;;  %v4172_v38 = vmul.f32 %v10031_v47, %v1135_v31  ;;  %8265 = vmatmul.mubr.msk.bf16.gmra.mrb[168].mxu0 %vm848_vm0, %v9342_v41  ;;  %4682 = vst [vmem:[%s10045_s7 + $0x3d8] sm:$0xff] %v4426_v36  ;;  %v4427_v49 = vsel %vm3894_vm5, %v1133_v27, %v4171_v34  ;;  %vm3897_vm8 = vcmp.ge.f32.partialorder %v1488_v35, 0.0  ;;  %v9344_v34 = vld [vmem:[%s13218_s1 + $0x60] sm:$0xff]  }
 0x1bf   : > { %v4174_v50 = vmul.f32 %v10035_v48, %v1488_v35  ;;  %8297 = vmatmul.mubr.msk.bf16.gmra.mrb[168].mxu1 %vm848_vm0, %v9342_v41  ;;  %1793 = vmatprep.mubr.bf16.mxu0 %v9578_v0  ;;  %4683 = vst [vmem:[%s10045_s7 + $0x3e0] sm:$0xff] %v4427_v49  ;;  %v4429_v51 = vsel %vm3896_vm6, %v1486_v30, %v4173_v37 }
 0x1c0   : > { %v4428_v52 = vsel %vm3895_vm7, %v1135_v31, %v4172_v38  ;;  %2146 = vmatprep.mubr.bf16.mxu1 %v9578_v0  ;;  %4685 = vst [vmem:[%s10045_s7 + $0x3f0] sm:$0xff] %v4429_v51 }
 0x1c1   : > { %4684 = vst [vmem:[%s10045_s7 + $0x3e8] sm:$0xff] %v4428_v52  ;;  %v4430_v53 = vsel %vm3897_vm8, %v1488_v35, %v4174_v50  ;;  %v1139_v54 = vpop.f32.mrb[64].mxu0  ;;  %v1492_v56 = vpop.f32.mrb[64].mxu1 }
 0x1c2   : > { %4686 = vst [vmem:[%s10045_s7 + $0x3f8] sm:$0xff] %v4430_v53  ;;  %vm3898_vm9 = vcmp.ge.f32.partialorder %v1139_v54, 0.0  ;;  %v4175_v55 = vmul.f32 %v10023_v45, %v1139_v54  ;;  %v1141_v57 = vpop.f32.mrb[65].mxu0  ;;  %vm3900_vm10 = vcmp.ge.f32.partialorder %v1492_v56, 0.0  ;;  %v4177_v39 = vmul.f32 %v10028_v46, %v1492_v56  ;;  %v1494_v59 = vpop.f32.mrb[65].mxu1 }
 0x1c3   : > { %vm3899_vm11 = vcmp.ge.f32.partialorder %v1141_v57, 0.0  ;;  %v4176_v58 = vmul.f32 %v10031_v47, %v1141_v57  ;;  %v1143_v60 = vpop.f32.mrb[66].mxu0  ;;  %vm3901_vm12 = vcmp.ge.f32.partialorder %v1494_v59, 0.0  ;;  %v4178_v21 = vmul.f32 %v10035_v48, %v1494_v59  ;;  %v1496_v23 = vpop.f32.mrb[66].mxu1 }
 0x1c4   : > { %v4431_v20 = vsel %vm3898_vm9, %v1139_v54, %v4175_v55  ;;  %vm3902_vm13 = vcmp.ge.f32.partialorder %v1143_v60, 0.0  ;;  %v1145_v61 = vpop.f32.mrb[67].mxu0  ;;  %v4433_v62 = vsel %vm3900_vm10, %v1492_v56, %v4177_v39  ;;  %v4179_v25 = vmul.f32 %v10023_v45, %v1143_v60  ;;  %v1498_v26 = vpop.f32.mrb[67].mxu1 }
 0x1c5   : > { %4687 = vst [vmem:[%s10045_s7 + $0x400] sm:$0xff] %v4431_v20  ;;  %v4432_v22 = vsel %vm3899_vm11, %v1141_v57, %v4176_v58  ;;  %vm3904_vm14 = vcmp.ge.f32.partialorder %v1496_v23, 0.0  ;;  %4689 = vst [vmem:[%s10045_s7 + $0x410] sm:$0xff] %v4433_v62  ;;  %v4434_v63 = vsel %vm3901_vm12, %v1494_v59, %v4178_v21  ;;  %v4181_v1 = vmul.f32 %v10028_v46, %v1496_v23 }
 0x1c6   : > { %4688 = vst [vmem:[%s10045_s7 + $0x408] sm:$0xff] %v4432_v22  ;;  %vm3903_vm15 = vcmp.ge.f32.partialorder %v1145_v61, 0.0  ;;  %v4180_v2 = vmul.f32 %v10031_v47, %v1145_v61  ;;  %8266 = vmatmul.mubr.msk.bf16.gmra.mrb[172].mxu0 %vm848_vm0, %v9343_v3  ;;  %4690 = vst [vmem:[%s10045_s7 + $0x418] sm:$0xff] %v4434_v63  ;;  %v4435_v4 = vsel %vm3902_vm13, %v1143_v60, %v4179_v25  ;;  %vm3905_vm1 = vcmp.ge.f32.partialorder %v1498_v26, 0.0  ;;  %v9345_v25 = vld [vmem:[%s13218_s1 + $0x68] sm:$0xff]  }
 0x1c7   : > { %v4182_v5 = vmul.f32 %v10035_v48, %v1498_v26  ;;  %8298 = vmatmul.mubr.msk.bf16.gmra.mrb[172].mxu1 %vm848_vm0, %v9343_v3  ;;  %1803 = vmatprep.mubr.bf16.mxu0 %v9578_v0  ;;  %4691 = vst [vmem:[%s10045_s7 + $0x420] sm:$0xff] %v4435_v4  ;;  %v4437_v6 = vsel %vm3904_vm14, %v1496_v23, %v4181_v1 }
 0x1c8   : > { %v4436_v7 = vsel %vm3903_vm15, %v1145_v61, %v4180_v2  ;;  %2156 = vmatprep.mubr.bf16.mxu1 %v9578_v0  ;;  %4693 = vst [vmem:[%s10045_s7 + $0x430] sm:$0xff] %v4437_v6 }
 0x1c9   : > { %4692 = vst [vmem:[%s10045_s7 + $0x428] sm:$0xff] %v4436_v7  ;;  %v4438_v8 = vsel %vm3905_vm1, %v1498_v26, %v4182_v5  ;;  %v1149_v9 = vpop.f32.mrb[68].mxu0  ;;  %v1502_v11 = vpop.f32.mrb[68].mxu1 }
 0x1ca   : > { %4694 = vst [vmem:[%s10045_s7 + $0x438] sm:$0xff] %v4438_v8  ;;  %vm3906_vm2 = vcmp.ge.f32.partialorder %v1149_v9, 0.0  ;;  %v4183_v10 = vmul.f32 %v10023_v45, %v1149_v9  ;;  %v1151_v12 = vpop.f32.mrb[69].mxu0  ;;  %vm3908_vm3 = vcmp.ge.f32.partialorder %v1502_v11, 0.0  ;;  %v4185_v13 = vmul.f32 %v10028_v46, %v1502_v11  ;;  %v1504_v15 = vpop.f32.mrb[69].mxu1 }
 0x1cb   : > { %vm3907_vm4 = vcmp.ge.f32.partialorder %v1151_v12, 0.0  ;;  %v4184_v14 = vmul.f32 %v10031_v47, %v1151_v12  ;;  %v1153_v16 = vpop.f32.mrb[70].mxu0  ;;  %vm3909_vm5 = vcmp.ge.f32.partialorder %v1504_v15, 0.0  ;;  %v4186_v18 = vmul.f32 %v10035_v48, %v1504_v15  ;;  %v1506_v19 = vpop.f32.mrb[70].mxu1 }
 0x1cc   : > { %v4439_v17 = vsel %vm3906_vm2, %v1149_v9, %v4183_v10  ;;  %vm3910_vm6 = vcmp.ge.f32.partialorder %v1153_v16, 0.0  ;;  %v1155_v24 = vpop.f32.mrb[71].mxu0  ;;  %v4441_v27 = vsel %vm3908_vm3, %v1502_v11, %v4185_v13  ;;  %v4187_v29 = vmul.f32 %v10023_v45, %v1153_v16  ;;  %v1508_v30 = vpop.f32.mrb[71].mxu1 }
 0x1cd   : > { %4695 = vst [vmem:[%s10045_s7 + $0x440] sm:$0xff] %v4439_v17  ;;  %v4440_v28 = vsel %vm3907_vm4, %v1151_v12, %v4184_v14  ;;  %vm3912_vm7 = vcmp.ge.f32.partialorder %v1506_v19, 0.0  ;;  %4697 = vst [vmem:[%s10045_s7 + $0x450] sm:$0xff] %v4441_v27  ;;  %v4442_v31 = vsel %vm3909_vm5, %v1504_v15, %v4186_v18  ;;  %v4189_v32 = vmul.f32 %v10028_v46, %v1506_v19 }
 0x1ce   : > { %4696 = vst [vmem:[%s10045_s7 + $0x448] sm:$0xff] %v4440_v28  ;;  %vm3911_vm8 = vcmp.ge.f32.partialorder %v1155_v24, 0.0  ;;  %v4188_v33 = vmul.f32 %v10031_v47, %v1155_v24  ;;  %8267 = vmatmul.mubr.msk.bf16.gmra.mrb[176].mxu0 %vm848_vm0, %v9344_v34  ;;  %4698 = vst [vmem:[%s10045_s7 + $0x458] sm:$0xff] %v4442_v31  ;;  %v4443_v35 = vsel %vm3910_vm6, %v1153_v16, %v4187_v29  ;;  %vm3913_vm9 = vcmp.ge.f32.partialorder %v1508_v30, 0.0  ;;  %v9346_v29 = vld [vmem:[%s13218_s1 + $0x70] sm:$0xff]  }
 0x1cf   : > { %v4190_v36 = vmul.f32 %v10035_v48, %v1508_v30  ;;  %8299 = vmatmul.mubr.msk.bf16.gmra.mrb[176].mxu1 %vm848_vm0, %v9344_v34  ;;  %1813 = vmatprep.mubr.bf16.mxu0 %v9578_v0  ;;  %4699 = vst [vmem:[%s10045_s7 + $0x460] sm:$0xff] %v4443_v35  ;;  %v4445_v37 = vsel %vm3912_vm7, %v1506_v19, %v4189_v32 }
 0x1d0   : > { %v4444_v38 = vsel %vm3911_vm8, %v1155_v24, %v4188_v33  ;;  %2166 = vmatprep.mubr.bf16.mxu1 %v9578_v0  ;;  %4701 = vst [vmem:[%s10045_s7 + $0x470] sm:$0xff] %v4445_v37 }
 0x1d1   : > { %4700 = vst [vmem:[%s10045_s7 + $0x468] sm:$0xff] %v4444_v38  ;;  %v4446_v41 = vsel %vm3913_vm9, %v1508_v30, %v4190_v36  ;;  %v1159_v49 = vpop.f32.mrb[72].mxu0  ;;  %v1512_v51 = vpop.f32.mrb[72].mxu1 }
 0x1d2   : > { %4702 = vst [vmem:[%s10045_s7 + $0x478] sm:$0xff] %v4446_v41  ;;  %vm3914_vm10 = vcmp.ge.f32.partialorder %v1159_v49, 0.0  ;;  %v4191_v50 = vmul.f32 %v10023_v45, %v1159_v49  ;;  %v1161_v52 = vpop.f32.mrb[73].mxu0  ;;  %vm3916_vm11 = vcmp.ge.f32.partialorder %v1512_v51, 0.0  ;;  %v4193_v53 = vmul.f32 %v10028_v46, %v1512_v51  ;;  %v1514_v55 = vpop.f32.mrb[73].mxu1 }
 0x1d3   : > { %vm3915_vm12 = vcmp.ge.f32.partialorder %v1161_v52, 0.0  ;;  %v4192_v54 = vmul.f32 %v10031_v47, %v1161_v52  ;;  %v1163_v56 = vpop.f32.mrb[74].mxu0  ;;  %vm3917_vm13 = vcmp.ge.f32.partialorder %v1514_v55, 0.0  ;;  %v4194_v39 = vmul.f32 %v10035_v48, %v1514_v55  ;;  %v1516_v58 = vpop.f32.mrb[74].mxu1 }
 0x1d4   : > { %v4447_v57 = vsel %vm3914_vm10, %v1159_v49, %v4191_v50  ;;  %vm3918_vm14 = vcmp.ge.f32.partialorder %v1163_v56, 0.0  ;;  %v1165_v59 = vpop.f32.mrb[75].mxu0  ;;  %v4449_v60 = vsel %vm3916_vm11, %v1512_v51, %v4193_v53  ;;  %v4195_v21 = vmul.f32 %v10023_v45, %v1163_v56  ;;  %v1518_v23 = vpop.f32.mrb[75].mxu1 }
 0x1d5   : > { %4703 = vst [vmem:[%s10045_s7 + $0x480] sm:$0xff] %v4447_v57  ;;  %v4448_v20 = vsel %vm3915_vm12, %v1161_v52, %v4192_v54  ;;  %vm3920_vm15 = vcmp.ge.f32.partialorder %v1516_v58, 0.0  ;;  %4705 = vst [vmem:[%s10045_s7 + $0x490] sm:$0xff] %v4449_v60  ;;  %v4450_v61 = vsel %vm3917_vm13, %v1514_v55, %v4194_v39  ;;  %v4197_v62 = vmul.f32 %v10028_v46, %v1516_v58 }
 0x1d6   : > { %4704 = vst [vmem:[%s10045_s7 + $0x488] sm:$0xff] %v4448_v20  ;;  %vm3919_vm1 = vcmp.ge.f32.partialorder %v1165_v59, 0.0  ;;  %v4196_v22 = vmul.f32 %v10031_v47, %v1165_v59  ;;  %8268 = vmatmul.mubr.msk.bf16.gmra.mrb[180].mxu0 %vm848_vm0, %v9345_v25  ;;  %4706 = vst [vmem:[%s10045_s7 + $0x498] sm:$0xff] %v4450_v61  ;;  %v4451_v26 = vsel %vm3918_vm14, %v1163_v56, %v4195_v21  ;;  %vm3921_vm2 = vcmp.ge.f32.partialorder %v1518_v23, 0.0  ;;  %v9347_v21 = vld [vmem:[%s13218_s1 + $0x78] sm:$0xff]  }
 0x1d7   : > { %v4198_v63 = vmul.f32 %v10035_v48, %v1518_v23  ;;  %8300 = vmatmul.mubr.msk.bf16.gmra.mrb[180].mxu1 %vm848_vm0, %v9345_v25  ;;  %1823 = vmatprep.mubr.bf16.mxu0 %v9578_v0  ;;  %4707 = vst [vmem:[%s10045_s7 + $0x4a0] sm:$0xff] %v4451_v26  ;;  %v4453_v1 = vsel %vm3920_vm15, %v1516_v58, %v4197_v62 }
 0x1d8   : > { %v4452_v2 = vsel %vm3919_vm1, %v1165_v59, %v4196_v22  ;;  %2176 = vmatprep.mubr.bf16.mxu1 %v9578_v0  ;;  %4709 = vst [vmem:[%s10045_s7 + $0x4b0] sm:$0xff] %v4453_v1 }
 0x1d9   : > { %4708 = vst [vmem:[%s10045_s7 + $0x4a8] sm:$0xff] %v4452_v2  ;;  %v4454_v3 = vsel %vm3921_vm2, %v1518_v23, %v4198_v63  ;;  %v1169_v4 = vpop.f32.mrb[76].mxu0  ;;  %v1522_v6 = vpop.f32.mrb[76].mxu1 }
 0x1da   : > { %4710 = vst [vmem:[%s10045_s7 + $0x4b8] sm:$0xff] %v4454_v3  ;;  %vm3922_vm3 = vcmp.ge.f32.partialorder %v1169_v4, 0.0  ;;  %v4199_v5 = vmul.f32 %v10023_v45, %v1169_v4  ;;  %v1171_v7 = vpop.f32.mrb[77].mxu0  ;;  %vm3924_vm4 = vcmp.ge.f32.partialorder %v1522_v6, 0.0  ;;  %v4201_v8 = vmul.f32 %v10028_v46, %v1522_v6  ;;  %v1524_v10 = vpop.f32.mrb[77].mxu1 }
 0x1db   : > { %vm3923_vm5 = vcmp.ge.f32.partialorder %v1171_v7, 0.0  ;;  %v4200_v9 = vmul.f32 %v10031_v47, %v1171_v7  ;;  %v1173_v11 = vpop.f32.mrb[78].mxu0  ;;  %vm3925_vm6 = vcmp.ge.f32.partialorder %v1524_v10, 0.0  ;;  %v4202_v13 = vmul.f32 %v10035_v48, %v1524_v10  ;;  %v1526_v14 = vpop.f32.mrb[78].mxu1 }
 0x1dc   : > { %v4455_v12 = vsel %vm3922_vm3, %v1169_v4, %v4199_v5  ;;  %vm3926_vm7 = vcmp.ge.f32.partialorder %v1173_v11, 0.0  ;;  %v1175_v15 = vpop.f32.mrb[79].mxu0  ;;  %v4457_v16 = vsel %vm3924_vm4, %v1522_v6, %v4201_v8  ;;  %v4203_v18 = vmul.f32 %v10023_v45, %v1173_v11  ;;  %v1528_v19 = vpop.f32.mrb[79].mxu1 }
 0x1dd   : > { %4711 = vst [vmem:[%s10045_s7 + $0x4c0] sm:$0xff] %v4455_v12  ;;  %v4456_v17 = vsel %vm3923_vm5, %v1171_v7, %v4200_v9  ;;  %vm3928_vm8 = vcmp.ge.f32.partialorder %v1526_v14, 0.0  ;;  %4713 = vst [vmem:[%s10045_s7 + $0x4d0] sm:$0xff] %v4457_v16  ;;  %v4458_v24 = vsel %vm3925_vm6, %v1524_v10, %v4202_v13  ;;  %v4205_v27 = vmul.f32 %v10028_v46, %v1526_v14 }
 0x1de   : > { %4712 = vst [vmem:[%s10045_s7 + $0x4c8] sm:$0xff] %v4456_v17  ;;  %vm3927_vm9 = vcmp.ge.f32.partialorder %v1175_v15, 0.0  ;;  %v4204_v28 = vmul.f32 %v10031_v47, %v1175_v15  ;;  %8269 = vmatmul.mubr.msk.bf16.gmra.mrb[184].mxu0 %vm848_vm0, %v9346_v29  ;;  %4714 = vst [vmem:[%s10045_s7 + $0x4d8] sm:$0xff] %v4458_v24  ;;  %v4459_v30 = vsel %vm3926_vm7, %v1173_v11, %v4203_v18  ;;  %vm3929_vm10 = vcmp.ge.f32.partialorder %v1528_v19, 0.0  ;;  %v9348_v18 = vld [vmem:[%s13218_s1 + $0x80] sm:$0xff]  }
 0x1df   : > { %v4206_v31 = vmul.f32 %v10035_v48, %v1528_v19  ;;  %8301 = vmatmul.mubr.msk.bf16.gmra.mrb[184].mxu1 %vm848_vm0, %v9346_v29  ;;  %1833 = vmatprep.mubr.bf16.mxu0 %v9578_v0  ;;  %4715 = vst [vmem:[%s10045_s7 + $0x4e0] sm:$0xff] %v4459_v30  ;;  %v4461_v32 = vsel %vm3928_vm8, %v1526_v14, %v4205_v27 }
 0x1e0   : > { %v4460_v33 = vsel %vm3927_vm9, %v1175_v15, %v4204_v28  ;;  %2186 = vmatprep.mubr.bf16.mxu1 %v9578_v0  ;;  %4717 = vst [vmem:[%s10045_s7 + $0x4f0] sm:$0xff] %v4461_v32 }
 0x1e1   : > { %4716 = vst [vmem:[%s10045_s7 + $0x4e8] sm:$0xff] %v4460_v33  ;;  %v4462_v34 = vsel %vm3929_vm10, %v1528_v19, %v4206_v31  ;;  %v1179_v35 = vpop.f32.mrb[80].mxu0  ;;  %v1532_v37 = vpop.f32.mrb[80].mxu1 }
 0x1e2   : > { %4718 = vst [vmem:[%s10045_s7 + $0x4f8] sm:$0xff] %v4462_v34  ;;  %vm3930_vm11 = vcmp.ge.f32.partialorder %v1179_v35, 0.0  ;;  %v4207_v36 = vmul.f32 %v10023_v45, %v1179_v35  ;;  %v1181_v38 = vpop.f32.mrb[81].mxu0  ;;  %vm3932_vm12 = vcmp.ge.f32.partialorder %v1532_v37, 0.0  ;;  %v4209_v41 = vmul.f32 %v10028_v46, %v1532_v37  ;;  %v1534_v50 = vpop.f32.mrb[81].mxu1 }
 0x1e3   : > { %vm3931_vm13 = vcmp.ge.f32.partialorder %v1181_v38, 0.0  ;;  %v4208_v49 = vmul.f32 %v10031_v47, %v1181_v38  ;;  %v1183_v51 = vpop.f32.mrb[82].mxu0  ;;  %vm3933_vm14 = vcmp.ge.f32.partialorder %v1534_v50, 0.0  ;;  %v4210_v53 = vmul.f32 %v10035_v48, %v1534_v50  ;;  %v1536_v54 = vpop.f32.mrb[82].mxu1 }
 0x1e4   : > { %v4463_v52 = vsel %vm3930_vm11, %v1179_v35, %v4207_v36  ;;  %vm3934_vm15 = vcmp.ge.f32.partialorder %v1183_v51, 0.0  ;;  %v1185_v55 = vpop.f32.mrb[83].mxu0  ;;  %v4465_v56 = vsel %vm3932_vm12, %v1532_v37, %v4209_v41  ;;  %v4211_v39 = vmul.f32 %v10023_v45, %v1183_v51  ;;  %v1538_v58 = vpop.f32.mrb[83].mxu1 }
 0x1e5   : > { %4719 = vst [vmem:[%s10045_s7 + $0x500] sm:$0xff] %v4463_v52  ;;  %v4464_v57 = vsel %vm3931_vm13, %v1181_v38, %v4208_v49  ;;  %vm3936_vm1 = vcmp.ge.f32.partialorder %v1536_v54, 0.0  ;;  %4721 = vst [vmem:[%s10045_s7 + $0x510] sm:$0xff] %v4465_v56  ;;  %v4466_v59 = vsel %vm3933_vm14, %v1534_v50, %v4210_v53  ;;  %v4213_v60 = vmul.f32 %v10028_v46, %v1536_v54  ;;  %v10639_v52 = vld [vmem:[%s9760_s30 + $0x70] sm:$0xff] }
 0x1e6   : > { %4720 = vst [vmem:[%s10045_s7 + $0x508] sm:$0xff] %v4464_v57  ;;  %vm3935_vm2 = vcmp.ge.f32.partialorder %v1185_v55, 0.0  ;;  %v4212_v20 = vmul.f32 %v10031_v47, %v1185_v55  ;;  %8270 = vmatmul.mubr.msk.bf16.gmra.mrb[188].mxu0 %vm848_vm0, %v9347_v21  ;;  %4722 = vst [vmem:[%s10045_s7 + $0x518] sm:$0xff] %v4466_v59  ;;  %v4467_v23 = vsel %vm3934_vm15, %v1183_v51, %v4211_v39  ;;  %vm3937_vm3 = vcmp.ge.f32.partialorder %v1538_v58, 0.0  ;;  %v10636_v51 = vld [vmem:[%s9760_s30 + $0x30] sm:$0xff]  ;;  %v10644_v57 = vld [vmem:[%s9760_s30 + $0x38] sm:$0xff] }
 0x1e7   : > { %v4214_v61 = vmul.f32 %v10035_v48, %v1538_v58  ;;  %8302 = vmatmul.mubr.msk.bf16.gmra.mrb[188].mxu1 %vm848_vm0, %v9347_v21  ;;  %1843 = vmatprep.mubr.bf16.mxu0 %v9578_v0  ;;  %4723 = vst [vmem:[%s10045_s7 + $0x520] sm:$0xff] %v4467_v23  ;;  %v4469_v62 = vsel %vm3936_vm1, %v1536_v54, %v4213_v60  ;;  %v10647_v39 = vld [vmem:[%s9760_s30 + $0x78] sm:$0xff] }
 0x1e8   : > { %v4468_v22 = vsel %vm3935_vm2, %v1185_v55, %v4212_v20  ;;  %2196 = vmatprep.mubr.bf16.mxu1 %v9578_v0  ;;  %4725 = vst [vmem:[%s10045_s7 + $0x530] sm:$0xff] %v4469_v62  ;;  %v9349_v20 = vld [vmem:[%s13218_s1 + $0x88] sm:$0xff]  }
 0x1e9   : > { %4724 = vst [vmem:[%s10045_s7 + $0x528] sm:$0xff] %v4468_v22  ;;  %v4470_v25 = vsel %vm3937_vm3, %v1538_v58, %v4214_v61  ;;  %v1189_v26 = vpop.f32.mrb[84].mxu0  ;;  %v1542_v1 = vpop.f32.mrb[84].mxu1  ;;  %v8139_v61 = vcombine.low %v10636_v51, %v10639_v52 }
 0x1ea   : > { %4726 = vst [vmem:[%s10045_s7 + $0x538] sm:$0xff] %v4470_v25  ;;  %vm3938_vm4 = vcmp.ge.f32.partialorder %v1189_v26, 0.0  ;;  %v4215_v63 = vmul.f32 %v10023_v45, %v1189_v26  ;;  %v1191_v2 = vpop.f32.mrb[85].mxu0  ;;  %vm3940_vm5 = vcmp.ge.f32.partialorder %v1542_v1, 0.0  ;;  %v4217_v3 = vmul.f32 %v10028_v46, %v1542_v1  ;;  %v1544_v5 = vpop.f32.mrb[85].mxu1 }
 0x1eb   : > { %vm3939_vm6 = vcmp.ge.f32.partialorder %v1191_v2, 0.0  ;;  %v4216_v4 = vmul.f32 %v10031_v47, %v1191_v2  ;;  %v1193_v6 = vpop.f32.mrb[86].mxu0  ;;  %vm3941_vm7 = vcmp.ge.f32.partialorder %v1544_v5, 0.0  ;;  %v4218_v8 = vmul.f32 %v10035_v48, %v1544_v5  ;;  %v1546_v9 = vpop.f32.mrb[86].mxu1 }
 0x1ec   : > { %v4471_v7 = vsel %vm3938_vm4, %v1189_v26, %v4215_v63  ;;  %vm3942_vm8 = vcmp.ge.f32.partialorder %v1193_v6, 0.0  ;;  %v1195_v10 = vpop.f32.mrb[87].mxu0  ;;  %v4473_v11 = vsel %vm3940_vm5, %v1542_v1, %v4217_v3  ;;  %v4219_v13 = vmul.f32 %v10023_v45, %v1193_v6  ;;  %v1548_v14 = vpop.f32.mrb[87].mxu1 }
 0x1ed   : > { %4727 = vst [vmem:[%s10045_s7 + $0x540] sm:$0xff] %v4471_v7  ;;  %v4472_v12 = vsel %vm3939_vm6, %v1191_v2, %v4216_v4  ;;  %vm3944_vm9 = vcmp.ge.f32.partialorder %v1546_v9, 0.0  ;;  %4729 = vst [vmem:[%s10045_s7 + $0x550] sm:$0xff] %v4473_v11  ;;  %v4474_v15 = vsel %vm3941_vm7, %v1544_v5, %v4218_v8  ;;  %v4221_v16 = vmul.f32 %v10028_v46, %v1546_v9 }
 0x1ee   : > { %4728 = vst [vmem:[%s10045_s7 + $0x548] sm:$0xff] %v4472_v12  ;;  %vm3943_vm10 = vcmp.ge.f32.partialorder %v1195_v10, 0.0  ;;  %v4220_v17 = vmul.f32 %v10031_v47, %v1195_v10  ;;  %8271 = vmatmul.mubr.msk.bf16.gmra.mrb[192].mxu0 %vm848_vm0, %v9348_v18  ;;  %4730 = vst [vmem:[%s10045_s7 + $0x558] sm:$0xff] %v4474_v15  ;;  %v4475_v19 = vsel %vm3942_vm8, %v1193_v6, %v4219_v13  ;;  %vm3945_vm11 = vcmp.ge.f32.partialorder %v1548_v14, 0.0 }
 0x1ef   : > { %v4222_v24 = vmul.f32 %v10035_v48, %v1548_v14  ;;  %8303 = vmatmul.mubr.msk.bf16.gmra.mrb[192].mxu1 %vm848_vm0, %v9348_v18  ;;  %1853 = vmatprep.mubr.bf16.mxu0 %v9578_v0  ;;  %4731 = vst [vmem:[%s10045_s7 + $0x560] sm:$0xff] %v4475_v19  ;;  %v4477_v27 = vsel %vm3944_vm9, %v1546_v9, %v4221_v16 }
 0x1f0   : > { %v4476_v28 = vsel %vm3943_vm10, %v1195_v10, %v4220_v17  ;;  %2206 = vmatprep.mubr.bf16.mxu1 %v9578_v0  ;;  %4733 = vst [vmem:[%s10045_s7 + $0x570] sm:$0xff] %v4477_v27  ;;  %v8140_v25 = vcombine.high %v10636_v51, %v10639_v52  ;;  %v8141_v26 = vcombine.low %v10644_v57, %v10647_v39  ;;  %v9350_v27 = vld [vmem:[%s13218_s1 + $0x90] sm:$0xff]  }
 0x1f1   : > { %4732 = vst [vmem:[%s10045_s7 + $0x568] sm:$0xff] %v4476_v28  ;;  %v4478_v29 = vsel %vm3945_vm11, %v1548_v14, %v4222_v24  ;;  %v1199_v30 = vpop.f32.mrb[88].mxu0  ;;  %v1552_v32 = vpop.f32.mrb[88].mxu1  ;;  %v8142_v2 = vcombine.high %v10644_v57, %v10647_v39 }
 0x1f2   : > { %4734 = vst [vmem:[%s10045_s7 + $0x578] sm:$0xff] %v4478_v29  ;;  %vm3946_vm12 = vcmp.ge.f32.partialorder %v1199_v30, 0.0  ;;  %v4223_v31 = vmul.f32 %v10023_v45, %v1199_v30  ;;  %v1201_v33 = vpop.f32.mrb[89].mxu0  ;;  %vm3948_vm13 = vcmp.ge.f32.partialorder %v1552_v32, 0.0  ;;  %v4225_v34 = vmul.f32 %v10028_v46, %v1552_v32  ;;  %v1554_v36 = vpop.f32.mrb[89].mxu1  ;;  %3063 = vmatprep.subr.bf16.mxu0 %v8140_v25 }
 0x1f3   : > { %vm3947_vm14 = vcmp.ge.f32.partialorder %v1201_v33, 0.0  ;;  %v4224_v35 = vmul.f32 %v10031_v47, %v1201_v33  ;;  %v1203_v37 = vpop.f32.mrb[90].mxu0  ;;  %vm3949_vm15 = vcmp.ge.f32.partialorder %v1554_v36, 0.0  ;;  %v4226_v41 = vmul.f32 %v10035_v48, %v1554_v36  ;;  %v1556_v49 = vpop.f32.mrb[90].mxu1  ;;  %3416 = vmatprep.subr.bf16.mxu1 %v8142_v2 }
 0x1f4   : > { %v4479_v38 = vsel %vm3946_vm12, %v1199_v30, %v4223_v31  ;;  %vm3950_vm1 = vcmp.ge.f32.partialorder %v1203_v37, 0.0  ;;  %v1205_v50 = vpop.f32.mrb[91].mxu0  ;;  %v4481_v53 = vsel %vm3948_vm13, %v1552_v32, %v4225_v34  ;;  %v4227_v55 = vmul.f32 %v10023_v45, %v1203_v37  ;;  %v1558_v56 = vpop.f32.mrb[91].mxu1 }
 0x1f5   : > { %4735 = vst [vmem:[%s10045_s7 + $0x580] sm:$0xff] %v4479_v38  ;;  %v4480_v54 = vsel %vm3947_vm14, %v1201_v33, %v4224_v35  ;;  %vm3952_vm2 = vcmp.ge.f32.partialorder %v1556_v49, 0.0  ;;  %4737 = vst [vmem:[%s10045_s7 + $0x590] sm:$0xff] %v4481_v53  ;;  %v4482_v58 = vsel %vm3949_vm15, %v1554_v36, %v4226_v41  ;;  %v4229_v59 = vmul.f32 %v10028_v46, %v1556_v49 }
 0x1f6   : > { %4736 = vst [vmem:[%s10045_s7 + $0x588] sm:$0xff] %v4480_v54  ;;  %vm3951_vm3 = vcmp.ge.f32.partialorder %v1205_v50, 0.0  ;;  %v4228_v60 = vmul.f32 %v10031_v47, %v1205_v50  ;;  %8272 = vmatmul.mubr.msk.bf16.gmra.mrb[196].mxu0 %vm848_vm0, %v9349_v20  ;;  %4738 = vst [vmem:[%s10045_s7 + $0x598] sm:$0xff] %v4482_v58  ;;  %v4483_v21 = vsel %vm3950_vm1, %v1203_v37, %v4227_v55  ;;  %vm3953_vm4 = vcmp.ge.f32.partialorder %v1558_v56, 0.0 }
 0x1f7   : > { %v4230_v23 = vmul.f32 %v10035_v48, %v1558_v56  ;;  %8304 = vmatmul.mubr.msk.bf16.gmra.mrb[196].mxu1 %vm848_vm0, %v9349_v20  ;;  %1863 = vmatprep.mubr.bf16.mxu0 %v9578_v0  ;;  %4739 = vst [vmem:[%s10045_s7 + $0x5a0] sm:$0xff] %v4483_v21  ;;  %v4485_v62 = vsel %vm3952_vm2, %v1556_v49, %v4229_v59 }
 0x1f8   : > { %v4484_v22 = vsel %vm3951_vm3, %v1205_v50, %v4228_v60  ;;  %2216 = vmatprep.mubr.bf16.mxu1 %v9578_v0  ;;  %4741 = vst [vmem:[%s10045_s7 + $0x5b0] sm:$0xff] %v4485_v62  ;;  %v9351_v62 = vld [vmem:[%s13218_s1 + $0x98] sm:$0xff]  }
 0x1f9   : > { %4740 = vst [vmem:[%s10045_s7 + $0x5a8] sm:$0xff] %v4484_v22  ;;  %v4486_v63 = vsel %vm3953_vm4, %v1558_v56, %v4230_v23  ;;  %v1209_v1 = vpop.f32.mrb[92].mxu0  ;;  %v1562_v4 = vpop.f32.mrb[92].mxu1 }
 0x1fa   : > { %4742 = vst [vmem:[%s10045_s7 + $0x5b8] sm:$0xff] %v4486_v63  ;;  %vm3954_vm5 = vcmp.ge.f32.partialorder %v1209_v1, 0.0  ;;  %v4231_v3 = vmul.f32 %v10023_v45, %v1209_v1  ;;  %v1211_v5 = vpop.f32.mrb[93].mxu0  ;;  %vm3956_vm6 = vcmp.ge.f32.partialorder %v1562_v4, 0.0  ;;  %v4233_v6 = vmul.f32 %v10028_v46, %v1562_v4  ;;  %v1564_v8 = vpop.f32.mrb[93].mxu1 }
 0x1fb   : > { %vm3955_vm7 = vcmp.ge.f32.partialorder %v1211_v5, 0.0  ;;  %v4232_v7 = vmul.f32 %v10031_v47, %v1211_v5  ;;  %v1213_v9 = vpop.f32.mrb[94].mxu0  ;;  %vm3957_vm8 = vcmp.ge.f32.partialorder %v1564_v8, 0.0  ;;  %v4234_v11 = vmul.f32 %v10035_v48, %v1564_v8  ;;  %v1566_v12 = vpop.f32.mrb[94].mxu1 }
 0x1fc   : > { %v4487_v10 = vsel %vm3954_vm5, %v1209_v1, %v4231_v3  ;;  %vm3958_vm9 = vcmp.ge.f32.partialorder %v1213_v9, 0.0  ;;  %v1215_v13 = vpop.f32.mrb[95].mxu0  ;;  %v4489_v14 = vsel %vm3956_vm6, %v1562_v4, %v4233_v6  ;;  %v4235_v16 = vmul.f32 %v10023_v45, %v1213_v9  ;;  %v1568_v17 = vpop.f32.mrb[95].mxu1 }
 0x1fd   : > { %4743 = vst [vmem:[%s10045_s7 + $0x5c0] sm:$0xff] %v4487_v10  ;;  %v4488_v15 = vsel %vm3955_vm7, %v1211_v5, %v4232_v7  ;;  %vm3960_vm10 = vcmp.ge.f32.partialorder %v1566_v12, 0.0  ;;  %4745 = vst [vmem:[%s10045_s7 + $0x5d0] sm:$0xff] %v4489_v14  ;;  %v4490_v18 = vsel %vm3957_vm8, %v1564_v8, %v4234_v11  ;;  %v4237_v19 = vmul.f32 %v10028_v46, %v1566_v12 }
 0x1fe   : > { %4744 = vst [vmem:[%s10045_s7 + $0x5c8] sm:$0xff] %v4488_v15  ;;  %vm3959_vm11 = vcmp.ge.f32.partialorder %v1215_v13, 0.0  ;;  %v4236_v24 = vmul.f32 %v10031_v47, %v1215_v13  ;;  %8273 = vmatmul.mubr.msk.bf16.gmra.mrb[200].mxu0 %vm848_vm0, %v9350_v27  ;;  %4746 = vst [vmem:[%s10045_s7 + $0x5d8] sm:$0xff] %v4490_v18  ;;  %v4491_v28 = vsel %vm3958_vm9, %v1213_v9, %v4235_v16  ;;  %vm3961_vm12 = vcmp.ge.f32.partialorder %v1568_v17, 0.0 }
 0x1ff   : > { %v4238_v29 = vmul.f32 %v10035_v48, %v1568_v17  ;;  %8305 = vmatmul.mubr.msk.bf16.gmra.mrb[200].mxu1 %vm848_vm0, %v9350_v27  ;;  %1873 = vmatprep.mubr.bf16.mxu0 %v9578_v0  ;;  %4747 = vst [vmem:[%s10045_s7 + $0x5e0] sm:$0xff] %v4491_v28  ;;  %v4493_v30 = vsel %vm3960_vm10, %v1566_v12, %v4237_v19  ;;  %v9352_v28 = vld [vmem:[%s13218_s1 + $0xa0] sm:$0xff]  }
 0x200   : > { %v4492_v31 = vsel %vm3959_vm11, %v1215_v13, %v4236_v24  ;;  %2226 = vmatprep.mubr.bf16.mxu1 %v9578_v0  ;;  %4749 = vst [vmem:[%s10045_s7 + $0x5f0] sm:$0xff] %v4493_v30 }
 0x201   : > { %4748 = vst [vmem:[%s10045_s7 + $0x5e8] sm:$0xff] %v4492_v31  ;;  %v4494_v32 = vsel %vm3961_vm12, %v1568_v17, %v4238_v29  ;;  %v1219_v33 = vpop.f32.mrb[96].mxu0  ;;  %v1572_v35 = vpop.f32.mrb[96].mxu1 }
 0x202   : > { %4750 = vst [vmem:[%s10045_s7 + $0x5f8] sm:$0xff] %v4494_v32  ;;  %vm3962_vm13 = vcmp.ge.f32.partialorder %v1219_v33, 0.0  ;;  %v4239_v34 = vmul.f32 %v10023_v45, %v1219_v33  ;;  %v1221_v36 = vpop.f32.mrb[97].mxu0  ;;  %vm3964_vm14 = vcmp.ge.f32.partialorder %v1572_v35, 0.0  ;;  %v4241_v37 = vmul.f32 %v10028_v46, %v1572_v35  ;;  %v1574_v41 = vpop.f32.mrb[97].mxu1 }
 0x203   : > { %vm3963_vm15 = vcmp.ge.f32.partialorder %v1221_v36, 0.0  ;;  %v4240_v38 = vmul.f32 %v10031_v47, %v1221_v36  ;;  %v1223_v49 = vpop.f32.mrb[98].mxu0  ;;  %vm3965_vm1 = vcmp.ge.f32.partialorder %v1574_v41, 0.0  ;;  %v4242_v53 = vmul.f32 %v10035_v48, %v1574_v41  ;;  %v1576_v54 = vpop.f32.mrb[98].mxu1 }
 0x204   : > { %v4495_v50 = vsel %vm3962_vm13, %v1219_v33, %v4239_v34  ;;  %vm3966_vm2 = vcmp.ge.f32.partialorder %v1223_v49, 0.0  ;;  %v1225_v55 = vpop.f32.mrb[99].mxu0  ;;  %v4497_v56 = vsel %vm3964_vm14, %v1572_v35, %v4241_v37  ;;  %v4243_v59 = vmul.f32 %v10023_v45, %v1223_v49  ;;  %v1578_v60 = vpop.f32.mrb[99].mxu1 }
 0x205   : > { %4751 = vst [vmem:[%s10045_s7 + $0x600] sm:$0xff] %v4495_v50  ;;  %v4496_v58 = vsel %vm3963_vm15, %v1221_v36, %v4240_v38  ;;  %vm3968_vm3 = vcmp.ge.f32.partialorder %v1576_v54, 0.0  ;;  %4753 = vst [vmem:[%s10045_s7 + $0x610] sm:$0xff] %v4497_v56  ;;  %v4498_v20 = vsel %vm3965_vm1, %v1574_v41, %v4242_v53  ;;  %v4245_v21 = vmul.f32 %v10028_v46, %v1576_v54 }
 0x206   : > { %4752 = vst [vmem:[%s10045_s7 + $0x608] sm:$0xff] %v4496_v58  ;;  %vm3967_vm4 = vcmp.ge.f32.partialorder %v1225_v55, 0.0  ;;  %v4244_v23 = vmul.f32 %v10031_v47, %v1225_v55  ;;  %8274 = vmatmul.mubr.msk.bf16.gmra.mrb[204].mxu0 %vm848_vm0, %v9351_v62  ;;  %4754 = vst [vmem:[%s10045_s7 + $0x618] sm:$0xff] %v4498_v20  ;;  %v4499_v22 = vsel %vm3966_vm2, %v1223_v49, %v4243_v59  ;;  %vm3969_vm5 = vcmp.ge.f32.partialorder %v1578_v60, 0.0 }
 0x207   : > { %v4246_v25 = vmul.f32 %v10035_v48, %v1578_v60  ;;  %8306 = vmatmul.mubr.msk.bf16.gmra.mrb[204].mxu1 %vm848_vm0, %v9351_v62  ;;  %1883 = vmatprep.mubr.bf16.mxu0 %v9578_v0  ;;  %4755 = vst [vmem:[%s10045_s7 + $0x620] sm:$0xff] %v4499_v22  ;;  %v4501_v63 = vsel %vm3968_vm3, %v1576_v54, %v4245_v21  ;;  %v9353_v22 = vld [vmem:[%s13218_s1 + $0xa8] sm:$0xff]  }
 0x208   : > { %v4500_v1 = vsel %vm3967_vm4, %v1225_v55, %v4244_v23  ;;  %2236 = vmatprep.mubr.bf16.mxu1 %v9578_v0  ;;  %4757 = vst [vmem:[%s10045_s7 + $0x630] sm:$0xff] %v4501_v63 }
 0x209   : > { %4756 = vst [vmem:[%s10045_s7 + $0x628] sm:$0xff] %v4500_v1  ;;  %v4502_v2 = vsel %vm3969_vm5, %v1578_v60, %v4246_v25  ;;  %v1229_v3 = vpop.f32.mrb[100].mxu0  ;;  %v1582_v5 = vpop.f32.mrb[100].mxu1 }
 0x20a   : > { %4758 = vst [vmem:[%s10045_s7 + $0x638] sm:$0xff] %v4502_v2  ;;  %vm3970_vm6 = vcmp.ge.f32.partialorder %v1229_v3, 0.0  ;;  %v4247_v4 = vmul.f32 %v10023_v45, %v1229_v3  ;;  %v1231_v6 = vpop.f32.mrb[101].mxu0  ;;  %vm3972_vm7 = vcmp.ge.f32.partialorder %v1582_v5, 0.0  ;;  %v4249_v7 = vmul.f32 %v10028_v46, %v1582_v5  ;;  %v1584_v9 = vpop.f32.mrb[101].mxu1 }
 0x20b   : > { %vm3971_vm8 = vcmp.ge.f32.partialorder %v1231_v6, 0.0  ;;  %v4248_v8 = vmul.f32 %v10031_v47, %v1231_v6  ;;  %v1233_v10 = vpop.f32.mrb[102].mxu0  ;;  %vm3973_vm9 = vcmp.ge.f32.partialorder %v1584_v9, 0.0  ;;  %v4250_v12 = vmul.f32 %v10035_v48, %v1584_v9  ;;  %v1586_v13 = vpop.f32.mrb[102].mxu1 }
 0x20c   : > { %v4503_v11 = vsel %vm3970_vm6, %v1229_v3, %v4247_v4  ;;  %vm3974_vm10 = vcmp.ge.f32.partialorder %v1233_v10, 0.0  ;;  %v1235_v14 = vpop.f32.mrb[103].mxu0  ;;  %v4505_v15 = vsel %vm3972_vm7, %v1582_v5, %v4249_v7  ;;  %v4251_v17 = vmul.f32 %v10023_v45, %v1233_v10  ;;  %v1588_v18 = vpop.f32.mrb[103].mxu1 }
 0x20d   : > { %4759 = vst [vmem:[%s10045_s7 + $0x640] sm:$0xff] %v4503_v11  ;;  %v4504_v16 = vsel %vm3971_vm8, %v1231_v6, %v4248_v8  ;;  %vm3976_vm11 = vcmp.ge.f32.partialorder %v1586_v13, 0.0  ;;  %4761 = vst [vmem:[%s10045_s7 + $0x650] sm:$0xff] %v4505_v15  ;;  %v4506_v19 = vsel %vm3973_vm9, %v1584_v9, %v4250_v12  ;;  %v4253_v24 = vmul.f32 %v10028_v46, %v1586_v13 }
 0x20e   : > { %4760 = vst [vmem:[%s10045_s7 + $0x648] sm:$0xff] %v4504_v16  ;;  %vm3975_vm12 = vcmp.ge.f32.partialorder %v1235_v14, 0.0  ;;  %v4252_v27 = vmul.f32 %v10031_v47, %v1235_v14  ;;  %8275 = vmatmul.mubr.msk.bf16.gmra.mrb[208].mxu0 %vm848_vm0, %v9352_v28  ;;  %4762 = vst [vmem:[%s10045_s7 + $0x658] sm:$0xff] %v4506_v19  ;;  %v4507_v29 = vsel %vm3974_vm10, %v1233_v10, %v4251_v17  ;;  %vm3977_vm13 = vcmp.ge.f32.partialorder %v1588_v18, 0.0 }
 0x20f   : > { %v4254_v30 = vmul.f32 %v10035_v48, %v1588_v18  ;;  %8307 = vmatmul.mubr.msk.bf16.gmra.mrb[208].mxu1 %vm848_vm0, %v9352_v28  ;;  %1893 = vmatprep.mubr.bf16.mxu0 %v9578_v0  ;;  %4763 = vst [vmem:[%s10045_s7 + $0x660] sm:$0xff] %v4507_v29  ;;  %v4509_v31 = vsel %vm3976_vm11, %v1586_v13, %v4253_v24  ;;  %v9354_v29 = vld [vmem:[%s13218_s1 + $0xb0] sm:$0xff]  }
 0x210   : > { %v4508_v32 = vsel %vm3975_vm12, %v1235_v14, %v4252_v27  ;;  %2246 = vmatprep.mubr.bf16.mxu1 %v9578_v0  ;;  %4765 = vst [vmem:[%s10045_s7 + $0x670] sm:$0xff] %v4509_v31 }
 0x211   : > { %4764 = vst [vmem:[%s10045_s7 + $0x668] sm:$0xff] %v4508_v32  ;;  %v4510_v33 = vsel %vm3977_vm13, %v1588_v18, %v4254_v30  ;;  %v1239_v34 = vpop.f32.mrb[104].mxu0  ;;  %v1592_v36 = vpop.f32.mrb[104].mxu1 }
 0x212   : > { %4766 = vst [vmem:[%s10045_s7 + $0x678] sm:$0xff] %v4510_v33  ;;  %vm3978_vm14 = vcmp.ge.f32.partialorder %v1239_v34, 0.0  ;;  %v4255_v35 = vmul.f32 %v10023_v45, %v1239_v34  ;;  %v1241_v37 = vpop.f32.mrb[105].mxu0  ;;  %vm3980_vm15 = vcmp.ge.f32.partialorder %v1592_v36, 0.0  ;;  %v4257_v38 = vmul.f32 %v10028_v46, %v1592_v36  ;;  %v1594_v49 = vpop.f32.mrb[105].mxu1 }
 0x213   : > { %vm3979_vm1 = vcmp.ge.f32.partialorder %v1241_v37, 0.0  ;;  %v4256_v41 = vmul.f32 %v10031_v47, %v1241_v37  ;;  %v1243_v50 = vpop.f32.mrb[106].mxu0  ;;  %vm3981_vm2 = vcmp.ge.f32.partialorder %v1594_v49, 0.0  ;;  %v4258_v54 = vmul.f32 %v10035_v48, %v1594_v49  ;;  %v1596_v55 = vpop.f32.mrb[106].mxu1 }
 0x214   : > { %v4511_v53 = vsel %vm3978_vm14, %v1239_v34, %v4255_v35  ;;  %vm3982_vm3 = vcmp.ge.f32.partialorder %v1243_v50, 0.0  ;;  %v1245_v56 = vpop.f32.mrb[107].mxu0  ;;  %v4513_v58 = vsel %vm3980_vm15, %v1592_v36, %v4257_v38  ;;  %v4259_v60 = vmul.f32 %v10023_v45, %v1243_v50  ;;  %v1598_v20 = vpop.f32.mrb[107].mxu1 }
 0x215   : > { %4767 = vst [vmem:[%s10045_s7 + $0x680] sm:$0xff] %v4511_v53  ;;  %v4512_v59 = vsel %vm3979_vm1, %v1241_v37, %v4256_v41  ;;  %vm3984_vm4 = vcmp.ge.f32.partialorder %v1596_v55, 0.0  ;;  %4769 = vst [vmem:[%s10045_s7 + $0x690] sm:$0xff] %v4513_v58  ;;  %v4514_v21 = vsel %vm3981_vm2, %v1594_v49, %v4258_v54  ;;  %v4261_v23 = vmul.f32 %v10028_v46, %v1596_v55 }
 0x216   : > { %4768 = vst [vmem:[%s10045_s7 + $0x688] sm:$0xff] %v4512_v59  ;;  %vm3983_vm5 = vcmp.ge.f32.partialorder %v1245_v56, 0.0  ;;  %v4260_v62 = vmul.f32 %v10031_v47, %v1245_v56  ;;  %8276 = vmatmul.mubr.msk.bf16.gmra.mrb[212].mxu0 %vm848_vm0, %v9353_v22  ;;  %4770 = vst [vmem:[%s10045_s7 + $0x698] sm:$0xff] %v4514_v21  ;;  %v4515_v25 = vsel %vm3982_vm3, %v1243_v50, %v4259_v60  ;;  %vm3985_vm6 = vcmp.ge.f32.partialorder %v1598_v20, 0.0 }
 0x217   : > { %v4262_v63 = vmul.f32 %v10035_v48, %v1598_v20  ;;  %8308 = vmatmul.mubr.msk.bf16.gmra.mrb[212].mxu1 %vm848_vm0, %v9353_v22  ;;  %1903 = vmatprep.mubr.bf16.mxu0 %v9578_v0  ;;  %4771 = vst [vmem:[%s10045_s7 + $0x6a0] sm:$0xff] %v4515_v25  ;;  %v4517_v1 = vsel %vm3984_vm4, %v1596_v55, %v4261_v23  ;;  %v9355_v25 = vld [vmem:[%s13218_s1 + $0xb8] sm:$0xff]  }
 0x218   : > { %v4516_v2 = vsel %vm3983_vm5, %v1245_v56, %v4260_v62  ;;  %2256 = vmatprep.mubr.bf16.mxu1 %v9578_v0  ;;  %4773 = vst [vmem:[%s10045_s7 + $0x6b0] sm:$0xff] %v4517_v1 }
 0x219   : > { %4772 = vst [vmem:[%s10045_s7 + $0x6a8] sm:$0xff] %v4516_v2  ;;  %v4518_v3 = vsel %vm3985_vm6, %v1598_v20, %v4262_v63  ;;  %v1249_v4 = vpop.f32.mrb[108].mxu0 }
 0x21a   : > { %4774 = vst [vmem:[%s10045_s7 + $0x6b8] sm:$0xff] %v4518_v3  ;;  %vm3986_vm7 = vcmp.ge.f32.partialorder %v1249_v4, 0.0  ;;  %v4263_v5 = vmul.f32 %v10023_v45, %v1249_v4  ;;  %v1602_v6 = vpop.f32.mrb[108].mxu1  ;;  %v1251_v7 = vpop.f32.mrb[109].mxu0 }
 0x21b   : > { %vm3988_vm8 = vcmp.ge.f32.partialorder %v1602_v6, 0.0  ;;  %v4265_v8 = vmul.f32 %v10028_v46, %v1602_v6  ;;  %vm3987_vm9 = vcmp.ge.f32.partialorder %v1251_v7, 0.0  ;;  %v4264_v9 = vmul.f32 %v10031_v47, %v1251_v7  ;;  %v1604_v10 = vpop.f32.mrb[109].mxu1  ;;  %v1253_v11 = vpop.f32.mrb[110].mxu0 }
 0x21c   : > { %v4519_v12 = vsel %vm3986_vm7, %v1249_v4, %v4263_v5  ;;  %vm3989_vm10 = vcmp.ge.f32.partialorder %v1604_v10, 0.0  ;;  %v4266_v13 = vmul.f32 %v10035_v48, %v1604_v10  ;;  %vm3990_vm11 = vcmp.ge.f32.partialorder %v1253_v11, 0.0  ;;  %v1606_v14 = vpop.f32.mrb[110].mxu1  ;;  %v1255_v15 = vpop.f32.mrb[111].mxu0 }
 0x21d   : > { %4775 = vst [vmem:[%s10045_s7 + $0x6c0] sm:$0xff] %v4519_v12  ;;  %v4521_v16 = vsel %vm3988_vm8, %v1602_v6, %v4265_v8  ;;  %v4520_v17 = vsel %vm3987_vm9, %v1251_v7, %v4264_v9  ;;  %v4267_v18 = vmul.f32 %v10023_v45, %v1253_v11  ;;  %vm3992_vm12 = vcmp.ge.f32.partialorder %v1606_v14, 0.0  ;;  %v1608_v19 = vpop.f32.mrb[111].mxu1 }
 0x21e   : > { %4777 = vst [vmem:[%s10045_s7 + $0x6d0] sm:$0xff] %v4521_v16  ;;  %4776 = vst [vmem:[%s10045_s7 + $0x6c8] sm:$0xff] %v4520_v17  ;;  %v4522_v24 = vsel %vm3989_vm10, %v1604_v10, %v4266_v13  ;;  %v4269_v27 = vmul.f32 %v10028_v46, %v1606_v14  ;;  %vm3991_vm13 = vcmp.ge.f32.partialorder %v1255_v15, 0.0  ;;  %v4268_v28 = vmul.f32 %v10031_v47, %v1255_v15 }
 0x21f   : > { %8277 = vmatmul.mubr.msk.bf16.gmra.mrb[216].mxu0 %vm848_vm0, %v9354_v29  ;;  %4778 = vst [vmem:[%s10045_s7 + $0x6d8] sm:$0xff] %v4522_v24  ;;  %v4523_v30 = vsel %vm3990_vm11, %v1253_v11, %v4267_v18  ;;  %vm3993_vm14 = vcmp.ge.f32.partialorder %v1608_v19, 0.0  ;;  %v4270_v31 = vmul.f32 %v10035_v48, %v1608_v19  ;;  %8309 = vmatmul.mubr.msk.bf16.gmra.mrb[216].mxu1 %vm848_vm0, %v9354_v29 }
 0x220   : > { %1913 = vmatprep.mubr.bf16.mxu0 %v9578_v0  ;;  %4779 = vst [vmem:[%s10045_s7 + $0x6e0] sm:$0xff] %v4523_v30  ;;  %v4525_v32 = vsel %vm3992_vm12, %v1606_v14, %v4269_v27  ;;  %v4524_v33 = vsel %vm3991_vm13, %v1255_v15, %v4268_v28  ;;  %2266 = vmatprep.mubr.bf16.mxu1 %v9578_v0  ;;  %v9356_v30 = vld [vmem:[%s13218_s1 + $0xc0] sm:$0xff]  }
 0x221   : > { %4781 = vst [vmem:[%s10045_s7 + $0x6f0] sm:$0xff] %v4525_v32  ;;  %4780 = vst [vmem:[%s10045_s7 + $0x6e8] sm:$0xff] %v4524_v33  ;;  %v4526_v34 = vsel %vm3993_vm14, %v1608_v19, %v4270_v31  ;;  %v1259_v35 = vpop.f32.mrb[112].mxu0 }
 0x222   : > { %4782 = vst [vmem:[%s10045_s7 + $0x6f8] sm:$0xff] %v4526_v34  ;;  %vm3994_vm15 = vcmp.ge.f32.partialorder %v1259_v35, 0.0  ;;  %v4271_v36 = vmul.f32 %v10023_v45, %v1259_v35  ;;  %v1612_v37 = vpop.f32.mrb[112].mxu1  ;;  %v1261_v38 = vpop.f32.mrb[113].mxu0 }
 0x223   : > { %vm3996_vm1 = vcmp.ge.f32.partialorder %v1612_v37, 0.0  ;;  %v4273_v41 = vmul.f32 %v10028_v46, %v1612_v37  ;;  %vm3995_vm2 = vcmp.ge.f32.partialorder %v1261_v38, 0.0  ;;  %v4272_v49 = vmul.f32 %v10031_v47, %v1261_v38  ;;  %v1614_v50 = vpop.f32.mrb[113].mxu1  ;;  %v1263_v53 = vpop.f32.mrb[114].mxu0 }
 0x224   : > { %v4527_v54 = vsel %vm3994_vm15, %v1259_v35, %v4271_v36  ;;  %vm3997_vm3 = vcmp.ge.f32.partialorder %v1614_v50, 0.0  ;;  %v4274_v55 = vmul.f32 %v10035_v48, %v1614_v50  ;;  %vm3998_vm4 = vcmp.ge.f32.partialorder %v1263_v53, 0.0  ;;  %v1616_v56 = vpop.f32.mrb[114].mxu1  ;;  %v1265_v58 = vpop.f32.mrb[115].mxu0 }
 0x225   : > { %4783 = vst [vmem:[%s10045_s7 + $0x700] sm:$0xff] %v4527_v54  ;;  %v4529_v59 = vsel %vm3996_vm1, %v1612_v37, %v4273_v41  ;;  %v4528_v60 = vsel %vm3995_vm2, %v1261_v38, %v4272_v49  ;;  %v4275_v20 = vmul.f32 %v10023_v45, %v1263_v53  ;;  %vm4000_vm5 = vcmp.ge.f32.partialorder %v1616_v56, 0.0  ;;  %v1618_v21 = vpop.f32.mrb[115].mxu1 }
 0x226   : > { %4785 = vst [vmem:[%s10045_s7 + $0x710] sm:$0xff] %v4529_v59  ;;  %4784 = vst [vmem:[%s10045_s7 + $0x708] sm:$0xff] %v4528_v60  ;;  %v4530_v23 = vsel %vm3997_vm3, %v1614_v50, %v4274_v55  ;;  %v4277_v62 = vmul.f32 %v10028_v46, %v1616_v56  ;;  %vm3999_vm6 = vcmp.ge.f32.partialorder %v1265_v58, 0.0  ;;  %v4276_v22 = vmul.f32 %v10031_v47, %v1265_v58 }
 0x227   : > { %8278 = vmatmul.mubr.msk.bf16.gmra.mrb[220].mxu0 %vm848_vm0, %v9355_v25  ;;  %4786 = vst [vmem:[%s10045_s7 + $0x718] sm:$0xff] %v4530_v23  ;;  %v4531_v63 = vsel %vm3998_vm4, %v1263_v53, %v4275_v20  ;;  %vm4001_vm7 = vcmp.ge.f32.partialorder %v1618_v21, 0.0  ;;  %v4278_v1 = vmul.f32 %v10035_v48, %v1618_v21  ;;  %8310 = vmatmul.mubr.msk.bf16.gmra.mrb[220].mxu1 %vm848_vm0, %v9355_v25 }
 0x228   : > { %1923 = vmatprep.mubr.bf16.mxu0 %v9578_v0  ;;  %4787 = vst [vmem:[%s10045_s7 + $0x720] sm:$0xff] %v4531_v63  ;;  %v4533_v2 = vsel %vm4000_vm5, %v1616_v56, %v4277_v62  ;;  %v4532_v3 = vsel %vm3999_vm6, %v1265_v58, %v4276_v22  ;;  %2276 = vmatprep.mubr.bf16.mxu1 %v9578_v0  ;;  %v9357_v63 = vld [vmem:[%s13218_s1 + $0xc8] sm:$0xff]  }
 0x229   : > { %4789 = vst [vmem:[%s10045_s7 + $0x730] sm:$0xff] %v4533_v2  ;;  %4788 = vst [vmem:[%s10045_s7 + $0x728] sm:$0xff] %v4532_v3  ;;  %v4534_v4 = vsel %vm4001_vm7, %v1618_v21, %v4278_v1  ;;  %v1269_v5 = vpop.f32.mrb[116].mxu0  ;;  %v4815_v3 = vld [vmem:[#allocation5 + $0x4] sm:$0xf] }
 0x22a   : > { %4790 = vst [vmem:[%s10045_s7 + $0x738] sm:$0xff] %v4534_v4  ;;  %vm4002_vm8 = vcmp.ge.f32.partialorder %v1269_v5, 0.0  ;;  %v4279_v6 = vmul.f32 %v10023_v45, %v1269_v5  ;;  %v1622_v7 = vpop.f32.mrb[116].mxu1  ;;  %v1271_v8 = vpop.f32.mrb[117].mxu0 }
 0x22b   : > { %vm4004_vm9 = vcmp.ge.f32.partialorder %v1622_v7, 0.0  ;;  %v4281_v9 = vmul.f32 %v10028_v46, %v1622_v7  ;;  %vm4003_vm10 = vcmp.ge.f32.partialorder %v1271_v8, 0.0  ;;  %v4280_v10 = vmul.f32 %v10031_v47, %v1271_v8  ;;  %v1624_v11 = vpop.f32.mrb[117].mxu1  ;;  %v1273_v12 = vpop.f32.mrb[118].mxu0 }
 0x22c   : > { %v4535_v13 = vsel %vm4002_vm8, %v1269_v5, %v4279_v6  ;;  %vm4005_vm11 = vcmp.ge.f32.partialorder %v1624_v11, 0.0  ;;  %v4282_v14 = vmul.f32 %v10035_v48, %v1624_v11  ;;  %vm4006_vm12 = vcmp.ge.f32.partialorder %v1273_v12, 0.0  ;;  %v1626_v15 = vpop.f32.mrb[118].mxu1  ;;  %v1275_v16 = vpop.f32.mrb[119].mxu0 }
 0x22d   : > { %4791 = vst [vmem:[%s10045_s7 + $0x740] sm:$0xff] %v4535_v13  ;;  %v4537_v17 = vsel %vm4004_vm9, %v1622_v7, %v4281_v9  ;;  %v4536_v18 = vsel %vm4003_vm10, %v1271_v8, %v4280_v10  ;;  %v4283_v19 = vmul.f32 %v10023_v45, %v1273_v12  ;;  %vm4008_vm13 = vcmp.ge.f32.partialorder %v1626_v15, 0.0  ;;  %v1628_v24 = vpop.f32.mrb[119].mxu1 }
 0x22e   : > { %4793 = vst [vmem:[%s10045_s7 + $0x750] sm:$0xff] %v4537_v17  ;;  %4792 = vst [vmem:[%s10045_s7 + $0x748] sm:$0xff] %v4536_v18  ;;  %v4538_v27 = vsel %vm4005_vm11, %v1624_v11, %v4282_v14  ;;  %v4285_v28 = vmul.f32 %v10028_v46, %v1626_v15  ;;  %vm4007_vm14 = vcmp.ge.f32.partialorder %v1275_v16, 0.0  ;;  %v4284_v29 = vmul.f32 %v10031_v47, %v1275_v16 }
 0x22f   : > { %8279 = vmatmul.mubr.msk.bf16.gmra.mrb[224].mxu0 %vm848_vm0, %v9356_v30  ;;  %4794 = vst [vmem:[%s10045_s7 + $0x758] sm:$0xff] %v4538_v27  ;;  %v4539_v31 = vsel %vm4006_vm12, %v1273_v12, %v4283_v19  ;;  %vm4009_vm15 = vcmp.ge.f32.partialorder %v1628_v24, 0.0  ;;  %v4286_v32 = vmul.f32 %v10035_v48, %v1628_v24  ;;  %8311 = vmatmul.mubr.msk.bf16.gmra.mrb[224].mxu1 %vm848_vm0, %v9356_v30 }
 0x230   : > { %1933 = vmatprep.mubr.bf16.mxu0 %v9578_v0  ;;  %4795 = vst [vmem:[%s10045_s7 + $0x760] sm:$0xff] %v4539_v31  ;;  %v4541_v33 = vsel %vm4008_vm13, %v1626_v15, %v4285_v28  ;;  %v4540_v34 = vsel %vm4007_vm14, %v1275_v16, %v4284_v29  ;;  %2286 = vmatprep.mubr.bf16.mxu1 %v9578_v0 }
 0x231   : > { %4797 = vst [vmem:[%s10045_s7 + $0x770] sm:$0xff] %v4541_v33  ;;  %4796 = vst [vmem:[%s10045_s7 + $0x768] sm:$0xff] %v4540_v34  ;;  %v4542_v35 = vsel %vm4009_vm15, %v1628_v24, %v4286_v32  ;;  %v1279_v36 = vpop.f32.mrb[120].mxu0  ;;  %v10879_v11 = vrot.slane %v4815_v3, %v10013_v40  ;;  %v10882_v12 = vrot.slane %v4815_v3, %v10015_v42  ;;  %v9358_v34 = vld [vmem:[%s13218_s1 + $0xd0] sm:$0xff]  }
 0x232   : > { %4798 = vst [vmem:[%s10045_s7 + $0x778] sm:$0xff] %v4542_v35  ;;  %vm4010_vm1 = vcmp.ge.f32.partialorder %v1279_v36, 0.0  ;;  %v4287_v37 = vmul.f32 %v10023_v45, %v1279_v36  ;;  %v1632_v38 = vpop.f32.mrb[120].mxu1  ;;  %v1281_v41 = vpop.f32.mrb[121].mxu0 }
 0x233   : > { %vm4012_vm2 = vcmp.ge.f32.partialorder %v1632_v38, 0.0  ;;  %v4289_v49 = vmul.f32 %v10028_v46, %v1632_v38  ;;  %vm4011_vm3 = vcmp.ge.f32.partialorder %v1281_v41, 0.0  ;;  %v4288_v50 = vmul.f32 %v10031_v47, %v1281_v41  ;;  %v1634_v53 = vpop.f32.mrb[121].mxu1  ;;  %v1283_v54 = vpop.f32.mrb[122].mxu0 }
 0x234   : > { %v4543_v55 = vsel %vm4010_vm1, %v1279_v36, %v4287_v37  ;;  %vm4013_vm4 = vcmp.ge.f32.partialorder %v1634_v53, 0.0  ;;  %v4290_v56 = vmul.f32 %v10035_v48, %v1634_v53  ;;  %vm4014_vm5 = vcmp.ge.f32.partialorder %v1283_v54, 0.0  ;;  %v1636_v58 = vpop.f32.mrb[122].mxu1  ;;  %v1285_v59 = vpop.f32.mrb[123].mxu0 }
 0x235   : > { %4799 = vst [vmem:[%s10045_s7 + $0x780] sm:$0xff] %v4543_v55  ;;  %v4545_v60 = vsel %vm4012_vm2, %v1632_v38, %v4289_v49  ;;  %v4544_v20 = vsel %vm4011_vm3, %v1281_v41, %v4288_v50  ;;  %v4291_v21 = vmul.f32 %v10023_v45, %v1283_v54  ;;  %vm4016_vm6 = vcmp.ge.f32.partialorder %v1636_v58, 0.0  ;;  %v1638_v23 = vpop.f32.mrb[123].mxu1 }
 0x236   : > { %4801 = vst [vmem:[%s10045_s7 + $0x790] sm:$0xff] %v4545_v60  ;;  %4800 = vst [vmem:[%s10045_s7 + $0x788] sm:$0xff] %v4544_v20  ;;  %v4546_v62 = vsel %vm4013_vm4, %v1634_v53, %v4290_v56  ;;  %v4293_v22 = vmul.f32 %v10028_v46, %v1636_v58  ;;  %vm4015_vm7 = vcmp.ge.f32.partialorder %v1285_v59, 0.0  ;;  %v4292_v25 = vmul.f32 %v10031_v47, %v1285_v59 }
 0x237   : > { %8280 = vmatmul.mubr.msk.bf16.gmra.mrb[228].mxu0 %vm848_vm0, %v9357_v63  ;;  %4802 = vst [vmem:[%s10045_s7 + $0x798] sm:$0xff] %v4546_v62  ;;  %v4547_v1 = vsel %vm4014_vm5, %v1283_v54, %v4291_v21  ;;  %vm4017_vm8 = vcmp.ge.f32.partialorder %v1638_v23, 0.0  ;;  %v4294_v2 = vmul.f32 %v10035_v48, %v1638_v23  ;;  %8312 = vmatmul.mubr.msk.bf16.gmra.mrb[228].mxu1 %vm848_vm0, %v9357_v63 }
 0x238   : > { %1943 = vmatprep.mubr.bf16.mxu0 %v9578_v0  ;;  %4803 = vst [vmem:[%s10045_s7 + $0x7a0] sm:$0xff] %v4547_v1  ;;  %v4549_v4 = vsel %vm4016_vm6, %v1636_v58, %v4293_v22  ;;  %v4548_v5 = vsel %vm4015_vm7, %v1285_v59, %v4292_v25  ;;  %2296 = vmatprep.mubr.bf16.mxu1 %v9578_v0 }
 0x239   : > { %4805 = vst [vmem:[%s10045_s7 + $0x7b0] sm:$0xff] %v4549_v4  ;;  %4804 = vst [vmem:[%s10045_s7 + $0x7a8] sm:$0xff] %v4548_v5  ;;  %v4550_v6 = vsel %vm4017_vm8, %v1638_v23, %v4294_v2  ;;  %v1289_v7 = vpop.f32.mrb[124].mxu0  ;;  %v10908_v37 = vrot.slane %v4815_v3, %v10019_v44  ;;  %v9359_v2 = vld [vmem:[%s13218_s1 + $0xd8] sm:$0xff]  }
 0x23a   : > { %4806 = vst [vmem:[%s10045_s7 + $0x7b8] sm:$0xff] %v4550_v6  ;;  %vm4018_vm9 = vcmp.ge.f32.partialorder %v1289_v7, 0.0  ;;  %v4295_v8 = vmul.f32 %v10023_v45, %v1289_v7  ;;  %v1642_v9 = vpop.f32.mrb[124].mxu1  ;;  %v1291_v10 = vpop.f32.mrb[125].mxu0 }
 0x23b   : > { %vm4020_vm10 = vcmp.ge.f32.partialorder %v1642_v9, 0.0  ;;  %v4297_v13 = vmul.f32 %v10028_v46, %v1642_v9  ;;  %vm4019_vm11 = vcmp.ge.f32.partialorder %v1291_v10, 0.0  ;;  %v4296_v14 = vmul.f32 %v10031_v47, %v1291_v10  ;;  %v1644_v15 = vpop.f32.mrb[125].mxu1  ;;  %v1293_v16 = vpop.f32.mrb[126].mxu0 }
 0x23c   : > { %v4551_v17 = vsel %vm4018_vm9, %v1289_v7, %v4295_v8  ;;  %vm4021_vm12 = vcmp.ge.f32.partialorder %v1644_v15, 0.0  ;;  %v4298_v18 = vmul.f32 %v10035_v48, %v1644_v15  ;;  %vm4022_vm13 = vcmp.ge.f32.partialorder %v1293_v16, 0.0  ;;  %v1646_v19 = vpop.f32.mrb[126].mxu1  ;;  %v1295_v24 = vpop.f32.mrb[127].mxu0 }
 0x23d   : > { %4807 = vst [vmem:[%s10045_s7 + $0x7c0] sm:$0xff] %v4551_v17  ;;  %v4553_v27 = vsel %vm4020_vm10, %v1642_v9, %v4297_v13  ;;  %v4552_v28 = vsel %vm4019_vm11, %v1291_v10, %v4296_v14  ;;  %v4299_v29 = vmul.f32 %v10023_v45, %v1293_v16  ;;  %vm4024_vm14 = vcmp.ge.f32.partialorder %v1646_v19, 0.0  ;;  %v1648_v30 = vpop.f32.mrb[127].mxu1 }
 0x23e   : > { %4809 = vst [vmem:[%s10045_s7 + $0x7d0] sm:$0xff] %v4553_v27  ;;  %4808 = vst [vmem:[%s10045_s7 + $0x7c8] sm:$0xff] %v4552_v28  ;;  %v4554_v31 = vsel %vm4021_vm12, %v1644_v15, %v4298_v18  ;;  %v4301_v32 = vmul.f32 %v10028_v46, %v1646_v19  ;;  %vm4023_vm15 = vcmp.ge.f32.partialorder %v1295_v24, 0.0  ;;  %v4300_v33 = vmul.f32 %v10031_v47, %v1295_v24 }
 0x23f   : > { %8281 = vmatmul.mubr.msk.bf16.gmra.mrb[232].mxu0 %vm848_vm0, %v9358_v34  ;;  %4810 = vst [vmem:[%s10045_s7 + $0x7d8] sm:$0xff] %v4554_v31  ;;  %v4555_v45 = vsel %vm4022_vm13, %v1293_v16, %v4299_v29  ;;  %vm4025_vm1 = vcmp.ge.f32.partialorder %v1648_v30, 0.0  ;;  %v4302_v35 = vmul.f32 %v10035_v48, %v1648_v30  ;;  %8313 = vmatmul.mubr.msk.bf16.gmra.mrb[232].mxu1 %vm848_vm0, %v9358_v34 }
 0x240   : > { %v10902_v46 = vrot.slane %v4815_v3, %v10017_v43  ;;  %1953 = vmatprep.mubr.bf16.mxu0 %v9578_v0  ;;  %4811 = vst [vmem:[%s10045_s7 + $0x7e0] sm:$0xff] %v4555_v45  ;;  %v4557_v47 = vsel %vm4024_vm14, %v1646_v19, %v4301_v32  ;;  %v4556_v36 = vsel %vm4023_vm15, %v1295_v24, %v4300_v33  ;;  %v9360_v45 = vld [vmem:[%s13218_s1 + $0xe0] sm:$0xff]  }
 0x241   : > { %2306 = vmatprep.mubr.bf16.mxu1 %v9578_v0  ;;  %4813 = vst [vmem:[%s10045_s7 + $0x7f0] sm:$0xff] %v4557_v47  ;;  %4812 = vst [vmem:[%s10045_s7 + $0x7e8] sm:$0xff] %v4556_v36  ;;  %v4558_v38 = vsel %vm4025_vm1, %v1648_v30, %v4302_v35  ;;  %v1685_v48 = vpop.f32.mrb[128].mxu0 }
 0x242   : > { %4814 = vst [vmem:[%s10045_s7 + $0x7f8] sm:$0xff] %v4558_v38  ;;  %vm4816_vm2 = vcmp.ge.f32.partialorder %v1685_v48, 0.0  ;;  %v5093_v41 = vmul.f32 %v10879_v11, %v1685_v48  ;;  %v2038_v49 = vpop.f32.mrb[128].mxu1  ;;  %v1687_v50 = vpop.f32.mrb[129].mxu0 }
 0x243   : > { %vm4818_vm3 = vcmp.ge.f32.partialorder %v2038_v49, 0.0  ;;  %v5095_v53 = vmul.f32 %v10882_v12, %v2038_v49  ;;  %vm4817_vm4 = vcmp.ge.f32.partialorder %v1687_v50, 0.0  ;;  %v5094_v54 = vmul.f32 %v10902_v46, %v1687_v50  ;;  %v2040_v55 = vpop.f32.mrb[129].mxu1  ;;  %v1689_v56 = vpop.f32.mrb[130].mxu0 }
 0x244   : > { %v5349_v58 = vsel %vm4816_vm2, %v1685_v48, %v5093_v41  ;;  %vm4819_vm5 = vcmp.ge.f32.partialorder %v2040_v55, 0.0  ;;  %v5096_v59 = vmul.f32 %v10908_v37, %v2040_v55  ;;  %vm4820_vm6 = vcmp.ge.f32.partialorder %v1689_v56, 0.0  ;;  %v2042_v60 = vpop.f32.mrb[130].mxu1  ;;  %v1691_v20 = vpop.f32.mrb[131].mxu0 }
 0x245   : > { %8447 = vst [vmem:[%s10045_s7 + $0x800] sm:$0xff] %v5349_v58  ;;  %v5351_v21 = vsel %vm4818_vm3, %v2038_v49, %v5095_v53  ;;  %v5350_v23 = vsel %vm4817_vm4, %v1687_v50, %v5094_v54  ;;  %v5097_v62 = vmul.f32 %v10879_v11, %v1689_v56  ;;  %vm4822_vm7 = vcmp.ge.f32.partialorder %v2042_v60, 0.0  ;;  %v2044_v22 = vpop.f32.mrb[131].mxu1 }
 0x246   : > { %8449 = vst [vmem:[%s10045_s7 + $0x810] sm:$0xff] %v5351_v21  ;;  %8448 = vst [vmem:[%s10045_s7 + $0x808] sm:$0xff] %v5350_v23  ;;  %v5352_v25 = vsel %vm4819_vm5, %v2040_v55, %v5096_v59  ;;  %v5099_v63 = vmul.f32 %v10882_v12, %v2042_v60  ;;  %vm4821_vm8 = vcmp.ge.f32.partialorder %v1691_v20, 0.0  ;;  %v5098_v1 = vmul.f32 %v10902_v46, %v1691_v20 }
 0x247   : > { %8282 = vmatmul.mubr.msk.bf16.gmra.mrb[236].mxu0 %vm848_vm0, %v9359_v2  ;;  %8450 = vst [vmem:[%s10045_s7 + $0x818] sm:$0xff] %v5352_v25  ;;  %v5353_v3 = vsel %vm4820_vm6, %v1689_v56, %v5097_v62  ;;  %vm4823_vm9 = vcmp.ge.f32.partialorder %v2044_v22, 0.0  ;;  %v5100_v4 = vmul.f32 %v10908_v37, %v2044_v22  ;;  %8314 = vmatmul.mubr.msk.bf16.gmra.mrb[236].mxu1 %vm848_vm0, %v9359_v2 }
 0x248   : > { %1963 = vmatprep.mubr.bf16.mxu0 %v9578_v0  ;;  %8451 = vst [vmem:[%s10045_s7 + $0x820] sm:$0xff] %v5353_v3  ;;  %v5355_v5 = vsel %vm4822_vm7, %v2042_v60, %v5099_v63  ;;  %v5354_v6 = vsel %vm4821_vm8, %v1691_v20, %v5098_v1  ;;  %2316 = vmatprep.mubr.bf16.mxu1 %v9578_v0  ;;  %v9361_v3 = vld [vmem:[%s13218_s1 + $0xe8] sm:$0xff]  }
 0x249   : > { %8453 = vst [vmem:[%s10045_s7 + $0x830] sm:$0xff] %v5355_v5  ;;  %8452 = vst [vmem:[%s10045_s7 + $0x828] sm:$0xff] %v5354_v6  ;;  %v5356_v7 = vsel %vm4823_vm9, %v2044_v22, %v5100_v4  ;;  %v1695_v8 = vpop.f32.mrb[132].mxu0 }
 0x24a   : > { %8454 = vst [vmem:[%s10045_s7 + $0x838] sm:$0xff] %v5356_v7  ;;  %vm4824_vm10 = vcmp.ge.f32.partialorder %v1695_v8, 0.0  ;;  %v5101_v9 = vmul.f32 %v10879_v11, %v1695_v8  ;;  %v2048_v10 = vpop.f32.mrb[132].mxu1  ;;  %v1697_v13 = vpop.f32.mrb[133].mxu0 }
 0x24b   : > { %vm4826_vm11 = vcmp.ge.f32.partialorder %v2048_v10, 0.0  ;;  %v5103_v14 = vmul.f32 %v10882_v12, %v2048_v10  ;;  %vm4825_vm12 = vcmp.ge.f32.partialorder %v1697_v13, 0.0  ;;  %v5102_v15 = vmul.f32 %v10902_v46, %v1697_v13  ;;  %v2050_v16 = vpop.f32.mrb[133].mxu1  ;;  %v1699_v17 = vpop.f32.mrb[134].mxu0 }
 0x24c   : > { %v5357_v18 = vsel %vm4824_vm10, %v1695_v8, %v5101_v9  ;;  %vm4827_vm13 = vcmp.ge.f32.partialorder %v2050_v16, 0.0  ;;  %v5104_v19 = vmul.f32 %v10908_v37, %v2050_v16  ;;  %vm4828_vm14 = vcmp.ge.f32.partialorder %v1699_v17, 0.0  ;;  %v2052_v24 = vpop.f32.mrb[134].mxu1  ;;  %v1701_v27 = vpop.f32.mrb[135].mxu0 }
 0x24d   : > { %8455 = vst [vmem:[%s10045_s7 + $0x840] sm:$0xff] %v5357_v18  ;;  %v5359_v28 = vsel %vm4826_vm11, %v2048_v10, %v5103_v14  ;;  %v5358_v29 = vsel %vm4825_vm12, %v1697_v13, %v5102_v15  ;;  %v5105_v30 = vmul.f32 %v10879_v11, %v1699_v17  ;;  %vm4830_vm15 = vcmp.ge.f32.partialorder %v2052_v24, 0.0  ;;  %v2054_v31 = vpop.f32.mrb[135].mxu1 }
 0x24e   : > { %8457 = vst [vmem:[%s10045_s7 + $0x850] sm:$0xff] %v5359_v28  ;;  %8456 = vst [vmem:[%s10045_s7 + $0x848] sm:$0xff] %v5358_v29  ;;  %v5360_v32 = vsel %vm4827_vm13, %v2050_v16, %v5104_v19  ;;  %v5107_v33 = vmul.f32 %v10882_v12, %v2052_v24  ;;  %vm4829_vm1 = vcmp.ge.f32.partialorder %v1701_v27, 0.0  ;;  %v5106_v34 = vmul.f32 %v10902_v46, %v1701_v27 }
 0x24f   : > { %8283 = vmatmul.mubr.msk.bf16.gmra.mrb[240].mxu0 %vm848_vm0, %v9360_v45  ;;  %8458 = vst [vmem:[%s10045_s7 + $0x858] sm:$0xff] %v5360_v32  ;;  %v5361_v35 = vsel %vm4828_vm14, %v1699_v17, %v5105_v30  ;;  %vm4831_vm2 = vcmp.ge.f32.partialorder %v2054_v31, 0.0  ;;  %v5108_v47 = vmul.f32 %v10908_v37, %v2054_v31  ;;  %8315 = vmatmul.mubr.msk.bf16.gmra.mrb[240].mxu1 %vm848_vm0, %v9360_v45 }
 0x250   : > { %1973 = vmatprep.mubr.bf16.mxu0 %v9578_v0  ;;  %8459 = vst [vmem:[%s10045_s7 + $0x860] sm:$0xff] %v5361_v35  ;;  %v5363_v36 = vsel %vm4830_vm15, %v2052_v24, %v5107_v33  ;;  %v5362_v38 = vsel %vm4829_vm1, %v1701_v27, %v5106_v34  ;;  %2326 = vmatprep.mubr.bf16.mxu1 %v9578_v0  ;;  %v9362_v35 = vld [vmem:[%s13218_s1 + $0xf0] sm:$0xff]  }
 0x251   : > { %8461 = vst [vmem:[%s10045_s7 + $0x870] sm:$0xff] %v5363_v36  ;;  %8460 = vst [vmem:[%s10045_s7 + $0x868] sm:$0xff] %v5362_v38  ;;  %v5364_v48 = vsel %vm4831_vm2, %v2054_v31, %v5108_v47  ;;  %v1705_v41 = vpop.f32.mrb[136].mxu0 }
 0x252   : > { %8462 = vst [vmem:[%s10045_s7 + $0x878] sm:$0xff] %v5364_v48  ;;  %vm4832_vm3 = vcmp.ge.f32.partialorder %v1705_v41, 0.0  ;;  %v5109_v49 = vmul.f32 %v10879_v11, %v1705_v41  ;;  %v2058_v50 = vpop.f32.mrb[136].mxu1  ;;  %v1707_v53 = vpop.f32.mrb[137].mxu0 }
 0x253   : > { %vm4834_vm4 = vcmp.ge.f32.partialorder %v2058_v50, 0.0  ;;  %v5111_v54 = vmul.f32 %v10882_v12, %v2058_v50  ;;  %vm4833_vm5 = vcmp.ge.f32.partialorder %v1707_v53, 0.0  ;;  %v5110_v55 = vmul.f32 %v10902_v46, %v1707_v53  ;;  %v2060_v56 = vpop.f32.mrb[137].mxu1  ;;  %v1709_v58 = vpop.f32.mrb[138].mxu0 }
 0x254   : > { %v5365_v59 = vsel %vm4832_vm3, %v1705_v41, %v5109_v49  ;;  %vm4835_vm6 = vcmp.ge.f32.partialorder %v2060_v56, 0.0  ;;  %v5112_v60 = vmul.f32 %v10908_v37, %v2060_v56  ;;  %vm4836_vm7 = vcmp.ge.f32.partialorder %v1709_v58, 0.0  ;;  %v2062_v20 = vpop.f32.mrb[138].mxu1  ;;  %v1711_v21 = vpop.f32.mrb[139].mxu0 }
 0x255   : > { %8463 = vst [vmem:[%s10045_s7 + $0x880] sm:$0xff] %v5365_v59  ;;  %v5367_v23 = vsel %vm4834_vm4, %v2058_v50, %v5111_v54  ;;  %v5366_v62 = vsel %vm4833_vm5, %v1707_v53, %v5110_v55  ;;  %v5113_v22 = vmul.f32 %v10879_v11, %v1709_v58  ;;  %vm4838_vm8 = vcmp.ge.f32.partialorder %v2062_v20, 0.0  ;;  %v2064_v25 = vpop.f32.mrb[139].mxu1 }
 0x256   : > { %8465 = vst [vmem:[%s10045_s7 + $0x890] sm:$0xff] %v5367_v23  ;;  %8464 = vst [vmem:[%s10045_s7 + $0x888] sm:$0xff] %v5366_v62  ;;  %v5368_v63 = vsel %vm4835_vm6, %v2060_v56, %v5112_v60  ;;  %v5115_v1 = vmul.f32 %v10882_v12, %v2062_v20  ;;  %vm4837_vm9 = vcmp.ge.f32.partialorder %v1711_v21, 0.0  ;;  %v5114_v2 = vmul.f32 %v10902_v46, %v1711_v21 }
 0x257   : > { %8284 = vmatmul.mubr.msk.bf16.gmra.mrb[244].mxu0 %vm848_vm0, %v9361_v3  ;;  %8466 = vst [vmem:[%s10045_s7 + $0x898] sm:$0xff] %v5368_v63  ;;  %v5369_v4 = vsel %vm4836_vm7, %v1709_v58, %v5113_v22  ;;  %vm4839_vm10 = vcmp.ge.f32.partialorder %v2064_v25, 0.0  ;;  %v5116_v5 = vmul.f32 %v10908_v37, %v2064_v25  ;;  %8316 = vmatmul.mubr.msk.bf16.gmra.mrb[244].mxu1 %vm848_vm0, %v9361_v3 }
 0x258   : > { %1983 = vmatprep.mubr.bf16.mxu0 %v9578_v0  ;;  %8467 = vst [vmem:[%s10045_s7 + $0x8a0] sm:$0xff] %v5369_v4  ;;  %v5371_v6 = vsel %vm4838_vm8, %v2062_v20, %v5115_v1  ;;  %v5370_v7 = vsel %vm4837_vm9, %v1711_v21, %v5114_v2  ;;  %2336 = vmatprep.mubr.bf16.mxu1 %v9578_v0  ;;  %v9363_v4 = vld [vmem:[%s13218_s1 + $0xf8] sm:$0xff]  }
 0x259   : > { %8469 = vst [vmem:[%s10045_s7 + $0x8b0] sm:$0xff] %v5371_v6  ;;  %8468 = vst [vmem:[%s10045_s7 + $0x8a8] sm:$0xff] %v5370_v7  ;;  %v5372_v8 = vsel %vm4839_vm10, %v2064_v25, %v5116_v5  ;;  %v1715_v9 = vpop.f32.mrb[140].mxu0  ;;  %v11029_v5 = vld [vmem:[%s9760_s30 + $0xb0] sm:$0xff] }
 0x25a   : > { %8470 = vst [vmem:[%s10045_s7 + $0x8b8] sm:$0xff] %v5372_v8  ;;  %vm4840_vm11 = vcmp.ge.f32.partialorder %v1715_v9, 0.0  ;;  %v5117_v10 = vmul.f32 %v10879_v11, %v1715_v9  ;;  %v2068_v13 = vpop.f32.mrb[140].mxu1  ;;  %v1717_v14 = vpop.f32.mrb[141].mxu0  ;;  %v11037_v8 = vld [vmem:[%s9760_s30 + $0xf0] sm:$0xff] }
 0x25b   : > { %vm4842_vm12 = vcmp.ge.f32.partialorder %v2068_v13, 0.0  ;;  %v5119_v15 = vmul.f32 %v10882_v12, %v2068_v13  ;;  %vm4841_vm13 = vcmp.ge.f32.partialorder %v1717_v14, 0.0  ;;  %v5118_v16 = vmul.f32 %v10902_v46, %v1717_v14  ;;  %v2070_v17 = vpop.f32.mrb[141].mxu1  ;;  %v1719_v18 = vpop.f32.mrb[142].mxu0 }
 0x25c   : > { %v5373_v19 = vsel %vm4840_vm11, %v1715_v9, %v5117_v10  ;;  %vm4843_vm14 = vcmp.ge.f32.partialorder %v2070_v17, 0.0  ;;  %v5120_v24 = vmul.f32 %v10908_v37, %v2070_v17  ;;  %vm4844_vm15 = vcmp.ge.f32.partialorder %v1719_v18, 0.0  ;;  %v2072_v27 = vpop.f32.mrb[142].mxu1  ;;  %v1721_v28 = vpop.f32.mrb[143].mxu0  ;;  %v11040_v9 = vld [vmem:[%s9760_s30 + $0xb8] sm:$0xff] }
 0x25d   : > { %8471 = vst [vmem:[%s10045_s7 + $0x8c0] sm:$0xff] %v5373_v19  ;;  %v5375_v29 = vsel %vm4842_vm12, %v2068_v13, %v5119_v15  ;;  %v5374_v30 = vsel %vm4841_vm13, %v1717_v14, %v5118_v16  ;;  %v5121_v31 = vmul.f32 %v10879_v11, %v1719_v18  ;;  %vm4846_vm1 = vcmp.ge.f32.partialorder %v2072_v27, 0.0  ;;  %v2074_v32 = vpop.f32.mrb[143].mxu1  ;;  %v11043_v10 = vld [vmem:[%s9760_s30 + $0xf8] sm:$0xff] }
 0x25e   : > { %8473 = vst [vmem:[%s10045_s7 + $0x8d0] sm:$0xff] %v5375_v29  ;;  %8472 = vst [vmem:[%s10045_s7 + $0x8c8] sm:$0xff] %v5374_v30  ;;  %v5376_v33 = vsel %vm4843_vm14, %v2070_v17, %v5120_v24  ;;  %v5123_v34 = vmul.f32 %v10882_v12, %v2072_v27  ;;  %vm4845_vm2 = vcmp.ge.f32.partialorder %v1721_v28, 0.0  ;;  %v5122_v45 = vmul.f32 %v10902_v46, %v1721_v28 }
 0x25f   : > { %8285 = vmatmul.mubr.msk.bf16.gmra.mrb[248].mxu0 %vm848_vm0, %v9362_v35  ;;  %8474 = vst [vmem:[%s10045_s7 + $0x8d8] sm:$0xff] %v5376_v33  ;;  %v5377_v47 = vsel %vm4844_vm15, %v1719_v18, %v5121_v31  ;;  %vm4847_vm3 = vcmp.ge.f32.partialorder %v2074_v32, 0.0  ;;  %v5124_v36 = vmul.f32 %v10908_v37, %v2074_v32  ;;  %8317 = vmatmul.mubr.msk.bf16.gmra.mrb[248].mxu1 %vm848_vm0, %v9362_v35 }
 0x260   : > { %1993 = vmatprep.mubr.bf16.mxu0 %v9578_v0  ;;  %8475 = vst [vmem:[%s10045_s7 + $0x8e0] sm:$0xff] %v5377_v47  ;;  %v5379_v38 = vsel %vm4846_vm1, %v2072_v27, %v5123_v34  ;;  %v5378_v48 = vsel %vm4845_vm2, %v1721_v28, %v5122_v45  ;;  %2346 = vmatprep.mubr.bf16.mxu1 %v9578_v0 }
 0x261   : > { %8477 = vst [vmem:[%s10045_s7 + $0x8f0] sm:$0xff] %v5379_v38  ;;  %8476 = vst [vmem:[%s10045_s7 + $0x8e8] sm:$0xff] %v5378_v48  ;;  %v5380_v41 = vsel %vm4847_vm3, %v2074_v32, %v5124_v36  ;;  %v1725_v49 = vpop.f32.mrb[144].mxu0  ;;  %v8156_v24 = vcombine.high %v11029_v5, %v11037_v8  ;;  %v8158_v27 = vcombine.high %v11040_v9, %v11043_v10 }
 0x262   : > { %8478 = vst [vmem:[%s10045_s7 + $0x8f8] sm:$0xff] %v5380_v41  ;;  %vm4848_vm4 = vcmp.ge.f32.partialorder %v1725_v49, 0.0  ;;  %v5125_v50 = vmul.f32 %v10879_v11, %v1725_v49  ;;  %v2078_v53 = vpop.f32.mrb[144].mxu1  ;;  %v1727_v54 = vpop.f32.mrb[145].mxu0 }
 0x263   : > { %vm4850_vm5 = vcmp.ge.f32.partialorder %v2078_v53, 0.0  ;;  %v5127_v55 = vmul.f32 %v10882_v12, %v2078_v53  ;;  %vm4849_vm6 = vcmp.ge.f32.partialorder %v1727_v54, 0.0  ;;  %v5126_v56 = vmul.f32 %v10902_v46, %v1727_v54  ;;  %v2080_v58 = vpop.f32.mrb[145].mxu1  ;;  %v1729_v59 = vpop.f32.mrb[146].mxu0 }
 0x264   : > { %v5381_v60 = vsel %vm4848_vm4, %v1725_v49, %v5125_v50  ;;  %vm4851_vm7 = vcmp.ge.f32.partialorder %v2080_v58, 0.0  ;;  %v5128_v20 = vmul.f32 %v10908_v37, %v2080_v58  ;;  %vm4852_vm8 = vcmp.ge.f32.partialorder %v1729_v59, 0.0  ;;  %v2082_v21 = vpop.f32.mrb[146].mxu1  ;;  %v1731_v23 = vpop.f32.mrb[147].mxu0  ;;  %v9364_v50 = vld [vmem:[%s13218_s1] sm:$0xff]  }
 0x265   : > { %8479 = vst [vmem:[%s10045_s7 + $0x900] sm:$0xff] %v5381_v60  ;;  %v5383_v62 = vsel %vm4850_vm5, %v2078_v53, %v5127_v55  ;;  %v5382_v22 = vsel %vm4849_vm6, %v1727_v54, %v5126_v56  ;;  %v5129_v25 = vmul.f32 %v10879_v11, %v1729_v59  ;;  %vm4854_vm9 = vcmp.ge.f32.partialorder %v2082_v21, 0.0  ;;  %v2084_v63 = vpop.f32.mrb[147].mxu1 }
 0x266   : > { %8481 = vst [vmem:[%s10045_s7 + $0x910] sm:$0xff] %v5383_v62  ;;  %8480 = vst [vmem:[%s10045_s7 + $0x908] sm:$0xff] %v5382_v22  ;;  %v5384_v1 = vsel %vm4851_vm7, %v2080_v58, %v5128_v20  ;;  %v5131_v2 = vmul.f32 %v10882_v12, %v2082_v21  ;;  %vm4853_vm10 = vcmp.ge.f32.partialorder %v1731_v23, 0.0  ;;  %v5130_v3 = vmul.f32 %v10902_v46, %v1731_v23 }
 0x267   : > { %8286 = vmatmul.mubr.msk.bf16.gmra.mrb[252].mxu0 %vm848_vm0, %v9363_v4  ;;  %8482 = vst [vmem:[%s10045_s7 + $0x918] sm:$0xff] %v5384_v1  ;;  %v5385_v6 = vsel %vm4852_vm8, %v1729_v59, %v5129_v25  ;;  %vm4855_vm11 = vcmp.ge.f32.partialorder %v2084_v63, 0.0  ;;  %v5132_v7 = vmul.f32 %v10908_v37, %v2084_v63  ;;  %8318 = vmatmul.mubr.msk.bf16.gmra.mrb[252].mxu1 %vm848_vm0, %v9363_v4  ;;  %v350_v1 = vld [vmem:[%s9760_s30 + $0x170] sm:$0xff] }
 0x268   : > { %2389 = vmatprep.mubr.bf16.mxu0 %v9578_v0  ;;  %8483 = vst [vmem:[%s10045_s7 + $0x920] sm:$0xff] %v5385_v6  ;;  %v5387_v13 = vsel %vm4854_vm9, %v2082_v21, %v5131_v2  ;;  %v5386_v14 = vsel %vm4853_vm10, %v1731_v23, %v5130_v3  ;;  %2742 = vmatprep.mubr.bf16.mxu1 %v9578_v0  ;;  %v343_v6 = vld [vmem:[%s9760_s30 + $0x138] sm:$0xff] }
 0x269   : > { %8485 = vst [vmem:[%s10045_s7 + $0x930] sm:$0xff] %v5387_v13  ;;  %8484 = vst [vmem:[%s10045_s7 + $0x928] sm:$0xff] %v5386_v14  ;;  %v5388_v15 = vsel %vm4855_vm11, %v2084_v63, %v5132_v7  ;;  %v1735_v16 = vpop.f32.mrb[148].mxu0  ;;  %v8155_v55 = vcombine.low %v11029_v5, %v11037_v8  ;;  %v8157_v59 = vcombine.low %v11040_v9, %v11043_v10  ;;  %v342_v63 = vld [vmem:[%s9760_s30 + $0x130] sm:$0xff]  ;;  %v351_v7 = vld [vmem:[%s9760_s30 + $0x178] sm:$0xff] }
 0x26a   : > { %8486 = vst [vmem:[%s10045_s7 + $0x938] sm:$0xff] %v5388_v15  ;;  %vm4856_vm12 = vcmp.ge.f32.partialorder %v1735_v16, 0.0  ;;  %v5133_v17 = vmul.f32 %v10879_v11, %v1735_v16  ;;  %v2088_v18 = vpop.f32.mrb[148].mxu1  ;;  %v1737_v19 = vpop.f32.mrb[149].mxu0  ;;  %v9365_v13 = vld [vmem:[%s13218_s1 + $0x8] sm:$0xff]  }
 0x26b   : > { %vm4858_vm13 = vcmp.ge.f32.partialorder %v2088_v18, 0.0  ;;  %v5135_v28 = vmul.f32 %v10882_v12, %v2088_v18  ;;  %vm4857_vm14 = vcmp.ge.f32.partialorder %v1737_v19, 0.0  ;;  %v5134_v29 = vmul.f32 %v10902_v46, %v1737_v19  ;;  %v2090_v30 = vpop.f32.mrb[149].mxu1  ;;  %v1739_v31 = vpop.f32.mrb[150].mxu0 }
 0x26c   : > { %v5389_v32 = vsel %vm4856_vm12, %v1735_v16, %v5133_v17  ;;  %vm4859_vm15 = vcmp.ge.f32.partialorder %v2090_v30, 0.0  ;;  %v5136_v33 = vmul.f32 %v10908_v37, %v2090_v30  ;;  %vm4860_vm1 = vcmp.ge.f32.partialorder %v1739_v31, 0.0  ;;  %v2092_v34 = vpop.f32.mrb[150].mxu1  ;;  %v1741_v45 = vpop.f32.mrb[151].mxu0 }
 0x26d   : > { %8487 = vst [vmem:[%s10045_s7 + $0x940] sm:$0xff] %v5389_v32  ;;  %v5391_v35 = vsel %vm4858_vm13, %v2088_v18, %v5135_v28  ;;  %v5390_v47 = vsel %vm4857_vm14, %v1737_v19, %v5134_v29  ;;  %v5137_v36 = vmul.f32 %v10879_v11, %v1739_v31  ;;  %vm4862_vm2 = vcmp.ge.f32.partialorder %v2092_v34, 0.0  ;;  %v2094_v38 = vpop.f32.mrb[151].mxu1 }
 0x26e   : > { %8489 = vst [vmem:[%s10045_s7 + $0x950] sm:$0xff] %v5391_v35  ;;  %8488 = vst [vmem:[%s10045_s7 + $0x948] sm:$0xff] %v5390_v47  ;;  %v5392_v48 = vsel %vm4859_vm15, %v2090_v30, %v5136_v33  ;;  %v5139_v41 = vmul.f32 %v10882_v12, %v2092_v34  ;;  %vm4861_vm3 = vcmp.ge.f32.partialorder %v1741_v45, 0.0  ;;  %v5138_v49 = vmul.f32 %v10902_v46, %v1741_v45 }
 0x26f   : > { %8319 = vmatmul.mubr.msk.bf16.vlgmr.msra.gmra.mrb[0].mxu0 %vm848_vm0, %v9364_v50  ;;  %8490 = vst [vmem:[%s10045_s7 + $0x958] sm:$0xff] %v5392_v48  ;;  %v5393_v53 = vsel %vm4860_vm1, %v1739_v31, %v5137_v36  ;;  %vm4863_vm4 = vcmp.ge.f32.partialorder %v2094_v38, 0.0  ;;  %v5140_v54 = vmul.f32 %v10908_v37, %v2094_v38  ;;  %8351 = vmatmul.mubr.msk.bf16.vlgmr.msra.gmra.mrb[0].mxu1 %vm848_vm0, %v9364_v50 }
 0x270   : > { %3064 = vmatpush1.bf16.msra.mxu0 %v8139_v61  ;;  %8491 = vst [vmem:[%s10045_s7 + $0x960] sm:$0xff] %v5393_v53  ;;  %v5395_v56 = vsel %vm4862_vm2, %v2092_v34, %v5139_v41  ;;  %v5394_v58 = vsel %vm4861_vm3, %v1741_v45, %v5138_v49  ;;  %3417 = vmatpush1.bf16.msra.mxu1 %v8141_v26 }
 0x271   : > { %2399 = vmatprep.mubr.bf16.mxu0 %v9578_v0  ;;  %8493 = vst [vmem:[%s10045_s7 + $0x970] sm:$0xff] %v5395_v56  ;;  %8492 = vst [vmem:[%s10045_s7 + $0x968] sm:$0xff] %v5394_v58  ;;  %v5396_v51 = vsel %vm4863_vm4, %v2094_v38, %v5140_v54  ;;  %v1745_v52 = vpop.f32.mrb[152].mxu0  ;;  %2752 = vmatprep.mubr.bf16.mxu1 %v9578_v0  ;;  %v8171_v16 = vcombine.low %v342_v63, %v350_v1  ;;  %v9366_v58 = vld [vmem:[%s13218_s1 + $0x10] sm:$0xff]  }
 0x272   : > { %3065 = vmatprep.subr.bf16.mxu0 %v8156_v24  ;;  %8494 = vst [vmem:[%s10045_s7 + $0x978] sm:$0xff] %v5396_v51  ;;  %vm4864_vm5 = vcmp.ge.f32.partialorder %v1745_v52, 0.0  ;;  %v5141_v61 = vmul.f32 %v10879_v11, %v1745_v52  ;;  %v2098_v60 = vpop.f32.mrb[152].mxu1  ;;  %v1747_v20 = vpop.f32.mrb[153].mxu0  ;;  %3418 = vmatprep.subr.bf16.mxu1 %v8158_v27  ;;  %v8172_v19 = vcombine.high %v342_v63, %v350_v1 }
 0x273   : > { %vm4866_vm6 = vcmp.ge.f32.partialorder %v2098_v60, 0.0  ;;  %v5143_v57 = vmul.f32 %v10882_v12, %v2098_v60  ;;  %vm4865_vm7 = vcmp.ge.f32.partialorder %v1747_v20, 0.0  ;;  %v5142_v39 = vmul.f32 %v10902_v46, %v1747_v20  ;;  %v2100_v26 = vpop.f32.mrb[153].mxu1  ;;  %v1749_v21 = vpop.f32.mrb[154].mxu0 }
 0x274   : > { %3066 = vmatpush1.bf16.msra.mxu0 %v8155_v55  ;;  %v5397_v23 = vsel %vm4864_vm5, %v1745_v52, %v5141_v61  ;;  %vm4867_vm8 = vcmp.ge.f32.partialorder %v2100_v26, 0.0  ;;  %v5144_v62 = vmul.f32 %v10908_v37, %v2100_v26  ;;  %vm4868_vm9 = vcmp.ge.f32.partialorder %v1749_v21, 0.0  ;;  %v2102_v22 = vpop.f32.mrb[154].mxu1  ;;  %v1751_v25 = vpop.f32.mrb[155].mxu0  ;;  %3419 = vmatpush1.bf16.msra.mxu1 %v8157_v59 }
 0x275   : > { %8495 = vst [vmem:[%s10045_s7 + $0x980] sm:$0xff] %v5397_v23  ;;  %v5399_v2 = vsel %vm4866_vm6, %v2098_v60, %v5143_v57  ;;  %v5398_v3 = vsel %vm4865_vm7, %v1747_v20, %v5142_v39  ;;  %v5145_v4 = vmul.f32 %v10879_v11, %v1749_v21  ;;  %vm4870_vm10 = vcmp.ge.f32.partialorder %v2102_v22, 0.0  ;;  %v2104_v5 = vpop.f32.mrb[155].mxu1  ;;  %3067 = vmatprep.subr.bf16.mxu0 %v8172_v19 }
 0x276   : > { %8497 = vst [vmem:[%s10045_s7 + $0x990] sm:$0xff] %v5399_v2  ;;  %8496 = vst [vmem:[%s10045_s7 + $0x988] sm:$0xff] %v5398_v3  ;;  %v5400_v8 = vsel %vm4867_vm8, %v2100_v26, %v5144_v62  ;;  %v5147_v9 = vmul.f32 %v10882_v12, %v2102_v22  ;;  %vm4869_vm11 = vcmp.ge.f32.partialorder %v1751_v25, 0.0  ;;  %v5146_v10 = vmul.f32 %v10902_v46, %v1751_v25 }
 0x277   : > { %8320 = vmatmul.mubr.msk.bf16.gmra.mrb[4].mxu0 %vm848_vm0, %v9365_v13  ;;  %8498 = vst [vmem:[%s10045_s7 + $0x998] sm:$0xff] %v5400_v8  ;;  %v5401_v14 = vsel %vm4868_vm9, %v1749_v21, %v5145_v4  ;;  %vm4871_vm12 = vcmp.ge.f32.partialorder %v2104_v5, 0.0  ;;  %v5148_v15 = vmul.f32 %v10908_v37, %v2104_v5  ;;  %8352 = vmatmul.mubr.msk.bf16.gmra.mrb[4].mxu1 %vm848_vm0, %v9365_v13 }
 0x278   : > { %2409 = vmatprep.mubr.bf16.mxu0 %v9578_v0  ;;  %8499 = vst [vmem:[%s10045_s7 + $0x9a0] sm:$0xff] %v5401_v14  ;;  %v5403_v17 = vsel %vm4870_vm10, %v2102_v22, %v5147_v9  ;;  %v5402_v18 = vsel %vm4869_vm11, %v1751_v25, %v5146_v10  ;;  %2762 = vmatprep.mubr.bf16.mxu1 %v9578_v0  ;;  %v9367_v10 = vld [vmem:[%s13218_s1 + $0x18] sm:$0xff]  }
 0x279   : > { %v8173_v24 = vcombine.low %v343_v6, %v351_v7  ;;  %8501 = vst [vmem:[%s10045_s7 + $0x9b0] sm:$0xff] %v5403_v17  ;;  %8500 = vst [vmem:[%s10045_s7 + $0x9a8] sm:$0xff] %v5402_v18  ;;  %v5404_v27 = vsel %vm4871_vm12, %v2104_v5, %v5148_v15  ;;  %v1755_v28 = vpop.f32.mrb[156].mxu0  ;;  %v8174_v29 = vcombine.high %v343_v6, %v351_v7  ;;  %3068 = vmatpush1.bf16.msra.mxu0 %v8171_v16 }
 0x27a   : > { %8502 = vst [vmem:[%s10045_s7 + $0x9b8] sm:$0xff] %v5404_v27  ;;  %vm4872_vm13 = vcmp.ge.f32.partialorder %v1755_v28, 0.0  ;;  %v5149_v30 = vmul.f32 %v10879_v11, %v1755_v28  ;;  %v2108_v31 = vpop.f32.mrb[156].mxu1  ;;  %v1757_v32 = vpop.f32.mrb[157].mxu0 }
 0x27b   : > { %vm4874_vm14 = vcmp.ge.f32.partialorder %v2108_v31, 0.0  ;;  %v5151_v33 = vmul.f32 %v10882_v12, %v2108_v31  ;;  %vm4873_vm15 = vcmp.ge.f32.partialorder %v1757_v32, 0.0  ;;  %v5150_v34 = vmul.f32 %v10902_v46, %v1757_v32  ;;  %v2110_v45 = vpop.f32.mrb[157].mxu1  ;;  %v1759_v35 = vpop.f32.mrb[158].mxu0  ;;  %3420 = vmatprep.subr.bf16.mxu1 %v8174_v29 }
 0x27c   : > { %v5405_v47 = vsel %vm4872_vm13, %v1755_v28, %v5149_v30  ;;  %vm4875_vm1 = vcmp.ge.f32.partialorder %v2110_v45, 0.0  ;;  %v5152_v36 = vmul.f32 %v10908_v37, %v2110_v45  ;;  %vm4876_vm2 = vcmp.ge.f32.partialorder %v1759_v35, 0.0  ;;  %v2112_v38 = vpop.f32.mrb[158].mxu1  ;;  %v1761_v48 = vpop.f32.mrb[159].mxu0  ;;  %3421 = vmatpush1.bf16.msra.mxu1 %v8173_v24 }
 0x27d   : > { %8503 = vst [vmem:[%s10045_s7 + $0x9c0] sm:$0xff] %v5405_v47  ;;  %v5407_v41 = vsel %vm4874_vm14, %v2108_v31, %v5151_v33  ;;  %v5406_v49 = vsel %vm4873_vm15, %v1757_v32, %v5150_v34  ;;  %v5153_v50 = vmul.f32 %v10879_v11, %v1759_v35  ;;  %vm4878_vm3 = vcmp.ge.f32.partialorder %v2112_v38, 0.0  ;;  %v2114_v53 = vpop.f32.mrb[159].mxu1 }
 0x27e   : > { %8505 = vst [vmem:[%s10045_s7 + $0x9d0] sm:$0xff] %v5407_v41  ;;  %8504 = vst [vmem:[%s10045_s7 + $0x9c8] sm:$0xff] %v5406_v49  ;;  %v5408_v54 = vsel %vm4875_vm1, %v2110_v45, %v5152_v36  ;;  %v5155_v55 = vmul.f32 %v10882_v12, %v2112_v38  ;;  %vm4877_vm4 = vcmp.ge.f32.partialorder %v1761_v48, 0.0  ;;  %v5154_v56 = vmul.f32 %v10902_v46, %v1761_v48 }
 0x27f   : > { %8321 = vmatmul.mubr.msk.bf16.gmra.mrb[8].mxu0 %vm848_vm0, %v9366_v58  ;;  %8506 = vst [vmem:[%s10045_s7 + $0x9d8] sm:$0xff] %v5408_v54  ;;  %v5409_v59 = vsel %vm4876_vm2, %v1759_v35, %v5153_v50  ;;  %vm4879_vm5 = vcmp.ge.f32.partialorder %v2114_v53, 0.0  ;;  %v5156_v51 = vmul.f32 %v10908_v37, %v2114_v53  ;;  %8353 = vmatmul.mubr.msk.bf16.gmra.mrb[8].mxu1 %vm848_vm0, %v9366_v58  ;;  %v9368_v50 = vld [vmem:[%s13218_s1 + $0x20] sm:$0xff]  }
 0x280   : > { %2419 = vmatprep.mubr.bf16.mxu0 %v9578_v0  ;;  %8507 = vst [vmem:[%s10045_s7 + $0x9e0] sm:$0xff] %v5409_v59  ;;  %v5411_v52 = vsel %vm4878_vm3, %v2112_v38, %v5155_v55  ;;  %v5410_v61 = vsel %vm4877_vm4, %v1761_v48, %v5154_v56  ;;  %2772 = vmatprep.mubr.bf16.mxu1 %v9578_v0 }
 0x281   : > { %8509 = vst [vmem:[%s10045_s7 + $0x9f0] sm:$0xff] %v5411_v52  ;;  %8508 = vst [vmem:[%s10045_s7 + $0x9e8] sm:$0xff] %v5410_v61  ;;  %v5412_v60 = vsel %vm4879_vm5, %v2114_v53, %v5156_v51  ;;  %v1765_v20 = vpop.f32.mrb[160].mxu0 }
 0x282   : > { %8510 = vst [vmem:[%s10045_s7 + $0x9f8] sm:$0xff] %v5412_v60  ;;  %vm4880_vm6 = vcmp.ge.f32.partialorder %v1765_v20, 0.0  ;;  %v5157_v57 = vmul.f32 %v10879_v11, %v1765_v20  ;;  %v2118_v39 = vpop.f32.mrb[160].mxu1  ;;  %v1767_v26 = vpop.f32.mrb[161].mxu0 }
 0x283   : > { %vm4882_vm7 = vcmp.ge.f32.partialorder %v2118_v39, 0.0  ;;  %v5159_v21 = vmul.f32 %v10882_v12, %v2118_v39  ;;  %vm4881_vm8 = vcmp.ge.f32.partialorder %v1767_v26, 0.0  ;;  %v5158_v23 = vmul.f32 %v10902_v46, %v1767_v26  ;;  %v2120_v62 = vpop.f32.mrb[161].mxu1  ;;  %v1769_v22 = vpop.f32.mrb[162].mxu0 }
 0x284   : > { %v5413_v25 = vsel %vm4880_vm6, %v1765_v20, %v5157_v57  ;;  %vm4883_vm9 = vcmp.ge.f32.partialorder %v2120_v62, 0.0  ;;  %v5160_v63 = vmul.f32 %v10908_v37, %v2120_v62  ;;  %vm4884_vm10 = vcmp.ge.f32.partialorder %v1769_v22, 0.0  ;;  %v2122_v1 = vpop.f32.mrb[162].mxu1  ;;  %v1771_v2 = vpop.f32.mrb[163].mxu0 }
 0x285   : > { %8511 = vst [vmem:[%s10045_s7 + $0xa00] sm:$0xff] %v5413_v25  ;;  %v5415_v3 = vsel %vm4882_vm7, %v2118_v39, %v5159_v21  ;;  %v5414_v4 = vsel %vm4881_vm8, %v1767_v26, %v5158_v23  ;;  %v5161_v5 = vmul.f32 %v10879_v11, %v1769_v22  ;;  %vm4886_vm11 = vcmp.ge.f32.partialorder %v2122_v1, 0.0  ;;  %v2124_v6 = vpop.f32.mrb[163].mxu1 }
 0x286   : > { %8513 = vst [vmem:[%s10045_s7 + $0xa10] sm:$0xff] %v5415_v3  ;;  %8512 = vst [vmem:[%s10045_s7 + $0xa08] sm:$0xff] %v5414_v4  ;;  %v5416_v7 = vsel %vm4883_vm9, %v2120_v62, %v5160_v63  ;;  %v5163_v8 = vmul.f32 %v10882_v12, %v2122_v1  ;;  %vm4885_vm12 = vcmp.ge.f32.partialorder %v1771_v2, 0.0  ;;  %v5162_v9 = vmul.f32 %v10902_v46, %v1771_v2 }
 0x287   : > { %8322 = vmatmul.mubr.msk.bf16.gmra.mrb[12].mxu0 %vm848_vm0, %v9367_v10  ;;  %8514 = vst [vmem:[%s10045_s7 + $0xa18] sm:$0xff] %v5416_v7  ;;  %v5417_v13 = vsel %vm4884_vm10, %v1769_v22, %v5161_v5  ;;  %vm4887_vm13 = vcmp.ge.f32.partialorder %v2124_v6, 0.0  ;;  %v5164_v14 = vmul.f32 %v10908_v37, %v2124_v6  ;;  %8354 = vmatmul.mubr.msk.bf16.gmra.mrb[12].mxu1 %vm848_vm0, %v9367_v10  ;;  %v9369_v5 = vld [vmem:[%s13218_s1 + $0x28] sm:$0xff]  }
 0x288   : > { %2429 = vmatprep.mubr.bf16.mxu0 %v9578_v0  ;;  %8515 = vst [vmem:[%s10045_s7 + $0xa20] sm:$0xff] %v5417_v13  ;;  %v5419_v15 = vsel %vm4886_vm11, %v2122_v1, %v5163_v8  ;;  %v5418_v16 = vsel %vm4885_vm12, %v1771_v2, %v5162_v9  ;;  %2782 = vmatprep.mubr.bf16.mxu1 %v9578_v0 }
 0x289   : > { %8517 = vst [vmem:[%s10045_s7 + $0xa30] sm:$0xff] %v5419_v15  ;;  %8516 = vst [vmem:[%s10045_s7 + $0xa28] sm:$0xff] %v5418_v16  ;;  %v5420_v17 = vsel %vm4887_vm13, %v2124_v6, %v5164_v14  ;;  %v1775_v18 = vpop.f32.mrb[164].mxu0 }
 0x28a   : > { %8518 = vst [vmem:[%s10045_s7 + $0xa38] sm:$0xff] %v5420_v17  ;;  %vm4888_vm14 = vcmp.ge.f32.partialorder %v1775_v18, 0.0  ;;  %v5165_v19 = vmul.f32 %v10879_v11, %v1775_v18  ;;  %v2128_v24 = vpop.f32.mrb[164].mxu1  ;;  %v1777_v27 = vpop.f32.mrb[165].mxu0 }
 0x28b   : > { %vm4890_vm15 = vcmp.ge.f32.partialorder %v2128_v24, 0.0  ;;  %v5167_v28 = vmul.f32 %v10882_v12, %v2128_v24  ;;  %vm4889_vm1 = vcmp.ge.f32.partialorder %v1777_v27, 0.0  ;;  %v5166_v29 = vmul.f32 %v10902_v46, %v1777_v27  ;;  %v2130_v30 = vpop.f32.mrb[165].mxu1  ;;  %v1779_v31 = vpop.f32.mrb[166].mxu0 }
 0x28c   : > { %v5421_v32 = vsel %vm4888_vm14, %v1775_v18, %v5165_v19  ;;  %vm4891_vm2 = vcmp.ge.f32.partialorder %v2130_v30, 0.0  ;;  %v5168_v33 = vmul.f32 %v10908_v37, %v2130_v30  ;;  %vm4892_vm3 = vcmp.ge.f32.partialorder %v1779_v31, 0.0  ;;  %v2132_v34 = vpop.f32.mrb[166].mxu1  ;;  %v1781_v45 = vpop.f32.mrb[167].mxu0 }
 0x28d   : > { %8519 = vst [vmem:[%s10045_s7 + $0xa40] sm:$0xff] %v5421_v32  ;;  %v5423_v35 = vsel %vm4890_vm15, %v2128_v24, %v5167_v28  ;;  %v5422_v47 = vsel %vm4889_vm1, %v1777_v27, %v5166_v29  ;;  %v5169_v36 = vmul.f32 %v10879_v11, %v1779_v31  ;;  %vm4894_vm4 = vcmp.ge.f32.partialorder %v2132_v34, 0.0  ;;  %v2134_v38 = vpop.f32.mrb[167].mxu1 }
 0x28e   : > { %8521 = vst [vmem:[%s10045_s7 + $0xa50] sm:$0xff] %v5423_v35  ;;  %8520 = vst [vmem:[%s10045_s7 + $0xa48] sm:$0xff] %v5422_v47  ;;  %v5424_v48 = vsel %vm4891_vm2, %v2130_v30, %v5168_v33  ;;  %v5171_v41 = vmul.f32 %v10882_v12, %v2132_v34  ;;  %vm4893_vm5 = vcmp.ge.f32.partialorder %v1781_v45, 0.0  ;;  %v5170_v49 = vmul.f32 %v10902_v46, %v1781_v45 }
 0x28f   : > { %8323 = vmatmul.mubr.msk.bf16.gmra.mrb[16].mxu0 %vm848_vm0, %v9368_v50  ;;  %8522 = vst [vmem:[%s10045_s7 + $0xa58] sm:$0xff] %v5424_v48  ;;  %v5425_v53 = vsel %vm4892_vm3, %v1779_v31, %v5169_v36  ;;  %vm4895_vm6 = vcmp.ge.f32.partialorder %v2134_v38, 0.0  ;;  %v5172_v54 = vmul.f32 %v10908_v37, %v2134_v38  ;;  %8355 = vmatmul.mubr.msk.bf16.gmra.mrb[16].mxu1 %vm848_vm0, %v9368_v50  ;;  %v9370_v36 = vld [vmem:[%s13218_s1 + $0x30] sm:$0xff]  }
 0x290   : > { %2439 = vmatprep.mubr.bf16.mxu0 %v9578_v0  ;;  %8523 = vst [vmem:[%s10045_s7 + $0xa60] sm:$0xff] %v5425_v53  ;;  %v5427_v55 = vsel %vm4894_vm4, %v2132_v34, %v5171_v41  ;;  %v5426_v56 = vsel %vm4893_vm5, %v1781_v45, %v5170_v49  ;;  %2792 = vmatprep.mubr.bf16.mxu1 %v9578_v0 }
 0x291   : > { %8525 = vst [vmem:[%s10045_s7 + $0xa70] sm:$0xff] %v5427_v55  ;;  %8524 = vst [vmem:[%s10045_s7 + $0xa68] sm:$0xff] %v5426_v56  ;;  %v5428_v58 = vsel %vm4895_vm6, %v2134_v38, %v5172_v54  ;;  %v1785_v59 = vpop.f32.mrb[168].mxu0 }
 0x292   : > { %8526 = vst [vmem:[%s10045_s7 + $0xa78] sm:$0xff] %v5428_v58  ;;  %vm4896_vm7 = vcmp.ge.f32.partialorder %v1785_v59, 0.0  ;;  %v5173_v51 = vmul.f32 %v10879_v11, %v1785_v59  ;;  %v2138_v52 = vpop.f32.mrb[168].mxu1  ;;  %v1787_v61 = vpop.f32.mrb[169].mxu0 }
 0x293   : > { %vm4898_vm8 = vcmp.ge.f32.partialorder %v2138_v52, 0.0  ;;  %v5175_v60 = vmul.f32 %v10882_v12, %v2138_v52  ;;  %vm4897_vm9 = vcmp.ge.f32.partialorder %v1787_v61, 0.0  ;;  %v5174_v20 = vmul.f32 %v10902_v46, %v1787_v61  ;;  %v2140_v57 = vpop.f32.mrb[169].mxu1  ;;  %v1789_v39 = vpop.f32.mrb[170].mxu0 }
 0x294   : > { %v5429_v26 = vsel %vm4896_vm7, %v1785_v59, %v5173_v51  ;;  %vm4899_vm10 = vcmp.ge.f32.partialorder %v2140_v57, 0.0  ;;  %v5176_v21 = vmul.f32 %v10908_v37, %v2140_v57  ;;  %vm4900_vm11 = vcmp.ge.f32.partialorder %v1789_v39, 0.0  ;;  %v2142_v23 = vpop.f32.mrb[170].mxu1  ;;  %v1791_v62 = vpop.f32.mrb[171].mxu0 }
 0x295   : > { %8527 = vst [vmem:[%s10045_s7 + $0xa80] sm:$0xff] %v5429_v26  ;;  %v5431_v22 = vsel %vm4898_vm8, %v2138_v52, %v5175_v60  ;;  %v5430_v25 = vsel %vm4897_vm9, %v1787_v61, %v5174_v20  ;;  %v5177_v63 = vmul.f32 %v10879_v11, %v1789_v39  ;;  %vm4902_vm12 = vcmp.ge.f32.partialorder %v2142_v23, 0.0  ;;  %v2144_v1 = vpop.f32.mrb[171].mxu1 }
 0x296   : > { %8529 = vst [vmem:[%s10045_s7 + $0xa90] sm:$0xff] %v5431_v22  ;;  %8528 = vst [vmem:[%s10045_s7 + $0xa88] sm:$0xff] %v5430_v25  ;;  %v5432_v2 = vsel %vm4899_vm10, %v2140_v57, %v5176_v21  ;;  %v5179_v3 = vmul.f32 %v10882_v12, %v2142_v23  ;;  %vm4901_vm13 = vcmp.ge.f32.partialorder %v1791_v62, 0.0  ;;  %v5178_v4 = vmul.f32 %v10902_v46, %v1791_v62 }
 0x297   : > { %8324 = vmatmul.mubr.msk.bf16.gmra.mrb[20].mxu0 %vm848_vm0, %v9369_v5  ;;  %8530 = vst [vmem:[%s10045_s7 + $0xa98] sm:$0xff] %v5432_v2  ;;  %v5433_v6 = vsel %vm4900_vm11, %v1789_v39, %v5177_v63  ;;  %vm4903_vm14 = vcmp.ge.f32.partialorder %v2144_v1, 0.0  ;;  %v5180_v7 = vmul.f32 %v10908_v37, %v2144_v1  ;;  %8356 = vmatmul.mubr.msk.bf16.gmra.mrb[20].mxu1 %vm848_vm0, %v9369_v5  ;;  %v9371_v63 = vld [vmem:[%s13218_s1 + $0x38] sm:$0xff]  }
 0x298   : > { %2449 = vmatprep.mubr.bf16.mxu0 %v9578_v0  ;;  %8531 = vst [vmem:[%s10045_s7 + $0xaa0] sm:$0xff] %v5433_v6  ;;  %v5435_v8 = vsel %vm4902_vm12, %v2142_v23, %v5179_v3  ;;  %v5434_v9 = vsel %vm4901_vm13, %v1791_v62, %v5178_v4  ;;  %2802 = vmatprep.mubr.bf16.mxu1 %v9578_v0 }
 0x299   : > { %8533 = vst [vmem:[%s10045_s7 + $0xab0] sm:$0xff] %v5435_v8  ;;  %8532 = vst [vmem:[%s10045_s7 + $0xaa8] sm:$0xff] %v5434_v9  ;;  %v5436_v10 = vsel %vm4903_vm14, %v2144_v1, %v5180_v7  ;;  %v1795_v13 = vpop.f32.mrb[172].mxu0 }
 0x29a   : > { %8534 = vst [vmem:[%s10045_s7 + $0xab8] sm:$0xff] %v5436_v10  ;;  %vm4904_vm15 = vcmp.ge.f32.partialorder %v1795_v13, 0.0  ;;  %v5181_v14 = vmul.f32 %v10879_v11, %v1795_v13  ;;  %v2148_v15 = vpop.f32.mrb[172].mxu1  ;;  %v1797_v16 = vpop.f32.mrb[173].mxu0 }
 0x29b   : > { %vm4906_vm1 = vcmp.ge.f32.partialorder %v2148_v15, 0.0  ;;  %v5183_v17 = vmul.f32 %v10882_v12, %v2148_v15  ;;  %vm4905_vm2 = vcmp.ge.f32.partialorder %v1797_v16, 0.0  ;;  %v5182_v18 = vmul.f32 %v10902_v46, %v1797_v16  ;;  %v2150_v19 = vpop.f32.mrb[173].mxu1  ;;  %v1799_v24 = vpop.f32.mrb[174].mxu0 }
 0x29c   : > { %v5437_v27 = vsel %vm4904_vm15, %v1795_v13, %v5181_v14  ;;  %vm4907_vm3 = vcmp.ge.f32.partialorder %v2150_v19, 0.0  ;;  %v5184_v28 = vmul.f32 %v10908_v37, %v2150_v19  ;;  %vm4908_vm4 = vcmp.ge.f32.partialorder %v1799_v24, 0.0  ;;  %v2152_v29 = vpop.f32.mrb[174].mxu1  ;;  %v1801_v30 = vpop.f32.mrb[175].mxu0 }
 0x29d   : > { %8535 = vst [vmem:[%s10045_s7 + $0xac0] sm:$0xff] %v5437_v27  ;;  %v5439_v31 = vsel %vm4906_vm1, %v2148_v15, %v5183_v17  ;;  %v5438_v32 = vsel %vm4905_vm2, %v1797_v16, %v5182_v18  ;;  %v5185_v33 = vmul.f32 %v10879_v11, %v1799_v24  ;;  %vm4910_vm5 = vcmp.ge.f32.partialorder %v2152_v29, 0.0  ;;  %v2154_v34 = vpop.f32.mrb[175].mxu1 }
 0x29e   : > { %8537 = vst [vmem:[%s10045_s7 + $0xad0] sm:$0xff] %v5439_v31  ;;  %8536 = vst [vmem:[%s10045_s7 + $0xac8] sm:$0xff] %v5438_v32  ;;  %v5440_v45 = vsel %vm4907_vm3, %v2150_v19, %v5184_v28  ;;  %v5187_v35 = vmul.f32 %v10882_v12, %v2152_v29  ;;  %vm4909_vm6 = vcmp.ge.f32.partialorder %v1801_v30, 0.0  ;;  %v5186_v47 = vmul.f32 %v10902_v46, %v1801_v30 }
 0x29f   : > { %8325 = vmatmul.mubr.msk.bf16.gmra.mrb[24].mxu0 %vm848_vm0, %v9370_v36  ;;  %8538 = vst [vmem:[%s10045_s7 + $0xad8] sm:$0xff] %v5440_v45  ;;  %v5441_v38 = vsel %vm4908_vm4, %v1799_v24, %v5185_v33  ;;  %vm4911_vm7 = vcmp.ge.f32.partialorder %v2154_v34, 0.0  ;;  %v5188_v48 = vmul.f32 %v10908_v37, %v2154_v34  ;;  %8357 = vmatmul.mubr.msk.bf16.gmra.mrb[24].mxu1 %vm848_vm0, %v9370_v36  ;;  %v9372_v33 = vld [vmem:[%s13218_s1 + $0x40] sm:$0xff]  }
 0x2a0   : > { %2459 = vmatprep.mubr.bf16.mxu0 %v9578_v0  ;;  %8539 = vst [vmem:[%s10045_s7 + $0xae0] sm:$0xff] %v5441_v38  ;;  %v5443_v41 = vsel %vm4910_vm5, %v2152_v29, %v5187_v35  ;;  %v5442_v49 = vsel %vm4909_vm6, %v1801_v30, %v5186_v47  ;;  %2812 = vmatprep.mubr.bf16.mxu1 %v9578_v0 }
 0x2a1   : > { %8541 = vst [vmem:[%s10045_s7 + $0xaf0] sm:$0xff] %v5443_v41  ;;  %8540 = vst [vmem:[%s10045_s7 + $0xae8] sm:$0xff] %v5442_v49  ;;  %v5444_v50 = vsel %vm4911_vm7, %v2154_v34, %v5188_v48  ;;  %v1805_v53 = vpop.f32.mrb[176].mxu0 }
 0x2a2   : > { %8542 = vst [vmem:[%s10045_s7 + $0xaf8] sm:$0xff] %v5444_v50  ;;  %vm4912_vm8 = vcmp.ge.f32.partialorder %v1805_v53, 0.0  ;;  %v5189_v54 = vmul.f32 %v10879_v11, %v1805_v53  ;;  %v2158_v55 = vpop.f32.mrb[176].mxu1  ;;  %v1807_v56 = vpop.f32.mrb[177].mxu0 }
 0x2a3   : > { %vm4914_vm9 = vcmp.ge.f32.partialorder %v2158_v55, 0.0  ;;  %v5191_v58 = vmul.f32 %v10882_v12, %v2158_v55  ;;  %vm4913_vm10 = vcmp.ge.f32.partialorder %v1807_v56, 0.0  ;;  %v5190_v59 = vmul.f32 %v10902_v46, %v1807_v56  ;;  %v2160_v51 = vpop.f32.mrb[177].mxu1  ;;  %v1809_v52 = vpop.f32.mrb[178].mxu0 }
 0x2a4   : > { %v5445_v61 = vsel %vm4912_vm8, %v1805_v53, %v5189_v54  ;;  %vm4915_vm11 = vcmp.ge.f32.partialorder %v2160_v51, 0.0  ;;  %v5192_v60 = vmul.f32 %v10908_v37, %v2160_v51  ;;  %vm4916_vm12 = vcmp.ge.f32.partialorder %v1809_v52, 0.0  ;;  %v2162_v20 = vpop.f32.mrb[178].mxu1  ;;  %v1811_v57 = vpop.f32.mrb[179].mxu0 }
 0x2a5   : > { %8543 = vst [vmem:[%s10045_s7 + $0xb00] sm:$0xff] %v5445_v61  ;;  %v5447_v39 = vsel %vm4914_vm9, %v2158_v55, %v5191_v58  ;;  %v5446_v26 = vsel %vm4913_vm10, %v1807_v56, %v5190_v59  ;;  %v5193_v21 = vmul.f32 %v10879_v11, %v1809_v52  ;;  %vm4918_vm13 = vcmp.ge.f32.partialorder %v2162_v20, 0.0  ;;  %v2164_v23 = vpop.f32.mrb[179].mxu1  ;;  %v366_v61 = vld [vmem:[%s9760_s30 + $0x1f0] sm:$0xff] }
 0x2a6   : > { %8545 = vst [vmem:[%s10045_s7 + $0xb10] sm:$0xff] %v5447_v39  ;;  %8544 = vst [vmem:[%s10045_s7 + $0xb08] sm:$0xff] %v5446_v26  ;;  %v5448_v62 = vsel %vm4915_vm11, %v2160_v51, %v5192_v60  ;;  %v5195_v22 = vmul.f32 %v10882_v12, %v2162_v20  ;;  %vm4917_vm14 = vcmp.ge.f32.partialorder %v1811_v57, 0.0  ;;  %v5194_v25 = vmul.f32 %v10902_v46, %v1811_v57  ;;  %v359_v26 = vld [vmem:[%s9760_s30 + $0x1b8] sm:$0xff] }
 0x2a7   : > { %8326 = vmatmul.mubr.msk.bf16.gmra.mrb[28].mxu0 %vm848_vm0, %v9371_v63  ;;  %8546 = vst [vmem:[%s10045_s7 + $0xb18] sm:$0xff] %v5448_v62  ;;  %v5449_v1 = vsel %vm4916_vm12, %v1809_v52, %v5193_v21  ;;  %vm4919_vm15 = vcmp.ge.f32.partialorder %v2164_v23, 0.0  ;;  %v5196_v2 = vmul.f32 %v10908_v37, %v2164_v23  ;;  %8358 = vmatmul.mubr.msk.bf16.gmra.mrb[28].mxu1 %vm848_vm0, %v9371_v63  ;;  %v358_v52 = vld [vmem:[%s9760_s30 + $0x1b0] sm:$0xff]  ;;  %v367_v21 = vld [vmem:[%s9760_s30 + $0x1f8] sm:$0xff] }
 0x2a8   : > { %2469 = vmatprep.mubr.bf16.mxu0 %v9578_v0  ;;  %8547 = vst [vmem:[%s10045_s7 + $0xb20] sm:$0xff] %v5449_v1  ;;  %v5451_v3 = vsel %vm4918_vm13, %v2162_v20, %v5195_v22  ;;  %v5450_v4 = vsel %vm4917_vm14, %v1811_v57, %v5194_v25  ;;  %2822 = vmatprep.mubr.bf16.mxu1 %v9578_v0  ;;  %v9373_v25 = vld [vmem:[%s13218_s1 + $0x48] sm:$0xff]  }
 0x2a9   : > { %8549 = vst [vmem:[%s10045_s7 + $0xb30] sm:$0xff] %v5451_v3  ;;  %8548 = vst [vmem:[%s10045_s7 + $0xb28] sm:$0xff] %v5450_v4  ;;  %v5452_v5 = vsel %vm4919_vm15, %v2164_v23, %v5196_v2  ;;  %v1815_v6 = vpop.f32.mrb[180].mxu0  ;;  %v8187_v2 = vcombine.low %v358_v52, %v366_v61 }
 0x2aa   : > { %8550 = vst [vmem:[%s10045_s7 + $0xb38] sm:$0xff] %v5452_v5  ;;  %vm4920_vm1 = vcmp.ge.f32.partialorder %v1815_v6, 0.0  ;;  %v5197_v7 = vmul.f32 %v10879_v11, %v1815_v6  ;;  %v2168_v8 = vpop.f32.mrb[180].mxu1  ;;  %v1817_v9 = vpop.f32.mrb[181].mxu0  ;;  %v8188_v5 = vcombine.high %v358_v52, %v366_v61 }
 0x2ab   : > { %vm4922_vm2 = vcmp.ge.f32.partialorder %v2168_v8, 0.0  ;;  %v5199_v10 = vmul.f32 %v10882_v12, %v2168_v8  ;;  %vm4921_vm3 = vcmp.ge.f32.partialorder %v1817_v9, 0.0  ;;  %v5198_v13 = vmul.f32 %v10902_v46, %v1817_v9  ;;  %v2170_v14 = vpop.f32.mrb[181].mxu1  ;;  %v1819_v15 = vpop.f32.mrb[182].mxu0 }
 0x2ac   : > { %v5453_v16 = vsel %vm4920_vm1, %v1815_v6, %v5197_v7  ;;  %vm4923_vm4 = vcmp.ge.f32.partialorder %v2170_v14, 0.0  ;;  %v5200_v17 = vmul.f32 %v10908_v37, %v2170_v14  ;;  %vm4924_vm5 = vcmp.ge.f32.partialorder %v1819_v15, 0.0  ;;  %v2172_v18 = vpop.f32.mrb[182].mxu1  ;;  %v1821_v19 = vpop.f32.mrb[183].mxu0  ;;  %3069 = vmatprep.subr.bf16.mxu0 %v8188_v5 }
 0x2ad   : > { %8551 = vst [vmem:[%s10045_s7 + $0xb40] sm:$0xff] %v5453_v16  ;;  %v5455_v24 = vsel %vm4922_vm2, %v2168_v8, %v5199_v10  ;;  %v5454_v27 = vsel %vm4921_vm3, %v1817_v9, %v5198_v13  ;;  %v5201_v28 = vmul.f32 %v10879_v11, %v1819_v15  ;;  %vm4926_vm6 = vcmp.ge.f32.partialorder %v2172_v18, 0.0  ;;  %v2174_v29 = vpop.f32.mrb[183].mxu1  ;;  %3070 = vmatpush1.bf16.msra.mxu0 %v8187_v2 }
 0x2ae   : > { %8553 = vst [vmem:[%s10045_s7 + $0xb50] sm:$0xff] %v5455_v24  ;;  %8552 = vst [vmem:[%s10045_s7 + $0xb48] sm:$0xff] %v5454_v27  ;;  %v5456_v30 = vsel %vm4923_vm4, %v2170_v14, %v5200_v17  ;;  %v5203_v31 = vmul.f32 %v10882_v12, %v2172_v18  ;;  %vm4925_vm7 = vcmp.ge.f32.partialorder %v1821_v19, 0.0  ;;  %v5202_v32 = vmul.f32 %v10902_v46, %v1821_v19 }
 0x2af   : > { %8327 = vmatmul.mubr.msk.bf16.gmra.mrb[32].mxu0 %vm848_vm0, %v9372_v33  ;;  %8554 = vst [vmem:[%s10045_s7 + $0xb58] sm:$0xff] %v5456_v30  ;;  %v5457_v34 = vsel %vm4924_vm5, %v1819_v15, %v5201_v28  ;;  %vm4927_vm8 = vcmp.ge.f32.partialorder %v2174_v29, 0.0  ;;  %v5204_v45 = vmul.f32 %v10908_v37, %v2174_v29  ;;  %8359 = vmatmul.mubr.msk.bf16.gmra.mrb[32].mxu1 %vm848_vm0, %v9372_v33 }
 0x2b0   : > { %2479 = vmatprep.mubr.bf16.mxu0 %v9578_v0  ;;  %8555 = vst [vmem:[%s10045_s7 + $0xb60] sm:$0xff] %v5457_v34  ;;  %v5459_v35 = vsel %vm4926_vm6, %v2172_v18, %v5203_v31  ;;  %v5458_v47 = vsel %vm4925_vm7, %v1821_v19, %v5202_v32  ;;  %2832 = vmatprep.mubr.bf16.mxu1 %v9578_v0 }
 0x2b1   : > { %8557 = vst [vmem:[%s10045_s7 + $0xb70] sm:$0xff] %v5459_v35  ;;  %8556 = vst [vmem:[%s10045_s7 + $0xb68] sm:$0xff] %v5458_v47  ;;  %v5460_v36 = vsel %vm4927_vm8, %v2174_v29, %v5204_v45  ;;  %v1825_v38 = vpop.f32.mrb[184].mxu0  ;;  %v8189_v6 = vcombine.low %v359_v26, %v367_v21  ;;  %v8190_v9 = vcombine.high %v359_v26, %v367_v21  ;;  %v9374_v35 = vld [vmem:[%s13218_s1 + $0x50] sm:$0xff]  }
 0x2b2   : > { %8558 = vst [vmem:[%s10045_s7 + $0xb78] sm:$0xff] %v5460_v36  ;;  %vm4928_vm9 = vcmp.ge.f32.partialorder %v1825_v38, 0.0  ;;  %v5205_v48 = vmul.f32 %v10879_v11, %v1825_v38  ;;  %v2178_v41 = vpop.f32.mrb[184].mxu1  ;;  %v1827_v49 = vpop.f32.mrb[185].mxu0 }
 0x2b3   : > { %vm4930_vm10 = vcmp.ge.f32.partialorder %v2178_v41, 0.0  ;;  %v5207_v50 = vmul.f32 %v10882_v12, %v2178_v41  ;;  %vm4929_vm11 = vcmp.ge.f32.partialorder %v1827_v49, 0.0  ;;  %v5206_v53 = vmul.f32 %v10902_v46, %v1827_v49  ;;  %v2180_v54 = vpop.f32.mrb[185].mxu1  ;;  %v1829_v55 = vpop.f32.mrb[186].mxu0  ;;  %3422 = vmatprep.subr.bf16.mxu1 %v8190_v9 }
 0x2b4   : > { %v5461_v56 = vsel %vm4928_vm9, %v1825_v38, %v5205_v48  ;;  %vm4931_vm12 = vcmp.ge.f32.partialorder %v2180_v54, 0.0  ;;  %v5208_v58 = vmul.f32 %v10908_v37, %v2180_v54  ;;  %vm4932_vm13 = vcmp.ge.f32.partialorder %v1829_v55, 0.0  ;;  %v2182_v59 = vpop.f32.mrb[186].mxu1  ;;  %v1831_v51 = vpop.f32.mrb[187].mxu0  ;;  %3423 = vmatpush1.bf16.msra.mxu1 %v8189_v6 }
 0x2b5   : > { %8559 = vst [vmem:[%s10045_s7 + $0xb80] sm:$0xff] %v5461_v56  ;;  %v5463_v60 = vsel %vm4930_vm10, %v2178_v41, %v5207_v50  ;;  %v5462_v20 = vsel %vm4929_vm11, %v1827_v49, %v5206_v53  ;;  %v5209_v57 = vmul.f32 %v10879_v11, %v1829_v55  ;;  %vm4934_vm14 = vcmp.ge.f32.partialorder %v2182_v59, 0.0  ;;  %v2184_v39 = vpop.f32.mrb[187].mxu1 }
 0x2b6   : > { %8561 = vst [vmem:[%s10045_s7 + $0xb90] sm:$0xff] %v5463_v60  ;;  %8560 = vst [vmem:[%s10045_s7 + $0xb88] sm:$0xff] %v5462_v20  ;;  %v5464_v23 = vsel %vm4931_vm12, %v2180_v54, %v5208_v58  ;;  %v5211_v62 = vmul.f32 %v10882_v12, %v2182_v59  ;;  %vm4933_vm15 = vcmp.ge.f32.partialorder %v1831_v51, 0.0  ;;  %v5210_v22 = vmul.f32 %v10902_v46, %v1831_v51 }
 0x2b7   : > { %8328 = vmatmul.mubr.msk.bf16.gmra.mrb[36].mxu0 %vm848_vm0, %v9373_v25  ;;  %8562 = vst [vmem:[%s10045_s7 + $0xb98] sm:$0xff] %v5464_v23  ;;  %v5465_v63 = vsel %vm4932_vm13, %v1829_v55, %v5209_v57  ;;  %vm4935_vm1 = vcmp.ge.f32.partialorder %v2184_v39, 0.0  ;;  %v5212_v1 = vmul.f32 %v10908_v37, %v2184_v39  ;;  %8360 = vmatmul.mubr.msk.bf16.gmra.mrb[36].mxu1 %vm848_vm0, %v9373_v25 }
 0x2b8   : > { %2489 = vmatprep.mubr.bf16.mxu0 %v9578_v0  ;;  %8563 = vst [vmem:[%s10045_s7 + $0xba0] sm:$0xff] %v5465_v63  ;;  %v5467_v3 = vsel %vm4934_vm14, %v2182_v59, %v5211_v62  ;;  %v5466_v4 = vsel %vm4933_vm15, %v1831_v51, %v5210_v22  ;;  %2842 = vmatprep.mubr.bf16.mxu1 %v9578_v0  ;;  %v9375_v22 = vld [vmem:[%s13218_s1 + $0x58] sm:$0xff]  }
 0x2b9   : > { %8565 = vst [vmem:[%s10045_s7 + $0xbb0] sm:$0xff] %v5467_v3  ;;  %8564 = vst [vmem:[%s10045_s7 + $0xba8] sm:$0xff] %v5466_v4  ;;  %v5468_v7 = vsel %vm4935_vm1, %v2184_v39, %v5212_v1  ;;  %v1835_v8 = vpop.f32.mrb[188].mxu0 }
 0x2ba   : > { %8566 = vst [vmem:[%s10045_s7 + $0xbb8] sm:$0xff] %v5468_v7  ;;  %vm4936_vm2 = vcmp.ge.f32.partialorder %v1835_v8, 0.0  ;;  %v5213_v10 = vmul.f32 %v10879_v11, %v1835_v8  ;;  %v2188_v13 = vpop.f32.mrb[188].mxu1  ;;  %v1837_v14 = vpop.f32.mrb[189].mxu0 }
 0x2bb   : > { %vm4938_vm3 = vcmp.ge.f32.partialorder %v2188_v13, 0.0  ;;  %v5215_v15 = vmul.f32 %v10882_v12, %v2188_v13  ;;  %vm4937_vm4 = vcmp.ge.f32.partialorder %v1837_v14, 0.0  ;;  %v5214_v16 = vmul.f32 %v10902_v46, %v1837_v14  ;;  %v2190_v17 = vpop.f32.mrb[189].mxu1  ;;  %v1839_v18 = vpop.f32.mrb[190].mxu0 }
 0x2bc   : > { %v5469_v19 = vsel %vm4936_vm2, %v1835_v8, %v5213_v10  ;;  %vm4939_vm5 = vcmp.ge.f32.partialorder %v2190_v17, 0.0  ;;  %v5216_v24 = vmul.f32 %v10908_v37, %v2190_v17  ;;  %vm4940_vm6 = vcmp.ge.f32.partialorder %v1839_v18, 0.0  ;;  %v2192_v27 = vpop.f32.mrb[190].mxu1  ;;  %v1841_v28 = vpop.f32.mrb[191].mxu0 }
 0x2bd   : > { %8567 = vst [vmem:[%s10045_s7 + $0xbc0] sm:$0xff] %v5469_v19  ;;  %v5471_v29 = vsel %vm4938_vm3, %v2188_v13, %v5215_v15  ;;  %v5470_v30 = vsel %vm4937_vm4, %v1837_v14, %v5214_v16  ;;  %v5217_v31 = vmul.f32 %v10879_v11, %v1839_v18  ;;  %vm4942_vm7 = vcmp.ge.f32.partialorder %v2192_v27, 0.0  ;;  %v2194_v32 = vpop.f32.mrb[191].mxu1 }
 0x2be   : > { %8569 = vst [vmem:[%s10045_s7 + $0xbd0] sm:$0xff] %v5471_v29  ;;  %8568 = vst [vmem:[%s10045_s7 + $0xbc8] sm:$0xff] %v5470_v30  ;;  %v5472_v33 = vsel %vm4939_vm5, %v2190_v17, %v5216_v24  ;;  %v5219_v34 = vmul.f32 %v10882_v12, %v2192_v27  ;;  %vm4941_vm8 = vcmp.ge.f32.partialorder %v1841_v28, 0.0  ;;  %v5218_v45 = vmul.f32 %v10902_v46, %v1841_v28 }
 0x2bf   : > { %8329 = vmatmul.mubr.msk.bf16.gmra.mrb[40].mxu0 %vm848_vm0, %v9374_v35  ;;  %8570 = vst [vmem:[%s10045_s7 + $0xbd8] sm:$0xff] %v5472_v33  ;;  %v5473_v47 = vsel %vm4940_vm6, %v1839_v18, %v5217_v31  ;;  %vm4943_vm9 = vcmp.ge.f32.partialorder %v2194_v32, 0.0  ;;  %v5220_v36 = vmul.f32 %v10908_v37, %v2194_v32  ;;  %8361 = vmatmul.mubr.msk.bf16.gmra.mrb[40].mxu1 %vm848_vm0, %v9374_v35  ;;  %v9376_v31 = vld [vmem:[%s13218_s1 + $0x60] sm:$0xff]  }
 0x2c0   : > { %2499 = vmatprep.mubr.bf16.mxu0 %v9578_v0  ;;  %8571 = vst [vmem:[%s10045_s7 + $0xbe0] sm:$0xff] %v5473_v47  ;;  %v5475_v38 = vsel %vm4942_vm7, %v2192_v27, %v5219_v34  ;;  %v5474_v48 = vsel %vm4941_vm8, %v1841_v28, %v5218_v45  ;;  %2852 = vmatprep.mubr.bf16.mxu1 %v9578_v0 }
 0x2c1   : > { %8573 = vst [vmem:[%s10045_s7 + $0xbf0] sm:$0xff] %v5475_v38  ;;  %8572 = vst [vmem:[%s10045_s7 + $0xbe8] sm:$0xff] %v5474_v48  ;;  %v5476_v41 = vsel %vm4943_vm9, %v2194_v32, %v5220_v36  ;;  %v1845_v49 = vpop.f32.mrb[192].mxu0 }
 0x2c2   : > { %8574 = vst [vmem:[%s10045_s7 + $0xbf8] sm:$0xff] %v5476_v41  ;;  %vm4944_vm10 = vcmp.ge.f32.partialorder %v1845_v49, 0.0  ;;  %v5221_v50 = vmul.f32 %v10879_v11, %v1845_v49  ;;  %v2198_v53 = vpop.f32.mrb[192].mxu1  ;;  %v1847_v54 = vpop.f32.mrb[193].mxu0 }
 0x2c3   : > { %vm4946_vm11 = vcmp.ge.f32.partialorder %v2198_v53, 0.0  ;;  %v5223_v55 = vmul.f32 %v10882_v12, %v2198_v53  ;;  %vm4945_vm12 = vcmp.ge.f32.partialorder %v1847_v54, 0.0  ;;  %v5222_v56 = vmul.f32 %v10902_v46, %v1847_v54  ;;  %v2200_v58 = vpop.f32.mrb[193].mxu1  ;;  %v1849_v59 = vpop.f32.mrb[194].mxu0 }
 0x2c4   : > { %v5477_v51 = vsel %vm4944_vm10, %v1845_v49, %v5221_v50  ;;  %vm4947_vm13 = vcmp.ge.f32.partialorder %v2200_v58, 0.0  ;;  %v5224_v52 = vmul.f32 %v10908_v37, %v2200_v58  ;;  %vm4948_vm14 = vcmp.ge.f32.partialorder %v1849_v59, 0.0  ;;  %v2202_v61 = vpop.f32.mrb[194].mxu1  ;;  %v1851_v60 = vpop.f32.mrb[195].mxu0 }
 0x2c5   : > { %8575 = vst [vmem:[%s10045_s7 + $0xc00] sm:$0xff] %v5477_v51  ;;  %v5479_v20 = vsel %vm4946_vm11, %v2198_v53, %v5223_v55  ;;  %v5478_v57 = vsel %vm4945_vm12, %v1847_v54, %v5222_v56  ;;  %v5225_v39 = vmul.f32 %v10879_v11, %v1849_v59  ;;  %vm4950_vm15 = vcmp.ge.f32.partialorder %v2202_v61, 0.0  ;;  %v2204_v26 = vpop.f32.mrb[195].mxu1 }
 0x2c6   : > { %8577 = vst [vmem:[%s10045_s7 + $0xc10] sm:$0xff] %v5479_v20  ;;  %8576 = vst [vmem:[%s10045_s7 + $0xc08] sm:$0xff] %v5478_v57  ;;  %v5480_v21 = vsel %vm4947_vm13, %v2200_v58, %v5224_v52  ;;  %v5227_v23 = vmul.f32 %v10882_v12, %v2202_v61  ;;  %vm4949_vm1 = vcmp.ge.f32.partialorder %v1851_v60, 0.0  ;;  %v5226_v62 = vmul.f32 %v10902_v46, %v1851_v60 }
 0x2c7   : > { %8330 = vmatmul.mubr.msk.bf16.gmra.mrb[44].mxu0 %vm848_vm0, %v9375_v22  ;;  %8578 = vst [vmem:[%s10045_s7 + $0xc18] sm:$0xff] %v5480_v21  ;;  %v5481_v25 = vsel %vm4948_vm14, %v1849_v59, %v5225_v39  ;;  %vm4951_vm2 = vcmp.ge.f32.partialorder %v2204_v26, 0.0  ;;  %v5228_v63 = vmul.f32 %v10908_v37, %v2204_v26  ;;  %8362 = vmatmul.mubr.msk.bf16.gmra.mrb[44].mxu1 %vm848_vm0, %v9375_v22  ;;  %v9377_v39 = vld [vmem:[%s13218_s1 + $0x68] sm:$0xff]  }
 0x2c8   : > { %2509 = vmatprep.mubr.bf16.mxu0 %v9578_v0  ;;  %8579 = vst [vmem:[%s10045_s7 + $0xc20] sm:$0xff] %v5481_v25  ;;  %v5483_v1 = vsel %vm4950_vm15, %v2202_v61, %v5227_v23  ;;  %v5482_v2 = vsel %vm4949_vm1, %v1851_v60, %v5226_v62  ;;  %2862 = vmatprep.mubr.bf16.mxu1 %v9578_v0 }
 0x2c9   : > { %8581 = vst [vmem:[%s10045_s7 + $0xc30] sm:$0xff] %v5483_v1  ;;  %8580 = vst [vmem:[%s10045_s7 + $0xc28] sm:$0xff] %v5482_v2  ;;  %v5484_v3 = vsel %vm4951_vm2, %v2204_v26, %v5228_v63  ;;  %v1855_v4 = vpop.f32.mrb[196].mxu0 }
 0x2ca   : > { %8582 = vst [vmem:[%s10045_s7 + $0xc38] sm:$0xff] %v5484_v3  ;;  %vm4952_vm3 = vcmp.ge.f32.partialorder %v1855_v4, 0.0  ;;  %v5229_v5 = vmul.f32 %v10879_v11, %v1855_v4  ;;  %v2208_v6 = vpop.f32.mrb[196].mxu1  ;;  %v1857_v7 = vpop.f32.mrb[197].mxu0 }
 0x2cb   : > { %vm4954_vm4 = vcmp.ge.f32.partialorder %v2208_v6, 0.0  ;;  %v5231_v8 = vmul.f32 %v10882_v12, %v2208_v6  ;;  %vm4953_vm5 = vcmp.ge.f32.partialorder %v1857_v7, 0.0  ;;  %v5230_v9 = vmul.f32 %v10902_v46, %v1857_v7  ;;  %v2210_v10 = vpop.f32.mrb[197].mxu1  ;;  %v1859_v13 = vpop.f32.mrb[198].mxu0 }
 0x2cc   : > { %v5485_v14 = vsel %vm4952_vm3, %v1855_v4, %v5229_v5  ;;  %vm4955_vm6 = vcmp.ge.f32.partialorder %v2210_v10, 0.0  ;;  %v5232_v15 = vmul.f32 %v10908_v37, %v2210_v10  ;;  %vm4956_vm7 = vcmp.ge.f32.partialorder %v1859_v13, 0.0  ;;  %v2212_v16 = vpop.f32.mrb[198].mxu1  ;;  %v1861_v17 = vpop.f32.mrb[199].mxu0 }
 0x2cd   : > { %8583 = vst [vmem:[%s10045_s7 + $0xc40] sm:$0xff] %v5485_v14  ;;  %v5487_v18 = vsel %vm4954_vm4, %v2208_v6, %v5231_v8  ;;  %v5486_v19 = vsel %vm4953_vm5, %v1857_v7, %v5230_v9  ;;  %v5233_v24 = vmul.f32 %v10879_v11, %v1859_v13  ;;  %vm4958_vm8 = vcmp.ge.f32.partialorder %v2212_v16, 0.0  ;;  %v2214_v27 = vpop.f32.mrb[199].mxu1 }
 0x2ce   : > { %8585 = vst [vmem:[%s10045_s7 + $0xc50] sm:$0xff] %v5487_v18  ;;  %8584 = vst [vmem:[%s10045_s7 + $0xc48] sm:$0xff] %v5486_v19  ;;  %v5488_v28 = vsel %vm4955_vm6, %v2210_v10, %v5232_v15  ;;  %v5235_v29 = vmul.f32 %v10882_v12, %v2212_v16  ;;  %vm4957_vm9 = vcmp.ge.f32.partialorder %v1861_v17, 0.0  ;;  %v5234_v30 = vmul.f32 %v10902_v46, %v1861_v17 }
 0x2cf   : > { %8331 = vmatmul.mubr.msk.bf16.gmra.mrb[48].mxu0 %vm848_vm0, %v9376_v31  ;;  %8586 = vst [vmem:[%s10045_s7 + $0xc58] sm:$0xff] %v5488_v28  ;;  %v5489_v32 = vsel %vm4956_vm7, %v1859_v13, %v5233_v24  ;;  %vm4959_vm10 = vcmp.ge.f32.partialorder %v2214_v27, 0.0  ;;  %v5236_v33 = vmul.f32 %v10908_v37, %v2214_v27  ;;  %8363 = vmatmul.mubr.msk.bf16.gmra.mrb[48].mxu1 %vm848_vm0, %v9376_v31  ;;  %v9378_v24 = vld [vmem:[%s13218_s1 + $0x70] sm:$0xff]  }
 0x2d0   : > { %2519 = vmatprep.mubr.bf16.mxu0 %v9578_v0  ;;  %8587 = vst [vmem:[%s10045_s7 + $0xc60] sm:$0xff] %v5489_v32  ;;  %v5491_v34 = vsel %vm4958_vm8, %v2212_v16, %v5235_v29  ;;  %v5490_v45 = vsel %vm4957_vm9, %v1861_v17, %v5234_v30  ;;  %2872 = vmatprep.mubr.bf16.mxu1 %v9578_v0 }
 0x2d1   : > { %8589 = vst [vmem:[%s10045_s7 + $0xc70] sm:$0xff] %v5491_v34  ;;  %8588 = vst [vmem:[%s10045_s7 + $0xc68] sm:$0xff] %v5490_v45  ;;  %v5492_v35 = vsel %vm4959_vm10, %v2214_v27, %v5236_v33  ;;  %v1865_v47 = vpop.f32.mrb[200].mxu0 }
 0x2d2   : > { %8590 = vst [vmem:[%s10045_s7 + $0xc78] sm:$0xff] %v5492_v35  ;;  %vm4960_vm11 = vcmp.ge.f32.partialorder %v1865_v47, 0.0  ;;  %v5237_v36 = vmul.f32 %v10879_v11, %v1865_v47  ;;  %v2218_v38 = vpop.f32.mrb[200].mxu1  ;;  %v1867_v48 = vpop.f32.mrb[201].mxu0 }
 0x2d3   : > { %vm4962_vm12 = vcmp.ge.f32.partialorder %v2218_v38, 0.0  ;;  %v5239_v41 = vmul.f32 %v10882_v12, %v2218_v38  ;;  %vm4961_vm13 = vcmp.ge.f32.partialorder %v1867_v48, 0.0  ;;  %v5238_v49 = vmul.f32 %v10902_v46, %v1867_v48  ;;  %v2220_v50 = vpop.f32.mrb[201].mxu1  ;;  %v1869_v53 = vpop.f32.mrb[202].mxu0 }
 0x2d4   : > { %v5493_v54 = vsel %vm4960_vm11, %v1865_v47, %v5237_v36  ;;  %vm4963_vm14 = vcmp.ge.f32.partialorder %v2220_v50, 0.0  ;;  %v5240_v55 = vmul.f32 %v10908_v37, %v2220_v50  ;;  %vm4964_vm15 = vcmp.ge.f32.partialorder %v1869_v53, 0.0  ;;  %v2222_v56 = vpop.f32.mrb[202].mxu1  ;;  %v1871_v58 = vpop.f32.mrb[203].mxu0 }
 0x2d5   : > { %8591 = vst [vmem:[%s10045_s7 + $0xc80] sm:$0xff] %v5493_v54  ;;  %v5495_v59 = vsel %vm4962_vm12, %v2218_v38, %v5239_v41  ;;  %v5494_v51 = vsel %vm4961_vm13, %v1867_v48, %v5238_v49  ;;  %v5241_v52 = vmul.f32 %v10879_v11, %v1869_v53  ;;  %vm4966_vm1 = vcmp.ge.f32.partialorder %v2222_v56, 0.0  ;;  %v2224_v61 = vpop.f32.mrb[203].mxu1 }
 0x2d6   : > { %8593 = vst [vmem:[%s10045_s7 + $0xc90] sm:$0xff] %v5495_v59  ;;  %8592 = vst [vmem:[%s10045_s7 + $0xc88] sm:$0xff] %v5494_v51  ;;  %v5496_v60 = vsel %vm4963_vm14, %v2220_v50, %v5240_v55  ;;  %v5243_v20 = vmul.f32 %v10882_v12, %v2222_v56  ;;  %vm4965_vm2 = vcmp.ge.f32.partialorder %v1871_v58, 0.0  ;;  %v5242_v57 = vmul.f32 %v10902_v46, %v1871_v58 }
 0x2d7   : > { %8332 = vmatmul.mubr.msk.bf16.gmra.mrb[52].mxu0 %vm848_vm0, %v9377_v39  ;;  %8594 = vst [vmem:[%s10045_s7 + $0xc98] sm:$0xff] %v5496_v60  ;;  %v5497_v26 = vsel %vm4964_vm15, %v1869_v53, %v5241_v52  ;;  %vm4967_vm3 = vcmp.ge.f32.partialorder %v2224_v61, 0.0  ;;  %v5244_v21 = vmul.f32 %v10908_v37, %v2224_v61  ;;  %8364 = vmatmul.mubr.msk.bf16.gmra.mrb[52].mxu1 %vm848_vm0, %v9377_v39  ;;  %v9379_v52 = vld [vmem:[%s13218_s1 + $0x78] sm:$0xff]  }
 0x2d8   : > { %2529 = vmatprep.mubr.bf16.mxu0 %v9578_v0  ;;  %8595 = vst [vmem:[%s10045_s7 + $0xca0] sm:$0xff] %v5497_v26  ;;  %v5499_v23 = vsel %vm4966_vm1, %v2222_v56, %v5243_v20  ;;  %v5498_v62 = vsel %vm4965_vm2, %v1871_v58, %v5242_v57  ;;  %2882 = vmatprep.mubr.bf16.mxu1 %v9578_v0 }
 0x2d9   : > { %8597 = vst [vmem:[%s10045_s7 + $0xcb0] sm:$0xff] %v5499_v23  ;;  %8596 = vst [vmem:[%s10045_s7 + $0xca8] sm:$0xff] %v5498_v62  ;;  %v5500_v22 = vsel %vm4967_vm3, %v2224_v61, %v5244_v21  ;;  %v1875_v25 = vpop.f32.mrb[204].mxu0 }
 0x2da   : > { %8598 = vst [vmem:[%s10045_s7 + $0xcb8] sm:$0xff] %v5500_v22  ;;  %vm4968_vm4 = vcmp.ge.f32.partialorder %v1875_v25, 0.0  ;;  %v5245_v63 = vmul.f32 %v10879_v11, %v1875_v25  ;;  %v2228_v1 = vpop.f32.mrb[204].mxu1  ;;  %v1877_v2 = vpop.f32.mrb[205].mxu0 }
 0x2db   : > { %vm4970_vm5 = vcmp.ge.f32.partialorder %v2228_v1, 0.0  ;;  %v5247_v3 = vmul.f32 %v10882_v12, %v2228_v1  ;;  %vm4969_vm6 = vcmp.ge.f32.partialorder %v1877_v2, 0.0  ;;  %v5246_v4 = vmul.f32 %v10902_v46, %v1877_v2  ;;  %v2230_v5 = vpop.f32.mrb[205].mxu1  ;;  %v1879_v6 = vpop.f32.mrb[206].mxu0 }
 0x2dc   : > { %v5501_v7 = vsel %vm4968_vm4, %v1875_v25, %v5245_v63  ;;  %vm4971_vm7 = vcmp.ge.f32.partialorder %v2230_v5, 0.0  ;;  %v5248_v8 = vmul.f32 %v10908_v37, %v2230_v5  ;;  %vm4972_vm8 = vcmp.ge.f32.partialorder %v1879_v6, 0.0  ;;  %v2232_v9 = vpop.f32.mrb[206].mxu1  ;;  %v1881_v10 = vpop.f32.mrb[207].mxu0 }
 0x2dd   : > { %8599 = vst [vmem:[%s10045_s7 + $0xcc0] sm:$0xff] %v5501_v7  ;;  %v5503_v13 = vsel %vm4970_vm5, %v2228_v1, %v5247_v3  ;;  %v5502_v14 = vsel %vm4969_vm6, %v1877_v2, %v5246_v4  ;;  %v5249_v15 = vmul.f32 %v10879_v11, %v1879_v6  ;;  %vm4974_vm9 = vcmp.ge.f32.partialorder %v2232_v9, 0.0  ;;  %v2234_v16 = vpop.f32.mrb[207].mxu1 }
 0x2de   : > { %8601 = vst [vmem:[%s10045_s7 + $0xcd0] sm:$0xff] %v5503_v13  ;;  %8600 = vst [vmem:[%s10045_s7 + $0xcc8] sm:$0xff] %v5502_v14  ;;  %v5504_v17 = vsel %vm4971_vm7, %v2230_v5, %v5248_v8  ;;  %v5251_v18 = vmul.f32 %v10882_v12, %v2232_v9  ;;  %vm4973_vm10 = vcmp.ge.f32.partialorder %v1881_v10, 0.0  ;;  %v5250_v19 = vmul.f32 %v10902_v46, %v1881_v10 }
 0x2df   : > { %8333 = vmatmul.mubr.msk.bf16.gmra.mrb[56].mxu0 %vm848_vm0, %v9378_v24  ;;  %8602 = vst [vmem:[%s10045_s7 + $0xcd8] sm:$0xff] %v5504_v17  ;;  %v5505_v27 = vsel %vm4972_vm8, %v1879_v6, %v5249_v15  ;;  %vm4975_vm11 = vcmp.ge.f32.partialorder %v2234_v16, 0.0  ;;  %v5252_v28 = vmul.f32 %v10908_v37, %v2234_v16  ;;  %8365 = vmatmul.mubr.msk.bf16.gmra.mrb[56].mxu1 %vm848_vm0, %v9378_v24  ;;  %v9380_v15 = vld [vmem:[%s13218_s1 + $0x80] sm:$0xff]  }
 0x2e0   : > { %2539 = vmatprep.mubr.bf16.mxu0 %v9578_v0  ;;  %8603 = vst [vmem:[%s10045_s7 + $0xce0] sm:$0xff] %v5505_v27  ;;  %v5507_v29 = vsel %vm4974_vm9, %v2232_v9, %v5251_v18  ;;  %v5506_v30 = vsel %vm4973_vm10, %v1881_v10, %v5250_v19  ;;  %2892 = vmatprep.mubr.bf16.mxu1 %v9578_v0 }
 0x2e1   : > { %8605 = vst [vmem:[%s10045_s7 + $0xcf0] sm:$0xff] %v5507_v29  ;;  %8604 = vst [vmem:[%s10045_s7 + $0xce8] sm:$0xff] %v5506_v30  ;;  %v5508_v31 = vsel %vm4975_vm11, %v2234_v16, %v5252_v28  ;;  %v1885_v32 = vpop.f32.mrb[208].mxu0 }
 0x2e2   : > { %8606 = vst [vmem:[%s10045_s7 + $0xcf8] sm:$0xff] %v5508_v31  ;;  %vm4976_vm12 = vcmp.ge.f32.partialorder %v1885_v32, 0.0  ;;  %v5253_v33 = vmul.f32 %v10879_v11, %v1885_v32  ;;  %v2238_v34 = vpop.f32.mrb[208].mxu1  ;;  %v1887_v45 = vpop.f32.mrb[209].mxu0 }
 0x2e3   : > { %vm4978_vm13 = vcmp.ge.f32.partialorder %v2238_v34, 0.0  ;;  %v5255_v35 = vmul.f32 %v10882_v12, %v2238_v34  ;;  %vm4977_vm14 = vcmp.ge.f32.partialorder %v1887_v45, 0.0  ;;  %v5254_v47 = vmul.f32 %v10902_v46, %v1887_v45  ;;  %v2240_v36 = vpop.f32.mrb[209].mxu1  ;;  %v1889_v38 = vpop.f32.mrb[210].mxu0 }
 0x2e4   : > { %v5509_v48 = vsel %vm4976_vm12, %v1885_v32, %v5253_v33  ;;  %vm4979_vm15 = vcmp.ge.f32.partialorder %v2240_v36, 0.0  ;;  %v5256_v41 = vmul.f32 %v10908_v37, %v2240_v36  ;;  %vm4980_vm1 = vcmp.ge.f32.partialorder %v1889_v38, 0.0  ;;  %v2242_v49 = vpop.f32.mrb[210].mxu1  ;;  %v1891_v50 = vpop.f32.mrb[211].mxu0 }
 0x2e5   : > { %8607 = vst [vmem:[%s10045_s7 + $0xd00] sm:$0xff] %v5509_v48  ;;  %v5511_v53 = vsel %vm4978_vm13, %v2238_v34, %v5255_v35  ;;  %v5510_v54 = vsel %vm4977_vm14, %v1887_v45, %v5254_v47  ;;  %v5257_v55 = vmul.f32 %v10879_v11, %v1889_v38  ;;  %vm4982_vm2 = vcmp.ge.f32.partialorder %v2242_v49, 0.0  ;;  %v2244_v56 = vpop.f32.mrb[211].mxu1 }
 0x2e6   : > { %8609 = vst [vmem:[%s10045_s7 + $0xd10] sm:$0xff] %v5511_v53  ;;  %8608 = vst [vmem:[%s10045_s7 + $0xd08] sm:$0xff] %v5510_v54  ;;  %v5512_v58 = vsel %vm4979_vm15, %v2240_v36, %v5256_v41  ;;  %v5259_v59 = vmul.f32 %v10882_v12, %v2242_v49  ;;  %vm4981_vm3 = vcmp.ge.f32.partialorder %v1891_v50, 0.0  ;;  %v5258_v51 = vmul.f32 %v10902_v46, %v1891_v50 }
 0x2e7   : > { %8334 = vmatmul.mubr.msk.bf16.gmra.mrb[60].mxu0 %vm848_vm0, %v9379_v52  ;;  %8610 = vst [vmem:[%s10045_s7 + $0xd18] sm:$0xff] %v5512_v58  ;;  %v5513_v61 = vsel %vm4980_vm1, %v1889_v38, %v5257_v55  ;;  %vm4983_vm4 = vcmp.ge.f32.partialorder %v2244_v56, 0.0  ;;  %v5260_v60 = vmul.f32 %v10908_v37, %v2244_v56  ;;  %8366 = vmatmul.mubr.msk.bf16.gmra.mrb[60].mxu1 %vm848_vm0, %v9379_v52  ;;  %v9381_v55 = vld [vmem:[%s13218_s1 + $0x88] sm:$0xff]  }
 0x2e8   : > { %2549 = vmatprep.mubr.bf16.mxu0 %v9578_v0  ;;  %8611 = vst [vmem:[%s10045_s7 + $0xd20] sm:$0xff] %v5513_v61  ;;  %v5515_v20 = vsel %vm4982_vm2, %v2242_v49, %v5259_v59  ;;  %v5514_v57 = vsel %vm4981_vm3, %v1891_v50, %v5258_v51  ;;  %2902 = vmatprep.mubr.bf16.mxu1 %v9578_v0 }
 0x2e9   : > { %8613 = vst [vmem:[%s10045_s7 + $0xd30] sm:$0xff] %v5515_v20  ;;  %8612 = vst [vmem:[%s10045_s7 + $0xd28] sm:$0xff] %v5514_v57  ;;  %v5516_v39 = vsel %vm4983_vm4, %v2244_v56, %v5260_v60  ;;  %v1895_v26 = vpop.f32.mrb[212].mxu0 }
 0x2ea   : > { %8614 = vst [vmem:[%s10045_s7 + $0xd38] sm:$0xff] %v5516_v39  ;;  %vm4984_vm5 = vcmp.ge.f32.partialorder %v1895_v26, 0.0  ;;  %v5261_v21 = vmul.f32 %v10879_v11, %v1895_v26  ;;  %v2248_v23 = vpop.f32.mrb[212].mxu1  ;;  %v1897_v62 = vpop.f32.mrb[213].mxu0 }
 0x2eb   : > { %vm4986_vm6 = vcmp.ge.f32.partialorder %v2248_v23, 0.0  ;;  %v5263_v22 = vmul.f32 %v10882_v12, %v2248_v23  ;;  %vm4985_vm7 = vcmp.ge.f32.partialorder %v1897_v62, 0.0  ;;  %v5262_v25 = vmul.f32 %v10902_v46, %v1897_v62  ;;  %v2250_v63 = vpop.f32.mrb[213].mxu1  ;;  %v1899_v1 = vpop.f32.mrb[214].mxu0 }
 0x2ec   : > { %v5517_v2 = vsel %vm4984_vm5, %v1895_v26, %v5261_v21  ;;  %vm4987_vm8 = vcmp.ge.f32.partialorder %v2250_v63, 0.0  ;;  %v5264_v3 = vmul.f32 %v10908_v37, %v2250_v63  ;;  %vm4988_vm9 = vcmp.ge.f32.partialorder %v1899_v1, 0.0  ;;  %v2252_v4 = vpop.f32.mrb[214].mxu1  ;;  %v1901_v5 = vpop.f32.mrb[215].mxu0 }
 0x2ed   : > { %8615 = vst [vmem:[%s10045_s7 + $0xd40] sm:$0xff] %v5517_v2  ;;  %v5519_v6 = vsel %vm4986_vm6, %v2248_v23, %v5263_v22  ;;  %v5518_v7 = vsel %vm4985_vm7, %v1897_v62, %v5262_v25  ;;  %v5265_v8 = vmul.f32 %v10879_v11, %v1899_v1  ;;  %vm4990_vm10 = vcmp.ge.f32.partialorder %v2252_v4, 0.0  ;;  %v2254_v9 = vpop.f32.mrb[215].mxu1 }
 0x2ee   : > { %8617 = vst [vmem:[%s10045_s7 + $0xd50] sm:$0xff] %v5519_v6  ;;  %8616 = vst [vmem:[%s10045_s7 + $0xd48] sm:$0xff] %v5518_v7  ;;  %v5520_v10 = vsel %vm4987_vm8, %v2250_v63, %v5264_v3  ;;  %v5267_v13 = vmul.f32 %v10882_v12, %v2252_v4  ;;  %vm4989_vm11 = vcmp.ge.f32.partialorder %v1901_v5, 0.0  ;;  %v5266_v14 = vmul.f32 %v10902_v46, %v1901_v5 }
 0x2ef   : > { %8335 = vmatmul.mubr.msk.bf16.gmra.mrb[64].mxu0 %vm848_vm0, %v9380_v15  ;;  %8618 = vst [vmem:[%s10045_s7 + $0xd58] sm:$0xff] %v5520_v10  ;;  %v5521_v16 = vsel %vm4988_vm9, %v1899_v1, %v5265_v8  ;;  %vm4991_vm12 = vcmp.ge.f32.partialorder %v2254_v9, 0.0  ;;  %v5268_v17 = vmul.f32 %v10908_v37, %v2254_v9  ;;  %8367 = vmatmul.mubr.msk.bf16.gmra.mrb[64].mxu1 %vm848_vm0, %v9380_v15  ;;  %v9382_v8 = vld [vmem:[%s13218_s1 + $0x90] sm:$0xff]  }
 0x2f0   : > { %2559 = vmatprep.mubr.bf16.mxu0 %v9578_v0  ;;  %8619 = vst [vmem:[%s10045_s7 + $0xd60] sm:$0xff] %v5521_v16  ;;  %v5523_v18 = vsel %vm4990_vm10, %v2252_v4, %v5267_v13  ;;  %v5522_v19 = vsel %vm4989_vm11, %v1901_v5, %v5266_v14  ;;  %2912 = vmatprep.mubr.bf16.mxu1 %v9578_v0 }
 0x2f1   : > { %8621 = vst [vmem:[%s10045_s7 + $0xd70] sm:$0xff] %v5523_v18  ;;  %8620 = vst [vmem:[%s10045_s7 + $0xd68] sm:$0xff] %v5522_v19  ;;  %v5524_v24 = vsel %vm4991_vm12, %v2254_v9, %v5268_v17 }
 0x2f2   : > { %v1905_v27 = vpop.f32.mrb[216].mxu0  ;;  %8622 = vst [vmem:[%s10045_s7 + $0xd78] sm:$0xff] %v5524_v24  ;;  %v2258_v29 = vpop.f32.mrb[216].mxu1 }
 0x2f3   : > { %vm4992_vm13 = vcmp.ge.f32.partialorder %v1905_v27, 0.0  ;;  %v5269_v28 = vmul.f32 %v10879_v11, %v1905_v27  ;;  %v1907_v30 = vpop.f32.mrb[217].mxu0  ;;  %vm4994_vm14 = vcmp.ge.f32.partialorder %v2258_v29, 0.0  ;;  %v5271_v31 = vmul.f32 %v10882_v12, %v2258_v29  ;;  %v2260_v33 = vpop.f32.mrb[217].mxu1 }
 0x2f4   : > { %vm4993_vm15 = vcmp.ge.f32.partialorder %v1907_v30, 0.0  ;;  %v5270_v32 = vmul.f32 %v10902_v46, %v1907_v30  ;;  %v1909_v34 = vpop.f32.mrb[218].mxu0  ;;  %vm4995_vm1 = vcmp.ge.f32.partialorder %v2260_v33, 0.0  ;;  %v5272_v35 = vmul.f32 %v10908_v37, %v2260_v33  ;;  %v2262_v47 = vpop.f32.mrb[218].mxu1 }
 0x2f5   : > { %v5525_v45 = vsel %vm4992_vm13, %v1905_v27, %v5269_v28  ;;  %vm4996_vm2 = vcmp.ge.f32.partialorder %v1909_v34, 0.0  ;;  %v1911_v36 = vpop.f32.mrb[219].mxu0  ;;  %v5527_v38 = vsel %vm4994_vm14, %v2258_v29, %v5271_v31  ;;  %v5273_v41 = vmul.f32 %v10879_v11, %v1909_v34  ;;  %v2264_v49 = vpop.f32.mrb[219].mxu1 }
 0x2f6   : > { %8623 = vst [vmem:[%s10045_s7 + $0xd80] sm:$0xff] %v5525_v45  ;;  %v5526_v48 = vsel %vm4993_vm15, %v1907_v30, %v5270_v32  ;;  %vm4998_vm3 = vcmp.ge.f32.partialorder %v2262_v47, 0.0  ;;  %8625 = vst [vmem:[%s10045_s7 + $0xd90] sm:$0xff] %v5527_v38  ;;  %v5528_v50 = vsel %vm4995_vm1, %v2260_v33, %v5272_v35  ;;  %v5275_v53 = vmul.f32 %v10882_v12, %v2262_v47 }
 0x2f7   : > { %8624 = vst [vmem:[%s10045_s7 + $0xd88] sm:$0xff] %v5526_v48  ;;  %vm4997_vm4 = vcmp.ge.f32.partialorder %v1911_v36, 0.0  ;;  %v5274_v54 = vmul.f32 %v10902_v46, %v1911_v36  ;;  %8336 = vmatmul.mubr.msk.bf16.gmra.mrb[68].mxu0 %vm848_vm0, %v9381_v55  ;;  %8626 = vst [vmem:[%s10045_s7 + $0xd98] sm:$0xff] %v5528_v50  ;;  %v5529_v56 = vsel %vm4996_vm2, %v1909_v34, %v5273_v41  ;;  %vm4999_vm5 = vcmp.ge.f32.partialorder %v2264_v49, 0.0  ;;  %v9383_v41 = vld [vmem:[%s13218_s1 + $0x98] sm:$0xff]  }
 0x2f8   : > { %v5276_v58 = vmul.f32 %v10908_v37, %v2264_v49  ;;  %8368 = vmatmul.mubr.msk.bf16.gmra.mrb[68].mxu1 %vm848_vm0, %v9381_v55  ;;  %2569 = vmatprep.mubr.bf16.mxu0 %v9578_v0  ;;  %8627 = vst [vmem:[%s10045_s7 + $0xda0] sm:$0xff] %v5529_v56  ;;  %v5531_v59 = vsel %vm4998_vm3, %v2262_v47, %v5275_v53 }
 0x2f9   : > { %v5530_v51 = vsel %vm4997_vm4, %v1911_v36, %v5274_v54  ;;  %2922 = vmatprep.mubr.bf16.mxu1 %v9578_v0  ;;  %8629 = vst [vmem:[%s10045_s7 + $0xdb0] sm:$0xff] %v5531_v59 }
 0x2fa   : > { %8628 = vst [vmem:[%s10045_s7 + $0xda8] sm:$0xff] %v5530_v51  ;;  %v5532_v52 = vsel %vm4999_vm5, %v2264_v49, %v5276_v58  ;;  %v1915_v61 = vpop.f32.mrb[220].mxu0  ;;  %v2268_v20 = vpop.f32.mrb[220].mxu1 }
 0x2fb   : > { %8630 = vst [vmem:[%s10045_s7 + $0xdb8] sm:$0xff] %v5532_v52  ;;  %vm5000_vm6 = vcmp.ge.f32.partialorder %v1915_v61, 0.0  ;;  %v5277_v60 = vmul.f32 %v10879_v11, %v1915_v61  ;;  %v1917_v57 = vpop.f32.mrb[221].mxu0  ;;  %vm5002_vm7 = vcmp.ge.f32.partialorder %v2268_v20, 0.0  ;;  %v5279_v39 = vmul.f32 %v10882_v12, %v2268_v20  ;;  %v2270_v21 = vpop.f32.mrb[221].mxu1 }
 0x2fc   : > { %vm5001_vm8 = vcmp.ge.f32.partialorder %v1917_v57, 0.0  ;;  %v5278_v26 = vmul.f32 %v10902_v46, %v1917_v57  ;;  %v1919_v23 = vpop.f32.mrb[222].mxu0  ;;  %vm5003_vm9 = vcmp.ge.f32.partialorder %v2270_v21, 0.0  ;;  %v5280_v22 = vmul.f32 %v10908_v37, %v2270_v21  ;;  %v2272_v25 = vpop.f32.mrb[222].mxu1 }
 0x2fd   : > { %v5533_v62 = vsel %vm5000_vm6, %v1915_v61, %v5277_v60  ;;  %vm5004_vm10 = vcmp.ge.f32.partialorder %v1919_v23, 0.0  ;;  %v1921_v63 = vpop.f32.mrb[223].mxu0  ;;  %v5535_v1 = vsel %vm5002_vm7, %v2268_v20, %v5279_v39  ;;  %v5281_v3 = vmul.f32 %v10879_v11, %v1919_v23  ;;  %v2274_v4 = vpop.f32.mrb[223].mxu1 }
 0x2fe   : > { %8631 = vst [vmem:[%s10045_s7 + $0xdc0] sm:$0xff] %v5533_v62  ;;  %v5534_v2 = vsel %vm5001_vm8, %v1917_v57, %v5278_v26  ;;  %vm5006_vm11 = vcmp.ge.f32.partialorder %v2272_v25, 0.0  ;;  %8633 = vst [vmem:[%s10045_s7 + $0xdd0] sm:$0xff] %v5535_v1  ;;  %v5536_v5 = vsel %vm5003_vm9, %v2270_v21, %v5280_v22  ;;  %v5283_v6 = vmul.f32 %v10882_v12, %v2272_v25 }
 0x2ff   : > { %8632 = vst [vmem:[%s10045_s7 + $0xdc8] sm:$0xff] %v5534_v2  ;;  %vm5005_vm12 = vcmp.ge.f32.partialorder %v1921_v63, 0.0  ;;  %v5282_v7 = vmul.f32 %v10902_v46, %v1921_v63  ;;  %8337 = vmatmul.mubr.msk.bf16.gmra.mrb[72].mxu0 %vm848_vm0, %v9382_v8  ;;  %8634 = vst [vmem:[%s10045_s7 + $0xdd8] sm:$0xff] %v5536_v5  ;;  %v5537_v9 = vsel %vm5004_vm10, %v1919_v23, %v5281_v3  ;;  %vm5007_vm13 = vcmp.ge.f32.partialorder %v2274_v4, 0.0  ;;  %v9384_v3 = vld [vmem:[%s13218_s1 + $0xa0] sm:$0xff]  }
 0x300   : > { %v5284_v10 = vmul.f32 %v10908_v37, %v2274_v4  ;;  %8369 = vmatmul.mubr.msk.bf16.gmra.mrb[72].mxu1 %vm848_vm0, %v9382_v8  ;;  %2579 = vmatprep.mubr.bf16.mxu0 %v9578_v0  ;;  %8635 = vst [vmem:[%s10045_s7 + $0xde0] sm:$0xff] %v5537_v9  ;;  %v5539_v13 = vsel %vm5006_vm11, %v2272_v25, %v5283_v6 }
 0x301   : > { %v5538_v14 = vsel %vm5005_vm12, %v1921_v63, %v5282_v7  ;;  %2932 = vmatprep.mubr.bf16.mxu1 %v9578_v0  ;;  %8637 = vst [vmem:[%s10045_s7 + $0xdf0] sm:$0xff] %v5539_v13 }
 0x302   : > { %8636 = vst [vmem:[%s10045_s7 + $0xde8] sm:$0xff] %v5538_v14  ;;  %v5540_v15 = vsel %vm5007_vm13, %v2274_v4, %v5284_v10  ;;  %v1925_v16 = vpop.f32.mrb[224].mxu0  ;;  %v2278_v18 = vpop.f32.mrb[224].mxu1 }
 0x303   : > { %8638 = vst [vmem:[%s10045_s7 + $0xdf8] sm:$0xff] %v5540_v15  ;;  %vm5008_vm14 = vcmp.ge.f32.partialorder %v1925_v16, 0.0  ;;  %v5285_v17 = vmul.f32 %v10879_v11, %v1925_v16  ;;  %v1927_v19 = vpop.f32.mrb[225].mxu0  ;;  %vm5010_vm15 = vcmp.ge.f32.partialorder %v2278_v18, 0.0  ;;  %v5287_v24 = vmul.f32 %v10882_v12, %v2278_v18  ;;  %v2280_v28 = vpop.f32.mrb[225].mxu1 }
 0x304   : > { %vm5009_vm1 = vcmp.ge.f32.partialorder %v1927_v19, 0.0  ;;  %v5286_v27 = vmul.f32 %v10902_v46, %v1927_v19  ;;  %v1929_v29 = vpop.f32.mrb[226].mxu0  ;;  %vm5011_vm2 = vcmp.ge.f32.partialorder %v2280_v28, 0.0  ;;  %v5288_v31 = vmul.f32 %v10908_v37, %v2280_v28  ;;  %v2282_v32 = vpop.f32.mrb[226].mxu1 }
 0x305   : > { %v5541_v30 = vsel %vm5008_vm14, %v1925_v16, %v5285_v17  ;;  %vm5012_vm3 = vcmp.ge.f32.partialorder %v1929_v29, 0.0  ;;  %v1931_v33 = vpop.f32.mrb[227].mxu0  ;;  %v5543_v34 = vsel %vm5010_vm15, %v2278_v18, %v5287_v24  ;;  %v5289_v35 = vmul.f32 %v10879_v11, %v1929_v29  ;;  %v2284_v47 = vpop.f32.mrb[227].mxu1 }
 0x306   : > { %8639 = vst [vmem:[%s10045_s7 + $0xe00] sm:$0xff] %v5541_v30  ;;  %v5542_v45 = vsel %vm5009_vm1, %v1927_v19, %v5286_v27  ;;  %vm5014_vm4 = vcmp.ge.f32.partialorder %v2282_v32, 0.0  ;;  %8641 = vst [vmem:[%s10045_s7 + $0xe10] sm:$0xff] %v5543_v34  ;;  %v5544_v36 = vsel %vm5011_vm2, %v2280_v28, %v5288_v31  ;;  %v5291_v38 = vmul.f32 %v10882_v12, %v2282_v32 }
 0x307   : > { %8640 = vst [vmem:[%s10045_s7 + $0xe08] sm:$0xff] %v5542_v45  ;;  %vm5013_vm5 = vcmp.ge.f32.partialorder %v1931_v33, 0.0  ;;  %v5290_v48 = vmul.f32 %v10902_v46, %v1931_v33  ;;  %8338 = vmatmul.mubr.msk.bf16.gmra.mrb[76].mxu0 %vm848_vm0, %v9383_v41  ;;  %8642 = vst [vmem:[%s10045_s7 + $0xe18] sm:$0xff] %v5544_v36  ;;  %v5545_v49 = vsel %vm5012_vm3, %v1929_v29, %v5289_v35  ;;  %vm5015_vm6 = vcmp.ge.f32.partialorder %v2284_v47, 0.0  ;;  %v9385_v35 = vld [vmem:[%s13218_s1 + $0xa8] sm:$0xff]  }
 0x308   : > { %v5292_v50 = vmul.f32 %v10908_v37, %v2284_v47  ;;  %8370 = vmatmul.mubr.msk.bf16.gmra.mrb[76].mxu1 %vm848_vm0, %v9383_v41  ;;  %2589 = vmatprep.mubr.bf16.mxu0 %v9578_v0  ;;  %8643 = vst [vmem:[%s10045_s7 + $0xe20] sm:$0xff] %v5545_v49  ;;  %v5547_v53 = vsel %vm5014_vm4, %v2282_v32, %v5291_v38 }
 0x309   : > { %v5546_v54 = vsel %vm5013_vm5, %v1931_v33, %v5290_v48  ;;  %2942 = vmatprep.mubr.bf16.mxu1 %v9578_v0  ;;  %8645 = vst [vmem:[%s10045_s7 + $0xe30] sm:$0xff] %v5547_v53 }
 0x30a   : > { %8644 = vst [vmem:[%s10045_s7 + $0xe28] sm:$0xff] %v5546_v54  ;;  %v5548_v55 = vsel %vm5015_vm6, %v2284_v47, %v5292_v50  ;;  %v1935_v56 = vpop.f32.mrb[228].mxu0  ;;  %v2288_v59 = vpop.f32.mrb[228].mxu1 }
 0x30b   : > { %8646 = vst [vmem:[%s10045_s7 + $0xe38] sm:$0xff] %v5548_v55  ;;  %vm5016_vm7 = vcmp.ge.f32.partialorder %v1935_v56, 0.0  ;;  %v5293_v58 = vmul.f32 %v10879_v11, %v1935_v56  ;;  %v1937_v51 = vpop.f32.mrb[229].mxu0  ;;  %vm5018_vm8 = vcmp.ge.f32.partialorder %v2288_v59, 0.0  ;;  %v5295_v52 = vmul.f32 %v10882_v12, %v2288_v59  ;;  %v2290_v60 = vpop.f32.mrb[229].mxu1 }
 0x30c   : > { %vm5017_vm9 = vcmp.ge.f32.partialorder %v1937_v51, 0.0  ;;  %v5294_v61 = vmul.f32 %v10902_v46, %v1937_v51  ;;  %v1939_v20 = vpop.f32.mrb[230].mxu0  ;;  %vm5019_vm10 = vcmp.ge.f32.partialorder %v2290_v60, 0.0  ;;  %v5296_v39 = vmul.f32 %v10908_v37, %v2290_v60  ;;  %v2292_v26 = vpop.f32.mrb[230].mxu1 }
 0x30d   : > { %v5549_v57 = vsel %vm5016_vm7, %v1935_v56, %v5293_v58  ;;  %vm5020_vm11 = vcmp.ge.f32.partialorder %v1939_v20, 0.0  ;;  %v1941_v21 = vpop.f32.mrb[231].mxu0  ;;  %v5551_v23 = vsel %vm5018_vm8, %v2288_v59, %v5295_v52  ;;  %v5297_v22 = vmul.f32 %v10879_v11, %v1939_v20  ;;  %v2294_v25 = vpop.f32.mrb[231].mxu1 }
 0x30e   : > { %8647 = vst [vmem:[%s10045_s7 + $0xe40] sm:$0xff] %v5549_v57  ;;  %v5550_v62 = vsel %vm5017_vm9, %v1937_v51, %v5294_v61  ;;  %vm5022_vm12 = vcmp.ge.f32.partialorder %v2292_v26, 0.0  ;;  %8649 = vst [vmem:[%s10045_s7 + $0xe50] sm:$0xff] %v5551_v23  ;;  %v5552_v63 = vsel %vm5019_vm10, %v2290_v60, %v5296_v39  ;;  %v5299_v1 = vmul.f32 %v10882_v12, %v2292_v26 }
 0x30f   : > { %8648 = vst [vmem:[%s10045_s7 + $0xe48] sm:$0xff] %v5550_v62  ;;  %vm5021_vm13 = vcmp.ge.f32.partialorder %v1941_v21, 0.0  ;;  %v5298_v2 = vmul.f32 %v10902_v46, %v1941_v21  ;;  %8339 = vmatmul.mubr.msk.bf16.gmra.mrb[80].mxu0 %vm848_vm0, %v9384_v3  ;;  %8650 = vst [vmem:[%s10045_s7 + $0xe58] sm:$0xff] %v5552_v63  ;;  %v5553_v4 = vsel %vm5020_vm11, %v1939_v20, %v5297_v22  ;;  %vm5023_vm14 = vcmp.ge.f32.partialorder %v2294_v25, 0.0  ;;  %v9386_v22 = vld [vmem:[%s13218_s1 + $0xb0] sm:$0xff]  }
 0x310   : > { %v5300_v5 = vmul.f32 %v10908_v37, %v2294_v25  ;;  %8371 = vmatmul.mubr.msk.bf16.gmra.mrb[80].mxu1 %vm848_vm0, %v9384_v3  ;;  %2599 = vmatprep.mubr.bf16.mxu0 %v9578_v0  ;;  %8651 = vst [vmem:[%s10045_s7 + $0xe60] sm:$0xff] %v5553_v4  ;;  %v5555_v6 = vsel %vm5022_vm12, %v2292_v26, %v5299_v1 }
 0x311   : > { %v5554_v7 = vsel %vm5021_vm13, %v1941_v21, %v5298_v2  ;;  %2952 = vmatprep.mubr.bf16.mxu1 %v9578_v0  ;;  %8653 = vst [vmem:[%s10045_s7 + $0xe70] sm:$0xff] %v5555_v6 }
 0x312   : > { %8652 = vst [vmem:[%s10045_s7 + $0xe68] sm:$0xff] %v5554_v7  ;;  %v5556_v8 = vsel %vm5023_vm14, %v2294_v25, %v5300_v5  ;;  %v1945_v9 = vpop.f32.mrb[232].mxu0  ;;  %v2298_v13 = vpop.f32.mrb[232].mxu1 }
 0x313   : > { %8654 = vst [vmem:[%s10045_s7 + $0xe78] sm:$0xff] %v5556_v8  ;;  %vm5024_vm15 = vcmp.ge.f32.partialorder %v1945_v9, 0.0  ;;  %v5301_v10 = vmul.f32 %v10879_v11, %v1945_v9  ;;  %v1947_v14 = vpop.f32.mrb[233].mxu0  ;;  %vm5026_vm1 = vcmp.ge.f32.partialorder %v2298_v13, 0.0  ;;  %v5303_v15 = vmul.f32 %v10882_v12, %v2298_v13  ;;  %v2300_v17 = vpop.f32.mrb[233].mxu1 }
 0x314   : > { %vm5025_vm2 = vcmp.ge.f32.partialorder %v1947_v14, 0.0  ;;  %v5302_v16 = vmul.f32 %v10902_v46, %v1947_v14  ;;  %v1949_v18 = vpop.f32.mrb[234].mxu0  ;;  %vm5027_vm3 = vcmp.ge.f32.partialorder %v2300_v17, 0.0  ;;  %v5304_v24 = vmul.f32 %v10908_v37, %v2300_v17  ;;  %v2302_v27 = vpop.f32.mrb[234].mxu1 }
 0x315   : > { %v5557_v19 = vsel %vm5024_vm15, %v1945_v9, %v5301_v10  ;;  %vm5028_vm4 = vcmp.ge.f32.partialorder %v1949_v18, 0.0  ;;  %v1951_v28 = vpop.f32.mrb[235].mxu0  ;;  %v5559_v29 = vsel %vm5026_vm1, %v2298_v13, %v5303_v15  ;;  %v5305_v31 = vmul.f32 %v10879_v11, %v1949_v18  ;;  %v2304_v32 = vpop.f32.mrb[235].mxu1 }
 0x316   : > { %8655 = vst [vmem:[%s10045_s7 + $0xe80] sm:$0xff] %v5557_v19  ;;  %v5558_v30 = vsel %vm5025_vm2, %v1947_v14, %v5302_v16  ;;  %vm5030_vm5 = vcmp.ge.f32.partialorder %v2302_v27, 0.0  ;;  %8657 = vst [vmem:[%s10045_s7 + $0xe90] sm:$0xff] %v5559_v29  ;;  %v5560_v33 = vsel %vm5027_vm3, %v2300_v17, %v5304_v24  ;;  %v5307_v34 = vmul.f32 %v10882_v12, %v2302_v27 }
 0x317   : > { %8656 = vst [vmem:[%s10045_s7 + $0xe88] sm:$0xff] %v5558_v30  ;;  %vm5029_vm6 = vcmp.ge.f32.partialorder %v1951_v28, 0.0  ;;  %v5306_v45 = vmul.f32 %v10902_v46, %v1951_v28  ;;  %8340 = vmatmul.mubr.msk.bf16.gmra.mrb[84].mxu0 %vm848_vm0, %v9385_v35  ;;  %8658 = vst [vmem:[%s10045_s7 + $0xe98] sm:$0xff] %v5560_v33  ;;  %v5561_v47 = vsel %vm5028_vm4, %v1949_v18, %v5305_v31  ;;  %vm5031_vm7 = vcmp.ge.f32.partialorder %v2304_v32, 0.0  ;;  %v9387_v31 = vld [vmem:[%s13218_s1 + $0xb8] sm:$0xff]  }
 0x318   : > { %v5308_v36 = vmul.f32 %v10908_v37, %v2304_v32  ;;  %8372 = vmatmul.mubr.msk.bf16.gmra.mrb[84].mxu1 %vm848_vm0, %v9385_v35  ;;  %2609 = vmatprep.mubr.bf16.mxu0 %v9578_v0  ;;  %8659 = vst [vmem:[%s10045_s7 + $0xea0] sm:$0xff] %v5561_v47  ;;  %v5563_v38 = vsel %vm5030_vm5, %v2302_v27, %v5307_v34 }
 0x319   : > { %v5562_v48 = vsel %vm5029_vm6, %v1951_v28, %v5306_v45  ;;  %2962 = vmatprep.mubr.bf16.mxu1 %v9578_v0  ;;  %8661 = vst [vmem:[%s10045_s7 + $0xeb0] sm:$0xff] %v5563_v38 }
 0x31a   : > { %8660 = vst [vmem:[%s10045_s7 + $0xea8] sm:$0xff] %v5562_v48  ;;  %v5564_v41 = vsel %vm5031_vm7, %v2304_v32, %v5308_v36  ;;  %v1955_v49 = vpop.f32.mrb[236].mxu0  ;;  %v2308_v53 = vpop.f32.mrb[236].mxu1 }
 0x31b   : > { %8662 = vst [vmem:[%s10045_s7 + $0xeb8] sm:$0xff] %v5564_v41  ;;  %vm5032_vm8 = vcmp.ge.f32.partialorder %v1955_v49, 0.0  ;;  %v5309_v50 = vmul.f32 %v10879_v11, %v1955_v49  ;;  %v1957_v54 = vpop.f32.mrb[237].mxu0  ;;  %vm5034_vm9 = vcmp.ge.f32.partialorder %v2308_v53, 0.0  ;;  %v5311_v55 = vmul.f32 %v10882_v12, %v2308_v53  ;;  %v2310_v58 = vpop.f32.mrb[237].mxu1 }
 0x31c   : > { %vm5033_vm10 = vcmp.ge.f32.partialorder %v1957_v54, 0.0  ;;  %v5310_v56 = vmul.f32 %v10902_v46, %v1957_v54  ;;  %v1959_v59 = vpop.f32.mrb[238].mxu0  ;;  %vm5035_vm11 = vcmp.ge.f32.partialorder %v2310_v58, 0.0  ;;  %v5312_v52 = vmul.f32 %v10908_v37, %v2310_v58  ;;  %v2312_v61 = vpop.f32.mrb[238].mxu1 }
 0x31d   : > { %v5565_v51 = vsel %vm5032_vm8, %v1955_v49, %v5309_v50  ;;  %vm5036_vm12 = vcmp.ge.f32.partialorder %v1959_v59, 0.0  ;;  %v1961_v60 = vpop.f32.mrb[239].mxu0  ;;  %v5567_v20 = vsel %vm5034_vm9, %v2308_v53, %v5311_v55  ;;  %v5313_v39 = vmul.f32 %v10879_v11, %v1959_v59  ;;  %v2314_v26 = vpop.f32.mrb[239].mxu1 }
 0x31e   : > { %8663 = vst [vmem:[%s10045_s7 + $0xec0] sm:$0xff] %v5565_v51  ;;  %v5566_v57 = vsel %vm5033_vm10, %v1957_v54, %v5310_v56  ;;  %vm5038_vm13 = vcmp.ge.f32.partialorder %v2312_v61, 0.0  ;;  %8665 = vst [vmem:[%s10045_s7 + $0xed0] sm:$0xff] %v5567_v20  ;;  %v5568_v21 = vsel %vm5035_vm11, %v2310_v58, %v5312_v52  ;;  %v5315_v23 = vmul.f32 %v10882_v12, %v2312_v61 }
 0x31f   : > { %8664 = vst [vmem:[%s10045_s7 + $0xec8] sm:$0xff] %v5566_v57  ;;  %vm5037_vm14 = vcmp.ge.f32.partialorder %v1961_v60, 0.0  ;;  %v5314_v62 = vmul.f32 %v10902_v46, %v1961_v60  ;;  %8341 = vmatmul.mubr.msk.bf16.gmra.mrb[88].mxu0 %vm848_vm0, %v9386_v22  ;;  %8666 = vst [vmem:[%s10045_s7 + $0xed8] sm:$0xff] %v5568_v21  ;;  %v5569_v25 = vsel %vm5036_vm12, %v1959_v59, %v5313_v39  ;;  %vm5039_vm15 = vcmp.ge.f32.partialorder %v2314_v26, 0.0  ;;  %v9388_v39 = vld [vmem:[%s13218_s1 + $0xc0] sm:$0xff]  }
 0x320   : > { %v5316_v63 = vmul.f32 %v10908_v37, %v2314_v26  ;;  %8373 = vmatmul.mubr.msk.bf16.gmra.mrb[88].mxu1 %vm848_vm0, %v9386_v22  ;;  %2619 = vmatprep.mubr.bf16.mxu0 %v9578_v0  ;;  %8667 = vst [vmem:[%s10045_s7 + $0xee0] sm:$0xff] %v5569_v25  ;;  %v5571_v1 = vsel %vm5038_vm13, %v2312_v61, %v5315_v23 }
 0x321   : > { %v5570_v2 = vsel %vm5037_vm14, %v1961_v60, %v5314_v62  ;;  %2972 = vmatprep.mubr.bf16.mxu1 %v9578_v0  ;;  %8669 = vst [vmem:[%s10045_s7 + $0xef0] sm:$0xff] %v5571_v1 }
 0x322   : > { %8668 = vst [vmem:[%s10045_s7 + $0xee8] sm:$0xff] %v5570_v2  ;;  %v5572_v3 = vsel %vm5039_vm15, %v2314_v26, %v5316_v63  ;;  %v1965_v4 = vpop.f32.mrb[240].mxu0  ;;  %v2318_v6 = vpop.f32.mrb[240].mxu1 }
 0x323   : > { %8670 = vst [vmem:[%s10045_s7 + $0xef8] sm:$0xff] %v5572_v3  ;;  %vm5040_vm1 = vcmp.ge.f32.partialorder %v1965_v4, 0.0  ;;  %v5317_v5 = vmul.f32 %v10879_v11, %v1965_v4  ;;  %v1967_v7 = vpop.f32.mrb[241].mxu0  ;;  %vm5042_vm2 = vcmp.ge.f32.partialorder %v2318_v6, 0.0  ;;  %v5319_v8 = vmul.f32 %v10882_v12, %v2318_v6  ;;  %v2320_v10 = vpop.f32.mrb[241].mxu1 }
 0x324   : > { %vm5041_vm3 = vcmp.ge.f32.partialorder %v1967_v7, 0.0  ;;  %v5318_v9 = vmul.f32 %v10902_v46, %v1967_v7  ;;  %v1969_v13 = vpop.f32.mrb[242].mxu0  ;;  %vm5043_vm4 = vcmp.ge.f32.partialorder %v2320_v10, 0.0  ;;  %v5320_v15 = vmul.f32 %v10908_v37, %v2320_v10  ;;  %v2322_v16 = vpop.f32.mrb[242].mxu1 }
 0x325   : > { %v5573_v14 = vsel %vm5040_vm1, %v1965_v4, %v5317_v5  ;;  %vm5044_vm5 = vcmp.ge.f32.partialorder %v1969_v13, 0.0  ;;  %v1971_v17 = vpop.f32.mrb[243].mxu0  ;;  %v5575_v18 = vsel %vm5042_vm2, %v2318_v6, %v5319_v8  ;;  %v5321_v24 = vmul.f32 %v10879_v11, %v1969_v13  ;;  %v2324_v27 = vpop.f32.mrb[243].mxu1 }
 0x326   : > { %8671 = vst [vmem:[%s10045_s7 + $0xf00] sm:$0xff] %v5573_v14  ;;  %v5574_v19 = vsel %vm5041_vm3, %v1967_v7, %v5318_v9  ;;  %vm5046_vm6 = vcmp.ge.f32.partialorder %v2322_v16, 0.0  ;;  %8673 = vst [vmem:[%s10045_s7 + $0xf10] sm:$0xff] %v5575_v18  ;;  %v5576_v28 = vsel %vm5043_vm4, %v2320_v10, %v5320_v15  ;;  %v5323_v29 = vmul.f32 %v10882_v12, %v2322_v16 }
 0x327   : > { %8672 = vst [vmem:[%s10045_s7 + $0xf08] sm:$0xff] %v5574_v19  ;;  %vm5045_vm7 = vcmp.ge.f32.partialorder %v1971_v17, 0.0  ;;  %v5322_v30 = vmul.f32 %v10902_v46, %v1971_v17  ;;  %8342 = vmatmul.mubr.msk.bf16.gmra.mrb[92].mxu0 %vm848_vm0, %v9387_v31  ;;  %8674 = vst [vmem:[%s10045_s7 + $0xf18] sm:$0xff] %v5576_v28  ;;  %v5577_v32 = vsel %vm5044_vm5, %v1969_v13, %v5321_v24  ;;  %vm5047_vm8 = vcmp.ge.f32.partialorder %v2324_v27, 0.0  ;;  %v9389_v24 = vld [vmem:[%s13218_s1 + $0xc8] sm:$0xff]  }
 0x328   : > { %v5324_v33 = vmul.f32 %v10908_v37, %v2324_v27  ;;  %8374 = vmatmul.mubr.msk.bf16.gmra.mrb[92].mxu1 %vm848_vm0, %v9387_v31  ;;  %2629 = vmatprep.mubr.bf16.mxu0 %v9578_v0  ;;  %8675 = vst [vmem:[%s10045_s7 + $0xf20] sm:$0xff] %v5577_v32  ;;  %v5579_v34 = vsel %vm5046_vm6, %v2322_v16, %v5323_v29  ;;  %v5862_v29 = vld [vmem:[#allocation5 + $0x8] sm:$0xf] }
 0x329   : > { %v5578_v45 = vsel %vm5045_vm7, %v1971_v17, %v5322_v30  ;;  %2982 = vmatprep.mubr.bf16.mxu1 %v9578_v0  ;;  %8677 = vst [vmem:[%s10045_s7 + $0xf30] sm:$0xff] %v5579_v34 }
 0x32a   : > { %8676 = vst [vmem:[%s10045_s7 + $0xf28] sm:$0xff] %v5578_v45  ;;  %v5580_v35 = vsel %vm5047_vm8, %v2324_v27, %v5324_v33  ;;  %v1975_v47 = vpop.f32.mrb[244].mxu0  ;;  %v2328_v38 = vpop.f32.mrb[244].mxu1 }
 0x32b   : > { %8678 = vst [vmem:[%s10045_s7 + $0xf38] sm:$0xff] %v5580_v35  ;;  %vm5048_vm9 = vcmp.ge.f32.partialorder %v1975_v47, 0.0  ;;  %v5325_v36 = vmul.f32 %v10879_v11, %v1975_v47  ;;  %v1977_v48 = vpop.f32.mrb[245].mxu0  ;;  %vm5050_vm10 = vcmp.ge.f32.partialorder %v2328_v38, 0.0  ;;  %v5327_v41 = vmul.f32 %v10882_v12, %v2328_v38  ;;  %v2330_v50 = vpop.f32.mrb[245].mxu1 }
 0x32c   : > { %vm5049_vm11 = vcmp.ge.f32.partialorder %v1977_v48, 0.0  ;;  %v5326_v49 = vmul.f32 %v10902_v46, %v1977_v48  ;;  %v1979_v53 = vpop.f32.mrb[246].mxu0  ;;  %vm5051_vm12 = vcmp.ge.f32.partialorder %v2330_v50, 0.0  ;;  %v5328_v55 = vmul.f32 %v10908_v37, %v2330_v50  ;;  %v2332_v56 = vpop.f32.mrb[246].mxu1 }
 0x32d   : > { %v5581_v54 = vsel %vm5048_vm9, %v1975_v47, %v5325_v36  ;;  %vm5052_vm13 = vcmp.ge.f32.partialorder %v1979_v53, 0.0  ;;  %v1981_v58 = vpop.f32.mrb[247].mxu0  ;;  %v5583_v59 = vsel %vm5050_vm10, %v2328_v38, %v5327_v41  ;;  %v5329_v52 = vmul.f32 %v10879_v11, %v1979_v53  ;;  %v2334_v61 = vpop.f32.mrb[247].mxu1 }
 0x32e   : > { %8679 = vst [vmem:[%s10045_s7 + $0xf40] sm:$0xff] %v5581_v54  ;;  %v5582_v51 = vsel %vm5049_vm11, %v1977_v48, %v5326_v49  ;;  %vm5054_vm14 = vcmp.ge.f32.partialorder %v2332_v56, 0.0  ;;  %8681 = vst [vmem:[%s10045_s7 + $0xf50] sm:$0xff] %v5583_v59  ;;  %v5584_v60 = vsel %vm5051_vm12, %v2330_v50, %v5328_v55  ;;  %v5331_v20 = vmul.f32 %v10882_v12, %v2332_v56 }
 0x32f   : > { %8680 = vst [vmem:[%s10045_s7 + $0xf48] sm:$0xff] %v5582_v51  ;;  %vm5053_vm15 = vcmp.ge.f32.partialorder %v1981_v58, 0.0  ;;  %v5330_v57 = vmul.f32 %v10902_v46, %v1981_v58  ;;  %8343 = vmatmul.mubr.msk.bf16.gmra.mrb[96].mxu0 %vm848_vm0, %v9388_v39  ;;  %8682 = vst [vmem:[%s10045_s7 + $0xf58] sm:$0xff] %v5584_v60  ;;  %v5585_v26 = vsel %vm5052_vm13, %v1979_v53, %v5329_v52  ;;  %vm5055_vm1 = vcmp.ge.f32.partialorder %v2334_v61, 0.0 }
 0x330   : > { %v5332_v21 = vmul.f32 %v10908_v37, %v2334_v61  ;;  %8375 = vmatmul.mubr.msk.bf16.gmra.mrb[96].mxu1 %vm848_vm0, %v9388_v39  ;;  %2639 = vmatprep.mubr.bf16.mxu0 %v9578_v0  ;;  %8683 = vst [vmem:[%s10045_s7 + $0xf60] sm:$0xff] %v5585_v26  ;;  %v5587_v23 = vsel %vm5054_vm14, %v2332_v56, %v5331_v20  ;;  %v9390_v20 = vld [vmem:[%s13218_s1 + $0xd0] sm:$0xff]  }
 0x331   : > { %v5586_v62 = vsel %vm5053_vm15, %v1981_v58, %v5330_v57  ;;  %2992 = vmatprep.mubr.bf16.mxu1 %v9578_v0  ;;  %8685 = vst [vmem:[%s10045_s7 + $0xf70] sm:$0xff] %v5587_v23  ;;  %v11732_v47 = vrot.slane %v5862_v29, %v10013_v40  ;;  %v11735_v36 = vrot.slane %v5862_v29, %v10015_v42 }
 0x332   : > { %8684 = vst [vmem:[%s10045_s7 + $0xf68] sm:$0xff] %v5586_v62  ;;  %v5588_v22 = vsel %vm5055_vm1, %v2334_v61, %v5332_v21  ;;  %v1985_v25 = vpop.f32.mrb[248].mxu0  ;;  %v2338_v1 = vpop.f32.mrb[248].mxu1  ;;  %v11761_v26 = vrot.slane %v5862_v29, %v10019_v44 }
 0x333   : > { %8686 = vst [vmem:[%s10045_s7 + $0xf78] sm:$0xff] %v5588_v22  ;;  %vm5056_vm2 = vcmp.ge.f32.partialorder %v1985_v25, 0.0  ;;  %v5333_v63 = vmul.f32 %v10879_v11, %v1985_v25  ;;  %v1987_v2 = vpop.f32.mrb[249].mxu0  ;;  %vm5058_vm3 = vcmp.ge.f32.partialorder %v2338_v1, 0.0  ;;  %v5335_v3 = vmul.f32 %v10882_v12, %v2338_v1  ;;  %v2340_v5 = vpop.f32.mrb[249].mxu1 }
 0x334   : > { %vm5057_vm4 = vcmp.ge.f32.partialorder %v1987_v2, 0.0  ;;  %v5334_v4 = vmul.f32 %v10902_v46, %v1987_v2  ;;  %v1989_v6 = vpop.f32.mrb[250].mxu0  ;;  %vm5059_vm5 = vcmp.ge.f32.partialorder %v2340_v5, 0.0  ;;  %v5336_v8 = vmul.f32 %v10908_v37, %v2340_v5  ;;  %v2342_v9 = vpop.f32.mrb[250].mxu1 }
 0x335   : > { %v5589_v7 = vsel %vm5056_vm2, %v1985_v25, %v5333_v63  ;;  %vm5060_vm6 = vcmp.ge.f32.partialorder %v1989_v6, 0.0  ;;  %v1991_v10 = vpop.f32.mrb[251].mxu0  ;;  %v5591_v13 = vsel %vm5058_vm3, %v2338_v1, %v5335_v3  ;;  %v5337_v15 = vmul.f32 %v10879_v11, %v1989_v6  ;;  %v2344_v16 = vpop.f32.mrb[251].mxu1 }
 0x336   : > { %8687 = vst [vmem:[%s10045_s7 + $0xf80] sm:$0xff] %v5589_v7  ;;  %v5590_v14 = vsel %vm5057_vm4, %v1987_v2, %v5334_v4  ;;  %vm5062_vm7 = vcmp.ge.f32.partialorder %v2342_v9, 0.0  ;;  %8689 = vst [vmem:[%s10045_s7 + $0xf90] sm:$0xff] %v5591_v13  ;;  %v5592_v17 = vsel %vm5059_vm5, %v2340_v5, %v5336_v8  ;;  %v5339_v18 = vmul.f32 %v10882_v12, %v2342_v9 }
 0x337   : > { %8688 = vst [vmem:[%s10045_s7 + $0xf88] sm:$0xff] %v5590_v14  ;;  %vm5061_vm8 = vcmp.ge.f32.partialorder %v1991_v10, 0.0  ;;  %v5338_v19 = vmul.f32 %v10902_v46, %v1991_v10  ;;  %8344 = vmatmul.mubr.msk.bf16.gmra.mrb[100].mxu0 %vm848_vm0, %v9389_v24  ;;  %8690 = vst [vmem:[%s10045_s7 + $0xf98] sm:$0xff] %v5592_v17  ;;  %v5593_v27 = vsel %vm5060_vm6, %v1989_v6, %v5337_v15  ;;  %vm5063_vm9 = vcmp.ge.f32.partialorder %v2344_v16, 0.0 }
 0x338   : > { %v5340_v28 = vmul.f32 %v10908_v37, %v2344_v16  ;;  %8376 = vmatmul.mubr.msk.bf16.gmra.mrb[100].mxu1 %vm848_vm0, %v9389_v24  ;;  %2649 = vmatprep.mubr.bf16.mxu0 %v9578_v0  ;;  %8691 = vst [vmem:[%s10045_s7 + $0xfa0] sm:$0xff] %v5593_v27  ;;  %v5595_v30 = vsel %vm5062_vm7, %v2342_v9, %v5339_v18 }
 0x339   : > { %v5594_v31 = vsel %vm5061_vm8, %v1991_v10, %v5338_v19  ;;  %3002 = vmatprep.mubr.bf16.mxu1 %v9578_v0  ;;  %8693 = vst [vmem:[%s10045_s7 + $0xfb0] sm:$0xff] %v5595_v30 }
 0x33a   : > { %8692 = vst [vmem:[%s10045_s7 + $0xfa8] sm:$0xff] %v5594_v31  ;;  %v5596_v32 = vsel %vm5063_vm9, %v2344_v16, %v5340_v28  ;;  %v1995_v33 = vpop.f32.mrb[252].mxu0  ;;  %v2348_v45 = vpop.f32.mrb[252].mxu1  ;;  %v9391_v16 = vld [vmem:[%s13218_s1 + $0xd8] sm:$0xff]  }
 0x33b   : > { %8694 = vst [vmem:[%s10045_s7 + $0xfb8] sm:$0xff] %v5596_v32  ;;  %vm5064_vm10 = vcmp.ge.f32.partialorder %v1995_v33, 0.0  ;;  %v5341_v34 = vmul.f32 %v10879_v11, %v1995_v33  ;;  %v1997_v35 = vpop.f32.mrb[253].mxu0  ;;  %vm5066_vm11 = vcmp.ge.f32.partialorder %v2348_v45, 0.0  ;;  %v5343_v38 = vmul.f32 %v10882_v12, %v2348_v45  ;;  %v2350_v41 = vpop.f32.mrb[253].mxu1 }
 0x33c   : > { %vm5065_vm12 = vcmp.ge.f32.partialorder %v1997_v35, 0.0  ;;  %v5342_v48 = vmul.f32 %v10902_v46, %v1997_v35  ;;  %v1999_v49 = vpop.f32.mrb[254].mxu0  ;;  %vm5067_vm13 = vcmp.ge.f32.partialorder %v2350_v41, 0.0  ;;  %v5344_v53 = vmul.f32 %v10908_v37, %v2350_v41  ;;  %v2352_v54 = vpop.f32.mrb[254].mxu1 }
 0x33d   : > { %v5597_v50 = vsel %vm5064_vm10, %v1995_v33, %v5341_v34  ;;  %vm5068_vm14 = vcmp.ge.f32.partialorder %v1999_v49, 0.0  ;;  %v2001_v55 = vpop.f32.mrb[255].mxu0  ;;  %v5599_v56 = vsel %vm5066_vm11, %v2348_v45, %v5343_v38  ;;  %v5345_v59 = vmul.f32 %v10879_v11, %v1999_v49  ;;  %v2354_v51 = vpop.f32.mrb[255].mxu1 }
 0x33e   : > { %8695 = vst [vmem:[%s10045_s7 + $0xfc0] sm:$0xff] %v5597_v50  ;;  %v5598_v58 = vsel %vm5065_vm12, %v1997_v35, %v5342_v48  ;;  %vm5070_vm15 = vcmp.ge.f32.partialorder %v2352_v54, 0.0  ;;  %8697 = vst [vmem:[%s10045_s7 + $0xfd0] sm:$0xff] %v5599_v56  ;;  %v5600_v52 = vsel %vm5067_vm13, %v2350_v41, %v5344_v53  ;;  %v5347_v61 = vmul.f32 %v10882_v12, %v2352_v54 }
 0x33f   : > { %8696 = vst [vmem:[%s10045_s7 + $0xfc8] sm:$0xff] %v5598_v58  ;;  %vm5069_vm1 = vcmp.ge.f32.partialorder %v2001_v55, 0.0  ;;  %v5346_v60 = vmul.f32 %v10902_v46, %v2001_v55  ;;  %8345 = vmatmul.mubr.msk.bf16.gmra.mrb[104].mxu0 %vm848_vm0, %v9390_v20  ;;  %8698 = vst [vmem:[%s10045_s7 + $0xfd8] sm:$0xff] %v5600_v52  ;;  %v5601_v11 = vsel %vm5068_vm14, %v1999_v49, %v5345_v59  ;;  %vm5071_vm2 = vcmp.ge.f32.partialorder %v2354_v51, 0.0  ;;  %v9392_v59 = vld [vmem:[%s13218_s1 + $0xe0] sm:$0xff]  }
 0x340   : > { %v5348_v57 = vmul.f32 %v10908_v37, %v2354_v51  ;;  %8377 = vmatmul.mubr.msk.bf16.gmra.mrb[104].mxu1 %vm848_vm0, %v9390_v20  ;;  %v11755_v12 = vrot.slane %v5862_v29, %v10017_v43  ;;  %2659 = vmatprep.mubr.bf16.mxu0 %v9578_v0  ;;  %8699 = vst [vmem:[%s10045_s7 + $0xfe0] sm:$0xff] %v5601_v11 }
 0x341   : > { %v5603_v46 = vsel %vm5070_vm15, %v2352_v54, %v5347_v61  ;;  %v5602_v39 = vsel %vm5069_vm1, %v2001_v55, %v5346_v60  ;;  %3012 = vmatprep.mubr.bf16.mxu1 %v9578_v0 }
 0x342   : > { %8701 = vst [vmem:[%s10045_s7 + $0xff0] sm:$0xff] %v5603_v46  ;;  %8700 = vst [vmem:[%s10045_s7 + $0xfe8] sm:$0xff] %v5602_v39  ;;  %v5604_v21 = vsel %vm5071_vm2, %v2354_v51, %v5348_v57  ;;  %v2391_v37 = vpop.f32.mrb[0].mxu0  ;;  %v2744_v62 = vpop.f32.mrb[0].mxu1 }
 0x343   : > { %8702 = vst [vmem:[%s10045_s7 + $0xff8] sm:$0xff] %v5604_v21  ;;  %vm5863_vm3 = vcmp.ge.f32.partialorder %v2391_v37, 0.0  ;;  %v6140_v23 = vmul.f32 %v11732_v47, %v2391_v37  ;;  %v2393_v22 = vpop.f32.mrb[1].mxu0  ;;  %vm5865_vm4 = vcmp.ge.f32.partialorder %v2744_v62, 0.0  ;;  %v6142_v25 = vmul.f32 %v11735_v36, %v2744_v62  ;;  %v2746_v1 = vpop.f32.mrb[1].mxu1 }
 0x344   : > { %vm5864_vm5 = vcmp.ge.f32.partialorder %v2393_v22, 0.0  ;;  %v6141_v63 = vmul.f32 %v11755_v12, %v2393_v22  ;;  %v2395_v2 = vpop.f32.mrb[2].mxu0  ;;  %vm5866_vm6 = vcmp.ge.f32.partialorder %v2746_v1, 0.0  ;;  %v6143_v4 = vmul.f32 %v11761_v26, %v2746_v1  ;;  %v2748_v5 = vpop.f32.mrb[2].mxu1 }
 0x345   : > { %v6396_v3 = vsel %vm5863_vm3, %v2391_v37, %v6140_v23  ;;  %vm5867_vm7 = vcmp.ge.f32.partialorder %v2395_v2, 0.0  ;;  %v2397_v6 = vpop.f32.mrb[3].mxu0  ;;  %v6398_v7 = vsel %vm5865_vm4, %v2744_v62, %v6142_v25  ;;  %v6144_v9 = vmul.f32 %v11732_v47, %v2395_v2  ;;  %v2750_v10 = vpop.f32.mrb[3].mxu1 }
 0x346   : > { %8703 = vst [vmem:[%s10045_s7 + $0x1000] sm:$0xff] %v6396_v3  ;;  %v6397_v8 = vsel %vm5864_vm5, %v2393_v22, %v6141_v63  ;;  %vm5869_vm8 = vcmp.ge.f32.partialorder %v2748_v5, 0.0  ;;  %8705 = vst [vmem:[%s10045_s7 + $0x1010] sm:$0xff] %v6398_v7  ;;  %v6399_v13 = vsel %vm5866_vm6, %v2746_v1, %v6143_v4  ;;  %v6146_v14 = vmul.f32 %v11735_v36, %v2748_v5 }
 0x347   : > { %8704 = vst [vmem:[%s10045_s7 + $0x1008] sm:$0xff] %v6397_v8  ;;  %vm5868_vm9 = vcmp.ge.f32.partialorder %v2397_v6, 0.0  ;;  %v6145_v15 = vmul.f32 %v11755_v12, %v2397_v6  ;;  %8346 = vmatmul.mubr.msk.bf16.gmra.mrb[108].mxu0 %vm848_vm0, %v9391_v16  ;;  %8706 = vst [vmem:[%s10045_s7 + $0x1018] sm:$0xff] %v6399_v13  ;;  %v6400_v17 = vsel %vm5867_vm7, %v2395_v2, %v6144_v9  ;;  %vm5870_vm10 = vcmp.ge.f32.partialorder %v2750_v10, 0.0  ;;  %v9393_v9 = vld [vmem:[%s13218_s1 + $0xe8] sm:$0xff]  }
 0x348   : > { %v6147_v18 = vmul.f32 %v11761_v26, %v2750_v10  ;;  %8378 = vmatmul.mubr.msk.bf16.gmra.mrb[108].mxu1 %vm848_vm0, %v9391_v16  ;;  %2669 = vmatprep.mubr.bf16.mxu0 %v9578_v0  ;;  %8707 = vst [vmem:[%s10045_s7 + $0x1020] sm:$0xff] %v6400_v17  ;;  %v6402_v19 = vsel %vm5869_vm8, %v2748_v5, %v6146_v14 }
 0x349   : > { %v6401_v24 = vsel %vm5868_vm9, %v2397_v6, %v6145_v15  ;;  %3022 = vmatprep.mubr.bf16.mxu1 %v9578_v0  ;;  %8709 = vst [vmem:[%s10045_s7 + $0x1030] sm:$0xff] %v6402_v19 }
 0x34a   : > { %8708 = vst [vmem:[%s10045_s7 + $0x1028] sm:$0xff] %v6401_v24  ;;  %v6403_v27 = vsel %vm5870_vm10, %v2750_v10, %v6147_v18  ;;  %v2401_v28 = vpop.f32.mrb[4].mxu0  ;;  %v2754_v30 = vpop.f32.mrb[4].mxu1 }
 0x34b   : > { %8710 = vst [vmem:[%s10045_s7 + $0x1038] sm:$0xff] %v6403_v27  ;;  %vm5871_vm11 = vcmp.ge.f32.partialorder %v2401_v28, 0.0  ;;  %v6148_v29 = vmul.f32 %v11732_v47, %v2401_v28  ;;  %v2403_v31 = vpop.f32.mrb[5].mxu0  ;;  %vm5873_vm12 = vcmp.ge.f32.partialorder %v2754_v30, 0.0  ;;  %v6150_v32 = vmul.f32 %v11735_v36, %v2754_v30  ;;  %v2756_v34 = vpop.f32.mrb[5].mxu1 }
 0x34c   : > { %vm5872_vm13 = vcmp.ge.f32.partialorder %v2403_v31, 0.0  ;;  %v6149_v33 = vmul.f32 %v11755_v12, %v2403_v31  ;;  %v2405_v45 = vpop.f32.mrb[6].mxu0  ;;  %vm5874_vm14 = vcmp.ge.f32.partialorder %v2756_v34, 0.0  ;;  %v6151_v38 = vmul.f32 %v11761_v26, %v2756_v34  ;;  %v2758_v48 = vpop.f32.mrb[6].mxu1 }
 0x34d   : > { %v6404_v35 = vsel %vm5871_vm11, %v2401_v28, %v6148_v29  ;;  %vm5875_vm15 = vcmp.ge.f32.partialorder %v2405_v45, 0.0  ;;  %v2407_v41 = vpop.f32.mrb[7].mxu0  ;;  %v6406_v49 = vsel %vm5873_vm12, %v2754_v30, %v6150_v32  ;;  %v6152_v53 = vmul.f32 %v11732_v47, %v2405_v45  ;;  %v2760_v54 = vpop.f32.mrb[7].mxu1 }
 0x34e   : > { %8711 = vst [vmem:[%s10045_s7 + $0x1040] sm:$0xff] %v6404_v35  ;;  %v6405_v50 = vsel %vm5872_vm13, %v2403_v31, %v6149_v33  ;;  %vm5877_vm1 = vcmp.ge.f32.partialorder %v2758_v48, 0.0  ;;  %8713 = vst [vmem:[%s10045_s7 + $0x1050] sm:$0xff] %v6406_v49  ;;  %v6407_v55 = vsel %vm5874_vm14, %v2756_v34, %v6151_v38  ;;  %v6154_v56 = vmul.f32 %v11735_v36, %v2758_v48 }
 0x34f   : > { %8712 = vst [vmem:[%s10045_s7 + $0x1048] sm:$0xff] %v6405_v50  ;;  %vm5876_vm2 = vcmp.ge.f32.partialorder %v2407_v41, 0.0  ;;  %v6153_v58 = vmul.f32 %v11755_v12, %v2407_v41  ;;  %8347 = vmatmul.mubr.msk.bf16.gmra.mrb[112].mxu0 %vm848_vm0, %v9392_v59  ;;  %8714 = vst [vmem:[%s10045_s7 + $0x1058] sm:$0xff] %v6407_v55  ;;  %v6408_v51 = vsel %vm5875_vm15, %v2405_v45, %v6152_v53  ;;  %vm5878_vm3 = vcmp.ge.f32.partialorder %v2760_v54, 0.0  ;;  %v9394_v53 = vld [vmem:[%s13218_s1 + $0xf0] sm:$0xff]  }
 0x350   : > { %v6155_v52 = vmul.f32 %v11761_v26, %v2760_v54  ;;  %8379 = vmatmul.mubr.msk.bf16.gmra.mrb[112].mxu1 %vm848_vm0, %v9392_v59  ;;  %2679 = vmatprep.mubr.bf16.mxu0 %v9578_v0  ;;  %8715 = vst [vmem:[%s10045_s7 + $0x1060] sm:$0xff] %v6408_v51  ;;  %v6410_v61 = vsel %vm5877_vm1, %v2758_v48, %v6154_v56 }
 0x351   : > { %v6409_v60 = vsel %vm5876_vm2, %v2407_v41, %v6153_v58  ;;  %3032 = vmatprep.mubr.bf16.mxu1 %v9578_v0  ;;  %8717 = vst [vmem:[%s10045_s7 + $0x1070] sm:$0xff] %v6410_v61 }
 0x352   : > { %8716 = vst [vmem:[%s10045_s7 + $0x1068] sm:$0xff] %v6409_v60  ;;  %v6411_v20 = vsel %vm5878_vm3, %v2760_v54, %v6155_v52  ;;  %v2411_v11 = vpop.f32.mrb[8].mxu0  ;;  %v2764_v46 = vpop.f32.mrb[8].mxu1 }
 0x353   : > { %8718 = vst [vmem:[%s10045_s7 + $0x1078] sm:$0xff] %v6411_v20  ;;  %vm5879_vm4 = vcmp.ge.f32.partialorder %v2411_v11, 0.0  ;;  %v6156_v57 = vmul.f32 %v11732_v47, %v2411_v11  ;;  %v2413_v39 = vpop.f32.mrb[9].mxu0  ;;  %vm5881_vm5 = vcmp.ge.f32.partialorder %v2764_v46, 0.0  ;;  %v6158_v21 = vmul.f32 %v11735_v36, %v2764_v46  ;;  %v2766_v23 = vpop.f32.mrb[9].mxu1 }
 0x354   : > { %vm5880_vm6 = vcmp.ge.f32.partialorder %v2413_v39, 0.0  ;;  %v6157_v37 = vmul.f32 %v11755_v12, %v2413_v39  ;;  %v2415_v62 = vpop.f32.mrb[10].mxu0  ;;  %vm5882_vm7 = vcmp.ge.f32.partialorder %v2766_v23, 0.0  ;;  %v6159_v25 = vmul.f32 %v11761_v26, %v2766_v23  ;;  %v2768_v63 = vpop.f32.mrb[10].mxu1 }
 0x355   : > { %v6412_v22 = vsel %vm5879_vm4, %v2411_v11, %v6156_v57  ;;  %vm5883_vm8 = vcmp.ge.f32.partialorder %v2415_v62, 0.0  ;;  %v2417_v1 = vpop.f32.mrb[11].mxu0  ;;  %v6414_v2 = vsel %vm5881_vm5, %v2764_v46, %v6158_v21  ;;  %v6160_v4 = vmul.f32 %v11732_v47, %v2415_v62  ;;  %v2770_v5 = vpop.f32.mrb[11].mxu1 }
 0x356   : > { %8719 = vst [vmem:[%s10045_s7 + $0x1080] sm:$0xff] %v6412_v22  ;;  %v6413_v3 = vsel %vm5880_vm6, %v2413_v39, %v6157_v37  ;;  %vm5885_vm9 = vcmp.ge.f32.partialorder %v2768_v63, 0.0  ;;  %8721 = vst [vmem:[%s10045_s7 + $0x1090] sm:$0xff] %v6414_v2  ;;  %v6415_v6 = vsel %vm5882_vm7, %v2766_v23, %v6159_v25  ;;  %v6162_v7 = vmul.f32 %v11735_v36, %v2768_v63 }
 0x357   : > { %8720 = vst [vmem:[%s10045_s7 + $0x1088] sm:$0xff] %v6413_v3  ;;  %vm5884_vm10 = vcmp.ge.f32.partialorder %v2417_v1, 0.0  ;;  %v6161_v8 = vmul.f32 %v11755_v12, %v2417_v1  ;;  %8348 = vmatmul.mubr.msk.bf16.gmra.mrb[116].mxu0 %vm848_vm0, %v9393_v9  ;;  %8722 = vst [vmem:[%s10045_s7 + $0x1098] sm:$0xff] %v6415_v6  ;;  %v6416_v10 = vsel %vm5883_vm8, %v2415_v62, %v6160_v4  ;;  %vm5886_vm11 = vcmp.ge.f32.partialorder %v2770_v5, 0.0  ;;  %v9395_v4 = vld [vmem:[%s13218_s1 + $0xf8] sm:$0xff]  }
 0x358   : > { %v6163_v13 = vmul.f32 %v11761_v26, %v2770_v5  ;;  %8380 = vmatmul.mubr.msk.bf16.gmra.mrb[116].mxu1 %vm848_vm0, %v9393_v9  ;;  %2689 = vmatprep.mubr.bf16.mxu0 %v9578_v0  ;;  %8723 = vst [vmem:[%s10045_s7 + $0x10a0] sm:$0xff] %v6416_v10  ;;  %v6418_v14 = vsel %vm5885_vm9, %v2768_v63, %v6162_v7 }
 0x359   : > { %v6417_v15 = vsel %vm5884_vm10, %v2417_v1, %v6161_v8  ;;  %3042 = vmatprep.mubr.bf16.mxu1 %v9578_v0  ;;  %8725 = vst [vmem:[%s10045_s7 + $0x10b0] sm:$0xff] %v6418_v14 }
 0x35a   : > { %8724 = vst [vmem:[%s10045_s7 + $0x10a8] sm:$0xff] %v6417_v15  ;;  %v6419_v16 = vsel %vm5886_vm11, %v2770_v5, %v6163_v13  ;;  %v2421_v17 = vpop.f32.mrb[12].mxu0  ;;  %v2774_v19 = vpop.f32.mrb[12].mxu1 }
 0x35b   : > { %8726 = vst [vmem:[%s10045_s7 + $0x10b8] sm:$0xff] %v6419_v16  ;;  %vm5887_vm12 = vcmp.ge.f32.partialorder %v2421_v17, 0.0  ;;  %v6164_v18 = vmul.f32 %v11732_v47, %v2421_v17  ;;  %v2423_v24 = vpop.f32.mrb[13].mxu0  ;;  %vm5889_vm13 = vcmp.ge.f32.partialorder %v2774_v19, 0.0  ;;  %v6166_v27 = vmul.f32 %v11735_v36, %v2774_v19  ;;  %v2776_v29 = vpop.f32.mrb[13].mxu1 }
 0x35c   : > { %vm5888_vm14 = vcmp.ge.f32.partialorder %v2423_v24, 0.0  ;;  %v6165_v28 = vmul.f32 %v11755_v12, %v2423_v24  ;;  %v2425_v30 = vpop.f32.mrb[14].mxu0  ;;  %vm5890_vm15 = vcmp.ge.f32.partialorder %v2776_v29, 0.0  ;;  %v6167_v32 = vmul.f32 %v11761_v26, %v2776_v29  ;;  %v2778_v33 = vpop.f32.mrb[14].mxu1 }
 0x35d   : > { %v6420_v31 = vsel %vm5887_vm12, %v2421_v17, %v6164_v18  ;;  %vm5891_vm1 = vcmp.ge.f32.partialorder %v2425_v30, 0.0  ;;  %v2427_v34 = vpop.f32.mrb[15].mxu0  ;;  %v6422_v45 = vsel %vm5889_vm13, %v2774_v19, %v6166_v27  ;;  %v6168_v38 = vmul.f32 %v11732_v47, %v2425_v30  ;;  %v2780_v48 = vpop.f32.mrb[15].mxu1 }
 0x35e   : > { %8727 = vst [vmem:[%s10045_s7 + $0x10c0] sm:$0xff] %v6420_v31  ;;  %v6421_v35 = vsel %vm5888_vm14, %v2423_v24, %v6165_v28  ;;  %vm5893_vm2 = vcmp.ge.f32.partialorder %v2778_v33, 0.0  ;;  %8729 = vst [vmem:[%s10045_s7 + $0x10d0] sm:$0xff] %v6422_v45  ;;  %v6423_v41 = vsel %vm5890_vm15, %v2776_v29, %v6167_v32  ;;  %v6170_v49 = vmul.f32 %v11735_v36, %v2778_v33 }
 0x35f   : > { %8728 = vst [vmem:[%s10045_s7 + $0x10c8] sm:$0xff] %v6421_v35  ;;  %vm5892_vm3 = vcmp.ge.f32.partialorder %v2427_v34, 0.0  ;;  %v6169_v50 = vmul.f32 %v11755_v12, %v2427_v34  ;;  %8349 = vmatmul.mubr.msk.bf16.gmra.mrb[120].mxu0 %vm848_vm0, %v9394_v53  ;;  %8730 = vst [vmem:[%s10045_s7 + $0x10d8] sm:$0xff] %v6423_v41  ;;  %v6424_v54 = vsel %vm5891_vm1, %v2425_v30, %v6168_v38  ;;  %vm5894_vm4 = vcmp.ge.f32.partialorder %v2780_v48, 0.0  ;;  %v9396_v38 = vld [vmem:[%s13218_s1] sm:$0xff]  }
 0x360   : > { %v6171_v55 = vmul.f32 %v11761_v26, %v2780_v48  ;;  %8381 = vmatmul.mubr.msk.bf16.gmra.mrb[120].mxu1 %vm848_vm0, %v9394_v53  ;;  %2699 = vmatprep.mubr.bf16.mxu0 %v9578_v0  ;;  %8731 = vst [vmem:[%s10045_s7 + $0x10e0] sm:$0xff] %v6424_v54  ;;  %v6426_v56 = vsel %vm5893_vm2, %v2778_v33, %v6170_v49 }
 0x361   : > { %v6425_v58 = vsel %vm5892_vm3, %v2427_v34, %v6169_v50  ;;  %3052 = vmatprep.mubr.bf16.mxu1 %v9578_v0  ;;  %8733 = vst [vmem:[%s10045_s7 + $0x10f0] sm:$0xff] %v6426_v56 }
 0x362   : > { %8732 = vst [vmem:[%s10045_s7 + $0x10e8] sm:$0xff] %v6425_v58  ;;  %v6427_v59 = vsel %vm5894_vm4, %v2780_v48, %v6171_v55  ;;  %v2431_v51 = vpop.f32.mrb[16].mxu0  ;;  %v2784_v61 = vpop.f32.mrb[16].mxu1 }
 0x363   : > { %8734 = vst [vmem:[%s10045_s7 + $0x10f8] sm:$0xff] %v6427_v59  ;;  %vm5895_vm5 = vcmp.ge.f32.partialorder %v2431_v51, 0.0  ;;  %v6172_v52 = vmul.f32 %v11732_v47, %v2431_v51  ;;  %v2433_v60 = vpop.f32.mrb[17].mxu0  ;;  %vm5897_vm6 = vcmp.ge.f32.partialorder %v2784_v61, 0.0  ;;  %v6174_v20 = vmul.f32 %v11735_v36, %v2784_v61  ;;  %v2786_v57 = vpop.f32.mrb[17].mxu1 }
 0x364   : > { %vm5896_vm7 = vcmp.ge.f32.partialorder %v2433_v60, 0.0  ;;  %v6173_v11 = vmul.f32 %v11755_v12, %v2433_v60  ;;  %v2435_v46 = vpop.f32.mrb[18].mxu0  ;;  %vm5898_vm8 = vcmp.ge.f32.partialorder %v2786_v57, 0.0  ;;  %v6175_v21 = vmul.f32 %v11761_v26, %v2786_v57  ;;  %v2788_v37 = vpop.f32.mrb[18].mxu1 }
 0x365   : > { %v6428_v39 = vsel %vm5895_vm5, %v2431_v51, %v6172_v52  ;;  %vm5899_vm9 = vcmp.ge.f32.partialorder %v2435_v46, 0.0  ;;  %v2437_v23 = vpop.f32.mrb[19].mxu0  ;;  %v6430_v62 = vsel %vm5897_vm6, %v2784_v61, %v6174_v20  ;;  %v6176_v25 = vmul.f32 %v11732_v47, %v2435_v46  ;;  %v2790_v63 = vpop.f32.mrb[19].mxu1 }
 0x366   : > { %8735 = vst [vmem:[%s10045_s7 + $0x1100] sm:$0xff] %v6428_v39  ;;  %v6429_v22 = vsel %vm5896_vm7, %v2433_v60, %v6173_v11  ;;  %vm5901_vm10 = vcmp.ge.f32.partialorder %v2788_v37, 0.0  ;;  %8737 = vst [vmem:[%s10045_s7 + $0x1110] sm:$0xff] %v6430_v62  ;;  %v6431_v1 = vsel %vm5898_vm8, %v2786_v57, %v6175_v21  ;;  %v6178_v2 = vmul.f32 %v11735_v36, %v2788_v37 }
 0x367   : > { %8736 = vst [vmem:[%s10045_s7 + $0x1108] sm:$0xff] %v6429_v22  ;;  %vm5900_vm11 = vcmp.ge.f32.partialorder %v2437_v23, 0.0  ;;  %v6177_v3 = vmul.f32 %v11755_v12, %v2437_v23  ;;  %8350 = vmatmul.mubr.msk.bf16.gmra.mrb[124].mxu0 %vm848_vm0, %v9395_v4  ;;  %8738 = vst [vmem:[%s10045_s7 + $0x1118] sm:$0xff] %v6431_v1  ;;  %v6432_v5 = vsel %vm5899_vm9, %v2435_v46, %v6176_v25  ;;  %vm5902_vm12 = vcmp.ge.f32.partialorder %v2790_v63, 0.0  ;;  %v9397_v25 = vld [vmem:[%s13218_s1 + $0x8] sm:$0xff]  }
 0x368   : > { %v6179_v6 = vmul.f32 %v11761_v26, %v2790_v63  ;;  %8382 = vmatmul.mubr.msk.bf16.gmra.mrb[124].mxu1 %vm848_vm0, %v9395_v4  ;;  %3095 = vmatprep.mubr.bf16.mxu0 %v9578_v0  ;;  %8739 = vst [vmem:[%s10045_s7 + $0x1120] sm:$0xff] %v6432_v5  ;;  %v6434_v7 = vsel %vm5901_vm10, %v2788_v37, %v6178_v2 }
 0x369   : > { %v6433_v8 = vsel %vm5900_vm11, %v2437_v23, %v6177_v3  ;;  %3448 = vmatprep.mubr.bf16.mxu1 %v9578_v0  ;;  %8741 = vst [vmem:[%s10045_s7 + $0x1130] sm:$0xff] %v6434_v7 }
 0x36a   : > { %8740 = vst [vmem:[%s10045_s7 + $0x1128] sm:$0xff] %v6433_v8  ;;  %v6435_v9 = vsel %vm5902_vm12, %v2790_v63, %v6179_v6  ;;  %v2441_v10 = vpop.f32.mrb[20].mxu0  ;;  %v2794_v14 = vpop.f32.mrb[20].mxu1 }
 0x36b   : > { %8742 = vst [vmem:[%s10045_s7 + $0x1138] sm:$0xff] %v6435_v9  ;;  %vm5903_vm13 = vcmp.ge.f32.partialorder %v2441_v10, 0.0  ;;  %v6180_v13 = vmul.f32 %v11732_v47, %v2441_v10  ;;  %v2443_v15 = vpop.f32.mrb[21].mxu0  ;;  %vm5905_vm14 = vcmp.ge.f32.partialorder %v2794_v14, 0.0  ;;  %v6182_v16 = vmul.f32 %v11735_v36, %v2794_v14  ;;  %v2796_v18 = vpop.f32.mrb[21].mxu1 }
 0x36c   : > { %vm5904_vm15 = vcmp.ge.f32.partialorder %v2443_v15, 0.0  ;;  %v6181_v17 = vmul.f32 %v11755_v12, %v2443_v15  ;;  %v2445_v19 = vpop.f32.mrb[22].mxu0  ;;  %vm5906_vm1 = vcmp.ge.f32.partialorder %v2796_v18, 0.0  ;;  %v6183_v27 = vmul.f32 %v11761_v26, %v2796_v18  ;;  %v2798_v28 = vpop.f32.mrb[22].mxu1 }
 0x36d   : > { %v6436_v24 = vsel %vm5903_vm13, %v2441_v10, %v6180_v13  ;;  %vm5907_vm2 = vcmp.ge.f32.partialorder %v2445_v19, 0.0  ;;  %v2447_v29 = vpop.f32.mrb[23].mxu0  ;;  %v6438_v30 = vsel %vm5905_vm14, %v2794_v14, %v6182_v16  ;;  %v6184_v32 = vmul.f32 %v11732_v47, %v2445_v19  ;;  %v2800_v33 = vpop.f32.mrb[23].mxu1 }
 0x36e   : > { %8743 = vst [vmem:[%s10045_s7 + $0x1140] sm:$0xff] %v6436_v24  ;;  %v6437_v31 = vsel %vm5904_vm15, %v2443_v15, %v6181_v17  ;;  %vm5909_vm3 = vcmp.ge.f32.partialorder %v2798_v28, 0.0  ;;  %8745 = vst [vmem:[%s10045_s7 + $0x1150] sm:$0xff] %v6438_v30  ;;  %v6439_v34 = vsel %vm5906_vm1, %v2796_v18, %v6183_v27  ;;  %v6186_v45 = vmul.f32 %v11735_v36, %v2798_v28 }
 0x36f   : > { %8744 = vst [vmem:[%s10045_s7 + $0x1148] sm:$0xff] %v6437_v31  ;;  %vm5908_vm4 = vcmp.ge.f32.partialorder %v2447_v29, 0.0  ;;  %v6185_v35 = vmul.f32 %v11755_v12, %v2447_v29  ;;  %8383 = vmatmul.mubr.msk.bf16.vlgmr.msra.gmra.mrb[128].mxu0 %vm848_vm0, %v9396_v38  ;;  %8746 = vst [vmem:[%s10045_s7 + $0x1158] sm:$0xff] %v6439_v34  ;;  %v6440_v48 = vsel %vm5907_vm2, %v2445_v19, %v6184_v32  ;;  %vm5910_vm5 = vcmp.ge.f32.partialorder %v2800_v33, 0.0  ;;  %v9398_v32 = vld [vmem:[%s13218_s1 + $0x10] sm:$0xff]  }
 0x370   : > { %v6187_v41 = vmul.f32 %v11761_v26, %v2800_v33  ;;  %8415 = vmatmul.mubr.msk.bf16.vlgmr.msra.gmra.mrb[128].mxu1 %vm848_vm0, %v9396_v38  ;;  %3105 = vmatprep.mubr.bf16.mxu0 %v9578_v0  ;;  %8747 = vst [vmem:[%s10045_s7 + $0x1160] sm:$0xff] %v6440_v48  ;;  %v6442_v49 = vsel %vm5909_vm3, %v2798_v28, %v6186_v45 }
 0x371   : > { %v6441_v50 = vsel %vm5908_vm4, %v2447_v29, %v6185_v35  ;;  %3458 = vmatprep.mubr.bf16.mxu1 %v9578_v0  ;;  %8749 = vst [vmem:[%s10045_s7 + $0x1170] sm:$0xff] %v6442_v49 }
 0x372   : > { %8748 = vst [vmem:[%s10045_s7 + $0x1168] sm:$0xff] %v6441_v50  ;;  %v6443_v53 = vsel %vm5910_vm5, %v2800_v33, %v6187_v41  ;;  %v2451_v54 = vpop.f32.mrb[24].mxu0  ;;  %v2804_v56 = vpop.f32.mrb[24].mxu1 }
 0x373   : > { %8750 = vst [vmem:[%s10045_s7 + $0x1178] sm:$0xff] %v6443_v53  ;;  %vm5911_vm6 = vcmp.ge.f32.partialorder %v2451_v54, 0.0  ;;  %v6188_v55 = vmul.f32 %v11732_v47, %v2451_v54  ;;  %v2453_v58 = vpop.f32.mrb[25].mxu0  ;;  %vm5913_vm7 = vcmp.ge.f32.partialorder %v2804_v56, 0.0  ;;  %v6190_v59 = vmul.f32 %v11735_v36, %v2804_v56  ;;  %v2806_v52 = vpop.f32.mrb[25].mxu1 }
 0x374   : > { %vm5912_vm8 = vcmp.ge.f32.partialorder %v2453_v58, 0.0  ;;  %v6189_v51 = vmul.f32 %v11755_v12, %v2453_v58  ;;  %v2455_v61 = vpop.f32.mrb[26].mxu0  ;;  %vm5914_vm9 = vcmp.ge.f32.partialorder %v2806_v52, 0.0  ;;  %v6191_v20 = vmul.f32 %v11761_v26, %v2806_v52  ;;  %v2808_v11 = vpop.f32.mrb[26].mxu1 }
 0x375   : > { %v6444_v60 = vsel %vm5911_vm6, %v2451_v54, %v6188_v55  ;;  %vm5915_vm10 = vcmp.ge.f32.partialorder %v2455_v61, 0.0  ;;  %v2457_v57 = vpop.f32.mrb[27].mxu0  ;;  %v6446_v46 = vsel %vm5913_vm7, %v2804_v56, %v6190_v59  ;;  %v6192_v21 = vmul.f32 %v11732_v47, %v2455_v61  ;;  %v2810_v37 = vpop.f32.mrb[27].mxu1 }
 0x376   : > { %8751 = vst [vmem:[%s10045_s7 + $0x1180] sm:$0xff] %v6444_v60  ;;  %v6445_v39 = vsel %vm5912_vm8, %v2453_v58, %v6189_v51  ;;  %vm5917_vm11 = vcmp.ge.f32.partialorder %v2808_v11, 0.0  ;;  %8753 = vst [vmem:[%s10045_s7 + $0x1190] sm:$0xff] %v6446_v46  ;;  %v6447_v23 = vsel %vm5914_vm9, %v2806_v52, %v6191_v20  ;;  %v6194_v62 = vmul.f32 %v11735_v36, %v2808_v11 }
 0x377   : > { %8752 = vst [vmem:[%s10045_s7 + $0x1188] sm:$0xff] %v6445_v39  ;;  %vm5916_vm12 = vcmp.ge.f32.partialorder %v2457_v57, 0.0  ;;  %v6193_v22 = vmul.f32 %v11755_v12, %v2457_v57  ;;  %8384 = vmatmul.mubr.msk.bf16.gmra.mrb[132].mxu0 %vm848_vm0, %v9397_v25  ;;  %8754 = vst [vmem:[%s10045_s7 + $0x1198] sm:$0xff] %v6447_v23  ;;  %v6448_v63 = vsel %vm5915_vm10, %v2455_v61, %v6192_v21  ;;  %vm5918_vm13 = vcmp.ge.f32.partialorder %v2810_v37, 0.0  ;;  %v9399_v21 = vld [vmem:[%s13218_s1 + $0x18] sm:$0xff]  }
 0x378   : > { %v6195_v1 = vmul.f32 %v11761_v26, %v2810_v37  ;;  %8416 = vmatmul.mubr.msk.bf16.gmra.mrb[132].mxu1 %vm848_vm0, %v9397_v25  ;;  %3115 = vmatprep.mubr.bf16.mxu0 %v9578_v0  ;;  %8755 = vst [vmem:[%s10045_s7 + $0x11a0] sm:$0xff] %v6448_v63  ;;  %v6450_v2 = vsel %vm5917_vm11, %v2808_v11, %v6194_v62 }
 0x379   : > { %v6449_v3 = vsel %vm5916_vm12, %v2457_v57, %v6193_v22  ;;  %3468 = vmatprep.mubr.bf16.mxu1 %v9578_v0  ;;  %8757 = vst [vmem:[%s10045_s7 + $0x11b0] sm:$0xff] %v6450_v2 }
 0x37a   : > { %8756 = vst [vmem:[%s10045_s7 + $0x11a8] sm:$0xff] %v6449_v3  ;;  %v6451_v4 = vsel %vm5918_vm13, %v2810_v37, %v6195_v1  ;;  %v2461_v5 = vpop.f32.mrb[28].mxu0  ;;  %v2814_v7 = vpop.f32.mrb[28].mxu1 }
 0x37b   : > { %8758 = vst [vmem:[%s10045_s7 + $0x11b8] sm:$0xff] %v6451_v4  ;;  %vm5919_vm14 = vcmp.ge.f32.partialorder %v2461_v5, 0.0  ;;  %v6196_v6 = vmul.f32 %v11732_v47, %v2461_v5  ;;  %v2463_v8 = vpop.f32.mrb[29].mxu0  ;;  %vm5921_vm15 = vcmp.ge.f32.partialorder %v2814_v7, 0.0  ;;  %v6198_v9 = vmul.f32 %v11735_v36, %v2814_v7  ;;  %v2816_v13 = vpop.f32.mrb[29].mxu1 }
 0x37c   : > { %vm5920_vm1 = vcmp.ge.f32.partialorder %v2463_v8, 0.0  ;;  %v6197_v10 = vmul.f32 %v11755_v12, %v2463_v8  ;;  %v2465_v14 = vpop.f32.mrb[30].mxu0  ;;  %vm5922_vm2 = vcmp.ge.f32.partialorder %v2816_v13, 0.0  ;;  %v6199_v16 = vmul.f32 %v11761_v26, %v2816_v13  ;;  %v2818_v17 = vpop.f32.mrb[30].mxu1 }
 0x37d   : > { %v6452_v15 = vsel %vm5919_vm14, %v2461_v5, %v6196_v6  ;;  %vm5923_vm3 = vcmp.ge.f32.partialorder %v2465_v14, 0.0  ;;  %v2467_v18 = vpop.f32.mrb[31].mxu0  ;;  %v6454_v19 = vsel %vm5921_vm15, %v2814_v7, %v6198_v9  ;;  %v6200_v27 = vmul.f32 %v11732_v47, %v2465_v14  ;;  %v2820_v28 = vpop.f32.mrb[31].mxu1 }
 0x37e   : > { %8759 = vst [vmem:[%s10045_s7 + $0x11c0] sm:$0xff] %v6452_v15  ;;  %v6453_v24 = vsel %vm5920_vm1, %v2463_v8, %v6197_v10  ;;  %vm5925_vm4 = vcmp.ge.f32.partialorder %v2818_v17, 0.0  ;;  %8761 = vst [vmem:[%s10045_s7 + $0x11d0] sm:$0xff] %v6454_v19  ;;  %v6455_v29 = vsel %vm5922_vm2, %v2816_v13, %v6199_v16  ;;  %v6202_v30 = vmul.f32 %v11735_v36, %v2818_v17 }
 0x37f   : > { %8760 = vst [vmem:[%s10045_s7 + $0x11c8] sm:$0xff] %v6453_v24  ;;  %vm5924_vm5 = vcmp.ge.f32.partialorder %v2467_v18, 0.0  ;;  %v6201_v31 = vmul.f32 %v11755_v12, %v2467_v18  ;;  %8385 = vmatmul.mubr.msk.bf16.gmra.mrb[136].mxu0 %vm848_vm0, %v9398_v32  ;;  %8762 = vst [vmem:[%s10045_s7 + $0x11d8] sm:$0xff] %v6455_v29  ;;  %v6456_v33 = vsel %vm5923_vm3, %v2465_v14, %v6200_v27  ;;  %vm5926_vm6 = vcmp.ge.f32.partialorder %v2820_v28, 0.0  ;;  %v9400_v27 = vld [vmem:[%s13218_s1 + $0x20] sm:$0xff]  }
 0x380   : > { %v6203_v34 = vmul.f32 %v11761_v26, %v2820_v28  ;;  %8417 = vmatmul.mubr.msk.bf16.gmra.mrb[136].mxu1 %vm848_vm0, %v9398_v32  ;;  %3125 = vmatprep.mubr.bf16.mxu0 %v9578_v0  ;;  %8763 = vst [vmem:[%s10045_s7 + $0x11e0] sm:$0xff] %v6456_v33  ;;  %v6458_v45 = vsel %vm5925_vm4, %v2818_v17, %v6202_v30 }
 0x381   : > { %v6457_v35 = vsel %vm5924_vm5, %v2467_v18, %v6201_v31  ;;  %3478 = vmatprep.mubr.bf16.mxu1 %v9578_v0  ;;  %8765 = vst [vmem:[%s10045_s7 + $0x11f0] sm:$0xff] %v6458_v45 }
 0x382   : > { %8764 = vst [vmem:[%s10045_s7 + $0x11e8] sm:$0xff] %v6457_v35  ;;  %v6459_v38 = vsel %vm5926_vm6, %v2820_v28, %v6203_v34  ;;  %v2471_v48 = vpop.f32.mrb[32].mxu0  ;;  %v2824_v49 = vpop.f32.mrb[32].mxu1 }
 0x383   : > { %8766 = vst [vmem:[%s10045_s7 + $0x11f8] sm:$0xff] %v6459_v38  ;;  %vm5927_vm7 = vcmp.ge.f32.partialorder %v2471_v48, 0.0  ;;  %v6204_v41 = vmul.f32 %v11732_v47, %v2471_v48  ;;  %v2473_v50 = vpop.f32.mrb[33].mxu0  ;;  %vm5929_vm8 = vcmp.ge.f32.partialorder %v2824_v49, 0.0  ;;  %v6206_v53 = vmul.f32 %v11735_v36, %v2824_v49  ;;  %v2826_v55 = vpop.f32.mrb[33].mxu1 }
 0x384   : > { %vm5928_vm9 = vcmp.ge.f32.partialorder %v2473_v50, 0.0  ;;  %v6205_v54 = vmul.f32 %v11755_v12, %v2473_v50  ;;  %v2475_v56 = vpop.f32.mrb[34].mxu0  ;;  %vm5930_vm10 = vcmp.ge.f32.partialorder %v2826_v55, 0.0  ;;  %v6207_v59 = vmul.f32 %v11761_v26, %v2826_v55  ;;  %v2828_v51 = vpop.f32.mrb[34].mxu1 }
 0x385   : > { %v6460_v58 = vsel %vm5927_vm7, %v2471_v48, %v6204_v41  ;;  %vm5931_vm11 = vcmp.ge.f32.partialorder %v2475_v56, 0.0  ;;  %v2477_v52 = vpop.f32.mrb[35].mxu0  ;;  %v6462_v61 = vsel %vm5929_vm8, %v2824_v49, %v6206_v53  ;;  %v6208_v20 = vmul.f32 %v11732_v47, %v2475_v56  ;;  %v2830_v11 = vpop.f32.mrb[35].mxu1 }
 0x386   : > { %8767 = vst [vmem:[%s10045_s7 + $0x1200] sm:$0xff] %v6460_v58  ;;  %v6461_v60 = vsel %vm5928_vm9, %v2473_v50, %v6205_v54  ;;  %vm5933_vm12 = vcmp.ge.f32.partialorder %v2828_v51, 0.0  ;;  %8769 = vst [vmem:[%s10045_s7 + $0x1210] sm:$0xff] %v6462_v61  ;;  %v6463_v57 = vsel %vm5930_vm10, %v2826_v55, %v6207_v59  ;;  %v6210_v46 = vmul.f32 %v11735_v36, %v2828_v51 }
 0x387   : > { %8768 = vst [vmem:[%s10045_s7 + $0x1208] sm:$0xff] %v6461_v60  ;;  %vm5932_vm13 = vcmp.ge.f32.partialorder %v2477_v52, 0.0  ;;  %v6209_v39 = vmul.f32 %v11755_v12, %v2477_v52  ;;  %8386 = vmatmul.mubr.msk.bf16.gmra.mrb[140].mxu0 %vm848_vm0, %v9399_v21  ;;  %8770 = vst [vmem:[%s10045_s7 + $0x1218] sm:$0xff] %v6463_v57  ;;  %v6464_v37 = vsel %vm5931_vm11, %v2475_v56, %v6208_v20  ;;  %vm5934_vm14 = vcmp.ge.f32.partialorder %v2830_v11, 0.0  ;;  %v9401_v20 = vld [vmem:[%s13218_s1 + $0x28] sm:$0xff]  }
 0x388   : > { %v6211_v23 = vmul.f32 %v11761_v26, %v2830_v11  ;;  %8418 = vmatmul.mubr.msk.bf16.gmra.mrb[140].mxu1 %vm848_vm0, %v9399_v21  ;;  %3135 = vmatprep.mubr.bf16.mxu0 %v9578_v0  ;;  %8771 = vst [vmem:[%s10045_s7 + $0x1220] sm:$0xff] %v6464_v37  ;;  %v6466_v62 = vsel %vm5933_vm12, %v2828_v51, %v6210_v46 }
 0x389   : > { %v6465_v22 = vsel %vm5932_vm13, %v2477_v52, %v6209_v39  ;;  %3488 = vmatprep.mubr.bf16.mxu1 %v9578_v0  ;;  %8773 = vst [vmem:[%s10045_s7 + $0x1230] sm:$0xff] %v6466_v62 }
 0x38a   : > { %8772 = vst [vmem:[%s10045_s7 + $0x1228] sm:$0xff] %v6465_v22  ;;  %v6467_v25 = vsel %vm5934_vm14, %v2830_v11, %v6211_v23  ;;  %v2481_v63 = vpop.f32.mrb[36].mxu0  ;;  %v2834_v2 = vpop.f32.mrb[36].mxu1 }
 0x38b   : > { %8774 = vst [vmem:[%s10045_s7 + $0x1238] sm:$0xff] %v6467_v25  ;;  %vm5935_vm15 = vcmp.ge.f32.partialorder %v2481_v63, 0.0  ;;  %v6212_v1 = vmul.f32 %v11732_v47, %v2481_v63  ;;  %v2483_v3 = vpop.f32.mrb[37].mxu0  ;;  %vm5937_vm1 = vcmp.ge.f32.partialorder %v2834_v2, 0.0  ;;  %v6214_v4 = vmul.f32 %v11735_v36, %v2834_v2  ;;  %v2836_v6 = vpop.f32.mrb[37].mxu1 }
 0x38c   : > { %vm5936_vm2 = vcmp.ge.f32.partialorder %v2483_v3, 0.0  ;;  %v6213_v5 = vmul.f32 %v11755_v12, %v2483_v3  ;;  %v2485_v7 = vpop.f32.mrb[38].mxu0  ;;  %vm5938_vm3 = vcmp.ge.f32.partialorder %v2836_v6, 0.0  ;;  %v6215_v9 = vmul.f32 %v11761_v26, %v2836_v6  ;;  %v2838_v10 = vpop.f32.mrb[38].mxu1 }
 0x38d   : > { %v6468_v8 = vsel %vm5935_vm15, %v2481_v63, %v6212_v1  ;;  %vm5939_vm4 = vcmp.ge.f32.partialorder %v2485_v7, 0.0  ;;  %v2487_v13 = vpop.f32.mrb[39].mxu0  ;;  %v6470_v14 = vsel %vm5937_vm1, %v2834_v2, %v6214_v4  ;;  %v6216_v16 = vmul.f32 %v11732_v47, %v2485_v7  ;;  %v2840_v17 = vpop.f32.mrb[39].mxu1 }
 0x38e   : > { %8775 = vst [vmem:[%s10045_s7 + $0x1240] sm:$0xff] %v6468_v8  ;;  %v6469_v15 = vsel %vm5936_vm2, %v2483_v3, %v6213_v5  ;;  %vm5941_vm5 = vcmp.ge.f32.partialorder %v2838_v10, 0.0  ;;  %8777 = vst [vmem:[%s10045_s7 + $0x1250] sm:$0xff] %v6470_v14  ;;  %v6471_v18 = vsel %vm5938_vm3, %v2836_v6, %v6215_v9  ;;  %v6218_v19 = vmul.f32 %v11735_v36, %v2838_v10 }
 0x38f   : > { %8776 = vst [vmem:[%s10045_s7 + $0x1248] sm:$0xff] %v6469_v15  ;;  %vm5940_vm6 = vcmp.ge.f32.partialorder %v2487_v13, 0.0  ;;  %v6217_v24 = vmul.f32 %v11755_v12, %v2487_v13  ;;  %8387 = vmatmul.mubr.msk.bf16.gmra.mrb[144].mxu0 %vm848_vm0, %v9400_v27  ;;  %8778 = vst [vmem:[%s10045_s7 + $0x1258] sm:$0xff] %v6471_v18  ;;  %v6472_v28 = vsel %vm5939_vm4, %v2485_v7, %v6216_v16  ;;  %vm5942_vm7 = vcmp.ge.f32.partialorder %v2840_v17, 0.0  ;;  %v9402_v16 = vld [vmem:[%s13218_s1 + $0x30] sm:$0xff]  }
 0x390   : > { %v6219_v29 = vmul.f32 %v11761_v26, %v2840_v17  ;;  %8419 = vmatmul.mubr.msk.bf16.gmra.mrb[144].mxu1 %vm848_vm0, %v9400_v27  ;;  %3145 = vmatprep.mubr.bf16.mxu0 %v9578_v0  ;;  %8779 = vst [vmem:[%s10045_s7 + $0x1260] sm:$0xff] %v6472_v28  ;;  %v6474_v30 = vsel %vm5941_vm5, %v2838_v10, %v6218_v19 }
 0x391   : > { %v6473_v31 = vsel %vm5940_vm6, %v2487_v13, %v6217_v24  ;;  %3498 = vmatprep.mubr.bf16.mxu1 %v9578_v0  ;;  %8781 = vst [vmem:[%s10045_s7 + $0x1270] sm:$0xff] %v6474_v30 }
 0x392   : > { %8780 = vst [vmem:[%s10045_s7 + $0x1268] sm:$0xff] %v6473_v31  ;;  %v6475_v32 = vsel %vm5942_vm7, %v2840_v17, %v6219_v29  ;;  %v2491_v33 = vpop.f32.mrb[40].mxu0  ;;  %v2844_v45 = vpop.f32.mrb[40].mxu1 }
 0x393   : > { %8782 = vst [vmem:[%s10045_s7 + $0x1278] sm:$0xff] %v6475_v32  ;;  %vm5943_vm8 = vcmp.ge.f32.partialorder %v2491_v33, 0.0  ;;  %v6220_v34 = vmul.f32 %v11732_v47, %v2491_v33  ;;  %v2493_v35 = vpop.f32.mrb[41].mxu0  ;;  %vm5945_vm9 = vcmp.ge.f32.partialorder %v2844_v45, 0.0  ;;  %v6222_v38 = vmul.f32 %v11735_v36, %v2844_v45  ;;  %v2846_v41 = vpop.f32.mrb[41].mxu1 }
 0x394   : > { %vm5944_vm10 = vcmp.ge.f32.partialorder %v2493_v35, 0.0  ;;  %v6221_v48 = vmul.f32 %v11755_v12, %v2493_v35  ;;  %v2495_v49 = vpop.f32.mrb[42].mxu0  ;;  %vm5946_vm11 = vcmp.ge.f32.partialorder %v2846_v41, 0.0  ;;  %v6223_v53 = vmul.f32 %v11761_v26, %v2846_v41  ;;  %v2848_v54 = vpop.f32.mrb[42].mxu1 }
 0x395   : > { %v6476_v50 = vsel %vm5943_vm8, %v2491_v33, %v6220_v34  ;;  %vm5947_vm12 = vcmp.ge.f32.partialorder %v2495_v49, 0.0  ;;  %v2497_v55 = vpop.f32.mrb[43].mxu0  ;;  %v6478_v56 = vsel %vm5945_vm9, %v2844_v45, %v6222_v38  ;;  %v6224_v59 = vmul.f32 %v11732_v47, %v2495_v49  ;;  %v2850_v51 = vpop.f32.mrb[43].mxu1 }
 0x396   : > { %8783 = vst [vmem:[%s10045_s7 + $0x1280] sm:$0xff] %v6476_v50  ;;  %v6477_v58 = vsel %vm5944_vm10, %v2493_v35, %v6221_v48  ;;  %vm5949_vm13 = vcmp.ge.f32.partialorder %v2848_v54, 0.0  ;;  %8785 = vst [vmem:[%s10045_s7 + $0x1290] sm:$0xff] %v6478_v56  ;;  %v6479_v52 = vsel %vm5946_vm11, %v2846_v41, %v6223_v53  ;;  %v6226_v61 = vmul.f32 %v11735_v36, %v2848_v54 }
 0x397   : > { %8784 = vst [vmem:[%s10045_s7 + $0x1288] sm:$0xff] %v6477_v58  ;;  %vm5948_vm14 = vcmp.ge.f32.partialorder %v2497_v55, 0.0  ;;  %v6225_v60 = vmul.f32 %v11755_v12, %v2497_v55  ;;  %8388 = vmatmul.mubr.msk.bf16.gmra.mrb[148].mxu0 %vm848_vm0, %v9401_v20  ;;  %8786 = vst [vmem:[%s10045_s7 + $0x1298] sm:$0xff] %v6479_v52  ;;  %v6480_v11 = vsel %vm5947_vm12, %v2495_v49, %v6224_v59  ;;  %vm5950_vm15 = vcmp.ge.f32.partialorder %v2850_v51, 0.0  ;;  %v9403_v59 = vld [vmem:[%s13218_s1 + $0x38] sm:$0xff]  }
 0x398   : > { %v6227_v57 = vmul.f32 %v11761_v26, %v2850_v51  ;;  %8420 = vmatmul.mubr.msk.bf16.gmra.mrb[148].mxu1 %vm848_vm0, %v9401_v20  ;;  %3155 = vmatprep.mubr.bf16.mxu0 %v9578_v0  ;;  %8787 = vst [vmem:[%s10045_s7 + $0x12a0] sm:$0xff] %v6480_v11  ;;  %v6482_v46 = vsel %vm5949_vm13, %v2848_v54, %v6226_v61 }
 0x399   : > { %v6481_v39 = vsel %vm5948_vm14, %v2497_v55, %v6225_v60  ;;  %3508 = vmatprep.mubr.bf16.mxu1 %v9578_v0  ;;  %8789 = vst [vmem:[%s10045_s7 + $0x12b0] sm:$0xff] %v6482_v46 }
 0x39a   : > { %8788 = vst [vmem:[%s10045_s7 + $0x12a8] sm:$0xff] %v6481_v39  ;;  %v6483_v21 = vsel %vm5950_vm15, %v2850_v51, %v6227_v57  ;;  %v2501_v37 = vpop.f32.mrb[44].mxu0  ;;  %v2854_v62 = vpop.f32.mrb[44].mxu1 }
 0x39b   : > { %8790 = vst [vmem:[%s10045_s7 + $0x12b8] sm:$0xff] %v6483_v21  ;;  %vm5951_vm1 = vcmp.ge.f32.partialorder %v2501_v37, 0.0  ;;  %v6228_v23 = vmul.f32 %v11732_v47, %v2501_v37  ;;  %v2503_v22 = vpop.f32.mrb[45].mxu0  ;;  %vm5953_vm2 = vcmp.ge.f32.partialorder %v2854_v62, 0.0  ;;  %v6230_v25 = vmul.f32 %v11735_v36, %v2854_v62  ;;  %v2856_v1 = vpop.f32.mrb[45].mxu1 }
 0x39c   : > { %vm5952_vm3 = vcmp.ge.f32.partialorder %v2503_v22, 0.0  ;;  %v6229_v63 = vmul.f32 %v11755_v12, %v2503_v22  ;;  %v2505_v2 = vpop.f32.mrb[46].mxu0  ;;  %vm5954_vm4 = vcmp.ge.f32.partialorder %v2856_v1, 0.0  ;;  %v6231_v4 = vmul.f32 %v11761_v26, %v2856_v1  ;;  %v2858_v5 = vpop.f32.mrb[46].mxu1 }
 0x39d   : > { %v6484_v3 = vsel %vm5951_vm1, %v2501_v37, %v6228_v23  ;;  %vm5955_vm5 = vcmp.ge.f32.partialorder %v2505_v2, 0.0  ;;  %v2507_v6 = vpop.f32.mrb[47].mxu0  ;;  %v6486_v7 = vsel %vm5953_vm2, %v2854_v62, %v6230_v25  ;;  %v6232_v9 = vmul.f32 %v11732_v47, %v2505_v2  ;;  %v2860_v10 = vpop.f32.mrb[47].mxu1 }
 0x39e   : > { %8791 = vst [vmem:[%s10045_s7 + $0x12c0] sm:$0xff] %v6484_v3  ;;  %v6485_v8 = vsel %vm5952_vm3, %v2503_v22, %v6229_v63  ;;  %vm5957_vm6 = vcmp.ge.f32.partialorder %v2858_v5, 0.0  ;;  %8793 = vst [vmem:[%s10045_s7 + $0x12d0] sm:$0xff] %v6486_v7  ;;  %v6487_v13 = vsel %vm5954_vm4, %v2856_v1, %v6231_v4  ;;  %v6234_v14 = vmul.f32 %v11735_v36, %v2858_v5 }
 0x39f   : > { %8792 = vst [vmem:[%s10045_s7 + $0x12c8] sm:$0xff] %v6485_v8  ;;  %vm5956_vm7 = vcmp.ge.f32.partialorder %v2507_v6, 0.0  ;;  %v6233_v15 = vmul.f32 %v11755_v12, %v2507_v6  ;;  %8389 = vmatmul.mubr.msk.bf16.gmra.mrb[152].mxu0 %vm848_vm0, %v9402_v16  ;;  %8794 = vst [vmem:[%s10045_s7 + $0x12d8] sm:$0xff] %v6487_v13  ;;  %v6488_v17 = vsel %vm5955_vm5, %v2505_v2, %v6232_v9  ;;  %vm5958_vm8 = vcmp.ge.f32.partialorder %v2860_v10, 0.0  ;;  %v9404_v9 = vld [vmem:[%s13218_s1 + $0x40] sm:$0xff]  }
 0x3a0   : > { %v6235_v18 = vmul.f32 %v11761_v26, %v2860_v10  ;;  %8421 = vmatmul.mubr.msk.bf16.gmra.mrb[152].mxu1 %vm848_vm0, %v9402_v16  ;;  %3165 = vmatprep.mubr.bf16.mxu0 %v9578_v0  ;;  %8795 = vst [vmem:[%s10045_s7 + $0x12e0] sm:$0xff] %v6488_v17  ;;  %v6490_v19 = vsel %vm5957_vm6, %v2858_v5, %v6234_v14 }
 0x3a1   : > { %v6489_v24 = vsel %vm5956_vm7, %v2507_v6, %v6233_v15  ;;  %3518 = vmatprep.mubr.bf16.mxu1 %v9578_v0  ;;  %8797 = vst [vmem:[%s10045_s7 + $0x12f0] sm:$0xff] %v6490_v19 }
 0x3a2   : > { %8796 = vst [vmem:[%s10045_s7 + $0x12e8] sm:$0xff] %v6489_v24  ;;  %v6491_v27 = vsel %vm5958_vm8, %v2860_v10, %v6235_v18  ;;  %v2511_v28 = vpop.f32.mrb[48].mxu0  ;;  %v2864_v30 = vpop.f32.mrb[48].mxu1 }
 0x3a3   : > { %8798 = vst [vmem:[%s10045_s7 + $0x12f8] sm:$0xff] %v6491_v27  ;;  %vm5959_vm9 = vcmp.ge.f32.partialorder %v2511_v28, 0.0  ;;  %v6236_v29 = vmul.f32 %v11732_v47, %v2511_v28  ;;  %v2513_v31 = vpop.f32.mrb[49].mxu0  ;;  %vm5961_vm10 = vcmp.ge.f32.partialorder %v2864_v30, 0.0  ;;  %v6238_v32 = vmul.f32 %v11735_v36, %v2864_v30  ;;  %v2866_v34 = vpop.f32.mrb[49].mxu1 }
 0x3a4   : > { %vm5960_vm11 = vcmp.ge.f32.partialorder %v2513_v31, 0.0  ;;  %v6237_v33 = vmul.f32 %v11755_v12, %v2513_v31  ;;  %v2515_v45 = vpop.f32.mrb[50].mxu0  ;;  %vm5962_vm12 = vcmp.ge.f32.partialorder %v2866_v34, 0.0  ;;  %v6239_v38 = vmul.f32 %v11761_v26, %v2866_v34  ;;  %v2868_v48 = vpop.f32.mrb[50].mxu1 }
 0x3a5   : > { %v6492_v35 = vsel %vm5959_vm9, %v2511_v28, %v6236_v29  ;;  %vm5963_vm13 = vcmp.ge.f32.partialorder %v2515_v45, 0.0  ;;  %v2517_v41 = vpop.f32.mrb[51].mxu0  ;;  %v6494_v49 = vsel %vm5961_vm10, %v2864_v30, %v6238_v32  ;;  %v6240_v53 = vmul.f32 %v11732_v47, %v2515_v45  ;;  %v2870_v54 = vpop.f32.mrb[51].mxu1 }
 0x3a6   : > { %8799 = vst [vmem:[%s10045_s7 + $0x1300] sm:$0xff] %v6492_v35  ;;  %v6493_v50 = vsel %vm5960_vm11, %v2513_v31, %v6237_v33  ;;  %vm5965_vm14 = vcmp.ge.f32.partialorder %v2868_v48, 0.0  ;;  %8801 = vst [vmem:[%s10045_s7 + $0x1310] sm:$0xff] %v6494_v49  ;;  %v6495_v55 = vsel %vm5962_vm12, %v2866_v34, %v6239_v38  ;;  %v6242_v56 = vmul.f32 %v11735_v36, %v2868_v48 }
 0x3a7   : > { %8800 = vst [vmem:[%s10045_s7 + $0x1308] sm:$0xff] %v6493_v50  ;;  %vm5964_vm15 = vcmp.ge.f32.partialorder %v2517_v41, 0.0  ;;  %v6241_v58 = vmul.f32 %v11755_v12, %v2517_v41  ;;  %8390 = vmatmul.mubr.msk.bf16.gmra.mrb[156].mxu0 %vm848_vm0, %v9403_v59  ;;  %8802 = vst [vmem:[%s10045_s7 + $0x1318] sm:$0xff] %v6495_v55  ;;  %v6496_v51 = vsel %vm5963_vm13, %v2515_v45, %v6240_v53  ;;  %vm5966_vm1 = vcmp.ge.f32.partialorder %v2870_v54, 0.0  ;;  %v9405_v53 = vld [vmem:[%s13218_s1 + $0x48] sm:$0xff]  }
 0x3a8   : > { %v6243_v52 = vmul.f32 %v11761_v26, %v2870_v54  ;;  %8422 = vmatmul.mubr.msk.bf16.gmra.mrb[156].mxu1 %vm848_vm0, %v9403_v59  ;;  %3175 = vmatprep.mubr.bf16.mxu0 %v9578_v0  ;;  %8803 = vst [vmem:[%s10045_s7 + $0x1320] sm:$0xff] %v6496_v51  ;;  %v6498_v61 = vsel %vm5965_vm14, %v2868_v48, %v6242_v56 }
 0x3a9   : > { %v6497_v60 = vsel %vm5964_vm15, %v2517_v41, %v6241_v58  ;;  %3528 = vmatprep.mubr.bf16.mxu1 %v9578_v0  ;;  %8805 = vst [vmem:[%s10045_s7 + $0x1330] sm:$0xff] %v6498_v61 }
 0x3aa   : > { %8804 = vst [vmem:[%s10045_s7 + $0x1328] sm:$0xff] %v6497_v60  ;;  %v6499_v20 = vsel %vm5966_vm1, %v2870_v54, %v6243_v52  ;;  %v2521_v11 = vpop.f32.mrb[52].mxu0  ;;  %v2874_v46 = vpop.f32.mrb[52].mxu1 }
 0x3ab   : > { %8806 = vst [vmem:[%s10045_s7 + $0x1338] sm:$0xff] %v6499_v20  ;;  %vm5967_vm2 = vcmp.ge.f32.partialorder %v2521_v11, 0.0  ;;  %v6244_v57 = vmul.f32 %v11732_v47, %v2521_v11  ;;  %v2523_v39 = vpop.f32.mrb[53].mxu0  ;;  %vm5969_vm3 = vcmp.ge.f32.partialorder %v2874_v46, 0.0  ;;  %v6246_v21 = vmul.f32 %v11735_v36, %v2874_v46  ;;  %v2876_v23 = vpop.f32.mrb[53].mxu1 }
 0x3ac   : > { %vm5968_vm4 = vcmp.ge.f32.partialorder %v2523_v39, 0.0  ;;  %v6245_v37 = vmul.f32 %v11755_v12, %v2523_v39  ;;  %v2525_v62 = vpop.f32.mrb[54].mxu0  ;;  %vm5970_vm5 = vcmp.ge.f32.partialorder %v2876_v23, 0.0  ;;  %v6247_v25 = vmul.f32 %v11761_v26, %v2876_v23  ;;  %v2878_v63 = vpop.f32.mrb[54].mxu1 }
 0x3ad   : > { %v6500_v22 = vsel %vm5967_vm2, %v2521_v11, %v6244_v57  ;;  %vm5971_vm6 = vcmp.ge.f32.partialorder %v2525_v62, 0.0  ;;  %v2527_v1 = vpop.f32.mrb[55].mxu0  ;;  %v6502_v2 = vsel %vm5969_vm3, %v2874_v46, %v6246_v21  ;;  %v6248_v4 = vmul.f32 %v11732_v47, %v2525_v62  ;;  %v2880_v5 = vpop.f32.mrb[55].mxu1 }
 0x3ae   : > { %8807 = vst [vmem:[%s10045_s7 + $0x1340] sm:$0xff] %v6500_v22  ;;  %v6501_v3 = vsel %vm5968_vm4, %v2523_v39, %v6245_v37  ;;  %vm5973_vm7 = vcmp.ge.f32.partialorder %v2878_v63, 0.0  ;;  %8809 = vst [vmem:[%s10045_s7 + $0x1350] sm:$0xff] %v6502_v2  ;;  %v6503_v6 = vsel %vm5970_vm5, %v2876_v23, %v6247_v25  ;;  %v6250_v7 = vmul.f32 %v11735_v36, %v2878_v63 }
 0x3af   : > { %8808 = vst [vmem:[%s10045_s7 + $0x1348] sm:$0xff] %v6501_v3  ;;  %vm5972_vm8 = vcmp.ge.f32.partialorder %v2527_v1, 0.0  ;;  %v6249_v8 = vmul.f32 %v11755_v12, %v2527_v1  ;;  %8391 = vmatmul.mubr.msk.bf16.gmra.mrb[160].mxu0 %vm848_vm0, %v9404_v9  ;;  %8810 = vst [vmem:[%s10045_s7 + $0x1358] sm:$0xff] %v6503_v6  ;;  %v6504_v10 = vsel %vm5971_vm6, %v2525_v62, %v6248_v4  ;;  %vm5974_vm9 = vcmp.ge.f32.partialorder %v2880_v5, 0.0  ;;  %v9406_v4 = vld [vmem:[%s13218_s1 + $0x50] sm:$0xff]  }
 0x3b0   : > { %v6251_v13 = vmul.f32 %v11761_v26, %v2880_v5  ;;  %8423 = vmatmul.mubr.msk.bf16.gmra.mrb[160].mxu1 %vm848_vm0, %v9404_v9  ;;  %3185 = vmatprep.mubr.bf16.mxu0 %v9578_v0  ;;  %8811 = vst [vmem:[%s10045_s7 + $0x1360] sm:$0xff] %v6504_v10  ;;  %v6506_v14 = vsel %vm5973_vm7, %v2878_v63, %v6250_v7 }
 0x3b1   : > { %v6505_v15 = vsel %vm5972_vm8, %v2527_v1, %v6249_v8  ;;  %3538 = vmatprep.mubr.bf16.mxu1 %v9578_v0  ;;  %8813 = vst [vmem:[%s10045_s7 + $0x1370] sm:$0xff] %v6506_v14 }
 0x3b2   : > { %8812 = vst [vmem:[%s10045_s7 + $0x1368] sm:$0xff] %v6505_v15  ;;  %v6507_v16 = vsel %vm5974_vm9, %v2880_v5, %v6251_v13  ;;  %v2531_v17 = vpop.f32.mrb[56].mxu0  ;;  %v2884_v19 = vpop.f32.mrb[56].mxu1 }
 0x3b3   : > { %8814 = vst [vmem:[%s10045_s7 + $0x1378] sm:$0xff] %v6507_v16  ;;  %vm5975_vm10 = vcmp.ge.f32.partialorder %v2531_v17, 0.0  ;;  %v6252_v18 = vmul.f32 %v11732_v47, %v2531_v17  ;;  %v2533_v24 = vpop.f32.mrb[57].mxu0  ;;  %vm5977_vm11 = vcmp.ge.f32.partialorder %v2884_v19, 0.0  ;;  %v6254_v27 = vmul.f32 %v11735_v36, %v2884_v19  ;;  %v2886_v29 = vpop.f32.mrb[57].mxu1 }
 0x3b4   : > { %vm5976_vm12 = vcmp.ge.f32.partialorder %v2533_v24, 0.0  ;;  %v6253_v28 = vmul.f32 %v11755_v12, %v2533_v24  ;;  %v2535_v30 = vpop.f32.mrb[58].mxu0  ;;  %vm5978_vm13 = vcmp.ge.f32.partialorder %v2886_v29, 0.0  ;;  %v6255_v32 = vmul.f32 %v11761_v26, %v2886_v29  ;;  %v2888_v33 = vpop.f32.mrb[58].mxu1 }
 0x3b5   : > { %v6508_v31 = vsel %vm5975_vm10, %v2531_v17, %v6252_v18  ;;  %vm5979_vm14 = vcmp.ge.f32.partialorder %v2535_v30, 0.0  ;;  %v2537_v34 = vpop.f32.mrb[59].mxu0  ;;  %v6510_v45 = vsel %vm5977_vm11, %v2884_v19, %v6254_v27  ;;  %v6256_v38 = vmul.f32 %v11732_v47, %v2535_v30  ;;  %v2890_v48 = vpop.f32.mrb[59].mxu1 }
 0x3b6   : > { %8815 = vst [vmem:[%s10045_s7 + $0x1380] sm:$0xff] %v6508_v31  ;;  %v6509_v35 = vsel %vm5976_vm12, %v2533_v24, %v6253_v28  ;;  %vm5981_vm15 = vcmp.ge.f32.partialorder %v2888_v33, 0.0  ;;  %8817 = vst [vmem:[%s10045_s7 + $0x1390] sm:$0xff] %v6510_v45  ;;  %v6511_v41 = vsel %vm5978_vm13, %v2886_v29, %v6255_v32  ;;  %v6258_v49 = vmul.f32 %v11735_v36, %v2888_v33 }
 0x3b7   : > { %8816 = vst [vmem:[%s10045_s7 + $0x1388] sm:$0xff] %v6509_v35  ;;  %vm5980_vm1 = vcmp.ge.f32.partialorder %v2537_v34, 0.0  ;;  %v6257_v50 = vmul.f32 %v11755_v12, %v2537_v34  ;;  %8392 = vmatmul.mubr.msk.bf16.gmra.mrb[164].mxu0 %vm848_vm0, %v9405_v53  ;;  %8818 = vst [vmem:[%s10045_s7 + $0x1398] sm:$0xff] %v6511_v41  ;;  %v6512_v54 = vsel %vm5979_vm14, %v2535_v30, %v6256_v38  ;;  %vm5982_vm2 = vcmp.ge.f32.partialorder %v2890_v48, 0.0  ;;  %v9407_v38 = vld [vmem:[%s13218_s1 + $0x58] sm:$0xff]  }
 0x3b8   : > { %v6259_v55 = vmul.f32 %v11761_v26, %v2890_v48  ;;  %8424 = vmatmul.mubr.msk.bf16.gmra.mrb[164].mxu1 %vm848_vm0, %v9405_v53  ;;  %3195 = vmatprep.mubr.bf16.mxu0 %v9578_v0  ;;  %8819 = vst [vmem:[%s10045_s7 + $0x13a0] sm:$0xff] %v6512_v54  ;;  %v6514_v56 = vsel %vm5981_vm15, %v2888_v33, %v6258_v49 }
 0x3b9   : > { %v6513_v58 = vsel %vm5980_vm1, %v2537_v34, %v6257_v50  ;;  %3548 = vmatprep.mubr.bf16.mxu1 %v9578_v0  ;;  %8821 = vst [vmem:[%s10045_s7 + $0x13b0] sm:$0xff] %v6514_v56 }
 0x3ba   : > { %8820 = vst [vmem:[%s10045_s7 + $0x13a8] sm:$0xff] %v6513_v58  ;;  %v6515_v59 = vsel %vm5982_vm2, %v2890_v48, %v6259_v55  ;;  %v2541_v51 = vpop.f32.mrb[60].mxu0  ;;  %v2894_v61 = vpop.f32.mrb[60].mxu1 }
 0x3bb   : > { %8822 = vst [vmem:[%s10045_s7 + $0x13b8] sm:$0xff] %v6515_v59  ;;  %vm5983_vm3 = vcmp.ge.f32.partialorder %v2541_v51, 0.0  ;;  %v6260_v52 = vmul.f32 %v11732_v47, %v2541_v51  ;;  %v2543_v60 = vpop.f32.mrb[61].mxu0  ;;  %vm5985_vm4 = vcmp.ge.f32.partialorder %v2894_v61, 0.0  ;;  %v6262_v20 = vmul.f32 %v11735_v36, %v2894_v61  ;;  %v2896_v57 = vpop.f32.mrb[61].mxu1 }
 0x3bc   : > { %vm5984_vm5 = vcmp.ge.f32.partialorder %v2543_v60, 0.0  ;;  %v6261_v11 = vmul.f32 %v11755_v12, %v2543_v60  ;;  %v2545_v46 = vpop.f32.mrb[62].mxu0  ;;  %vm5986_vm6 = vcmp.ge.f32.partialorder %v2896_v57, 0.0  ;;  %v6263_v21 = vmul.f32 %v11761_v26, %v2896_v57  ;;  %v2898_v37 = vpop.f32.mrb[62].mxu1 }
 0x3bd   : > { %v6516_v39 = vsel %vm5983_vm3, %v2541_v51, %v6260_v52  ;;  %vm5987_vm7 = vcmp.ge.f32.partialorder %v2545_v46, 0.0  ;;  %v2547_v23 = vpop.f32.mrb[63].mxu0  ;;  %v6518_v62 = vsel %vm5985_vm4, %v2894_v61, %v6262_v20  ;;  %v6264_v25 = vmul.f32 %v11732_v47, %v2545_v46  ;;  %v2900_v63 = vpop.f32.mrb[63].mxu1 }
 0x3be   : > { %8823 = vst [vmem:[%s10045_s7 + $0x13c0] sm:$0xff] %v6516_v39  ;;  %v6517_v22 = vsel %vm5984_vm5, %v2543_v60, %v6261_v11  ;;  %vm5989_vm8 = vcmp.ge.f32.partialorder %v2898_v37, 0.0  ;;  %8825 = vst [vmem:[%s10045_s7 + $0x13d0] sm:$0xff] %v6518_v62  ;;  %v6519_v1 = vsel %vm5986_vm6, %v2896_v57, %v6263_v21  ;;  %v6266_v2 = vmul.f32 %v11735_v36, %v2898_v37 }
 0x3bf   : > { %8824 = vst [vmem:[%s10045_s7 + $0x13c8] sm:$0xff] %v6517_v22  ;;  %vm5988_vm9 = vcmp.ge.f32.partialorder %v2547_v23, 0.0  ;;  %v6265_v3 = vmul.f32 %v11755_v12, %v2547_v23  ;;  %8393 = vmatmul.mubr.msk.bf16.gmra.mrb[168].mxu0 %vm848_vm0, %v9406_v4  ;;  %8826 = vst [vmem:[%s10045_s7 + $0x13d8] sm:$0xff] %v6519_v1  ;;  %v6520_v5 = vsel %vm5987_vm7, %v2545_v46, %v6264_v25  ;;  %vm5990_vm10 = vcmp.ge.f32.partialorder %v2900_v63, 0.0  ;;  %v9408_v25 = vld [vmem:[%s13218_s1 + $0x60] sm:$0xff]  }
 0x3c0   : > { %v6267_v6 = vmul.f32 %v11761_v26, %v2900_v63  ;;  %8425 = vmatmul.mubr.msk.bf16.gmra.mrb[168].mxu1 %vm848_vm0, %v9406_v4  ;;  %3205 = vmatprep.mubr.bf16.mxu0 %v9578_v0  ;;  %8827 = vst [vmem:[%s10045_s7 + $0x13e0] sm:$0xff] %v6520_v5  ;;  %v6522_v7 = vsel %vm5989_vm8, %v2898_v37, %v6266_v2 }
 0x3c1   : > { %v6521_v8 = vsel %vm5988_vm9, %v2547_v23, %v6265_v3  ;;  %3558 = vmatprep.mubr.bf16.mxu1 %v9578_v0  ;;  %8829 = vst [vmem:[%s10045_s7 + $0x13f0] sm:$0xff] %v6522_v7 }
 0x3c2   : > { %8828 = vst [vmem:[%s10045_s7 + $0x13e8] sm:$0xff] %v6521_v8  ;;  %v6523_v9 = vsel %vm5990_vm10, %v2900_v63, %v6267_v6  ;;  %v2551_v10 = vpop.f32.mrb[64].mxu0  ;;  %v2904_v14 = vpop.f32.mrb[64].mxu1 }
 0x3c3   : > { %8830 = vst [vmem:[%s10045_s7 + $0x13f8] sm:$0xff] %v6523_v9  ;;  %vm5991_vm11 = vcmp.ge.f32.partialorder %v2551_v10, 0.0  ;;  %v6268_v13 = vmul.f32 %v11732_v47, %v2551_v10  ;;  %v2553_v15 = vpop.f32.mrb[65].mxu0  ;;  %vm5993_vm12 = vcmp.ge.f32.partialorder %v2904_v14, 0.0  ;;  %v6270_v16 = vmul.f32 %v11735_v36, %v2904_v14  ;;  %v2906_v18 = vpop.f32.mrb[65].mxu1 }
 0x3c4   : > { %vm5992_vm13 = vcmp.ge.f32.partialorder %v2553_v15, 0.0  ;;  %v6269_v17 = vmul.f32 %v11755_v12, %v2553_v15  ;;  %v2555_v19 = vpop.f32.mrb[66].mxu0  ;;  %vm5994_vm14 = vcmp.ge.f32.partialorder %v2906_v18, 0.0  ;;  %v6271_v27 = vmul.f32 %v11761_v26, %v2906_v18  ;;  %v2908_v28 = vpop.f32.mrb[66].mxu1 }
 0x3c5   : > { %v6524_v24 = vsel %vm5991_vm11, %v2551_v10, %v6268_v13  ;;  %vm5995_vm15 = vcmp.ge.f32.partialorder %v2555_v19, 0.0  ;;  %v2557_v29 = vpop.f32.mrb[67].mxu0  ;;  %v6526_v30 = vsel %vm5993_vm12, %v2904_v14, %v6270_v16  ;;  %v6272_v32 = vmul.f32 %v11732_v47, %v2555_v19  ;;  %v2910_v33 = vpop.f32.mrb[67].mxu1 }
 0x3c6   : > { %8831 = vst [vmem:[%s10045_s7 + $0x1400] sm:$0xff] %v6524_v24  ;;  %v6525_v31 = vsel %vm5992_vm13, %v2553_v15, %v6269_v17  ;;  %vm5997_vm1 = vcmp.ge.f32.partialorder %v2908_v28, 0.0  ;;  %8833 = vst [vmem:[%s10045_s7 + $0x1410] sm:$0xff] %v6526_v30  ;;  %v6527_v34 = vsel %vm5994_vm14, %v2906_v18, %v6271_v27  ;;  %v6274_v45 = vmul.f32 %v11735_v36, %v2908_v28 }
 0x3c7   : > { %8832 = vst [vmem:[%s10045_s7 + $0x1408] sm:$0xff] %v6525_v31  ;;  %vm5996_vm2 = vcmp.ge.f32.partialorder %v2557_v29, 0.0  ;;  %v6273_v35 = vmul.f32 %v11755_v12, %v2557_v29  ;;  %8394 = vmatmul.mubr.msk.bf16.gmra.mrb[172].mxu0 %vm848_vm0, %v9407_v38  ;;  %8834 = vst [vmem:[%s10045_s7 + $0x1418] sm:$0xff] %v6527_v34  ;;  %v6528_v48 = vsel %vm5995_vm15, %v2555_v19, %v6272_v32  ;;  %vm5998_vm3 = vcmp.ge.f32.partialorder %v2910_v33, 0.0  ;;  %v9409_v32 = vld [vmem:[%s13218_s1 + $0x68] sm:$0xff]  }
 0x3c8   : > { %v6275_v41 = vmul.f32 %v11761_v26, %v2910_v33  ;;  %8426 = vmatmul.mubr.msk.bf16.gmra.mrb[172].mxu1 %vm848_vm0, %v9407_v38  ;;  %3215 = vmatprep.mubr.bf16.mxu0 %v9578_v0  ;;  %8835 = vst [vmem:[%s10045_s7 + $0x1420] sm:$0xff] %v6528_v48  ;;  %v6530_v49 = vsel %vm5997_vm1, %v2908_v28, %v6274_v45 }
 0x3c9   : > { %v6529_v50 = vsel %vm5996_vm2, %v2557_v29, %v6273_v35  ;;  %3568 = vmatprep.mubr.bf16.mxu1 %v9578_v0  ;;  %8837 = vst [vmem:[%s10045_s7 + $0x1430] sm:$0xff] %v6530_v49 }
 0x3ca   : > { %8836 = vst [vmem:[%s10045_s7 + $0x1428] sm:$0xff] %v6529_v50  ;;  %v6531_v53 = vsel %vm5998_vm3, %v2910_v33, %v6275_v41  ;;  %v2561_v54 = vpop.f32.mrb[68].mxu0 }
 0x3cb   : > { %8838 = vst [vmem:[%s10045_s7 + $0x1438] sm:$0xff] %v6531_v53  ;;  %vm5999_vm4 = vcmp.ge.f32.partialorder %v2561_v54, 0.0  ;;  %v6276_v55 = vmul.f32 %v11732_v47, %v2561_v54  ;;  %v2914_v56 = vpop.f32.mrb[68].mxu1  ;;  %v2563_v58 = vpop.f32.mrb[69].mxu0 }
 0x3cc   : > { %vm6001_vm5 = vcmp.ge.f32.partialorder %v2914_v56, 0.0  ;;  %v6278_v59 = vmul.f32 %v11735_v36, %v2914_v56  ;;  %vm6000_vm6 = vcmp.ge.f32.partialorder %v2563_v58, 0.0  ;;  %v6277_v51 = vmul.f32 %v11755_v12, %v2563_v58  ;;  %v2916_v52 = vpop.f32.mrb[69].mxu1  ;;  %v2565_v61 = vpop.f32.mrb[70].mxu0 }
 0x3cd   : > { %v6532_v60 = vsel %vm5999_vm4, %v2561_v54, %v6276_v55  ;;  %vm6002_vm7 = vcmp.ge.f32.partialorder %v2916_v52, 0.0  ;;  %v6279_v20 = vmul.f32 %v11761_v26, %v2916_v52  ;;  %vm6003_vm8 = vcmp.ge.f32.partialorder %v2565_v61, 0.0  ;;  %v2918_v11 = vpop.f32.mrb[70].mxu1  ;;  %v2567_v57 = vpop.f32.mrb[71].mxu0 }
 0x3ce   : > { %8839 = vst [vmem:[%s10045_s7 + $0x1440] sm:$0xff] %v6532_v60  ;;  %v6534_v46 = vsel %vm6001_vm5, %v2914_v56, %v6278_v59  ;;  %v6533_v39 = vsel %vm6000_vm6, %v2563_v58, %v6277_v51  ;;  %v6280_v21 = vmul.f32 %v11732_v47, %v2565_v61  ;;  %vm6005_vm9 = vcmp.ge.f32.partialorder %v2918_v11, 0.0  ;;  %v2920_v37 = vpop.f32.mrb[71].mxu1 }
 0x3cf   : > { %8841 = vst [vmem:[%s10045_s7 + $0x1450] sm:$0xff] %v6534_v46  ;;  %8840 = vst [vmem:[%s10045_s7 + $0x1448] sm:$0xff] %v6533_v39  ;;  %v6535_v23 = vsel %vm6002_vm7, %v2916_v52, %v6279_v20  ;;  %v6282_v62 = vmul.f32 %v11735_v36, %v2918_v11  ;;  %vm6004_vm10 = vcmp.ge.f32.partialorder %v2567_v57, 0.0  ;;  %v6281_v22 = vmul.f32 %v11755_v12, %v2567_v57 }
 0x3d0   : > { %8395 = vmatmul.mubr.msk.bf16.gmra.mrb[176].mxu0 %vm848_vm0, %v9408_v25  ;;  %8842 = vst [vmem:[%s10045_s7 + $0x1458] sm:$0xff] %v6535_v23  ;;  %v6536_v63 = vsel %vm6003_vm8, %v2565_v61, %v6280_v21  ;;  %vm6006_vm11 = vcmp.ge.f32.partialorder %v2920_v37, 0.0  ;;  %v6283_v1 = vmul.f32 %v11761_v26, %v2920_v37  ;;  %8427 = vmatmul.mubr.msk.bf16.gmra.mrb[176].mxu1 %vm848_vm0, %v9408_v25  ;;  %v9410_v21 = vld [vmem:[%s13218_s1 + $0x70] sm:$0xff]  }
 0x3d1   : > { %3225 = vmatprep.mubr.bf16.mxu0 %v9578_v0  ;;  %8843 = vst [vmem:[%s10045_s7 + $0x1460] sm:$0xff] %v6536_v63  ;;  %v6538_v2 = vsel %vm6005_vm9, %v2918_v11, %v6282_v62  ;;  %v6537_v3 = vsel %vm6004_vm10, %v2567_v57, %v6281_v22  ;;  %3578 = vmatprep.mubr.bf16.mxu1 %v9578_v0 }
 0x3d2   : > { %8845 = vst [vmem:[%s10045_s7 + $0x1470] sm:$0xff] %v6538_v2  ;;  %8844 = vst [vmem:[%s10045_s7 + $0x1468] sm:$0xff] %v6537_v3  ;;  %v6539_v4 = vsel %vm6006_vm11, %v2920_v37, %v6283_v1  ;;  %v2571_v5 = vpop.f32.mrb[72].mxu0 }
 0x3d3   : > { %8846 = vst [vmem:[%s10045_s7 + $0x1478] sm:$0xff] %v6539_v4  ;;  %vm6007_vm12 = vcmp.ge.f32.partialorder %v2571_v5, 0.0  ;;  %v6284_v6 = vmul.f32 %v11732_v47, %v2571_v5  ;;  %v2924_v7 = vpop.f32.mrb[72].mxu1  ;;  %v2573_v8 = vpop.f32.mrb[73].mxu0 }
 0x3d4   : > { %vm6009_vm13 = vcmp.ge.f32.partialorder %v2924_v7, 0.0  ;;  %v6286_v9 = vmul.f32 %v11735_v36, %v2924_v7  ;;  %vm6008_vm14 = vcmp.ge.f32.partialorder %v2573_v8, 0.0  ;;  %v6285_v10 = vmul.f32 %v11755_v12, %v2573_v8  ;;  %v2926_v13 = vpop.f32.mrb[73].mxu1  ;;  %v2575_v14 = vpop.f32.mrb[74].mxu0 }
 0x3d5   : > { %v6540_v15 = vsel %vm6007_vm12, %v2571_v5, %v6284_v6  ;;  %vm6010_vm15 = vcmp.ge.f32.partialorder %v2926_v13, 0.0  ;;  %v6287_v16 = vmul.f32 %v11761_v26, %v2926_v13  ;;  %vm6011_vm1 = vcmp.ge.f32.partialorder %v2575_v14, 0.0  ;;  %v2928_v17 = vpop.f32.mrb[74].mxu1  ;;  %v2577_v18 = vpop.f32.mrb[75].mxu0 }
 0x3d6   : > { %8847 = vst [vmem:[%s10045_s7 + $0x1480] sm:$0xff] %v6540_v15  ;;  %v6542_v19 = vsel %vm6009_vm13, %v2924_v7, %v6286_v9  ;;  %v6541_v24 = vsel %vm6008_vm14, %v2573_v8, %v6285_v10  ;;  %v6288_v27 = vmul.f32 %v11732_v47, %v2575_v14  ;;  %vm6013_vm2 = vcmp.ge.f32.partialorder %v2928_v17, 0.0  ;;  %v2930_v28 = vpop.f32.mrb[75].mxu1 }
 0x3d7   : > { %8849 = vst [vmem:[%s10045_s7 + $0x1490] sm:$0xff] %v6542_v19  ;;  %8848 = vst [vmem:[%s10045_s7 + $0x1488] sm:$0xff] %v6541_v24  ;;  %v6543_v29 = vsel %vm6010_vm15, %v2926_v13, %v6287_v16  ;;  %v6290_v30 = vmul.f32 %v11735_v36, %v2928_v17  ;;  %vm6012_vm3 = vcmp.ge.f32.partialorder %v2577_v18, 0.0  ;;  %v6289_v31 = vmul.f32 %v11755_v12, %v2577_v18 }
 0x3d8   : > { %8396 = vmatmul.mubr.msk.bf16.gmra.mrb[180].mxu0 %vm848_vm0, %v9409_v32  ;;  %8850 = vst [vmem:[%s10045_s7 + $0x1498] sm:$0xff] %v6543_v29  ;;  %v6544_v33 = vsel %vm6011_vm1, %v2575_v14, %v6288_v27  ;;  %vm6014_vm4 = vcmp.ge.f32.partialorder %v2930_v28, 0.0  ;;  %v6291_v34 = vmul.f32 %v11761_v26, %v2930_v28  ;;  %8428 = vmatmul.mubr.msk.bf16.gmra.mrb[180].mxu1 %vm848_vm0, %v9409_v32  ;;  %v9411_v27 = vld [vmem:[%s13218_s1 + $0x78] sm:$0xff]  }
 0x3d9   : > { %3235 = vmatprep.mubr.bf16.mxu0 %v9578_v0  ;;  %8851 = vst [vmem:[%s10045_s7 + $0x14a0] sm:$0xff] %v6544_v33  ;;  %v6546_v45 = vsel %vm6013_vm2, %v2928_v17, %v6290_v30  ;;  %v6545_v35 = vsel %vm6012_vm3, %v2577_v18, %v6289_v31  ;;  %3588 = vmatprep.mubr.bf16.mxu1 %v9578_v0 }
 0x3da   : > { %8853 = vst [vmem:[%s10045_s7 + $0x14b0] sm:$0xff] %v6546_v45  ;;  %8852 = vst [vmem:[%s10045_s7 + $0x14a8] sm:$0xff] %v6545_v35  ;;  %v6547_v38 = vsel %vm6014_vm4, %v2930_v28, %v6291_v34  ;;  %v2581_v48 = vpop.f32.mrb[76].mxu0 }
 0x3db   : > { %8854 = vst [vmem:[%s10045_s7 + $0x14b8] sm:$0xff] %v6547_v38  ;;  %vm6015_vm5 = vcmp.ge.f32.partialorder %v2581_v48, 0.0  ;;  %v6292_v41 = vmul.f32 %v11732_v47, %v2581_v48  ;;  %v2934_v49 = vpop.f32.mrb[76].mxu1  ;;  %v2583_v50 = vpop.f32.mrb[77].mxu0 }
 0x3dc   : > { %vm6017_vm6 = vcmp.ge.f32.partialorder %v2934_v49, 0.0  ;;  %v6294_v53 = vmul.f32 %v11735_v36, %v2934_v49  ;;  %vm6016_vm7 = vcmp.ge.f32.partialorder %v2583_v50, 0.0  ;;  %v6293_v54 = vmul.f32 %v11755_v12, %v2583_v50  ;;  %v2936_v55 = vpop.f32.mrb[77].mxu1  ;;  %v2585_v56 = vpop.f32.mrb[78].mxu0 }
 0x3dd   : > { %v6548_v58 = vsel %vm6015_vm5, %v2581_v48, %v6292_v41  ;;  %vm6018_vm8 = vcmp.ge.f32.partialorder %v2936_v55, 0.0  ;;  %v6295_v59 = vmul.f32 %v11761_v26, %v2936_v55  ;;  %vm6019_vm9 = vcmp.ge.f32.partialorder %v2585_v56, 0.0  ;;  %v2938_v51 = vpop.f32.mrb[78].mxu1  ;;  %v2587_v52 = vpop.f32.mrb[79].mxu0 }
 0x3de   : > { %8855 = vst [vmem:[%s10045_s7 + $0x14c0] sm:$0xff] %v6548_v58  ;;  %v6550_v61 = vsel %vm6017_vm6, %v2934_v49, %v6294_v53  ;;  %v6549_v60 = vsel %vm6016_vm7, %v2583_v50, %v6293_v54  ;;  %v6296_v20 = vmul.f32 %v11732_v47, %v2585_v56  ;;  %vm6021_vm10 = vcmp.ge.f32.partialorder %v2938_v51, 0.0  ;;  %v2940_v11 = vpop.f32.mrb[79].mxu1 }
 0x3df   : > { %8857 = vst [vmem:[%s10045_s7 + $0x14d0] sm:$0xff] %v6550_v61  ;;  %8856 = vst [vmem:[%s10045_s7 + $0x14c8] sm:$0xff] %v6549_v60  ;;  %v6551_v57 = vsel %vm6018_vm8, %v2936_v55, %v6295_v59  ;;  %v6298_v46 = vmul.f32 %v11735_v36, %v2938_v51  ;;  %vm6020_vm11 = vcmp.ge.f32.partialorder %v2587_v52, 0.0  ;;  %v6297_v39 = vmul.f32 %v11755_v12, %v2587_v52 }
 0x3e0   : > { %8397 = vmatmul.mubr.msk.bf16.gmra.mrb[184].mxu0 %vm848_vm0, %v9410_v21  ;;  %8858 = vst [vmem:[%s10045_s7 + $0x14d8] sm:$0xff] %v6551_v57  ;;  %v6552_v37 = vsel %vm6019_vm9, %v2585_v56, %v6296_v20  ;;  %vm6022_vm12 = vcmp.ge.f32.partialorder %v2940_v11, 0.0  ;;  %v6299_v23 = vmul.f32 %v11761_v26, %v2940_v11  ;;  %8429 = vmatmul.mubr.msk.bf16.gmra.mrb[184].mxu1 %vm848_vm0, %v9410_v21  ;;  %v9412_v20 = vld [vmem:[%s13218_s1 + $0x80] sm:$0xff]  }
 0x3e1   : > { %3245 = vmatprep.mubr.bf16.mxu0 %v9578_v0  ;;  %8859 = vst [vmem:[%s10045_s7 + $0x14e0] sm:$0xff] %v6552_v37  ;;  %v6554_v62 = vsel %vm6021_vm10, %v2938_v51, %v6298_v46  ;;  %v6553_v22 = vsel %vm6020_vm11, %v2587_v52, %v6297_v39  ;;  %3598 = vmatprep.mubr.bf16.mxu1 %v9578_v0 }
 0x3e2   : > { %8861 = vst [vmem:[%s10045_s7 + $0x14f0] sm:$0xff] %v6554_v62  ;;  %8860 = vst [vmem:[%s10045_s7 + $0x14e8] sm:$0xff] %v6553_v22  ;;  %v6555_v25 = vsel %vm6022_vm12, %v2940_v11, %v6299_v23  ;;  %v2591_v63 = vpop.f32.mrb[80].mxu0 }
 0x3e3   : > { %8862 = vst [vmem:[%s10045_s7 + $0x14f8] sm:$0xff] %v6555_v25  ;;  %vm6023_vm13 = vcmp.ge.f32.partialorder %v2591_v63, 0.0  ;;  %v6300_v1 = vmul.f32 %v11732_v47, %v2591_v63  ;;  %v2944_v2 = vpop.f32.mrb[80].mxu1  ;;  %v2593_v3 = vpop.f32.mrb[81].mxu0 }
 0x3e4   : > { %vm6025_vm14 = vcmp.ge.f32.partialorder %v2944_v2, 0.0  ;;  %v6302_v4 = vmul.f32 %v11735_v36, %v2944_v2  ;;  %vm6024_vm15 = vcmp.ge.f32.partialorder %v2593_v3, 0.0  ;;  %v6301_v5 = vmul.f32 %v11755_v12, %v2593_v3  ;;  %v2946_v6 = vpop.f32.mrb[81].mxu1  ;;  %v2595_v7 = vpop.f32.mrb[82].mxu0 }
 0x3e5   : > { %v6556_v8 = vsel %vm6023_vm13, %v2591_v63, %v6300_v1  ;;  %vm6026_vm1 = vcmp.ge.f32.partialorder %v2946_v6, 0.0  ;;  %v6303_v9 = vmul.f32 %v11761_v26, %v2946_v6  ;;  %vm6027_vm2 = vcmp.ge.f32.partialorder %v2595_v7, 0.0  ;;  %v2948_v10 = vpop.f32.mrb[82].mxu1  ;;  %v2597_v13 = vpop.f32.mrb[83].mxu0 }
 0x3e6   : > { %8863 = vst [vmem:[%s10045_s7 + $0x1500] sm:$0xff] %v6556_v8  ;;  %v6558_v14 = vsel %vm6025_vm14, %v2944_v2, %v6302_v4  ;;  %v6557_v15 = vsel %vm6024_vm15, %v2593_v3, %v6301_v5  ;;  %v6304_v16 = vmul.f32 %v11732_v47, %v2595_v7  ;;  %vm6029_vm3 = vcmp.ge.f32.partialorder %v2948_v10, 0.0  ;;  %v2950_v17 = vpop.f32.mrb[83].mxu1 }
 0x3e7   : > { %8865 = vst [vmem:[%s10045_s7 + $0x1510] sm:$0xff] %v6558_v14  ;;  %8864 = vst [vmem:[%s10045_s7 + $0x1508] sm:$0xff] %v6557_v15  ;;  %v6559_v18 = vsel %vm6026_vm1, %v2946_v6, %v6303_v9  ;;  %v6306_v19 = vmul.f32 %v11735_v36, %v2948_v10  ;;  %vm6028_vm4 = vcmp.ge.f32.partialorder %v2597_v13, 0.0  ;;  %v6305_v24 = vmul.f32 %v11755_v12, %v2597_v13 }
 0x3e8   : > { %8398 = vmatmul.mubr.msk.bf16.gmra.mrb[188].mxu0 %vm848_vm0, %v9411_v27  ;;  %8866 = vst [vmem:[%s10045_s7 + $0x1518] sm:$0xff] %v6559_v18  ;;  %v6560_v28 = vsel %vm6027_vm2, %v2595_v7, %v6304_v16  ;;  %vm6030_vm5 = vcmp.ge.f32.partialorder %v2950_v17, 0.0  ;;  %v6307_v29 = vmul.f32 %v11761_v26, %v2950_v17  ;;  %8430 = vmatmul.mubr.msk.bf16.gmra.mrb[188].mxu1 %vm848_vm0, %v9411_v27  ;;  %v9413_v16 = vld [vmem:[%s13218_s1 + $0x88] sm:$0xff]  }
 0x3e9   : > { %3255 = vmatprep.mubr.bf16.mxu0 %v9578_v0  ;;  %8867 = vst [vmem:[%s10045_s7 + $0x1520] sm:$0xff] %v6560_v28  ;;  %v6562_v30 = vsel %vm6029_vm3, %v2948_v10, %v6306_v19  ;;  %v6561_v31 = vsel %vm6028_vm4, %v2597_v13, %v6305_v24  ;;  %3608 = vmatprep.mubr.bf16.mxu1 %v9578_v0 }
 0x3ea   : > { %8869 = vst [vmem:[%s10045_s7 + $0x1530] sm:$0xff] %v6562_v30  ;;  %8868 = vst [vmem:[%s10045_s7 + $0x1528] sm:$0xff] %v6561_v31  ;;  %v6563_v32 = vsel %vm6030_vm5, %v2950_v17, %v6307_v29  ;;  %v2601_v33 = vpop.f32.mrb[84].mxu0 }
 0x3eb   : > { %8870 = vst [vmem:[%s10045_s7 + $0x1538] sm:$0xff] %v6563_v32  ;;  %vm6031_vm6 = vcmp.ge.f32.partialorder %v2601_v33, 0.0  ;;  %v6308_v34 = vmul.f32 %v11732_v47, %v2601_v33  ;;  %v2954_v45 = vpop.f32.mrb[84].mxu1  ;;  %v2603_v35 = vpop.f32.mrb[85].mxu0 }
 0x3ec   : > { %vm6033_vm7 = vcmp.ge.f32.partialorder %v2954_v45, 0.0  ;;  %v6310_v38 = vmul.f32 %v11735_v36, %v2954_v45  ;;  %vm6032_vm8 = vcmp.ge.f32.partialorder %v2603_v35, 0.0  ;;  %v6309_v48 = vmul.f32 %v11755_v12, %v2603_v35  ;;  %v2956_v41 = vpop.f32.mrb[85].mxu1  ;;  %v2605_v49 = vpop.f32.mrb[86].mxu0 }
 0x3ed   : > { %v6564_v50 = vsel %vm6031_vm6, %v2601_v33, %v6308_v34  ;;  %vm6034_vm9 = vcmp.ge.f32.partialorder %v2956_v41, 0.0  ;;  %v6311_v53 = vmul.f32 %v11761_v26, %v2956_v41  ;;  %vm6035_vm10 = vcmp.ge.f32.partialorder %v2605_v49, 0.0  ;;  %v2958_v54 = vpop.f32.mrb[86].mxu1  ;;  %v2607_v55 = vpop.f32.mrb[87].mxu0 }
 0x3ee   : > { %8871 = vst [vmem:[%s10045_s7 + $0x1540] sm:$0xff] %v6564_v50  ;;  %v6566_v56 = vsel %vm6033_vm7, %v2954_v45, %v6310_v38  ;;  %v6565_v58 = vsel %vm6032_vm8, %v2603_v35, %v6309_v48  ;;  %v6312_v59 = vmul.f32 %v11732_v47, %v2605_v49  ;;  %vm6037_vm11 = vcmp.ge.f32.partialorder %v2958_v54, 0.0  ;;  %v2960_v51 = vpop.f32.mrb[87].mxu1 }
 0x3ef   : > { %8873 = vst [vmem:[%s10045_s7 + $0x1550] sm:$0xff] %v6566_v56  ;;  %8872 = vst [vmem:[%s10045_s7 + $0x1548] sm:$0xff] %v6565_v58  ;;  %v6567_v52 = vsel %vm6034_vm9, %v2956_v41, %v6311_v53  ;;  %v6314_v61 = vmul.f32 %v11735_v36, %v2958_v54  ;;  %vm6036_vm12 = vcmp.ge.f32.partialorder %v2607_v55, 0.0  ;;  %v6313_v60 = vmul.f32 %v11755_v12, %v2607_v55 }
 0x3f0   : > { %8399 = vmatmul.mubr.msk.bf16.gmra.mrb[192].mxu0 %vm848_vm0, %v9412_v20  ;;  %8874 = vst [vmem:[%s10045_s7 + $0x1558] sm:$0xff] %v6567_v52  ;;  %v6568_v11 = vsel %vm6035_vm10, %v2605_v49, %v6312_v59  ;;  %vm6038_vm13 = vcmp.ge.f32.partialorder %v2960_v51, 0.0  ;;  %v6315_v57 = vmul.f32 %v11761_v26, %v2960_v51  ;;  %8431 = vmatmul.mubr.msk.bf16.gmra.mrb[192].mxu1 %vm848_vm0, %v9412_v20  ;;  %v9414_v59 = vld [vmem:[%s13218_s1 + $0x90] sm:$0xff]  }
 0x3f1   : > { %3265 = vmatprep.mubr.bf16.mxu0 %v9578_v0  ;;  %8875 = vst [vmem:[%s10045_s7 + $0x1560] sm:$0xff] %v6568_v11  ;;  %v6570_v46 = vsel %vm6037_vm11, %v2958_v54, %v6314_v61  ;;  %v6569_v39 = vsel %vm6036_vm12, %v2607_v55, %v6313_v60  ;;  %3618 = vmatprep.mubr.bf16.mxu1 %v9578_v0 }
 0x3f2   : > { %8877 = vst [vmem:[%s10045_s7 + $0x1570] sm:$0xff] %v6570_v46  ;;  %8876 = vst [vmem:[%s10045_s7 + $0x1568] sm:$0xff] %v6569_v39  ;;  %v6571_v21 = vsel %vm6038_vm13, %v2960_v51, %v6315_v57  ;;  %v2611_v37 = vpop.f32.mrb[88].mxu0 }
 0x3f3   : > { %8878 = vst [vmem:[%s10045_s7 + $0x1578] sm:$0xff] %v6571_v21  ;;  %vm6039_vm14 = vcmp.ge.f32.partialorder %v2611_v37, 0.0  ;;  %v6316_v23 = vmul.f32 %v11732_v47, %v2611_v37  ;;  %v2964_v62 = vpop.f32.mrb[88].mxu1  ;;  %v2613_v22 = vpop.f32.mrb[89].mxu0 }
 0x3f4   : > { %vm6041_vm15 = vcmp.ge.f32.partialorder %v2964_v62, 0.0  ;;  %v6318_v25 = vmul.f32 %v11735_v36, %v2964_v62  ;;  %vm6040_vm1 = vcmp.ge.f32.partialorder %v2613_v22, 0.0  ;;  %v6317_v63 = vmul.f32 %v11755_v12, %v2613_v22  ;;  %v2966_v1 = vpop.f32.mrb[89].mxu1  ;;  %v2615_v2 = vpop.f32.mrb[90].mxu0 }
 0x3f5   : > { %v6572_v3 = vsel %vm6039_vm14, %v2611_v37, %v6316_v23  ;;  %vm6042_vm2 = vcmp.ge.f32.partialorder %v2966_v1, 0.0  ;;  %v6319_v4 = vmul.f32 %v11761_v26, %v2966_v1  ;;  %vm6043_vm3 = vcmp.ge.f32.partialorder %v2615_v2, 0.0  ;;  %v2968_v5 = vpop.f32.mrb[90].mxu1  ;;  %v2617_v6 = vpop.f32.mrb[91].mxu0 }
 0x3f6   : > { %8879 = vst [vmem:[%s10045_s7 + $0x1580] sm:$0xff] %v6572_v3  ;;  %v6574_v7 = vsel %vm6041_vm15, %v2964_v62, %v6318_v25  ;;  %v6573_v8 = vsel %vm6040_vm1, %v2613_v22, %v6317_v63  ;;  %v6320_v9 = vmul.f32 %v11732_v47, %v2615_v2  ;;  %vm6045_vm4 = vcmp.ge.f32.partialorder %v2968_v5, 0.0  ;;  %v2970_v10 = vpop.f32.mrb[91].mxu1 }
 0x3f7   : > { %8881 = vst [vmem:[%s10045_s7 + $0x1590] sm:$0xff] %v6574_v7  ;;  %8880 = vst [vmem:[%s10045_s7 + $0x1588] sm:$0xff] %v6573_v8  ;;  %v6575_v13 = vsel %vm6042_vm2, %v2966_v1, %v6319_v4  ;;  %v6322_v14 = vmul.f32 %v11735_v36, %v2968_v5  ;;  %vm6044_vm5 = vcmp.ge.f32.partialorder %v2617_v6, 0.0  ;;  %v6321_v15 = vmul.f32 %v11755_v12, %v2617_v6 }
 0x3f8   : > { %8400 = vmatmul.mubr.msk.bf16.gmra.mrb[196].mxu0 %vm848_vm0, %v9413_v16  ;;  %8882 = vst [vmem:[%s10045_s7 + $0x1598] sm:$0xff] %v6575_v13  ;;  %v6576_v17 = vsel %vm6043_vm3, %v2615_v2, %v6320_v9  ;;  %vm6046_vm6 = vcmp.ge.f32.partialorder %v2970_v10, 0.0  ;;  %v6323_v18 = vmul.f32 %v11761_v26, %v2970_v10  ;;  %8432 = vmatmul.mubr.msk.bf16.gmra.mrb[196].mxu1 %vm848_vm0, %v9413_v16  ;;  %v9415_v9 = vld [vmem:[%s13218_s1 + $0x98] sm:$0xff]  }
 0x3f9   : > { %3275 = vmatprep.mubr.bf16.mxu0 %v9578_v0  ;;  %8883 = vst [vmem:[%s10045_s7 + $0x15a0] sm:$0xff] %v6576_v17  ;;  %v6578_v19 = vsel %vm6045_vm4, %v2968_v5, %v6322_v14  ;;  %v6577_v24 = vsel %vm6044_vm5, %v2617_v6, %v6321_v15  ;;  %3628 = vmatprep.mubr.bf16.mxu1 %v9578_v0 }
 0x3fa   : > { %8885 = vst [vmem:[%s10045_s7 + $0x15b0] sm:$0xff] %v6578_v19  ;;  %8884 = vst [vmem:[%s10045_s7 + $0x15a8] sm:$0xff] %v6577_v24  ;;  %v6579_v27 = vsel %vm6046_vm6, %v2970_v10, %v6323_v18  ;;  %v2621_v28 = vpop.f32.mrb[92].mxu0 }
 0x3fb   : > { %8886 = vst [vmem:[%s10045_s7 + $0x15b8] sm:$0xff] %v6579_v27  ;;  %vm6047_vm7 = vcmp.ge.f32.partialorder %v2621_v28, 0.0  ;;  %v6324_v29 = vmul.f32 %v11732_v47, %v2621_v28  ;;  %v2974_v30 = vpop.f32.mrb[92].mxu1  ;;  %v2623_v31 = vpop.f32.mrb[93].mxu0 }
 0x3fc   : > { %vm6049_vm8 = vcmp.ge.f32.partialorder %v2974_v30, 0.0  ;;  %v6326_v32 = vmul.f32 %v11735_v36, %v2974_v30  ;;  %vm6048_vm9 = vcmp.ge.f32.partialorder %v2623_v31, 0.0  ;;  %v6325_v33 = vmul.f32 %v11755_v12, %v2623_v31  ;;  %v2976_v34 = vpop.f32.mrb[93].mxu1  ;;  %v2625_v45 = vpop.f32.mrb[94].mxu0 }
 0x3fd   : > { %v6580_v35 = vsel %vm6047_vm7, %v2621_v28, %v6324_v29  ;;  %vm6050_vm10 = vcmp.ge.f32.partialorder %v2976_v34, 0.0  ;;  %v6327_v38 = vmul.f32 %v11761_v26, %v2976_v34  ;;  %vm6051_vm11 = vcmp.ge.f32.partialorder %v2625_v45, 0.0  ;;  %v2978_v48 = vpop.f32.mrb[94].mxu1  ;;  %v2627_v41 = vpop.f32.mrb[95].mxu0 }
 0x3fe   : > { %8887 = vst [vmem:[%s10045_s7 + $0x15c0] sm:$0xff] %v6580_v35  ;;  %v6582_v49 = vsel %vm6049_vm8, %v2974_v30, %v6326_v32  ;;  %v6581_v50 = vsel %vm6048_vm9, %v2623_v31, %v6325_v33  ;;  %v6328_v53 = vmul.f32 %v11732_v47, %v2625_v45  ;;  %vm6053_vm12 = vcmp.ge.f32.partialorder %v2978_v48, 0.0  ;;  %v2980_v54 = vpop.f32.mrb[95].mxu1 }
 0x3ff   : > { %8889 = vst [vmem:[%s10045_s7 + $0x15d0] sm:$0xff] %v6582_v49  ;;  %8888 = vst [vmem:[%s10045_s7 + $0x15c8] sm:$0xff] %v6581_v50  ;;  %v6583_v55 = vsel %vm6050_vm10, %v2976_v34, %v6327_v38  ;;  %v6330_v56 = vmul.f32 %v11735_v36, %v2978_v48  ;;  %vm6052_vm13 = vcmp.ge.f32.partialorder %v2627_v41, 0.0  ;;  %v6329_v58 = vmul.f32 %v11755_v12, %v2627_v41 }
 0x400   : > { %8401 = vmatmul.mubr.msk.bf16.gmra.mrb[200].mxu0 %vm848_vm0, %v9414_v59  ;;  %8890 = vst [vmem:[%s10045_s7 + $0x15d8] sm:$0xff] %v6583_v55  ;;  %v6584_v51 = vsel %vm6051_vm11, %v2625_v45, %v6328_v53  ;;  %vm6054_vm14 = vcmp.ge.f32.partialorder %v2980_v54, 0.0  ;;  %v6331_v52 = vmul.f32 %v11761_v26, %v2980_v54  ;;  %8433 = vmatmul.mubr.msk.bf16.gmra.mrb[200].mxu1 %vm848_vm0, %v9414_v59  ;;  %v9416_v53 = vld [vmem:[%s13218_s1 + $0xa0] sm:$0xff]  }
 0x401   : > { %3285 = vmatprep.mubr.bf16.mxu0 %v9578_v0  ;;  %8891 = vst [vmem:[%s10045_s7 + $0x15e0] sm:$0xff] %v6584_v51  ;;  %v6586_v61 = vsel %vm6053_vm12, %v2978_v48, %v6330_v56  ;;  %v6585_v60 = vsel %vm6052_vm13, %v2627_v41, %v6329_v58  ;;  %3638 = vmatprep.mubr.bf16.mxu1 %v9578_v0 }
 0x402   : > { %8893 = vst [vmem:[%s10045_s7 + $0x15f0] sm:$0xff] %v6586_v61  ;;  %8892 = vst [vmem:[%s10045_s7 + $0x15e8] sm:$0xff] %v6585_v60  ;;  %v6587_v20 = vsel %vm6054_vm14, %v2980_v54, %v6331_v52  ;;  %v2631_v11 = vpop.f32.mrb[96].mxu0 }
 0x403   : > { %8894 = vst [vmem:[%s10045_s7 + $0x15f8] sm:$0xff] %v6587_v20  ;;  %vm6055_vm15 = vcmp.ge.f32.partialorder %v2631_v11, 0.0  ;;  %v6332_v57 = vmul.f32 %v11732_v47, %v2631_v11  ;;  %v2984_v46 = vpop.f32.mrb[96].mxu1  ;;  %v2633_v39 = vpop.f32.mrb[97].mxu0 }
 0x404   : > { %vm6057_vm1 = vcmp.ge.f32.partialorder %v2984_v46, 0.0  ;;  %v6334_v21 = vmul.f32 %v11735_v36, %v2984_v46  ;;  %vm6056_vm2 = vcmp.ge.f32.partialorder %v2633_v39, 0.0  ;;  %v6333_v37 = vmul.f32 %v11755_v12, %v2633_v39  ;;  %v2986_v23 = vpop.f32.mrb[97].mxu1  ;;  %v2635_v62 = vpop.f32.mrb[98].mxu0 }
 0x405   : > { %v6588_v22 = vsel %vm6055_vm15, %v2631_v11, %v6332_v57  ;;  %vm6058_vm3 = vcmp.ge.f32.partialorder %v2986_v23, 0.0  ;;  %v6335_v25 = vmul.f32 %v11761_v26, %v2986_v23  ;;  %vm6059_vm4 = vcmp.ge.f32.partialorder %v2635_v62, 0.0  ;;  %v2988_v63 = vpop.f32.mrb[98].mxu1  ;;  %v2637_v1 = vpop.f32.mrb[99].mxu0 }
 0x406   : > { %8895 = vst [vmem:[%s10045_s7 + $0x1600] sm:$0xff] %v6588_v22  ;;  %v6590_v2 = vsel %vm6057_vm1, %v2984_v46, %v6334_v21  ;;  %v6589_v3 = vsel %vm6056_vm2, %v2633_v39, %v6333_v37  ;;  %v6336_v4 = vmul.f32 %v11732_v47, %v2635_v62  ;;  %vm6061_vm5 = vcmp.ge.f32.partialorder %v2988_v63, 0.0  ;;  %v2990_v5 = vpop.f32.mrb[99].mxu1 }
 0x407   : > { %8897 = vst [vmem:[%s10045_s7 + $0x1610] sm:$0xff] %v6590_v2  ;;  %8896 = vst [vmem:[%s10045_s7 + $0x1608] sm:$0xff] %v6589_v3  ;;  %v6591_v6 = vsel %vm6058_vm3, %v2986_v23, %v6335_v25  ;;  %v6338_v7 = vmul.f32 %v11735_v36, %v2988_v63  ;;  %vm6060_vm6 = vcmp.ge.f32.partialorder %v2637_v1, 0.0  ;;  %v6337_v8 = vmul.f32 %v11755_v12, %v2637_v1 }
 0x408   : > { %8402 = vmatmul.mubr.msk.bf16.gmra.mrb[204].mxu0 %vm848_vm0, %v9415_v9  ;;  %8898 = vst [vmem:[%s10045_s7 + $0x1618] sm:$0xff] %v6591_v6  ;;  %v6592_v10 = vsel %vm6059_vm4, %v2635_v62, %v6336_v4  ;;  %vm6062_vm7 = vcmp.ge.f32.partialorder %v2990_v5, 0.0  ;;  %v6339_v13 = vmul.f32 %v11761_v26, %v2990_v5  ;;  %8434 = vmatmul.mubr.msk.bf16.gmra.mrb[204].mxu1 %vm848_vm0, %v9415_v9  ;;  %v9417_v4 = vld [vmem:[%s13218_s1 + $0xa8] sm:$0xff]  }
 0x409   : > { %3295 = vmatprep.mubr.bf16.mxu0 %v9578_v0  ;;  %8899 = vst [vmem:[%s10045_s7 + $0x1620] sm:$0xff] %v6592_v10  ;;  %v6594_v14 = vsel %vm6061_vm5, %v2988_v63, %v6338_v7  ;;  %v6593_v15 = vsel %vm6060_vm6, %v2637_v1, %v6337_v8  ;;  %3648 = vmatprep.mubr.bf16.mxu1 %v9578_v0 }
 0x40a   : > { %8901 = vst [vmem:[%s10045_s7 + $0x1630] sm:$0xff] %v6594_v14  ;;  %8900 = vst [vmem:[%s10045_s7 + $0x1628] sm:$0xff] %v6593_v15  ;;  %v6595_v16 = vsel %vm6062_vm7, %v2990_v5, %v6339_v13  ;;  %v2641_v17 = vpop.f32.mrb[100].mxu0 }
 0x40b   : > { %8902 = vst [vmem:[%s10045_s7 + $0x1638] sm:$0xff] %v6595_v16  ;;  %vm6063_vm8 = vcmp.ge.f32.partialorder %v2641_v17, 0.0  ;;  %v6340_v18 = vmul.f32 %v11732_v47, %v2641_v17  ;;  %v2994_v19 = vpop.f32.mrb[100].mxu1  ;;  %v2643_v24 = vpop.f32.mrb[101].mxu0 }
 0x40c   : > { %vm6065_vm9 = vcmp.ge.f32.partialorder %v2994_v19, 0.0  ;;  %v6342_v27 = vmul.f32 %v11735_v36, %v2994_v19  ;;  %vm6064_vm10 = vcmp.ge.f32.partialorder %v2643_v24, 0.0  ;;  %v6341_v28 = vmul.f32 %v11755_v12, %v2643_v24  ;;  %v2996_v29 = vpop.f32.mrb[101].mxu1  ;;  %v2645_v30 = vpop.f32.mrb[102].mxu0 }
 0x40d   : > { %v6596_v31 = vsel %vm6063_vm8, %v2641_v17, %v6340_v18  ;;  %vm6066_vm11 = vcmp.ge.f32.partialorder %v2996_v29, 0.0  ;;  %v6343_v32 = vmul.f32 %v11761_v26, %v2996_v29  ;;  %vm6067_vm12 = vcmp.ge.f32.partialorder %v2645_v30, 0.0  ;;  %v2998_v33 = vpop.f32.mrb[102].mxu1  ;;  %v2647_v34 = vpop.f32.mrb[103].mxu0 }
 0x40e   : > { %8903 = vst [vmem:[%s10045_s7 + $0x1640] sm:$0xff] %v6596_v31  ;;  %v6598_v45 = vsel %vm6065_vm9, %v2994_v19, %v6342_v27  ;;  %v6597_v35 = vsel %vm6064_vm10, %v2643_v24, %v6341_v28  ;;  %v6344_v38 = vmul.f32 %v11732_v47, %v2645_v30  ;;  %vm6069_vm13 = vcmp.ge.f32.partialorder %v2998_v33, 0.0  ;;  %v3000_v48 = vpop.f32.mrb[103].mxu1 }
 0x40f   : > { %8905 = vst [vmem:[%s10045_s7 + $0x1650] sm:$0xff] %v6598_v45  ;;  %8904 = vst [vmem:[%s10045_s7 + $0x1648] sm:$0xff] %v6597_v35  ;;  %v6599_v41 = vsel %vm6066_vm11, %v2996_v29, %v6343_v32  ;;  %v6346_v49 = vmul.f32 %v11735_v36, %v2998_v33  ;;  %vm6068_vm14 = vcmp.ge.f32.partialorder %v2647_v34, 0.0  ;;  %v6345_v50 = vmul.f32 %v11755_v12, %v2647_v34 }
 0x410   : > { %8403 = vmatmul.mubr.msk.bf16.gmra.mrb[208].mxu0 %vm848_vm0, %v9416_v53  ;;  %8906 = vst [vmem:[%s10045_s7 + $0x1658] sm:$0xff] %v6599_v41  ;;  %v6600_v54 = vsel %vm6067_vm12, %v2645_v30, %v6344_v38  ;;  %vm6070_vm15 = vcmp.ge.f32.partialorder %v3000_v48, 0.0  ;;  %v6347_v55 = vmul.f32 %v11761_v26, %v3000_v48  ;;  %8435 = vmatmul.mubr.msk.bf16.gmra.mrb[208].mxu1 %vm848_vm0, %v9416_v53  ;;  %v9418_v38 = vld [vmem:[%s13218_s1 + $0xb0] sm:$0xff]  }
 0x411   : > { %3305 = vmatprep.mubr.bf16.mxu0 %v9578_v0  ;;  %8907 = vst [vmem:[%s10045_s7 + $0x1660] sm:$0xff] %v6600_v54  ;;  %v6602_v56 = vsel %vm6069_vm13, %v2998_v33, %v6346_v49  ;;  %v6601_v58 = vsel %vm6068_vm14, %v2647_v34, %v6345_v50  ;;  %3658 = vmatprep.mubr.bf16.mxu1 %v9578_v0 }
 0x412   : > { %8909 = vst [vmem:[%s10045_s7 + $0x1670] sm:$0xff] %v6602_v56  ;;  %8908 = vst [vmem:[%s10045_s7 + $0x1668] sm:$0xff] %v6601_v58  ;;  %v6603_v59 = vsel %vm6070_vm15, %v3000_v48, %v6347_v55  ;;  %v2651_v51 = vpop.f32.mrb[104].mxu0 }
 0x413   : > { %8910 = vst [vmem:[%s10045_s7 + $0x1678] sm:$0xff] %v6603_v59  ;;  %vm6071_vm1 = vcmp.ge.f32.partialorder %v2651_v51, 0.0  ;;  %v6348_v52 = vmul.f32 %v11732_v47, %v2651_v51  ;;  %v3004_v61 = vpop.f32.mrb[104].mxu1  ;;  %v2653_v60 = vpop.f32.mrb[105].mxu0 }
 0x414   : > { %vm6073_vm2 = vcmp.ge.f32.partialorder %v3004_v61, 0.0  ;;  %v6350_v20 = vmul.f32 %v11735_v36, %v3004_v61  ;;  %vm6072_vm3 = vcmp.ge.f32.partialorder %v2653_v60, 0.0  ;;  %v6349_v11 = vmul.f32 %v11755_v12, %v2653_v60  ;;  %v3006_v57 = vpop.f32.mrb[105].mxu1  ;;  %v2655_v46 = vpop.f32.mrb[106].mxu0 }
 0x415   : > { %v6604_v39 = vsel %vm6071_vm1, %v2651_v51, %v6348_v52  ;;  %vm6074_vm4 = vcmp.ge.f32.partialorder %v3006_v57, 0.0  ;;  %v6351_v21 = vmul.f32 %v11761_v26, %v3006_v57  ;;  %vm6075_vm5 = vcmp.ge.f32.partialorder %v2655_v46, 0.0  ;;  %v3008_v37 = vpop.f32.mrb[106].mxu1  ;;  %v2657_v23 = vpop.f32.mrb[107].mxu0 }
 0x416   : > { %8911 = vst [vmem:[%s10045_s7 + $0x1680] sm:$0xff] %v6604_v39  ;;  %v6606_v62 = vsel %vm6073_vm2, %v3004_v61, %v6350_v20  ;;  %v6605_v22 = vsel %vm6072_vm3, %v2653_v60, %v6349_v11  ;;  %v6352_v25 = vmul.f32 %v11732_v47, %v2655_v46  ;;  %vm6077_vm6 = vcmp.ge.f32.partialorder %v3008_v37, 0.0  ;;  %v3010_v63 = vpop.f32.mrb[107].mxu1 }
 0x417   : > { %8913 = vst [vmem:[%s10045_s7 + $0x1690] sm:$0xff] %v6606_v62  ;;  %8912 = vst [vmem:[%s10045_s7 + $0x1688] sm:$0xff] %v6605_v22  ;;  %v6607_v1 = vsel %vm6074_vm4, %v3006_v57, %v6351_v21  ;;  %v6354_v2 = vmul.f32 %v11735_v36, %v3008_v37  ;;  %vm6076_vm7 = vcmp.ge.f32.partialorder %v2657_v23, 0.0  ;;  %v6353_v3 = vmul.f32 %v11755_v12, %v2657_v23 }
 0x418   : > { %8404 = vmatmul.mubr.msk.bf16.gmra.mrb[212].mxu0 %vm848_vm0, %v9417_v4  ;;  %8914 = vst [vmem:[%s10045_s7 + $0x1698] sm:$0xff] %v6607_v1  ;;  %v6608_v5 = vsel %vm6075_vm5, %v2655_v46, %v6352_v25  ;;  %vm6078_vm8 = vcmp.ge.f32.partialorder %v3010_v63, 0.0  ;;  %v6355_v6 = vmul.f32 %v11761_v26, %v3010_v63  ;;  %8436 = vmatmul.mubr.msk.bf16.gmra.mrb[212].mxu1 %vm848_vm0, %v9417_v4  ;;  %v9419_v25 = vld [vmem:[%s13218_s1 + $0xb8] sm:$0xff]  }
 0x419   : > { %3315 = vmatprep.mubr.bf16.mxu0 %v9578_v0  ;;  %8915 = vst [vmem:[%s10045_s7 + $0x16a0] sm:$0xff] %v6608_v5  ;;  %v6610_v7 = vsel %vm6077_vm6, %v3008_v37, %v6354_v2  ;;  %v6609_v8 = vsel %vm6076_vm7, %v2657_v23, %v6353_v3  ;;  %3668 = vmatprep.mubr.bf16.mxu1 %v9578_v0 }
 0x41a   : > { %8917 = vst [vmem:[%s10045_s7 + $0x16b0] sm:$0xff] %v6610_v7  ;;  %8916 = vst [vmem:[%s10045_s7 + $0x16a8] sm:$0xff] %v6609_v8  ;;  %v6611_v9 = vsel %vm6078_vm8, %v3010_v63, %v6355_v6  ;;  %v2661_v10 = vpop.f32.mrb[108].mxu0 }
 0x41b   : > { %8918 = vst [vmem:[%s10045_s7 + $0x16b8] sm:$0xff] %v6611_v9  ;;  %vm6079_vm9 = vcmp.ge.f32.partialorder %v2661_v10, 0.0  ;;  %v6356_v13 = vmul.f32 %v11732_v47, %v2661_v10  ;;  %v3014_v14 = vpop.f32.mrb[108].mxu1  ;;  %v2663_v15 = vpop.f32.mrb[109].mxu0 }
 0x41c   : > { %vm6081_vm10 = vcmp.ge.f32.partialorder %v3014_v14, 0.0  ;;  %v6358_v16 = vmul.f32 %v11735_v36, %v3014_v14  ;;  %vm6080_vm11 = vcmp.ge.f32.partialorder %v2663_v15, 0.0  ;;  %v6357_v17 = vmul.f32 %v11755_v12, %v2663_v15  ;;  %v3016_v18 = vpop.f32.mrb[109].mxu1  ;;  %v2665_v19 = vpop.f32.mrb[110].mxu0 }
 0x41d   : > { %v6612_v24 = vsel %vm6079_vm9, %v2661_v10, %v6356_v13  ;;  %vm6082_vm12 = vcmp.ge.f32.partialorder %v3016_v18, 0.0  ;;  %v6359_v27 = vmul.f32 %v11761_v26, %v3016_v18  ;;  %vm6083_vm13 = vcmp.ge.f32.partialorder %v2665_v19, 0.0  ;;  %v3018_v28 = vpop.f32.mrb[110].mxu1  ;;  %v2667_v29 = vpop.f32.mrb[111].mxu0 }
 0x41e   : > { %8919 = vst [vmem:[%s10045_s7 + $0x16c0] sm:$0xff] %v6612_v24  ;;  %v6614_v30 = vsel %vm6081_vm10, %v3014_v14, %v6358_v16  ;;  %v6613_v31 = vsel %vm6080_vm11, %v2663_v15, %v6357_v17  ;;  %v6360_v32 = vmul.f32 %v11732_v47, %v2665_v19  ;;  %vm6085_vm14 = vcmp.ge.f32.partialorder %v3018_v28, 0.0  ;;  %v3020_v33 = vpop.f32.mrb[111].mxu1 }
 0x41f   : > { %8921 = vst [vmem:[%s10045_s7 + $0x16d0] sm:$0xff] %v6614_v30  ;;  %8920 = vst [vmem:[%s10045_s7 + $0x16c8] sm:$0xff] %v6613_v31  ;;  %v6615_v34 = vsel %vm6082_vm12, %v3016_v18, %v6359_v27  ;;  %v6362_v45 = vmul.f32 %v11735_v36, %v3018_v28  ;;  %vm6084_vm15 = vcmp.ge.f32.partialorder %v2667_v29, 0.0  ;;  %v6361_v35 = vmul.f32 %v11755_v12, %v2667_v29 }
 0x420   : > { %8405 = vmatmul.mubr.msk.bf16.gmra.mrb[216].mxu0 %vm848_vm0, %v9418_v38  ;;  %8922 = vst [vmem:[%s10045_s7 + $0x16d8] sm:$0xff] %v6615_v34  ;;  %v6616_v48 = vsel %vm6083_vm13, %v2665_v19, %v6360_v32  ;;  %vm6086_vm1 = vcmp.ge.f32.partialorder %v3020_v33, 0.0  ;;  %v6363_v41 = vmul.f32 %v11761_v26, %v3020_v33  ;;  %8437 = vmatmul.mubr.msk.bf16.gmra.mrb[216].mxu1 %vm848_vm0, %v9418_v38  ;;  %v9420_v32 = vld [vmem:[%s13218_s1 + $0xc0] sm:$0xff]  }
 0x421   : > { %3325 = vmatprep.mubr.bf16.mxu0 %v9578_v0  ;;  %8923 = vst [vmem:[%s10045_s7 + $0x16e0] sm:$0xff] %v6616_v48  ;;  %v6618_v49 = vsel %vm6085_vm14, %v3018_v28, %v6362_v45  ;;  %v6617_v50 = vsel %vm6084_vm15, %v2667_v29, %v6361_v35  ;;  %3678 = vmatprep.mubr.bf16.mxu1 %v9578_v0 }
 0x422   : > { %8925 = vst [vmem:[%s10045_s7 + $0x16f0] sm:$0xff] %v6618_v49  ;;  %8924 = vst [vmem:[%s10045_s7 + $0x16e8] sm:$0xff] %v6617_v50  ;;  %v6619_v53 = vsel %vm6086_vm1, %v3020_v33, %v6363_v41  ;;  %v2671_v54 = vpop.f32.mrb[112].mxu0 }
 0x423   : > { %8926 = vst [vmem:[%s10045_s7 + $0x16f8] sm:$0xff] %v6619_v53  ;;  %vm6087_vm2 = vcmp.ge.f32.partialorder %v2671_v54, 0.0  ;;  %v6364_v55 = vmul.f32 %v11732_v47, %v2671_v54  ;;  %v3024_v56 = vpop.f32.mrb[112].mxu1  ;;  %v2673_v58 = vpop.f32.mrb[113].mxu0 }
 0x424   : > { %vm6089_vm3 = vcmp.ge.f32.partialorder %v3024_v56, 0.0  ;;  %v6366_v59 = vmul.f32 %v11735_v36, %v3024_v56  ;;  %vm6088_vm4 = vcmp.ge.f32.partialorder %v2673_v58, 0.0  ;;  %v6365_v51 = vmul.f32 %v11755_v12, %v2673_v58  ;;  %v3026_v52 = vpop.f32.mrb[113].mxu1  ;;  %v2675_v61 = vpop.f32.mrb[114].mxu0 }
 0x425   : > { %v6620_v60 = vsel %vm6087_vm2, %v2671_v54, %v6364_v55  ;;  %vm6090_vm5 = vcmp.ge.f32.partialorder %v3026_v52, 0.0  ;;  %v6367_v20 = vmul.f32 %v11761_v26, %v3026_v52  ;;  %vm6091_vm6 = vcmp.ge.f32.partialorder %v2675_v61, 0.0  ;;  %v3028_v11 = vpop.f32.mrb[114].mxu1  ;;  %v2677_v57 = vpop.f32.mrb[115].mxu0 }
 0x426   : > { %8927 = vst [vmem:[%s10045_s7 + $0x1700] sm:$0xff] %v6620_v60  ;;  %v6622_v46 = vsel %vm6089_vm3, %v3024_v56, %v6366_v59  ;;  %v6621_v39 = vsel %vm6088_vm4, %v2673_v58, %v6365_v51  ;;  %v6368_v21 = vmul.f32 %v11732_v47, %v2675_v61  ;;  %vm6093_vm7 = vcmp.ge.f32.partialorder %v3028_v11, 0.0  ;;  %v3030_v37 = vpop.f32.mrb[115].mxu1 }
 0x427   : > { %8929 = vst [vmem:[%s10045_s7 + $0x1710] sm:$0xff] %v6622_v46  ;;  %8928 = vst [vmem:[%s10045_s7 + $0x1708] sm:$0xff] %v6621_v39  ;;  %v6623_v23 = vsel %vm6090_vm5, %v3026_v52, %v6367_v20  ;;  %v6370_v62 = vmul.f32 %v11735_v36, %v3028_v11  ;;  %vm6092_vm8 = vcmp.ge.f32.partialorder %v2677_v57, 0.0  ;;  %v6369_v22 = vmul.f32 %v11755_v12, %v2677_v57 }
 0x428   : > { %8406 = vmatmul.mubr.msk.bf16.gmra.mrb[220].mxu0 %vm848_vm0, %v9419_v25  ;;  %8930 = vst [vmem:[%s10045_s7 + $0x1718] sm:$0xff] %v6623_v23  ;;  %v6624_v63 = vsel %vm6091_vm6, %v2675_v61, %v6368_v21  ;;  %vm6094_vm9 = vcmp.ge.f32.partialorder %v3030_v37, 0.0  ;;  %v6371_v1 = vmul.f32 %v11761_v26, %v3030_v37  ;;  %8438 = vmatmul.mubr.msk.bf16.gmra.mrb[220].mxu1 %vm848_vm0, %v9419_v25  ;;  %v9421_v21 = vld [vmem:[%s13218_s1 + $0xc8] sm:$0xff]  }
 0x429   : > { %3335 = vmatprep.mubr.bf16.mxu0 %v9578_v0  ;;  %8931 = vst [vmem:[%s10045_s7 + $0x1720] sm:$0xff] %v6624_v63  ;;  %v6626_v2 = vsel %vm6093_vm7, %v3028_v11, %v6370_v62  ;;  %v6625_v3 = vsel %vm6092_vm8, %v2677_v57, %v6369_v22  ;;  %3688 = vmatprep.mubr.bf16.mxu1 %v9578_v0  ;;  %v6909_v62 = vld [vmem:[#allocation5 + $0xc] sm:$0xf] }
 0x42a   : > { %8933 = vst [vmem:[%s10045_s7 + $0x1730] sm:$0xff] %v6626_v2  ;;  %8932 = vst [vmem:[%s10045_s7 + $0x1728] sm:$0xff] %v6625_v3  ;;  %v6627_v4 = vsel %vm6094_vm9, %v3030_v37, %v6371_v1  ;;  %v2681_v5 = vpop.f32.mrb[116].mxu0 }
 0x42b   : > { %8934 = vst [vmem:[%s10045_s7 + $0x1738] sm:$0xff] %v6627_v4  ;;  %vm6095_vm10 = vcmp.ge.f32.partialorder %v2681_v5, 0.0  ;;  %v6372_v6 = vmul.f32 %v11732_v47, %v2681_v5  ;;  %v3034_v7 = vpop.f32.mrb[116].mxu1  ;;  %v2683_v8 = vpop.f32.mrb[117].mxu0 }
 0x42c   : > { %vm6097_vm11 = vcmp.ge.f32.partialorder %v3034_v7, 0.0  ;;  %v6374_v9 = vmul.f32 %v11735_v36, %v3034_v7  ;;  %vm6096_vm12 = vcmp.ge.f32.partialorder %v2683_v8, 0.0  ;;  %v6373_v10 = vmul.f32 %v11755_v12, %v2683_v8  ;;  %v3036_v13 = vpop.f32.mrb[117].mxu1  ;;  %v2685_v14 = vpop.f32.mrb[118].mxu0 }
 0x42d   : > { %v6628_v15 = vsel %vm6095_vm10, %v2681_v5, %v6372_v6  ;;  %vm6098_vm13 = vcmp.ge.f32.partialorder %v3036_v13, 0.0  ;;  %v6375_v16 = vmul.f32 %v11761_v26, %v3036_v13  ;;  %vm6099_vm14 = vcmp.ge.f32.partialorder %v2685_v14, 0.0  ;;  %v3038_v17 = vpop.f32.mrb[118].mxu1  ;;  %v2687_v18 = vpop.f32.mrb[119].mxu0 }
 0x42e   : > { %8935 = vst [vmem:[%s10045_s7 + $0x1740] sm:$0xff] %v6628_v15  ;;  %v6630_v19 = vsel %vm6097_vm11, %v3034_v7, %v6374_v9  ;;  %v6629_v24 = vsel %vm6096_vm12, %v2683_v8, %v6373_v10  ;;  %v6376_v27 = vmul.f32 %v11732_v47, %v2685_v14  ;;  %vm6101_vm15 = vcmp.ge.f32.partialorder %v3038_v17, 0.0  ;;  %v3040_v28 = vpop.f32.mrb[119].mxu1 }
 0x42f   : > { %8937 = vst [vmem:[%s10045_s7 + $0x1750] sm:$0xff] %v6630_v19  ;;  %8936 = vst [vmem:[%s10045_s7 + $0x1748] sm:$0xff] %v6629_v24  ;;  %v6631_v29 = vsel %vm6098_vm13, %v3036_v13, %v6375_v16  ;;  %v6378_v30 = vmul.f32 %v11735_v36, %v3038_v17  ;;  %vm6100_vm1 = vcmp.ge.f32.partialorder %v2687_v18, 0.0  ;;  %v6377_v31 = vmul.f32 %v11755_v12, %v2687_v18 }
 0x430   : > { %8407 = vmatmul.mubr.msk.bf16.gmra.mrb[224].mxu0 %vm848_vm0, %v9420_v32  ;;  %8938 = vst [vmem:[%s10045_s7 + $0x1758] sm:$0xff] %v6631_v29  ;;  %v6632_v33 = vsel %vm6099_vm14, %v2685_v14, %v6376_v27  ;;  %vm6102_vm2 = vcmp.ge.f32.partialorder %v3040_v28, 0.0  ;;  %v6379_v34 = vmul.f32 %v11761_v26, %v3040_v28  ;;  %8439 = vmatmul.mubr.msk.bf16.gmra.mrb[224].mxu1 %vm848_vm0, %v9420_v32 }
 0x431   : > { %3345 = vmatprep.mubr.bf16.mxu0 %v9578_v0  ;;  %8939 = vst [vmem:[%s10045_s7 + $0x1760] sm:$0xff] %v6632_v33  ;;  %v6634_v45 = vsel %vm6101_vm15, %v3038_v17, %v6378_v30  ;;  %v6633_v35 = vsel %vm6100_vm1, %v2687_v18, %v6377_v31  ;;  %3698 = vmatprep.mubr.bf16.mxu1 %v9578_v0 }
 0x432   : > { %8941 = vst [vmem:[%s10045_s7 + $0x1770] sm:$0xff] %v6634_v45  ;;  %8940 = vst [vmem:[%s10045_s7 + $0x1768] sm:$0xff] %v6633_v35  ;;  %v6635_v38 = vsel %vm6102_vm2, %v3040_v28, %v6379_v34  ;;  %v2691_v48 = vpop.f32.mrb[120].mxu0  ;;  %v12544_v5 = vrot.slane %v6909_v62, %v10013_v40  ;;  %v12547_v6 = vrot.slane %v6909_v62, %v10015_v42  ;;  %v9422_v28 = vld [vmem:[%s13218_s1 + $0xd0] sm:$0xff]  }
 0x433   : > { %8942 = vst [vmem:[%s10045_s7 + $0x1778] sm:$0xff] %v6635_v38  ;;  %vm6103_vm3 = vcmp.ge.f32.partialorder %v2691_v48, 0.0  ;;  %v6380_v41 = vmul.f32 %v11732_v47, %v2691_v48  ;;  %v3044_v49 = vpop.f32.mrb[120].mxu1  ;;  %v2693_v50 = vpop.f32.mrb[121].mxu0  ;;  %v12573_v31 = vrot.slane %v6909_v62, %v10019_v44 }
 0x434   : > { %vm6105_vm4 = vcmp.ge.f32.partialorder %v3044_v49, 0.0  ;;  %v6382_v53 = vmul.f32 %v11735_v36, %v3044_v49  ;;  %vm6104_vm5 = vcmp.ge.f32.partialorder %v2693_v50, 0.0  ;;  %v6381_v54 = vmul.f32 %v11755_v12, %v2693_v50  ;;  %v3046_v55 = vpop.f32.mrb[121].mxu1  ;;  %v2695_v56 = vpop.f32.mrb[122].mxu0 }
 0x435   : > { %v6636_v58 = vsel %vm6103_vm3, %v2691_v48, %v6380_v41  ;;  %vm6106_vm6 = vcmp.ge.f32.partialorder %v3046_v55, 0.0  ;;  %v6383_v59 = vmul.f32 %v11761_v26, %v3046_v55  ;;  %vm6107_vm7 = vcmp.ge.f32.partialorder %v2695_v56, 0.0  ;;  %v3048_v51 = vpop.f32.mrb[122].mxu1  ;;  %v2697_v52 = vpop.f32.mrb[123].mxu0 }
 0x436   : > { %8943 = vst [vmem:[%s10045_s7 + $0x1780] sm:$0xff] %v6636_v58  ;;  %v6638_v61 = vsel %vm6105_vm4, %v3044_v49, %v6382_v53  ;;  %v6637_v60 = vsel %vm6104_vm5, %v2693_v50, %v6381_v54  ;;  %v6384_v20 = vmul.f32 %v11732_v47, %v2695_v56  ;;  %vm6109_vm8 = vcmp.ge.f32.partialorder %v3048_v51, 0.0  ;;  %v3050_v11 = vpop.f32.mrb[123].mxu1 }
 0x437   : > { %8945 = vst [vmem:[%s10045_s7 + $0x1790] sm:$0xff] %v6638_v61  ;;  %8944 = vst [vmem:[%s10045_s7 + $0x1788] sm:$0xff] %v6637_v60  ;;  %v6639_v57 = vsel %vm6106_vm6, %v3046_v55, %v6383_v59  ;;  %v6386_v46 = vmul.f32 %v11735_v36, %v3048_v51  ;;  %vm6108_vm9 = vcmp.ge.f32.partialorder %v2697_v52, 0.0  ;;  %v6385_v39 = vmul.f32 %v11755_v12, %v2697_v52 }
 0x438   : > { %8408 = vmatmul.mubr.msk.bf16.gmra.mrb[228].mxu0 %vm848_vm0, %v9421_v21  ;;  %8946 = vst [vmem:[%s10045_s7 + $0x1798] sm:$0xff] %v6639_v57  ;;  %v6640_v37 = vsel %vm6107_vm7, %v2695_v56, %v6384_v20  ;;  %vm6110_vm10 = vcmp.ge.f32.partialorder %v3050_v11, 0.0  ;;  %v6387_v23 = vmul.f32 %v11761_v26, %v3050_v11  ;;  %8440 = vmatmul.mubr.msk.bf16.gmra.mrb[228].mxu1 %vm848_vm0, %v9421_v21 }
 0x439   : > { %3355 = vmatprep.mubr.bf16.mxu0 %v9578_v0  ;;  %8947 = vst [vmem:[%s10045_s7 + $0x17a0] sm:$0xff] %v6640_v37  ;;  %v6642_v22 = vsel %vm6109_vm8, %v3048_v51, %v6386_v46  ;;  %v6641_v25 = vsel %vm6108_vm9, %v2697_v52, %v6385_v39  ;;  %3708 = vmatprep.mubr.bf16.mxu1 %v9578_v0  ;;  %v9423_v52 = vld [vmem:[%s13218_s1 + $0xd8] sm:$0xff]  }
 0x43a   : > { %8949 = vst [vmem:[%s10045_s7 + $0x17b0] sm:$0xff] %v6642_v22  ;;  %8948 = vst [vmem:[%s10045_s7 + $0x17a8] sm:$0xff] %v6641_v25  ;;  %v6643_v63 = vsel %vm6110_vm10, %v3050_v11, %v6387_v23  ;;  %v2701_v1 = vpop.f32.mrb[124].mxu0 }
 0x43b   : > { %8950 = vst [vmem:[%s10045_s7 + $0x17b8] sm:$0xff] %v6643_v63  ;;  %vm6111_vm11 = vcmp.ge.f32.partialorder %v2701_v1, 0.0  ;;  %v6388_v2 = vmul.f32 %v11732_v47, %v2701_v1  ;;  %v3054_v3 = vpop.f32.mrb[124].mxu1  ;;  %v2703_v4 = vpop.f32.mrb[125].mxu0 }
 0x43c   : > { %vm6113_vm12 = vcmp.ge.f32.partialorder %v3054_v3, 0.0  ;;  %v6390_v7 = vmul.f32 %v11735_v36, %v3054_v3  ;;  %vm6112_vm13 = vcmp.ge.f32.partialorder %v2703_v4, 0.0  ;;  %v6389_v8 = vmul.f32 %v11755_v12, %v2703_v4  ;;  %v3056_v9 = vpop.f32.mrb[125].mxu1  ;;  %v2705_v10 = vpop.f32.mrb[126].mxu0 }
 0x43d   : > { %v6644_v13 = vsel %vm6111_vm11, %v2701_v1, %v6388_v2  ;;  %vm6114_vm14 = vcmp.ge.f32.partialorder %v3056_v9, 0.0  ;;  %v6391_v14 = vmul.f32 %v11761_v26, %v3056_v9  ;;  %vm6115_vm15 = vcmp.ge.f32.partialorder %v2705_v10, 0.0  ;;  %v3058_v40 = vpop.f32.mrb[126].mxu1  ;;  %v2707_v15 = vpop.f32.mrb[127].mxu0 }
 0x43e   : > { %8951 = vst [vmem:[%s10045_s7 + $0x17c0] sm:$0xff] %v6644_v13  ;;  %v6646_v42 = vsel %vm6113_vm12, %v3054_v3, %v6390_v7  ;;  %v6645_v16 = vsel %vm6112_vm13, %v2703_v4, %v6389_v8  ;;  %v6392_v17 = vmul.f32 %v11732_v47, %v2705_v10  ;;  %vm6117_vm1 = vcmp.ge.f32.partialorder %v3058_v40, 0.0  ;;  %v3060_v18 = vpop.f32.mrb[127].mxu1 }
 0x43f   : > { %8953 = vst [vmem:[%s10045_s7 + $0x17d0] sm:$0xff] %v6646_v42  ;;  %8952 = vst [vmem:[%s10045_s7 + $0x17c8] sm:$0xff] %v6645_v16  ;;  %v6647_v19 = vsel %vm6114_vm14, %v3056_v9, %v6391_v14  ;;  %v6394_v24 = vmul.f32 %v11735_v36, %v3058_v40  ;;  %vm6116_vm2 = vcmp.ge.f32.partialorder %v2707_v15, 0.0  ;;  %v6393_v27 = vmul.f32 %v11755_v12, %v2707_v15 }
 0x440   : > { %8409 = vmatmul.mubr.msk.bf16.gmra.mrb[232].mxu0 %vm848_vm0, %v9422_v28  ;;  %8954 = vst [vmem:[%s10045_s7 + $0x17d8] sm:$0xff] %v6647_v19  ;;  %v6648_v47 = vsel %vm6115_vm15, %v2705_v10, %v6392_v17  ;;  %vm6118_vm3 = vcmp.ge.f32.partialorder %v3060_v18, 0.0  ;;  %v6395_v29 = vmul.f32 %v11761_v26, %v3060_v18  ;;  %8441 = vmatmul.mubr.msk.bf16.gmra.mrb[232].mxu1 %vm848_vm0, %v9422_v28 }
 0x441   : > { %v12567_v36 = vrot.slane %v6909_v62, %v10017_v43  ;;  %3365 = vmatprep.mubr.bf16.mxu0 %v9578_v0  ;;  %8955 = vst [vmem:[%s10045_s7 + $0x17e0] sm:$0xff] %v6648_v47  ;;  %v6650_v12 = vsel %vm6117_vm1, %v3058_v40, %v6394_v24  ;;  %v6649_v30 = vsel %vm6116_vm2, %v2707_v15, %v6393_v27  ;;  %v9424_v40 = vld [vmem:[%s13218_s1 + $0xe0] sm:$0xff]  }
 0x442   : > { %3718 = vmatprep.mubr.bf16.mxu1 %v9578_v0  ;;  %8957 = vst [vmem:[%s10045_s7 + $0x17f0] sm:$0xff] %v6650_v12  ;;  %8956 = vst [vmem:[%s10045_s7 + $0x17e8] sm:$0xff] %v6649_v30  ;;  %v6651_v32 = vsel %vm6118_vm3, %v3060_v18, %v6395_v29  ;;  %v3097_v26 = vpop.f32.mrb[128].mxu0 }
 0x443   : > { %8958 = vst [vmem:[%s10045_s7 + $0x17f8] sm:$0xff] %v6651_v32  ;;  %vm6910_vm4 = vcmp.ge.f32.partialorder %v3097_v26, 0.0  ;;  %v7187_v43 = vmul.f32 %v12544_v5, %v3097_v26  ;;  %v3450_v33 = vpop.f32.mrb[128].mxu1  ;;  %v3099_v34 = vpop.f32.mrb[129].mxu0 }
 0x444   : > { %vm6912_vm5 = vcmp.ge.f32.partialorder %v3450_v33, 0.0  ;;  %v7189_v45 = vmul.f32 %v12547_v6, %v3450_v33  ;;  %vm6911_vm6 = vcmp.ge.f32.partialorder %v3099_v34, 0.0  ;;  %v7188_v44 = vmul.f32 %v12567_v36, %v3099_v34  ;;  %v3452_v35 = vpop.f32.mrb[129].mxu1  ;;  %v3101_v38 = vpop.f32.mrb[130].mxu0 }
 0x445   : > { %v7443_v48 = vsel %vm6910_vm4, %v3097_v26, %v7187_v43  ;;  %vm6913_vm7 = vcmp.ge.f32.partialorder %v3452_v35, 0.0  ;;  %v7190_v41 = vmul.f32 %v12573_v31, %v3452_v35  ;;  %vm6914_vm8 = vcmp.ge.f32.partialorder %v3101_v38, 0.0  ;;  %v3454_v49 = vpop.f32.mrb[130].mxu1  ;;  %v3103_v50 = vpop.f32.mrb[131].mxu0 }
 0x446   : > { %8959 = vst [vmem:[%s10045_s7 + $0x1800] sm:$0xff] %v7443_v48  ;;  %v7445_v53 = vsel %vm6912_vm5, %v3450_v33, %v7189_v45  ;;  %v7444_v54 = vsel %vm6911_vm6, %v3099_v34, %v7188_v44  ;;  %v7191_v55 = vmul.f32 %v12544_v5, %v3101_v38  ;;  %vm6916_vm9 = vcmp.ge.f32.partialorder %v3454_v49, 0.0  ;;  %v3456_v56 = vpop.f32.mrb[131].mxu1 }
 0x447   : > { %8961 = vst [vmem:[%s10045_s7 + $0x1810] sm:$0xff] %v7445_v53  ;;  %8960 = vst [vmem:[%s10045_s7 + $0x1808] sm:$0xff] %v7444_v54  ;;  %v7446_v58 = vsel %vm6913_vm7, %v3452_v35, %v7190_v41  ;;  %v7193_v59 = vmul.f32 %v12547_v6, %v3454_v49  ;;  %vm6915_vm10 = vcmp.ge.f32.partialorder %v3103_v50, 0.0  ;;  %v7192_v51 = vmul.f32 %v12567_v36, %v3103_v50 }
 0x448   : > { %8410 = vmatmul.mubr.msk.bf16.gmra.mrb[236].mxu0 %vm848_vm0, %v9423_v52  ;;  %8962 = vst [vmem:[%s10045_s7 + $0x1818] sm:$0xff] %v7446_v58  ;;  %v7447_v61 = vsel %vm6914_vm8, %v3101_v38, %v7191_v55  ;;  %vm6917_vm11 = vcmp.ge.f32.partialorder %v3456_v56, 0.0  ;;  %v7194_v60 = vmul.f32 %v12573_v31, %v3456_v56  ;;  %8442 = vmatmul.mubr.msk.bf16.gmra.mrb[236].mxu1 %vm848_vm0, %v9423_v52 }
 0x449   : > { %3375 = vmatprep.mubr.bf16.mxu0 %v9578_v0  ;;  %8963 = vst [vmem:[%s10045_s7 + $0x1820] sm:$0xff] %v7447_v61  ;;  %v7449_v20 = vsel %vm6916_vm9, %v3454_v49, %v7193_v59  ;;  %v7448_v11 = vsel %vm6915_vm10, %v3103_v50, %v7192_v51  ;;  %3728 = vmatprep.mubr.bf16.mxu1 %v9578_v0  ;;  %v9425_v49 = vld [vmem:[%s13218_s1 + $0xe8] sm:$0xff]  }
 0x44a   : > { %8965 = vst [vmem:[%s10045_s7 + $0x1830] sm:$0xff] %v7449_v20  ;;  %8964 = vst [vmem:[%s10045_s7 + $0x1828] sm:$0xff] %v7448_v11  ;;  %v7450_v57 = vsel %vm6917_vm11, %v3456_v56, %v7194_v60  ;;  %v3107_v46 = vpop.f32.mrb[132].mxu0 }
 0x44b   : > { %8966 = vst [vmem:[%s10045_s7 + $0x1838] sm:$0xff] %v7450_v57  ;;  %vm6918_vm12 = vcmp.ge.f32.partialorder %v3107_v46, 0.0  ;;  %v7195_v39 = vmul.f32 %v12544_v5, %v3107_v46  ;;  %v3460_v21 = vpop.f32.mrb[132].mxu1  ;;  %v3109_v37 = vpop.f32.mrb[133].mxu0 }
 0x44c   : > { %vm6920_vm13 = vcmp.ge.f32.partialorder %v3460_v21, 0.0  ;;  %v7197_v23 = vmul.f32 %v12547_v6, %v3460_v21  ;;  %vm6919_vm14 = vcmp.ge.f32.partialorder %v3109_v37, 0.0  ;;  %v7196_v62 = vmul.f32 %v12567_v36, %v3109_v37  ;;  %v3462_v22 = vpop.f32.mrb[133].mxu1  ;;  %v3111_v25 = vpop.f32.mrb[134].mxu0 }
 0x44d   : > { %v7451_v63 = vsel %vm6918_vm12, %v3107_v46, %v7195_v39  ;;  %vm6921_vm15 = vcmp.ge.f32.partialorder %v3462_v22, 0.0  ;;  %v7198_v1 = vmul.f32 %v12573_v31, %v3462_v22  ;;  %vm6922_vm1 = vcmp.ge.f32.partialorder %v3111_v25, 0.0  ;;  %v3464_v2 = vpop.f32.mrb[134].mxu1  ;;  %v3113_v3 = vpop.f32.mrb[135].mxu0 }
 0x44e   : > { %8967 = vst [vmem:[%s10045_s7 + $0x1840] sm:$0xff] %v7451_v63  ;;  %v7453_v4 = vsel %vm6920_vm13, %v3460_v21, %v7197_v23  ;;  %v7452_v7 = vsel %vm6919_vm14, %v3109_v37, %v7196_v62  ;;  %v7199_v8 = vmul.f32 %v12544_v5, %v3111_v25  ;;  %vm6924_vm2 = vcmp.ge.f32.partialorder %v3464_v2, 0.0  ;;  %v3466_v9 = vpop.f32.mrb[135].mxu1 }
 0x44f   : > { %8969 = vst [vmem:[%s10045_s7 + $0x1850] sm:$0xff] %v7453_v4  ;;  %8968 = vst [vmem:[%s10045_s7 + $0x1848] sm:$0xff] %v7452_v7  ;;  %v7454_v10 = vsel %vm6921_vm15, %v3462_v22, %v7198_v1  ;;  %v7201_v13 = vmul.f32 %v12547_v6, %v3464_v2  ;;  %vm6923_vm3 = vcmp.ge.f32.partialorder %v3113_v3, 0.0  ;;  %v7200_v14 = vmul.f32 %v12567_v36, %v3113_v3 }
 0x450   : > { %8411 = vmatmul.mubr.msk.bf16.gmra.mrb[240].mxu0 %vm848_vm0, %v9424_v40  ;;  %8970 = vst [vmem:[%s10045_s7 + $0x1858] sm:$0xff] %v7454_v10  ;;  %v7455_v15 = vsel %vm6922_vm1, %v3111_v25, %v7199_v8  ;;  %vm6925_vm4 = vcmp.ge.f32.partialorder %v3466_v9, 0.0  ;;  %v7202_v42 = vmul.f32 %v12573_v31, %v3466_v9  ;;  %8443 = vmatmul.mubr.msk.bf16.gmra.mrb[240].mxu1 %vm848_vm0, %v9424_v40 }
 0x451   : > { %3385 = vmatprep.mubr.bf16.mxu0 %v9578_v0  ;;  %8971 = vst [vmem:[%s10045_s7 + $0x1860] sm:$0xff] %v7455_v15  ;;  %v7457_v16 = vsel %vm6924_vm2, %v3464_v2, %v7201_v13  ;;  %v7456_v17 = vsel %vm6923_vm3, %v3113_v3, %v7200_v14  ;;  %3738 = vmatprep.mubr.bf16.mxu1 %v9578_v0  ;;  %v9426_v2 = vld [vmem:[%s13218_s1 + $0xf0] sm:$0xff]  }
 0x452   : > { %8973 = vst [vmem:[%s10045_s7 + $0x1870] sm:$0xff] %v7457_v16  ;;  %8972 = vst [vmem:[%s10045_s7 + $0x1868] sm:$0xff] %v7456_v17  ;;  %v7458_v18 = vsel %vm6925_vm4, %v3466_v9, %v7202_v42  ;;  %v3117_v19 = vpop.f32.mrb[136].mxu0 }
 0x453   : > { %8974 = vst [vmem:[%s10045_s7 + $0x1878] sm:$0xff] %v7458_v18  ;;  %vm6926_vm5 = vcmp.ge.f32.partialorder %v3117_v19, 0.0  ;;  %v7203_v24 = vmul.f32 %v12544_v5, %v3117_v19  ;;  %v3470_v27 = vpop.f32.mrb[136].mxu1  ;;  %v3119_v28 = vpop.f32.mrb[137].mxu0 }
 0x454   : > { %vm6928_vm6 = vcmp.ge.f32.partialorder %v3470_v27, 0.0  ;;  %v7205_v47 = vmul.f32 %v12547_v6, %v3470_v27  ;;  %vm6927_vm7 = vcmp.ge.f32.partialorder %v3119_v28, 0.0  ;;  %v7204_v29 = vmul.f32 %v12567_v36, %v3119_v28  ;;  %v3472_v12 = vpop.f32.mrb[137].mxu1  ;;  %v3121_v30 = vpop.f32.mrb[138].mxu0 }
 0x455   : > { %v7459_v32 = vsel %vm6926_vm5, %v3117_v19, %v7203_v24  ;;  %vm6929_vm8 = vcmp.ge.f32.partialorder %v3472_v12, 0.0  ;;  %v7206_v26 = vmul.f32 %v12573_v31, %v3472_v12  ;;  %vm6930_vm9 = vcmp.ge.f32.partialorder %v3121_v30, 0.0  ;;  %v3474_v43 = vpop.f32.mrb[138].mxu1  ;;  %v3123_v33 = vpop.f32.mrb[139].mxu0 }
 0x456   : > { %8975 = vst [vmem:[%s10045_s7 + $0x1880] sm:$0xff] %v7459_v32  ;;  %v7461_v34 = vsel %vm6928_vm6, %v3470_v27, %v7205_v47  ;;  %v7460_v45 = vsel %vm6927_vm7, %v3119_v28, %v7204_v29  ;;  %v7207_v44 = vmul.f32 %v12544_v5, %v3121_v30  ;;  %vm6932_vm10 = vcmp.ge.f32.partialorder %v3474_v43, 0.0  ;;  %v3476_v35 = vpop.f32.mrb[139].mxu1 }
 0x457   : > { %8977 = vst [vmem:[%s10045_s7 + $0x1890] sm:$0xff] %v7461_v34  ;;  %8976 = vst [vmem:[%s10045_s7 + $0x1888] sm:$0xff] %v7460_v45  ;;  %v7462_v38 = vsel %vm6929_vm8, %v3472_v12, %v7206_v26  ;;  %v7209_v48 = vmul.f32 %v12547_v6, %v3474_v43  ;;  %vm6931_vm11 = vcmp.ge.f32.partialorder %v3123_v33, 0.0  ;;  %v7208_v41 = vmul.f32 %v12567_v36, %v3123_v33  ;;  %v9427_v26 = vld [vmem:[%s13218_s1 + $0xf8] sm:$0xff]  }
 0x458   : > { %8412 = vmatmul.mubr.msk.bf16.gmra.mrb[244].mxu0 %vm848_vm0, %v9425_v49  ;;  %8978 = vst [vmem:[%s10045_s7 + $0x1898] sm:$0xff] %v7462_v38  ;;  %v7463_v50 = vsel %vm6930_vm9, %v3121_v30, %v7207_v44  ;;  %vm6933_vm12 = vcmp.ge.f32.partialorder %v3476_v35, 0.0  ;;  %v7210_v53 = vmul.f32 %v12573_v31, %v3476_v35  ;;  %8444 = vmatmul.mubr.msk.bf16.gmra.mrb[244].mxu1 %vm848_vm0, %v9425_v49 }
 0x459   : > { %3395 = vmatprep.mubr.bf16.mxu0 %v9578_v0  ;;  %8979 = vst [vmem:[%s10045_s7 + $0x18a0] sm:$0xff] %v7463_v50  ;;  %v7465_v54 = vsel %vm6932_vm10, %v3474_v43, %v7209_v48  ;;  %v7464_v55 = vsel %vm6931_vm11, %v3123_v33, %v7208_v41  ;;  %3748 = vmatprep.mubr.bf16.mxu1 %v9578_v0 }
 0x45a   : > { %8981 = vst [vmem:[%s10045_s7 + $0x18b0] sm:$0xff] %v7465_v54  ;;  %8980 = vst [vmem:[%s10045_s7 + $0x18a8] sm:$0xff] %v7464_v55  ;;  %v7466_v56 = vsel %vm6933_vm12, %v3476_v35, %v7210_v53  ;;  %v3127_v58 = vpop.f32.mrb[140].mxu0 }
 0x45b   : > { %8982 = vst [vmem:[%s10045_s7 + $0x18b8] sm:$0xff] %v7466_v56  ;;  %vm6934_vm13 = vcmp.ge.f32.partialorder %v3127_v58, 0.0  ;;  %v7211_v59 = vmul.f32 %v12544_v5, %v3127_v58  ;;  %v3480_v51 = vpop.f32.mrb[140].mxu1  ;;  %v3129_v52 = vpop.f32.mrb[141].mxu0 }
 0x45c   : > { %vm6936_vm14 = vcmp.ge.f32.partialorder %v3480_v51, 0.0  ;;  %v7213_v61 = vmul.f32 %v12547_v6, %v3480_v51  ;;  %vm6935_vm15 = vcmp.ge.f32.partialorder %v3129_v52, 0.0  ;;  %v7212_v60 = vmul.f32 %v12567_v36, %v3129_v52  ;;  %v3482_v20 = vpop.f32.mrb[141].mxu1  ;;  %v3131_v11 = vpop.f32.mrb[142].mxu0 }
 0x45d   : > { %v7467_v57 = vsel %vm6934_vm13, %v3127_v58, %v7211_v59  ;;  %vm6937_vm1 = vcmp.ge.f32.partialorder %v3482_v20, 0.0  ;;  %v7214_v46 = vmul.f32 %v12573_v31, %v3482_v20  ;;  %vm6938_vm2 = vcmp.ge.f32.partialorder %v3131_v11, 0.0  ;;  %v3484_v39 = vpop.f32.mrb[142].mxu1  ;;  %v3133_v21 = vpop.f32.mrb[143].mxu0 }
 0x45e   : > { %8983 = vst [vmem:[%s10045_s7 + $0x18c0] sm:$0xff] %v7467_v57  ;;  %v7469_v37 = vsel %vm6936_vm14, %v3480_v51, %v7213_v61  ;;  %v7468_v23 = vsel %vm6935_vm15, %v3129_v52, %v7212_v60  ;;  %v7215_v62 = vmul.f32 %v12544_v5, %v3131_v11  ;;  %vm6940_vm3 = vcmp.ge.f32.partialorder %v3484_v39, 0.0  ;;  %v3486_v22 = vpop.f32.mrb[143].mxu1 }
 0x45f   : > { %8985 = vst [vmem:[%s10045_s7 + $0x18d0] sm:$0xff] %v7469_v37  ;;  %8984 = vst [vmem:[%s10045_s7 + $0x18c8] sm:$0xff] %v7468_v23  ;;  %v7470_v25 = vsel %vm6937_vm1, %v3482_v20, %v7214_v46  ;;  %v7217_v63 = vmul.f32 %v12547_v6, %v3484_v39  ;;  %vm6939_vm4 = vcmp.ge.f32.partialorder %v3133_v21, 0.0  ;;  %v7216_v1 = vmul.f32 %v12567_v36, %v3133_v21 }
 0x460   : > { %8413 = vmatmul.mubr.msk.bf16.gmra.mrb[248].mxu0 %vm848_vm0, %v9426_v2  ;;  %8986 = vst [vmem:[%s10045_s7 + $0x18d8] sm:$0xff] %v7470_v25  ;;  %v7471_v3 = vsel %vm6938_vm2, %v3131_v11, %v7215_v62  ;;  %vm6941_vm5 = vcmp.ge.f32.partialorder %v3486_v22, 0.0  ;;  %v7218_v4 = vmul.f32 %v12573_v31, %v3486_v22  ;;  %8445 = vmatmul.mubr.msk.bf16.gmra.mrb[248].mxu1 %vm848_vm0, %v9426_v2 }
 0x461   : > { %3405 = vmatprep.mubr.bf16.mxu0 %v9578_v0  ;;  %8987 = vst [vmem:[%s10045_s7 + $0x18e0] sm:$0xff] %v7471_v3  ;;  %v7473_v7 = vsel %vm6940_vm3, %v3484_v39, %v7217_v63  ;;  %v7472_v8 = vsel %vm6939_vm4, %v3133_v21, %v7216_v1  ;;  %3758 = vmatprep.mubr.bf16.mxu1 %v9578_v0 }
 0x462   : > { %8989 = vst [vmem:[%s10045_s7 + $0x18f0] sm:$0xff] %v7473_v7  ;;  %8988 = vst [vmem:[%s10045_s7 + $0x18e8] sm:$0xff] %v7472_v8  ;;  %v7474_v9 = vsel %vm6941_vm5, %v3486_v22, %v7218_v4  ;;  %v3137_v10 = vpop.f32.mrb[144].mxu0 }
 0x463   : > { %8990 = vst [vmem:[%s10045_s7 + $0x18f8] sm:$0xff] %v7474_v9  ;;  %vm6942_vm6 = vcmp.ge.f32.partialorder %v3137_v10, 0.0  ;;  %v7219_v13 = vmul.f32 %v12544_v5, %v3137_v10  ;;  %v3490_v14 = vpop.f32.mrb[144].mxu1  ;;  %v3139_v40 = vpop.f32.mrb[145].mxu0 }
 0x464   : > { %vm6944_vm7 = vcmp.ge.f32.partialorder %v3490_v14, 0.0  ;;  %v7221_v15 = vmul.f32 %v12547_v6, %v3490_v14  ;;  %vm6943_vm8 = vcmp.ge.f32.partialorder %v3139_v40, 0.0  ;;  %v7220_v42 = vmul.f32 %v12567_v36, %v3139_v40  ;;  %v3492_v0 = vpop.f32.mrb[145].mxu1  ;;  %v3141_v16 = vpop.f32.mrb[146].mxu0 }
 0x465   : > { %v7475_v17 = vsel %vm6942_vm6, %v3137_v10, %v7219_v13  ;;  %vm6945_vm9 = vcmp.ge.f32.partialorder %v3492_v0, 0.0  ;;  %v7222_v18 = vmul.f32 %v12573_v31, %v3492_v0  ;;  %vm6946_vm10 = vcmp.ge.f32.partialorder %v3141_v16, 0.0  ;;  %v3494_v19 = vpop.f32.mrb[146].mxu1  ;;  %v3143_v24 = vpop.f32.mrb[147].mxu0 }
 0x466   : > { %8991 = vst [vmem:[%s10045_s7 + $0x1900] sm:$0xff] %v7475_v17  ;;  %v7477_v27 = vsel %vm6944_vm7, %v3490_v14, %v7221_v15  ;;  %v7476_v28 = vsel %vm6943_vm8, %v3139_v40, %v7220_v42  ;;  %v7223_v47 = vmul.f32 %v12544_v5, %v3141_v16  ;;  %vm6948_vm11 = vcmp.ge.f32.partialorder %v3494_v19, 0.0  ;;  %v3496_v29 = vpop.f32.mrb[147].mxu1 }
 0x467   : > { %8993 = vst [vmem:[%s10045_s7 + $0x1910] sm:$0xff] %v7477_v27  ;;  %8992 = vst [vmem:[%s10045_s7 + $0x1908] sm:$0xff] %v7476_v28  ;;  %v7478_v12 = vsel %vm6945_vm9, %v3492_v0, %v7222_v18  ;;  %v7225_v30 = vmul.f32 %v12547_v6, %v3494_v19  ;;  %vm6947_vm12 = vcmp.ge.f32.partialorder %v3143_v24, 0.0  ;;  %v7224_v32 = vmul.f32 %v12567_v36, %v3143_v24 }
 0x468   : > { %8414 = vmatmul.mubr.msk.bf16.gmra.mrb[252].mxu0 %vm848_vm0, %v9427_v26  ;;  %8994 = vst [vmem:[%s10045_s7 + $0x1918] sm:$0xff] %v7478_v12  ;;  %v7479_v43 = vsel %vm6946_vm10, %v3141_v16, %v7223_v47  ;;  %vm6949_vm13 = vcmp.ge.f32.partialorder %v3496_v29, 0.0  ;;  %v7226_v33 = vmul.f32 %v12573_v31, %v3496_v29  ;;  %8446 = vmatmul.mubr.msk.bf16.gmra.mrb[252].mxu1 %vm848_vm0, %v9427_v26 }
 0x469   : > { %8995 = vst [vmem:[%s10045_s7 + $0x1920] sm:$0xff] %v7479_v43  ;;  %v7481_v34 = vsel %vm6948_vm11, %v3494_v19, %v7225_v30  ;;  %v7480_v45 = vsel %vm6947_vm12, %v3143_v24, %v7224_v32 }
 0x46a   : > { %8997 = vst [vmem:[%s10045_s7 + $0x1930] sm:$0xff] %v7481_v34  ;;  %8996 = vst [vmem:[%s10045_s7 + $0x1928] sm:$0xff] %v7480_v45  ;;  %v7482_v44 = vsel %vm6949_vm13, %v3496_v29, %v7226_v33  ;;  %v3147_v35 = vpop.f32.mrb[148].mxu0 }
 0x46b   : > { %8998 = vst [vmem:[%s10045_s7 + $0x1938] sm:$0xff] %v7482_v44  ;;  %vm6950_vm14 = vcmp.ge.f32.partialorder %v3147_v35, 0.0  ;;  %v7227_v38 = vmul.f32 %v12544_v5, %v3147_v35  ;;  %v3500_v48 = vpop.f32.mrb[148].mxu1  ;;  %v3149_v41 = vpop.f32.mrb[149].mxu0 }
 0x46c   : > { %vm6952_vm15 = vcmp.ge.f32.partialorder %v3500_v48, 0.0  ;;  %v7229_v49 = vmul.f32 %v12547_v6, %v3500_v48  ;;  %vm6951_vm1 = vcmp.ge.f32.partialorder %v3149_v41, 0.0  ;;  %v7228_v50 = vmul.f32 %v12567_v36, %v3149_v41  ;;  %v3502_v53 = vpop.f32.mrb[149].mxu1  ;;  %v3151_v54 = vpop.f32.mrb[150].mxu0 }
 0x46d   : > { %v7483_v55 = vsel %vm6950_vm14, %v3147_v35, %v7227_v38  ;;  %vm6953_vm0 = vcmp.ge.f32.partialorder %v3502_v53, 0.0  ;;  %v7230_v56 = vmul.f32 %v12573_v31, %v3502_v53  ;;  %vm6954_vm2 = vcmp.ge.f32.partialorder %v3151_v54, 0.0  ;;  %v3504_v58 = vpop.f32.mrb[150].mxu1  ;;  %v3153_v59 = vpop.f32.mrb[151].mxu0 }
 0x46e   : > { %8999 = vst [vmem:[%s10045_s7 + $0x1940] sm:$0xff] %v7483_v55  ;;  %v7485_v51 = vsel %vm6952_vm15, %v3500_v48, %v7229_v49  ;;  %v7484_v52 = vsel %vm6951_vm1, %v3149_v41, %v7228_v50  ;;  %v7231_v61 = vmul.f32 %v12544_v5, %v3151_v54  ;;  %vm6956_vm3 = vcmp.ge.f32.partialorder %v3504_v58, 0.0  ;;  %v3506_v60 = vpop.f32.mrb[151].mxu1 }
 0x46f   : > { %9001 = vst [vmem:[%s10045_s7 + $0x1950] sm:$0xff] %v7485_v51  ;;  %9000 = vst [vmem:[%s10045_s7 + $0x1948] sm:$0xff] %v7484_v52  ;;  %v7486_v20 = vsel %vm6953_vm0, %v3502_v53, %v7230_v56  ;;  %v7233_v11 = vmul.f32 %v12547_v6, %v3504_v58  ;;  %vm6955_vm4 = vcmp.ge.f32.partialorder %v3153_v59, 0.0  ;;  %v7232_v57 = vmul.f32 %v12567_v36, %v3153_v59 }
 0x470   : > { %9002 = vst [vmem:[%s10045_s7 + $0x1958] sm:$0xff] %v7486_v20  ;;  %v7487_v46 = vsel %vm6954_vm2, %v3151_v54, %v7231_v61  ;;  %vm6957_vm5 = vcmp.ge.f32.partialorder %v3506_v60, 0.0  ;;  %v7234_v39 = vmul.f32 %v12573_v31, %v3506_v60 }
 0x471   : > { %9003 = vst [vmem:[%s10045_s7 + $0x1960] sm:$0xff] %v7487_v46  ;;  %v7489_v21 = vsel %vm6956_vm3, %v3504_v58, %v7233_v11  ;;  %v7488_v37 = vsel %vm6955_vm4, %v3153_v59, %v7232_v57 }
 0x472   : > { %9005 = vst [vmem:[%s10045_s7 + $0x1970] sm:$0xff] %v7489_v21  ;;  %9004 = vst [vmem:[%s10045_s7 + $0x1968] sm:$0xff] %v7488_v37  ;;  %v7490_v23 = vsel %vm6957_vm5, %v3506_v60, %v7234_v39  ;;  %v3157_v62 = vpop.f32.mrb[152].mxu0 }
 0x473   : > { %9006 = vst [vmem:[%s10045_s7 + $0x1978] sm:$0xff] %v7490_v23  ;;  %vm6958_vm6 = vcmp.ge.f32.partialorder %v3157_v62, 0.0  ;;  %v7235_v22 = vmul.f32 %v12544_v5, %v3157_v62  ;;  %v3510_v25 = vpop.f32.mrb[152].mxu1  ;;  %v3159_v63 = vpop.f32.mrb[153].mxu0 }
 0x474   : > { %vm6960_vm7 = vcmp.ge.f32.partialorder %v3510_v25, 0.0  ;;  %v7237_v1 = vmul.f32 %v12547_v6, %v3510_v25  ;;  %vm6959_vm8 = vcmp.ge.f32.partialorder %v3159_v63, 0.0  ;;  %v7236_v2 = vmul.f32 %v12567_v36, %v3159_v63  ;;  %v3512_v3 = vpop.f32.mrb[153].mxu1  ;;  %v3161_v4 = vpop.f32.mrb[154].mxu0 }
 0x475   : > { %v7491_v7 = vsel %vm6958_vm6, %v3157_v62, %v7235_v22  ;;  %vm6961_vm9 = vcmp.ge.f32.partialorder %v3512_v3, 0.0  ;;  %v7238_v8 = vmul.f32 %v12573_v31, %v3512_v3  ;;  %vm6962_vm10 = vcmp.ge.f32.partialorder %v3161_v4, 0.0  ;;  %v3514_v9 = vpop.f32.mrb[154].mxu1  ;;  %v3163_v10 = vpop.f32.mrb[155].mxu0 }
 0x476   : > { %9007 = vst [vmem:[%s10045_s7 + $0x1980] sm:$0xff] %v7491_v7  ;;  %v7493_v13 = vsel %vm6960_vm7, %v3510_v25, %v7237_v1  ;;  %v7492_v14 = vsel %vm6959_vm8, %v3159_v63, %v7236_v2  ;;  %v7239_v40 = vmul.f32 %v12544_v5, %v3161_v4  ;;  %vm6964_vm11 = vcmp.ge.f32.partialorder %v3514_v9, 0.0  ;;  %v3516_v15 = vpop.f32.mrb[155].mxu1 }
 0x477   : > { %9009 = vst [vmem:[%s10045_s7 + $0x1990] sm:$0xff] %v7493_v13  ;;  %9008 = vst [vmem:[%s10045_s7 + $0x1988] sm:$0xff] %v7492_v14  ;;  %v7494_v42 = vsel %vm6961_vm9, %v3512_v3, %v7238_v8  ;;  %v7241_v0 = vmul.f32 %v12547_v6, %v3514_v9  ;;  %vm6963_vm12 = vcmp.ge.f32.partialorder %v3163_v10, 0.0  ;;  %v7240_v16 = vmul.f32 %v12567_v36, %v3163_v10 }
 0x478   : > { %9010 = vst [vmem:[%s10045_s7 + $0x1998] sm:$0xff] %v7494_v42  ;;  %v7495_v17 = vsel %vm6962_vm10, %v3161_v4, %v7239_v40  ;;  %vm6965_vm13 = vcmp.ge.f32.partialorder %v3516_v15, 0.0  ;;  %v7242_v18 = vmul.f32 %v12573_v31, %v3516_v15 }
 0x479   : > { %9011 = vst [vmem:[%s10045_s7 + $0x19a0] sm:$0xff] %v7495_v17  ;;  %v7497_v19 = vsel %vm6964_vm11, %v3514_v9, %v7241_v0  ;;  %v7496_v24 = vsel %vm6963_vm12, %v3163_v10, %v7240_v16 }
 0x47a   : > { %9013 = vst [vmem:[%s10045_s7 + $0x19b0] sm:$0xff] %v7497_v19  ;;  %9012 = vst [vmem:[%s10045_s7 + $0x19a8] sm:$0xff] %v7496_v24  ;;  %v7498_v27 = vsel %vm6965_vm13, %v3516_v15, %v7242_v18  ;;  %v3167_v28 = vpop.f32.mrb[156].mxu0 }
 0x47b   : > { %9014 = vst [vmem:[%s10045_s7 + $0x19b8] sm:$0xff] %v7498_v27  ;;  %vm6966_vm14 = vcmp.ge.f32.partialorder %v3167_v28, 0.0  ;;  %v7243_v47 = vmul.f32 %v12544_v5, %v3167_v28  ;;  %v3520_v29 = vpop.f32.mrb[156].mxu1  ;;  %v3169_v12 = vpop.f32.mrb[157].mxu0 }
 0x47c   : > { %vm6968_vm15 = vcmp.ge.f32.partialorder %v3520_v29, 0.0  ;;  %v7245_v30 = vmul.f32 %v12547_v6, %v3520_v29  ;;  %vm6967_vm1 = vcmp.ge.f32.partialorder %v3169_v12, 0.0  ;;  %v7244_v32 = vmul.f32 %v12567_v36, %v3169_v12  ;;  %v3522_v26 = vpop.f32.mrb[157].mxu1  ;;  %v3171_v43 = vpop.f32.mrb[158].mxu0 }
 0x47d   : > { %v7499_v33 = vsel %vm6966_vm14, %v3167_v28, %v7243_v47  ;;  %vm6969_vm0 = vcmp.ge.f32.partialorder %v3522_v26, 0.0  ;;  %v7246_v34 = vmul.f32 %v12573_v31, %v3522_v26  ;;  %vm6970_vm2 = vcmp.ge.f32.partialorder %v3171_v43, 0.0  ;;  %v3524_v45 = vpop.f32.mrb[158].mxu1  ;;  %v3173_v44 = vpop.f32.mrb[159].mxu0 }
 0x47e   : > { %9015 = vst [vmem:[%s10045_s7 + $0x19c0] sm:$0xff] %v7499_v33  ;;  %v7501_v35 = vsel %vm6968_vm15, %v3520_v29, %v7245_v30  ;;  %v7500_v38 = vsel %vm6967_vm1, %v3169_v12, %v7244_v32  ;;  %v7247_v48 = vmul.f32 %v12544_v5, %v3171_v43  ;;  %vm6972_vm3 = vcmp.ge.f32.partialorder %v3524_v45, 0.0  ;;  %v3526_v41 = vpop.f32.mrb[159].mxu1 }
 0x47f   : > { %9017 = vst [vmem:[%s10045_s7 + $0x19d0] sm:$0xff] %v7501_v35  ;;  %9016 = vst [vmem:[%s10045_s7 + $0x19c8] sm:$0xff] %v7500_v38  ;;  %v7502_v49 = vsel %vm6969_vm0, %v3522_v26, %v7246_v34  ;;  %v7249_v50 = vmul.f32 %v12547_v6, %v3524_v45  ;;  %vm6971_vm4 = vcmp.ge.f32.partialorder %v3173_v44, 0.0  ;;  %v7248_v53 = vmul.f32 %v12567_v36, %v3173_v44 }
 0x480   : > { %9018 = vst [vmem:[%s10045_s7 + $0x19d8] sm:$0xff] %v7502_v49  ;;  %v7503_v54 = vsel %vm6970_vm2, %v3171_v43, %v7247_v48  ;;  %vm6973_vm5 = vcmp.ge.f32.partialorder %v3526_v41, 0.0  ;;  %v7250_v55 = vmul.f32 %v12573_v31, %v3526_v41 }
 0x481   : > { %9019 = vst [vmem:[%s10045_s7 + $0x19e0] sm:$0xff] %v7503_v54  ;;  %v7505_v56 = vsel %vm6972_vm3, %v3524_v45, %v7249_v50  ;;  %v7504_v58 = vsel %vm6971_vm4, %v3173_v44, %v7248_v53 }
 0x482   : > { %9021 = vst [vmem:[%s10045_s7 + $0x19f0] sm:$0xff] %v7505_v56  ;;  %9020 = vst [vmem:[%s10045_s7 + $0x19e8] sm:$0xff] %v7504_v58  ;;  %v7506_v59 = vsel %vm6973_vm5, %v3526_v41, %v7250_v55  ;;  %v3177_v51 = vpop.f32.mrb[160].mxu0 }
 0x483   : > { %9022 = vst [vmem:[%s10045_s7 + $0x19f8] sm:$0xff] %v7506_v59  ;;  %vm6974_vm6 = vcmp.ge.f32.partialorder %v3177_v51, 0.0  ;;  %v7251_v52 = vmul.f32 %v12544_v5, %v3177_v51  ;;  %v3530_v61 = vpop.f32.mrb[160].mxu1  ;;  %v3179_v60 = vpop.f32.mrb[161].mxu0 }
 0x484   : > { %vm6976_vm7 = vcmp.ge.f32.partialorder %v3530_v61, 0.0  ;;  %v7253_v20 = vmul.f32 %v12547_v6, %v3530_v61  ;;  %vm6975_vm8 = vcmp.ge.f32.partialorder %v3179_v60, 0.0  ;;  %v7252_v11 = vmul.f32 %v12567_v36, %v3179_v60  ;;  %v3532_v57 = vpop.f32.mrb[161].mxu1  ;;  %v3181_v46 = vpop.f32.mrb[162].mxu0 }
 0x485   : > { %v7507_v39 = vsel %vm6974_vm6, %v3177_v51, %v7251_v52  ;;  %vm6977_vm9 = vcmp.ge.f32.partialorder %v3532_v57, 0.0  ;;  %v7254_v21 = vmul.f32 %v12573_v31, %v3532_v57  ;;  %vm6978_vm10 = vcmp.ge.f32.partialorder %v3181_v46, 0.0  ;;  %v3534_v37 = vpop.f32.mrb[162].mxu1  ;;  %v3183_v23 = vpop.f32.mrb[163].mxu0 }
 0x486   : > { %9023 = vst [vmem:[%s10045_s7 + $0x1a00] sm:$0xff] %v7507_v39  ;;  %v7509_v62 = vsel %vm6976_vm7, %v3530_v61, %v7253_v20  ;;  %v7508_v22 = vsel %vm6975_vm8, %v3179_v60, %v7252_v11  ;;  %v7255_v25 = vmul.f32 %v12544_v5, %v3181_v46  ;;  %vm6980_vm11 = vcmp.ge.f32.partialorder %v3534_v37, 0.0  ;;  %v3536_v63 = vpop.f32.mrb[163].mxu1 }
 0x487   : > { %9025 = vst [vmem:[%s10045_s7 + $0x1a10] sm:$0xff] %v7509_v62  ;;  %9024 = vst [vmem:[%s10045_s7 + $0x1a08] sm:$0xff] %v7508_v22  ;;  %v7510_v1 = vsel %vm6977_vm9, %v3532_v57, %v7254_v21  ;;  %v7257_v2 = vmul.f32 %v12547_v6, %v3534_v37  ;;  %vm6979_vm12 = vcmp.ge.f32.partialorder %v3183_v23, 0.0  ;;  %v7256_v3 = vmul.f32 %v12567_v36, %v3183_v23 }
 0x488   : > { %9026 = vst [vmem:[%s10045_s7 + $0x1a18] sm:$0xff] %v7510_v1  ;;  %v7511_v4 = vsel %vm6978_vm10, %v3181_v46, %v7255_v25  ;;  %vm6981_vm13 = vcmp.ge.f32.partialorder %v3536_v63, 0.0  ;;  %v7258_v7 = vmul.f32 %v12573_v31, %v3536_v63 }
 0x489   : > { %9027 = vst [vmem:[%s10045_s7 + $0x1a20] sm:$0xff] %v7511_v4  ;;  %v7513_v8 = vsel %vm6980_vm11, %v3534_v37, %v7257_v2  ;;  %v7512_v9 = vsel %vm6979_vm12, %v3183_v23, %v7256_v3 }
 0x48a   : > { %9029 = vst [vmem:[%s10045_s7 + $0x1a30] sm:$0xff] %v7513_v8  ;;  %9028 = vst [vmem:[%s10045_s7 + $0x1a28] sm:$0xff] %v7512_v9  ;;  %v7514_v10 = vsel %vm6981_vm13, %v3536_v63, %v7258_v7  ;;  %v3187_v13 = vpop.f32.mrb[164].mxu0 }
 0x48b   : > { %9030 = vst [vmem:[%s10045_s7 + $0x1a38] sm:$0xff] %v7514_v10  ;;  %vm6982_vm14 = vcmp.ge.f32.partialorder %v3187_v13, 0.0  ;;  %v7259_v14 = vmul.f32 %v12544_v5, %v3187_v13  ;;  %v3540_v40 = vpop.f32.mrb[164].mxu1  ;;  %v3189_v15 = vpop.f32.mrb[165].mxu0 }
 0x48c   : > { %vm6984_vm15 = vcmp.ge.f32.partialorder %v3540_v40, 0.0  ;;  %v7261_v42 = vmul.f32 %v12547_v6, %v3540_v40  ;;  %vm6983_vm1 = vcmp.ge.f32.partialorder %v3189_v15, 0.0  ;;  %v7260_v0 = vmul.f32 %v12567_v36, %v3189_v15  ;;  %v3542_v16 = vpop.f32.mrb[165].mxu1  ;;  %v3191_v17 = vpop.f32.mrb[166].mxu0 }
 0x48d   : > { %v7515_v18 = vsel %vm6982_vm14, %v3187_v13, %v7259_v14  ;;  %vm6985_vm0 = vcmp.ge.f32.partialorder %v3542_v16, 0.0  ;;  %v7262_v19 = vmul.f32 %v12573_v31, %v3542_v16  ;;  %vm6986_vm2 = vcmp.ge.f32.partialorder %v3191_v17, 0.0  ;;  %v3544_v24 = vpop.f32.mrb[166].mxu1  ;;  %v3193_v27 = vpop.f32.mrb[167].mxu0 }
 0x48e   : > { %9031 = vst [vmem:[%s10045_s7 + $0x1a40] sm:$0xff] %v7515_v18  ;;  %v7517_v28 = vsel %vm6984_vm15, %v3540_v40, %v7261_v42  ;;  %v7516_v47 = vsel %vm6983_vm1, %v3189_v15, %v7260_v0  ;;  %v7263_v29 = vmul.f32 %v12544_v5, %v3191_v17  ;;  %vm6988_vm3 = vcmp.ge.f32.partialorder %v3544_v24, 0.0  ;;  %v3546_v12 = vpop.f32.mrb[167].mxu1 }
 0x48f   : > { %9033 = vst [vmem:[%s10045_s7 + $0x1a50] sm:$0xff] %v7517_v28  ;;  %9032 = vst [vmem:[%s10045_s7 + $0x1a48] sm:$0xff] %v7516_v47  ;;  %v7518_v30 = vsel %vm6985_vm0, %v3542_v16, %v7262_v19  ;;  %v7265_v32 = vmul.f32 %v12547_v6, %v3544_v24  ;;  %vm6987_vm4 = vcmp.ge.f32.partialorder %v3193_v27, 0.0  ;;  %v7264_v26 = vmul.f32 %v12567_v36, %v3193_v27 }
 0x490   : > { %9034 = vst [vmem:[%s10045_s7 + $0x1a58] sm:$0xff] %v7518_v30  ;;  %v7519_v43 = vsel %vm6986_vm2, %v3191_v17, %v7263_v29  ;;  %vm6989_vm5 = vcmp.ge.f32.partialorder %v3546_v12, 0.0  ;;  %v7266_v33 = vmul.f32 %v12573_v31, %v3546_v12 }
 0x491   : > { %9035 = vst [vmem:[%s10045_s7 + $0x1a60] sm:$0xff] %v7519_v43  ;;  %v7521_v34 = vsel %vm6988_vm3, %v3544_v24, %v7265_v32  ;;  %v7520_v45 = vsel %vm6987_vm4, %v3193_v27, %v7264_v26 }
 0x492   : > { %9037 = vst [vmem:[%s10045_s7 + $0x1a70] sm:$0xff] %v7521_v34  ;;  %9036 = vst [vmem:[%s10045_s7 + $0x1a68] sm:$0xff] %v7520_v45  ;;  %v7522_v44 = vsel %vm6989_vm5, %v3546_v12, %v7266_v33  ;;  %v3197_v35 = vpop.f32.mrb[168].mxu0 }
 0x493   : > { %9038 = vst [vmem:[%s10045_s7 + $0x1a78] sm:$0xff] %v7522_v44  ;;  %vm6990_vm6 = vcmp.ge.f32.partialorder %v3197_v35, 0.0  ;;  %v7267_v38 = vmul.f32 %v12544_v5, %v3197_v35  ;;  %v3550_v48 = vpop.f32.mrb[168].mxu1  ;;  %v3199_v41 = vpop.f32.mrb[169].mxu0 }
 0x494   : > { %vm6992_vm7 = vcmp.ge.f32.partialorder %v3550_v48, 0.0  ;;  %v7269_v49 = vmul.f32 %v12547_v6, %v3550_v48  ;;  %vm6991_vm8 = vcmp.ge.f32.partialorder %v3199_v41, 0.0  ;;  %v7268_v50 = vmul.f32 %v12567_v36, %v3199_v41  ;;  %v3552_v53 = vpop.f32.mrb[169].mxu1  ;;  %v3201_v54 = vpop.f32.mrb[170].mxu0 }
 0x495   : > { %v7523_v55 = vsel %vm6990_vm6, %v3197_v35, %v7267_v38  ;;  %vm6993_vm9 = vcmp.ge.f32.partialorder %v3552_v53, 0.0  ;;  %v7270_v56 = vmul.f32 %v12573_v31, %v3552_v53  ;;  %vm6994_vm10 = vcmp.ge.f32.partialorder %v3201_v54, 0.0  ;;  %v3554_v58 = vpop.f32.mrb[170].mxu1  ;;  %v3203_v59 = vpop.f32.mrb[171].mxu0 }
 0x496   : > { %9039 = vst [vmem:[%s10045_s7 + $0x1a80] sm:$0xff] %v7523_v55  ;;  %v7525_v51 = vsel %vm6992_vm7, %v3550_v48, %v7269_v49  ;;  %v7524_v52 = vsel %vm6991_vm8, %v3199_v41, %v7268_v50  ;;  %v7271_v61 = vmul.f32 %v12544_v5, %v3201_v54  ;;  %vm6996_vm11 = vcmp.ge.f32.partialorder %v3554_v58, 0.0  ;;  %v3556_v60 = vpop.f32.mrb[171].mxu1 }
 0x497   : > { %9041 = vst [vmem:[%s10045_s7 + $0x1a90] sm:$0xff] %v7525_v51  ;;  %9040 = vst [vmem:[%s10045_s7 + $0x1a88] sm:$0xff] %v7524_v52  ;;  %v7526_v20 = vsel %vm6993_vm9, %v3552_v53, %v7270_v56  ;;  %v7273_v11 = vmul.f32 %v12547_v6, %v3554_v58  ;;  %vm6995_vm12 = vcmp.ge.f32.partialorder %v3203_v59, 0.0  ;;  %v7272_v57 = vmul.f32 %v12567_v36, %v3203_v59 }
 0x498   : > { %9042 = vst [vmem:[%s10045_s7 + $0x1a98] sm:$0xff] %v7526_v20  ;;  %v7527_v46 = vsel %vm6994_vm10, %v3201_v54, %v7271_v61  ;;  %vm6997_vm13 = vcmp.ge.f32.partialorder %v3556_v60, 0.0  ;;  %v7274_v39 = vmul.f32 %v12573_v31, %v3556_v60 }
 0x499   : > { %9043 = vst [vmem:[%s10045_s7 + $0x1aa0] sm:$0xff] %v7527_v46  ;;  %v7529_v21 = vsel %vm6996_vm11, %v3554_v58, %v7273_v11  ;;  %v7528_v37 = vsel %vm6995_vm12, %v3203_v59, %v7272_v57 }
 0x49a   : > { %9045 = vst [vmem:[%s10045_s7 + $0x1ab0] sm:$0xff] %v7529_v21  ;;  %9044 = vst [vmem:[%s10045_s7 + $0x1aa8] sm:$0xff] %v7528_v37  ;;  %v7530_v23 = vsel %vm6997_vm13, %v3556_v60, %v7274_v39  ;;  %v3207_v62 = vpop.f32.mrb[172].mxu0 }
 0x49b   : > { %9046 = vst [vmem:[%s10045_s7 + $0x1ab8] sm:$0xff] %v7530_v23  ;;  %vm6998_vm14 = vcmp.ge.f32.partialorder %v3207_v62, 0.0  ;;  %v7275_v22 = vmul.f32 %v12544_v5, %v3207_v62  ;;  %v3560_v25 = vpop.f32.mrb[172].mxu1  ;;  %v3209_v63 = vpop.f32.mrb[173].mxu0 }
 0x49c   : > { %vm7000_vm15 = vcmp.ge.f32.partialorder %v3560_v25, 0.0  ;;  %v7277_v1 = vmul.f32 %v12547_v6, %v3560_v25  ;;  %vm6999_vm1 = vcmp.ge.f32.partialorder %v3209_v63, 0.0  ;;  %v7276_v2 = vmul.f32 %v12567_v36, %v3209_v63  ;;  %v3562_v3 = vpop.f32.mrb[173].mxu1  ;;  %v3211_v4 = vpop.f32.mrb[174].mxu0 }
 0x49d   : > { %v7531_v7 = vsel %vm6998_vm14, %v3207_v62, %v7275_v22  ;;  %vm7001_vm0 = vcmp.ge.f32.partialorder %v3562_v3, 0.0  ;;  %v7278_v8 = vmul.f32 %v12573_v31, %v3562_v3  ;;  %vm7002_vm2 = vcmp.ge.f32.partialorder %v3211_v4, 0.0  ;;  %v3564_v9 = vpop.f32.mrb[174].mxu1  ;;  %v3213_v10 = vpop.f32.mrb[175].mxu0 }
 0x49e   : > { %9047 = vst [vmem:[%s10045_s7 + $0x1ac0] sm:$0xff] %v7531_v7  ;;  %v7533_v13 = vsel %vm7000_vm15, %v3560_v25, %v7277_v1  ;;  %v7532_v14 = vsel %vm6999_vm1, %v3209_v63, %v7276_v2  ;;  %v7279_v40 = vmul.f32 %v12544_v5, %v3211_v4  ;;  %vm7004_vm3 = vcmp.ge.f32.partialorder %v3564_v9, 0.0  ;;  %v3566_v15 = vpop.f32.mrb[175].mxu1 }
 0x49f   : > { %9049 = vst [vmem:[%s10045_s7 + $0x1ad0] sm:$0xff] %v7533_v13  ;;  %9048 = vst [vmem:[%s10045_s7 + $0x1ac8] sm:$0xff] %v7532_v14  ;;  %v7534_v42 = vsel %vm7001_vm0, %v3562_v3, %v7278_v8  ;;  %v7281_v0 = vmul.f32 %v12547_v6, %v3564_v9  ;;  %vm7003_vm4 = vcmp.ge.f32.partialorder %v3213_v10, 0.0  ;;  %v7280_v16 = vmul.f32 %v12567_v36, %v3213_v10 }
 0x4a0   : > { %9050 = vst [vmem:[%s10045_s7 + $0x1ad8] sm:$0xff] %v7534_v42  ;;  %v7535_v17 = vsel %vm7002_vm2, %v3211_v4, %v7279_v40  ;;  %vm7005_vm5 = vcmp.ge.f32.partialorder %v3566_v15, 0.0  ;;  %v7282_v18 = vmul.f32 %v12573_v31, %v3566_v15 }
 0x4a1   : > { %9051 = vst [vmem:[%s10045_s7 + $0x1ae0] sm:$0xff] %v7535_v17  ;;  %v7537_v19 = vsel %vm7004_vm3, %v3564_v9, %v7281_v0  ;;  %v7536_v24 = vsel %vm7003_vm4, %v3213_v10, %v7280_v16 }
 0x4a2   : > { %9053 = vst [vmem:[%s10045_s7 + $0x1af0] sm:$0xff] %v7537_v19  ;;  %9052 = vst [vmem:[%s10045_s7 + $0x1ae8] sm:$0xff] %v7536_v24  ;;  %v7538_v27 = vsel %vm7005_vm5, %v3566_v15, %v7282_v18 }
 0x4a3   : > { %v3217_v28 = vpop.f32.mrb[176].mxu0  ;;  %9054 = vst [vmem:[%s10045_s7 + $0x1af8] sm:$0xff] %v7538_v27  ;;  %v3570_v29 = vpop.f32.mrb[176].mxu1 }
 0x4a4   : > { %vm7006_vm6 = vcmp.ge.f32.partialorder %v3217_v28, 0.0  ;;  %v7283_v47 = vmul.f32 %v12544_v5, %v3217_v28  ;;  %v3219_v12 = vpop.f32.mrb[177].mxu0  ;;  %vm7008_vm7 = vcmp.ge.f32.partialorder %v3570_v29, 0.0  ;;  %v7285_v30 = vmul.f32 %v12547_v6, %v3570_v29  ;;  %v3572_v26 = vpop.f32.mrb[177].mxu1 }
 0x4a5   : > { %vm7007_vm8 = vcmp.ge.f32.partialorder %v3219_v12, 0.0  ;;  %v7284_v32 = vmul.f32 %v12567_v36, %v3219_v12  ;;  %v3221_v43 = vpop.f32.mrb[178].mxu0  ;;  %vm7009_vm9 = vcmp.ge.f32.partialorder %v3572_v26, 0.0  ;;  %v7286_v34 = vmul.f32 %v12573_v31, %v3572_v26  ;;  %v3574_v45 = vpop.f32.mrb[178].mxu1 }
 0x4a6   : > { %v7539_v33 = vsel %vm7006_vm6, %v3217_v28, %v7283_v47  ;;  %vm7010_vm10 = vcmp.ge.f32.partialorder %v3221_v43, 0.0  ;;  %v3223_v44 = vpop.f32.mrb[179].mxu0  ;;  %v7541_v35 = vsel %vm7008_vm7, %v3570_v29, %v7285_v30  ;;  %v7287_v48 = vmul.f32 %v12544_v5, %v3221_v43  ;;  %v3576_v41 = vpop.f32.mrb[179].mxu1 }
 0x4a7   : > { %9055 = vst [vmem:[%s10045_s7 + $0x1b00] sm:$0xff] %v7539_v33  ;;  %v7540_v38 = vsel %vm7007_vm8, %v3219_v12, %v7284_v32  ;;  %vm7012_vm11 = vcmp.ge.f32.partialorder %v3574_v45, 0.0  ;;  %9057 = vst [vmem:[%s10045_s7 + $0x1b10] sm:$0xff] %v7541_v35  ;;  %v7542_v49 = vsel %vm7009_vm9, %v3572_v26, %v7286_v34  ;;  %v7289_v50 = vmul.f32 %v12547_v6, %v3574_v45 }
 0x4a8   : > { %9056 = vst [vmem:[%s10045_s7 + $0x1b08] sm:$0xff] %v7540_v38  ;;  %vm7011_vm12 = vcmp.ge.f32.partialorder %v3223_v44, 0.0  ;;  %v7288_v53 = vmul.f32 %v12567_v36, %v3223_v44  ;;  %9058 = vst [vmem:[%s10045_s7 + $0x1b18] sm:$0xff] %v7542_v49  ;;  %v7543_v54 = vsel %vm7010_vm10, %v3221_v43, %v7287_v48  ;;  %vm7013_vm13 = vcmp.ge.f32.partialorder %v3576_v41, 0.0 }
 0x4a9   : > { %v7290_v55 = vmul.f32 %v12573_v31, %v3576_v41  ;;  %9059 = vst [vmem:[%s10045_s7 + $0x1b20] sm:$0xff] %v7543_v54  ;;  %v7545_v56 = vsel %vm7012_vm11, %v3574_v45, %v7289_v50 }
 0x4aa   : > { %v7544_v58 = vsel %vm7011_vm12, %v3223_v44, %v7288_v53  ;;  %9061 = vst [vmem:[%s10045_s7 + $0x1b30] sm:$0xff] %v7545_v56 }
 0x4ab   : > { %9060 = vst [vmem:[%s10045_s7 + $0x1b28] sm:$0xff] %v7544_v58  ;;  %v7546_v59 = vsel %vm7013_vm13, %v3576_v41, %v7290_v55  ;;  %v3227_v51 = vpop.f32.mrb[180].mxu0  ;;  %v3580_v61 = vpop.f32.mrb[180].mxu1 }
 0x4ac   : > { %9062 = vst [vmem:[%s10045_s7 + $0x1b38] sm:$0xff] %v7546_v59  ;;  %vm7014_vm14 = vcmp.ge.f32.partialorder %v3227_v51, 0.0  ;;  %v7291_v52 = vmul.f32 %v12544_v5, %v3227_v51  ;;  %v3229_v60 = vpop.f32.mrb[181].mxu0  ;;  %vm7016_vm15 = vcmp.ge.f32.partialorder %v3580_v61, 0.0  ;;  %v7293_v20 = vmul.f32 %v12547_v6, %v3580_v61  ;;  %v3582_v57 = vpop.f32.mrb[181].mxu1 }
 0x4ad   : > { %vm7015_vm1 = vcmp.ge.f32.partialorder %v3229_v60, 0.0  ;;  %v7292_v11 = vmul.f32 %v12567_v36, %v3229_v60  ;;  %v3231_v46 = vpop.f32.mrb[182].mxu0  ;;  %vm7017_vm0 = vcmp.ge.f32.partialorder %v3582_v57, 0.0  ;;  %v7294_v21 = vmul.f32 %v12573_v31, %v3582_v57  ;;  %v3584_v37 = vpop.f32.mrb[182].mxu1 }
 0x4ae   : > { %v7547_v39 = vsel %vm7014_vm14, %v3227_v51, %v7291_v52  ;;  %vm7018_vm2 = vcmp.ge.f32.partialorder %v3231_v46, 0.0  ;;  %v3233_v23 = vpop.f32.mrb[183].mxu0  ;;  %v7549_v62 = vsel %vm7016_vm15, %v3580_v61, %v7293_v20  ;;  %v7295_v25 = vmul.f32 %v12544_v5, %v3231_v46  ;;  %v3586_v63 = vpop.f32.mrb[183].mxu1 }
 0x4af   : > { %9063 = vst [vmem:[%s10045_s7 + $0x1b40] sm:$0xff] %v7547_v39  ;;  %v7548_v22 = vsel %vm7015_vm1, %v3229_v60, %v7292_v11  ;;  %vm7020_vm3 = vcmp.ge.f32.partialorder %v3584_v37, 0.0  ;;  %9065 = vst [vmem:[%s10045_s7 + $0x1b50] sm:$0xff] %v7549_v62  ;;  %v7550_v1 = vsel %vm7017_vm0, %v3582_v57, %v7294_v21  ;;  %v7297_v2 = vmul.f32 %v12547_v6, %v3584_v37 }
 0x4b0   : > { %9064 = vst [vmem:[%s10045_s7 + $0x1b48] sm:$0xff] %v7548_v22  ;;  %vm7019_vm4 = vcmp.ge.f32.partialorder %v3233_v23, 0.0  ;;  %v7296_v3 = vmul.f32 %v12567_v36, %v3233_v23  ;;  %9066 = vst [vmem:[%s10045_s7 + $0x1b58] sm:$0xff] %v7550_v1  ;;  %v7551_v4 = vsel %vm7018_vm2, %v3231_v46, %v7295_v25  ;;  %vm7021_vm5 = vcmp.ge.f32.partialorder %v3586_v63, 0.0 }
 0x4b1   : > { %v7298_v7 = vmul.f32 %v12573_v31, %v3586_v63  ;;  %9067 = vst [vmem:[%s10045_s7 + $0x1b60] sm:$0xff] %v7551_v4  ;;  %v7553_v8 = vsel %vm7020_vm3, %v3584_v37, %v7297_v2 }
 0x4b2   : > { %v7552_v9 = vsel %vm7019_vm4, %v3233_v23, %v7296_v3  ;;  %9069 = vst [vmem:[%s10045_s7 + $0x1b70] sm:$0xff] %v7553_v8 }
 0x4b3   : > { %9068 = vst [vmem:[%s10045_s7 + $0x1b68] sm:$0xff] %v7552_v9  ;;  %v7554_v10 = vsel %vm7021_vm5, %v3586_v63, %v7298_v7  ;;  %v3237_v13 = vpop.f32.mrb[184].mxu0  ;;  %v3590_v40 = vpop.f32.mrb[184].mxu1 }
 0x4b4   : > { %9070 = vst [vmem:[%s10045_s7 + $0x1b78] sm:$0xff] %v7554_v10  ;;  %vm7022_vm6 = vcmp.ge.f32.partialorder %v3237_v13, 0.0  ;;  %v7299_v14 = vmul.f32 %v12544_v5, %v3237_v13  ;;  %v3239_v15 = vpop.f32.mrb[185].mxu0  ;;  %vm7024_vm7 = vcmp.ge.f32.partialorder %v3590_v40, 0.0  ;;  %v7301_v42 = vmul.f32 %v12547_v6, %v3590_v40  ;;  %v3592_v16 = vpop.f32.mrb[185].mxu1 }
 0x4b5   : > { %vm7023_vm8 = vcmp.ge.f32.partialorder %v3239_v15, 0.0  ;;  %v7300_v0 = vmul.f32 %v12567_v36, %v3239_v15  ;;  %v3241_v17 = vpop.f32.mrb[186].mxu0  ;;  %vm7025_vm9 = vcmp.ge.f32.partialorder %v3592_v16, 0.0  ;;  %v7302_v19 = vmul.f32 %v12573_v31, %v3592_v16  ;;  %v3594_v24 = vpop.f32.mrb[186].mxu1 }
 0x4b6   : > { %v7555_v18 = vsel %vm7022_vm6, %v3237_v13, %v7299_v14  ;;  %vm7026_vm10 = vcmp.ge.f32.partialorder %v3241_v17, 0.0  ;;  %v3243_v27 = vpop.f32.mrb[187].mxu0  ;;  %v7557_v28 = vsel %vm7024_vm7, %v3590_v40, %v7301_v42  ;;  %v7303_v29 = vmul.f32 %v12544_v5, %v3241_v17  ;;  %v3596_v12 = vpop.f32.mrb[187].mxu1 }
 0x4b7   : > { %9071 = vst [vmem:[%s10045_s7 + $0x1b80] sm:$0xff] %v7555_v18  ;;  %v7556_v47 = vsel %vm7023_vm8, %v3239_v15, %v7300_v0  ;;  %vm7028_vm11 = vcmp.ge.f32.partialorder %v3594_v24, 0.0  ;;  %9073 = vst [vmem:[%s10045_s7 + $0x1b90] sm:$0xff] %v7557_v28  ;;  %v7558_v30 = vsel %vm7025_vm9, %v3592_v16, %v7302_v19  ;;  %v7305_v32 = vmul.f32 %v12547_v6, %v3594_v24 }
 0x4b8   : > { %9072 = vst [vmem:[%s10045_s7 + $0x1b88] sm:$0xff] %v7556_v47  ;;  %vm7027_vm12 = vcmp.ge.f32.partialorder %v3243_v27, 0.0  ;;  %v7304_v26 = vmul.f32 %v12567_v36, %v3243_v27  ;;  %9074 = vst [vmem:[%s10045_s7 + $0x1b98] sm:$0xff] %v7558_v30  ;;  %v7559_v43 = vsel %vm7026_vm10, %v3241_v17, %v7303_v29  ;;  %vm7029_vm13 = vcmp.ge.f32.partialorder %v3596_v12, 0.0 }
 0x4b9   : > { %v7306_v33 = vmul.f32 %v12573_v31, %v3596_v12  ;;  %9075 = vst [vmem:[%s10045_s7 + $0x1ba0] sm:$0xff] %v7559_v43  ;;  %v7561_v34 = vsel %vm7028_vm11, %v3594_v24, %v7305_v32 }
 0x4ba   : > { %v7560_v45 = vsel %vm7027_vm12, %v3243_v27, %v7304_v26  ;;  %9077 = vst [vmem:[%s10045_s7 + $0x1bb0] sm:$0xff] %v7561_v34 }
 0x4bb   : > { %9076 = vst [vmem:[%s10045_s7 + $0x1ba8] sm:$0xff] %v7560_v45  ;;  %v7562_v44 = vsel %vm7029_vm13, %v3596_v12, %v7306_v33  ;;  %v3247_v35 = vpop.f32.mrb[188].mxu0  ;;  %v3600_v48 = vpop.f32.mrb[188].mxu1 }
 0x4bc   : > { %9078 = vst [vmem:[%s10045_s7 + $0x1bb8] sm:$0xff] %v7562_v44  ;;  %vm7030_vm14 = vcmp.ge.f32.partialorder %v3247_v35, 0.0  ;;  %v7307_v38 = vmul.f32 %v12544_v5, %v3247_v35  ;;  %v3249_v41 = vpop.f32.mrb[189].mxu0  ;;  %vm7032_vm15 = vcmp.ge.f32.partialorder %v3600_v48, 0.0  ;;  %v7309_v49 = vmul.f32 %v12547_v6, %v3600_v48  ;;  %v3602_v53 = vpop.f32.mrb[189].mxu1 }
 0x4bd   : > { %vm7031_vm1 = vcmp.ge.f32.partialorder %v3249_v41, 0.0  ;;  %v7308_v50 = vmul.f32 %v12567_v36, %v3249_v41  ;;  %v3251_v54 = vpop.f32.mrb[190].mxu0  ;;  %vm7033_vm0 = vcmp.ge.f32.partialorder %v3602_v53, 0.0  ;;  %v7310_v56 = vmul.f32 %v12573_v31, %v3602_v53  ;;  %v3604_v58 = vpop.f32.mrb[190].mxu1 }
 0x4be   : > { %v7563_v55 = vsel %vm7030_vm14, %v3247_v35, %v7307_v38  ;;  %vm7034_vm2 = vcmp.ge.f32.partialorder %v3251_v54, 0.0  ;;  %v3253_v59 = vpop.f32.mrb[191].mxu0  ;;  %v7565_v51 = vsel %vm7032_vm15, %v3600_v48, %v7309_v49  ;;  %v7311_v61 = vmul.f32 %v12544_v5, %v3251_v54  ;;  %v3606_v60 = vpop.f32.mrb[191].mxu1 }
 0x4bf   : > { %9079 = vst [vmem:[%s10045_s7 + $0x1bc0] sm:$0xff] %v7563_v55  ;;  %v7564_v52 = vsel %vm7031_vm1, %v3249_v41, %v7308_v50  ;;  %vm7036_vm3 = vcmp.ge.f32.partialorder %v3604_v58, 0.0  ;;  %9081 = vst [vmem:[%s10045_s7 + $0x1bd0] sm:$0xff] %v7565_v51  ;;  %v7566_v20 = vsel %vm7033_vm0, %v3602_v53, %v7310_v56  ;;  %v7313_v11 = vmul.f32 %v12547_v6, %v3604_v58 }
 0x4c0   : > { %9080 = vst [vmem:[%s10045_s7 + $0x1bc8] sm:$0xff] %v7564_v52  ;;  %vm7035_vm4 = vcmp.ge.f32.partialorder %v3253_v59, 0.0  ;;  %v7312_v57 = vmul.f32 %v12567_v36, %v3253_v59  ;;  %9082 = vst [vmem:[%s10045_s7 + $0x1bd8] sm:$0xff] %v7566_v20  ;;  %v7567_v46 = vsel %vm7034_vm2, %v3251_v54, %v7311_v61  ;;  %vm7037_vm5 = vcmp.ge.f32.partialorder %v3606_v60, 0.0 }
 0x4c1   : > { %v7314_v39 = vmul.f32 %v12573_v31, %v3606_v60  ;;  %9083 = vst [vmem:[%s10045_s7 + $0x1be0] sm:$0xff] %v7567_v46  ;;  %v7569_v21 = vsel %vm7036_vm3, %v3604_v58, %v7313_v11 }
 0x4c2   : > { %v7568_v37 = vsel %vm7035_vm4, %v3253_v59, %v7312_v57  ;;  %9085 = vst [vmem:[%s10045_s7 + $0x1bf0] sm:$0xff] %v7569_v21 }
 0x4c3   : > { %9084 = vst [vmem:[%s10045_s7 + $0x1be8] sm:$0xff] %v7568_v37  ;;  %v7570_v23 = vsel %vm7037_vm5, %v3606_v60, %v7314_v39  ;;  %v3257_v62 = vpop.f32.mrb[192].mxu0  ;;  %v3610_v25 = vpop.f32.mrb[192].mxu1 }
 0x4c4   : > { %9086 = vst [vmem:[%s10045_s7 + $0x1bf8] sm:$0xff] %v7570_v23  ;;  %vm7038_vm6 = vcmp.ge.f32.partialorder %v3257_v62, 0.0  ;;  %v7315_v22 = vmul.f32 %v12544_v5, %v3257_v62  ;;  %v3259_v63 = vpop.f32.mrb[193].mxu0  ;;  %vm7040_vm7 = vcmp.ge.f32.partialorder %v3610_v25, 0.0  ;;  %v7317_v1 = vmul.f32 %v12547_v6, %v3610_v25  ;;  %v3612_v3 = vpop.f32.mrb[193].mxu1 }
 0x4c5   : > { %vm7039_vm8 = vcmp.ge.f32.partialorder %v3259_v63, 0.0  ;;  %v7316_v2 = vmul.f32 %v12567_v36, %v3259_v63  ;;  %v3261_v4 = vpop.f32.mrb[194].mxu0  ;;  %vm7041_vm9 = vcmp.ge.f32.partialorder %v3612_v3, 0.0  ;;  %v7318_v8 = vmul.f32 %v12573_v31, %v3612_v3  ;;  %v3614_v9 = vpop.f32.mrb[194].mxu1 }
 0x4c6   : > { %v7571_v7 = vsel %vm7038_vm6, %v3257_v62, %v7315_v22  ;;  %vm7042_vm10 = vcmp.ge.f32.partialorder %v3261_v4, 0.0  ;;  %v3263_v10 = vpop.f32.mrb[195].mxu0  ;;  %v7573_v13 = vsel %vm7040_vm7, %v3610_v25, %v7317_v1  ;;  %v7319_v40 = vmul.f32 %v12544_v5, %v3261_v4  ;;  %v3616_v15 = vpop.f32.mrb[195].mxu1 }
 0x4c7   : > { %9087 = vst [vmem:[%s10045_s7 + $0x1c00] sm:$0xff] %v7571_v7  ;;  %v7572_v14 = vsel %vm7039_vm8, %v3259_v63, %v7316_v2  ;;  %vm7044_vm11 = vcmp.ge.f32.partialorder %v3614_v9, 0.0  ;;  %9089 = vst [vmem:[%s10045_s7 + $0x1c10] sm:$0xff] %v7573_v13  ;;  %v7574_v42 = vsel %vm7041_vm9, %v3612_v3, %v7318_v8  ;;  %v7321_v0 = vmul.f32 %v12547_v6, %v3614_v9 }
 0x4c8   : > { %9088 = vst [vmem:[%s10045_s7 + $0x1c08] sm:$0xff] %v7572_v14  ;;  %vm7043_vm12 = vcmp.ge.f32.partialorder %v3263_v10, 0.0  ;;  %v7320_v16 = vmul.f32 %v12567_v36, %v3263_v10  ;;  %9090 = vst [vmem:[%s10045_s7 + $0x1c18] sm:$0xff] %v7574_v42  ;;  %v7575_v17 = vsel %vm7042_vm10, %v3261_v4, %v7319_v40  ;;  %vm7045_vm13 = vcmp.ge.f32.partialorder %v3616_v15, 0.0 }
 0x4c9   : > { %v7322_v18 = vmul.f32 %v12573_v31, %v3616_v15  ;;  %9091 = vst [vmem:[%s10045_s7 + $0x1c20] sm:$0xff] %v7575_v17  ;;  %v7577_v19 = vsel %vm7044_vm11, %v3614_v9, %v7321_v0 }
 0x4ca   : > { %v7576_v24 = vsel %vm7043_vm12, %v3263_v10, %v7320_v16  ;;  %9093 = vst [vmem:[%s10045_s7 + $0x1c30] sm:$0xff] %v7577_v19 }
 0x4cb   : > { %9092 = vst [vmem:[%s10045_s7 + $0x1c28] sm:$0xff] %v7576_v24  ;;  %v7578_v27 = vsel %vm7045_vm13, %v3616_v15, %v7322_v18  ;;  %v3267_v28 = vpop.f32.mrb[196].mxu0  ;;  %v3620_v29 = vpop.f32.mrb[196].mxu1 }
 0x4cc   : > { %9094 = vst [vmem:[%s10045_s7 + $0x1c38] sm:$0xff] %v7578_v27  ;;  %vm7046_vm14 = vcmp.ge.f32.partialorder %v3267_v28, 0.0  ;;  %v7323_v47 = vmul.f32 %v12544_v5, %v3267_v28  ;;  %v3269_v12 = vpop.f32.mrb[197].mxu0  ;;  %vm7048_vm15 = vcmp.ge.f32.partialorder %v3620_v29, 0.0  ;;  %v7325_v30 = vmul.f32 %v12547_v6, %v3620_v29  ;;  %v3622_v26 = vpop.f32.mrb[197].mxu1 }
 0x4cd   : > { %vm7047_vm1 = vcmp.ge.f32.partialorder %v3269_v12, 0.0  ;;  %v7324_v32 = vmul.f32 %v12567_v36, %v3269_v12  ;;  %v3271_v43 = vpop.f32.mrb[198].mxu0  ;;  %vm7049_vm0 = vcmp.ge.f32.partialorder %v3622_v26, 0.0  ;;  %v7326_v34 = vmul.f32 %v12573_v31, %v3622_v26  ;;  %v3624_v45 = vpop.f32.mrb[198].mxu1 }
 0x4ce   : > { %v7579_v33 = vsel %vm7046_vm14, %v3267_v28, %v7323_v47  ;;  %vm7050_vm2 = vcmp.ge.f32.partialorder %v3271_v43, 0.0  ;;  %v3273_v44 = vpop.f32.mrb[199].mxu0  ;;  %v7581_v35 = vsel %vm7048_vm15, %v3620_v29, %v7325_v30  ;;  %v7327_v48 = vmul.f32 %v12544_v5, %v3271_v43  ;;  %v3626_v41 = vpop.f32.mrb[199].mxu1 }
 0x4cf   : > { %9095 = vst [vmem:[%s10045_s7 + $0x1c40] sm:$0xff] %v7579_v33  ;;  %v7580_v38 = vsel %vm7047_vm1, %v3269_v12, %v7324_v32  ;;  %vm7052_vm3 = vcmp.ge.f32.partialorder %v3624_v45, 0.0  ;;  %9097 = vst [vmem:[%s10045_s7 + $0x1c50] sm:$0xff] %v7581_v35  ;;  %v7582_v49 = vsel %vm7049_vm0, %v3622_v26, %v7326_v34  ;;  %v7329_v50 = vmul.f32 %v12547_v6, %v3624_v45 }
 0x4d0   : > { %9096 = vst [vmem:[%s10045_s7 + $0x1c48] sm:$0xff] %v7580_v38  ;;  %vm7051_vm4 = vcmp.ge.f32.partialorder %v3273_v44, 0.0  ;;  %v7328_v53 = vmul.f32 %v12567_v36, %v3273_v44  ;;  %9098 = vst [vmem:[%s10045_s7 + $0x1c58] sm:$0xff] %v7582_v49  ;;  %v7583_v54 = vsel %vm7050_vm2, %v3271_v43, %v7327_v48  ;;  %vm7053_vm5 = vcmp.ge.f32.partialorder %v3626_v41, 0.0 }
 0x4d1   : > { %v7330_v55 = vmul.f32 %v12573_v31, %v3626_v41  ;;  %9099 = vst [vmem:[%s10045_s7 + $0x1c60] sm:$0xff] %v7583_v54  ;;  %v7585_v56 = vsel %vm7052_vm3, %v3624_v45, %v7329_v50 }
 0x4d2   : > { %v7584_v58 = vsel %vm7051_vm4, %v3273_v44, %v7328_v53  ;;  %9101 = vst [vmem:[%s10045_s7 + $0x1c70] sm:$0xff] %v7585_v56 }
 0x4d3   : > { %9100 = vst [vmem:[%s10045_s7 + $0x1c68] sm:$0xff] %v7584_v58  ;;  %v7586_v59 = vsel %vm7053_vm5, %v3626_v41, %v7330_v55  ;;  %v3277_v51 = vpop.f32.mrb[200].mxu0  ;;  %v3630_v61 = vpop.f32.mrb[200].mxu1 }
 0x4d4   : > { %9102 = vst [vmem:[%s10045_s7 + $0x1c78] sm:$0xff] %v7586_v59  ;;  %vm7054_vm6 = vcmp.ge.f32.partialorder %v3277_v51, 0.0  ;;  %v7331_v52 = vmul.f32 %v12544_v5, %v3277_v51  ;;  %v3279_v60 = vpop.f32.mrb[201].mxu0  ;;  %vm7056_vm7 = vcmp.ge.f32.partialorder %v3630_v61, 0.0  ;;  %v7333_v20 = vmul.f32 %v12547_v6, %v3630_v61  ;;  %v3632_v57 = vpop.f32.mrb[201].mxu1 }
 0x4d5   : > { %vm7055_vm8 = vcmp.ge.f32.partialorder %v3279_v60, 0.0  ;;  %v7332_v11 = vmul.f32 %v12567_v36, %v3279_v60  ;;  %v3281_v46 = vpop.f32.mrb[202].mxu0  ;;  %vm7057_vm9 = vcmp.ge.f32.partialorder %v3632_v57, 0.0  ;;  %v7334_v21 = vmul.f32 %v12573_v31, %v3632_v57  ;;  %v3634_v37 = vpop.f32.mrb[202].mxu1 }
 0x4d6   : > { %v7587_v39 = vsel %vm7054_vm6, %v3277_v51, %v7331_v52  ;;  %vm7058_vm10 = vcmp.ge.f32.partialorder %v3281_v46, 0.0  ;;  %v3283_v23 = vpop.f32.mrb[203].mxu0  ;;  %v7589_v62 = vsel %vm7056_vm7, %v3630_v61, %v7333_v20  ;;  %v7335_v25 = vmul.f32 %v12544_v5, %v3281_v46  ;;  %v3636_v63 = vpop.f32.mrb[203].mxu1 }
 0x4d7   : > { %9103 = vst [vmem:[%s10045_s7 + $0x1c80] sm:$0xff] %v7587_v39  ;;  %v7588_v22 = vsel %vm7055_vm8, %v3279_v60, %v7332_v11  ;;  %vm7060_vm11 = vcmp.ge.f32.partialorder %v3634_v37, 0.0  ;;  %9105 = vst [vmem:[%s10045_s7 + $0x1c90] sm:$0xff] %v7589_v62  ;;  %v7590_v1 = vsel %vm7057_vm9, %v3632_v57, %v7334_v21  ;;  %v7337_v2 = vmul.f32 %v12547_v6, %v3634_v37 }
 0x4d8   : > { %9104 = vst [vmem:[%s10045_s7 + $0x1c88] sm:$0xff] %v7588_v22  ;;  %vm7059_vm12 = vcmp.ge.f32.partialorder %v3283_v23, 0.0  ;;  %v7336_v3 = vmul.f32 %v12567_v36, %v3283_v23  ;;  %9106 = vst [vmem:[%s10045_s7 + $0x1c98] sm:$0xff] %v7590_v1  ;;  %v7591_v4 = vsel %vm7058_vm10, %v3281_v46, %v7335_v25  ;;  %vm7061_vm13 = vcmp.ge.f32.partialorder %v3636_v63, 0.0 }
 0x4d9   : > { %v7338_v7 = vmul.f32 %v12573_v31, %v3636_v63  ;;  %9107 = vst [vmem:[%s10045_s7 + $0x1ca0] sm:$0xff] %v7591_v4  ;;  %v7593_v8 = vsel %vm7060_vm11, %v3634_v37, %v7337_v2 }
 0x4da   : > { %v7592_v9 = vsel %vm7059_vm12, %v3283_v23, %v7336_v3  ;;  %9109 = vst [vmem:[%s10045_s7 + $0x1cb0] sm:$0xff] %v7593_v8 }
 0x4db   : > { %9108 = vst [vmem:[%s10045_s7 + $0x1ca8] sm:$0xff] %v7592_v9  ;;  %v7594_v10 = vsel %vm7061_vm13, %v3636_v63, %v7338_v7  ;;  %v3287_v13 = vpop.f32.mrb[204].mxu0  ;;  %v3640_v40 = vpop.f32.mrb[204].mxu1 }
 0x4dc   : > { %9110 = vst [vmem:[%s10045_s7 + $0x1cb8] sm:$0xff] %v7594_v10  ;;  %vm7062_vm14 = vcmp.ge.f32.partialorder %v3287_v13, 0.0  ;;  %v7339_v14 = vmul.f32 %v12544_v5, %v3287_v13  ;;  %v3289_v15 = vpop.f32.mrb[205].mxu0  ;;  %vm7064_vm15 = vcmp.ge.f32.partialorder %v3640_v40, 0.0  ;;  %v7341_v42 = vmul.f32 %v12547_v6, %v3640_v40  ;;  %v3642_v16 = vpop.f32.mrb[205].mxu1 }
 0x4dd   : > { %vm7063_vm1 = vcmp.ge.f32.partialorder %v3289_v15, 0.0  ;;  %v7340_v0 = vmul.f32 %v12567_v36, %v3289_v15  ;;  %v3291_v17 = vpop.f32.mrb[206].mxu0  ;;  %vm7065_vm0 = vcmp.ge.f32.partialorder %v3642_v16, 0.0  ;;  %v7342_v19 = vmul.f32 %v12573_v31, %v3642_v16  ;;  %v3644_v24 = vpop.f32.mrb[206].mxu1 }
 0x4de   : > { %v7595_v18 = vsel %vm7062_vm14, %v3287_v13, %v7339_v14  ;;  %vm7066_vm2 = vcmp.ge.f32.partialorder %v3291_v17, 0.0  ;;  %v3293_v27 = vpop.f32.mrb[207].mxu0  ;;  %v7597_v28 = vsel %vm7064_vm15, %v3640_v40, %v7341_v42  ;;  %v7343_v29 = vmul.f32 %v12544_v5, %v3291_v17  ;;  %v3646_v12 = vpop.f32.mrb[207].mxu1 }
 0x4df   : > { %9111 = vst [vmem:[%s10045_s7 + $0x1cc0] sm:$0xff] %v7595_v18  ;;  %v7596_v47 = vsel %vm7063_vm1, %v3289_v15, %v7340_v0  ;;  %vm7068_vm3 = vcmp.ge.f32.partialorder %v3644_v24, 0.0  ;;  %9113 = vst [vmem:[%s10045_s7 + $0x1cd0] sm:$0xff] %v7597_v28  ;;  %v7598_v30 = vsel %vm7065_vm0, %v3642_v16, %v7342_v19  ;;  %v7345_v32 = vmul.f32 %v12547_v6, %v3644_v24 }
 0x4e0   : > { %9112 = vst [vmem:[%s10045_s7 + $0x1cc8] sm:$0xff] %v7596_v47  ;;  %vm7067_vm4 = vcmp.ge.f32.partialorder %v3293_v27, 0.0  ;;  %v7344_v26 = vmul.f32 %v12567_v36, %v3293_v27  ;;  %9114 = vst [vmem:[%s10045_s7 + $0x1cd8] sm:$0xff] %v7598_v30  ;;  %v7599_v43 = vsel %vm7066_vm2, %v3291_v17, %v7343_v29  ;;  %vm7069_vm5 = vcmp.ge.f32.partialorder %v3646_v12, 0.0 }
 0x4e1   : > { %v7346_v33 = vmul.f32 %v12573_v31, %v3646_v12  ;;  %9115 = vst [vmem:[%s10045_s7 + $0x1ce0] sm:$0xff] %v7599_v43  ;;  %v7601_v34 = vsel %vm7068_vm3, %v3644_v24, %v7345_v32 }
 0x4e2   : > { %v7600_v45 = vsel %vm7067_vm4, %v3293_v27, %v7344_v26  ;;  %9117 = vst [vmem:[%s10045_s7 + $0x1cf0] sm:$0xff] %v7601_v34 }
 0x4e3   : > { %9116 = vst [vmem:[%s10045_s7 + $0x1ce8] sm:$0xff] %v7600_v45  ;;  %v7602_v44 = vsel %vm7069_vm5, %v3646_v12, %v7346_v33  ;;  %v3297_v35 = vpop.f32.mrb[208].mxu0  ;;  %v3650_v48 = vpop.f32.mrb[208].mxu1 }
 0x4e4   : > { %9118 = vst [vmem:[%s10045_s7 + $0x1cf8] sm:$0xff] %v7602_v44  ;;  %vm7070_vm6 = vcmp.ge.f32.partialorder %v3297_v35, 0.0  ;;  %v7347_v38 = vmul.f32 %v12544_v5, %v3297_v35  ;;  %v3299_v41 = vpop.f32.mrb[209].mxu0  ;;  %vm7072_vm7 = vcmp.ge.f32.partialorder %v3650_v48, 0.0  ;;  %v7349_v49 = vmul.f32 %v12547_v6, %v3650_v48  ;;  %v3652_v53 = vpop.f32.mrb[209].mxu1 }
 0x4e5   : > { %vm7071_vm8 = vcmp.ge.f32.partialorder %v3299_v41, 0.0  ;;  %v7348_v50 = vmul.f32 %v12567_v36, %v3299_v41  ;;  %v3301_v54 = vpop.f32.mrb[210].mxu0  ;;  %vm7073_vm9 = vcmp.ge.f32.partialorder %v3652_v53, 0.0  ;;  %v7350_v56 = vmul.f32 %v12573_v31, %v3652_v53  ;;  %v3654_v58 = vpop.f32.mrb[210].mxu1 }
 0x4e6   : > { %v7603_v55 = vsel %vm7070_vm6, %v3297_v35, %v7347_v38  ;;  %vm7074_vm10 = vcmp.ge.f32.partialorder %v3301_v54, 0.0  ;;  %v3303_v59 = vpop.f32.mrb[211].mxu0  ;;  %v7605_v51 = vsel %vm7072_vm7, %v3650_v48, %v7349_v49  ;;  %v7351_v61 = vmul.f32 %v12544_v5, %v3301_v54  ;;  %v3656_v60 = vpop.f32.mrb[211].mxu1 }
 0x4e7   : > { %9119 = vst [vmem:[%s10045_s7 + $0x1d00] sm:$0xff] %v7603_v55  ;;  %v7604_v52 = vsel %vm7071_vm8, %v3299_v41, %v7348_v50  ;;  %vm7076_vm11 = vcmp.ge.f32.partialorder %v3654_v58, 0.0  ;;  %9121 = vst [vmem:[%s10045_s7 + $0x1d10] sm:$0xff] %v7605_v51  ;;  %v7606_v20 = vsel %vm7073_vm9, %v3652_v53, %v7350_v56  ;;  %v7353_v11 = vmul.f32 %v12547_v6, %v3654_v58 }
 0x4e8   : > { %9120 = vst [vmem:[%s10045_s7 + $0x1d08] sm:$0xff] %v7604_v52  ;;  %vm7075_vm12 = vcmp.ge.f32.partialorder %v3303_v59, 0.0  ;;  %v7352_v57 = vmul.f32 %v12567_v36, %v3303_v59  ;;  %9122 = vst [vmem:[%s10045_s7 + $0x1d18] sm:$0xff] %v7606_v20  ;;  %v7607_v46 = vsel %vm7074_vm10, %v3301_v54, %v7351_v61  ;;  %vm7077_vm13 = vcmp.ge.f32.partialorder %v3656_v60, 0.0 }
 0x4e9   : > { %v7354_v39 = vmul.f32 %v12573_v31, %v3656_v60  ;;  %9123 = vst [vmem:[%s10045_s7 + $0x1d20] sm:$0xff] %v7607_v46  ;;  %v7609_v21 = vsel %vm7076_vm11, %v3654_v58, %v7353_v11 }
 0x4ea   : > { %v7608_v37 = vsel %vm7075_vm12, %v3303_v59, %v7352_v57  ;;  %9125 = vst [vmem:[%s10045_s7 + $0x1d30] sm:$0xff] %v7609_v21 }
 0x4eb   : > { %9124 = vst [vmem:[%s10045_s7 + $0x1d28] sm:$0xff] %v7608_v37  ;;  %v7610_v23 = vsel %vm7077_vm13, %v3656_v60, %v7354_v39  ;;  %v3307_v62 = vpop.f32.mrb[212].mxu0  ;;  %v3660_v25 = vpop.f32.mrb[212].mxu1 }
 0x4ec   : > { %9126 = vst [vmem:[%s10045_s7 + $0x1d38] sm:$0xff] %v7610_v23  ;;  %vm7078_vm14 = vcmp.ge.f32.partialorder %v3307_v62, 0.0  ;;  %v7355_v22 = vmul.f32 %v12544_v5, %v3307_v62  ;;  %v3309_v63 = vpop.f32.mrb[213].mxu0  ;;  %vm7080_vm15 = vcmp.ge.f32.partialorder %v3660_v25, 0.0  ;;  %v7357_v1 = vmul.f32 %v12547_v6, %v3660_v25  ;;  %v3662_v3 = vpop.f32.mrb[213].mxu1 }
 0x4ed   : > { %vm7079_vm1 = vcmp.ge.f32.partialorder %v3309_v63, 0.0  ;;  %v7356_v2 = vmul.f32 %v12567_v36, %v3309_v63  ;;  %v3311_v4 = vpop.f32.mrb[214].mxu0  ;;  %vm7081_vm0 = vcmp.ge.f32.partialorder %v3662_v3, 0.0  ;;  %v7358_v8 = vmul.f32 %v12573_v31, %v3662_v3  ;;  %v3664_v9 = vpop.f32.mrb[214].mxu1 }
 0x4ee   : > { %v7611_v7 = vsel %vm7078_vm14, %v3307_v62, %v7355_v22  ;;  %vm7082_vm2 = vcmp.ge.f32.partialorder %v3311_v4, 0.0  ;;  %v3313_v10 = vpop.f32.mrb[215].mxu0  ;;  %v7613_v13 = vsel %vm7080_vm15, %v3660_v25, %v7357_v1  ;;  %v7359_v40 = vmul.f32 %v12544_v5, %v3311_v4  ;;  %v3666_v15 = vpop.f32.mrb[215].mxu1 }
 0x4ef   : > { %9127 = vst [vmem:[%s10045_s7 + $0x1d40] sm:$0xff] %v7611_v7  ;;  %v7612_v14 = vsel %vm7079_vm1, %v3309_v63, %v7356_v2  ;;  %vm7084_vm3 = vcmp.ge.f32.partialorder %v3664_v9, 0.0  ;;  %9129 = vst [vmem:[%s10045_s7 + $0x1d50] sm:$0xff] %v7613_v13  ;;  %v7614_v42 = vsel %vm7081_vm0, %v3662_v3, %v7358_v8  ;;  %v7361_v0 = vmul.f32 %v12547_v6, %v3664_v9 }
 0x4f0   : > { %9128 = vst [vmem:[%s10045_s7 + $0x1d48] sm:$0xff] %v7612_v14  ;;  %vm7083_vm4 = vcmp.ge.f32.partialorder %v3313_v10, 0.0  ;;  %v7360_v16 = vmul.f32 %v12567_v36, %v3313_v10  ;;  %9130 = vst [vmem:[%s10045_s7 + $0x1d58] sm:$0xff] %v7614_v42  ;;  %v7615_v17 = vsel %vm7082_vm2, %v3311_v4, %v7359_v40  ;;  %vm7085_vm5 = vcmp.ge.f32.partialorder %v3666_v15, 0.0 }
 0x4f1   : > { %v7362_v18 = vmul.f32 %v12573_v31, %v3666_v15  ;;  %9131 = vst [vmem:[%s10045_s7 + $0x1d60] sm:$0xff] %v7615_v17  ;;  %v7617_v19 = vsel %vm7084_vm3, %v3664_v9, %v7361_v0 }
 0x4f2   : > { %v7616_v24 = vsel %vm7083_vm4, %v3313_v10, %v7360_v16  ;;  %9133 = vst [vmem:[%s10045_s7 + $0x1d70] sm:$0xff] %v7617_v19 }
 0x4f3   : > { %9132 = vst [vmem:[%s10045_s7 + $0x1d68] sm:$0xff] %v7616_v24  ;;  %v7618_v27 = vsel %vm7085_vm5, %v3666_v15, %v7362_v18  ;;  %v3317_v28 = vpop.f32.mrb[216].mxu0  ;;  %v3670_v29 = vpop.f32.mrb[216].mxu1 }
 0x4f4   : > { %9134 = vst [vmem:[%s10045_s7 + $0x1d78] sm:$0xff] %v7618_v27  ;;  %vm7086_vm6 = vcmp.ge.f32.partialorder %v3317_v28, 0.0  ;;  %v7363_v47 = vmul.f32 %v12544_v5, %v3317_v28  ;;  %v3319_v12 = vpop.f32.mrb[217].mxu0  ;;  %vm7088_vm7 = vcmp.ge.f32.partialorder %v3670_v29, 0.0  ;;  %v7365_v30 = vmul.f32 %v12547_v6, %v3670_v29  ;;  %v3672_v26 = vpop.f32.mrb[217].mxu1 }
 0x4f5   : > { %vm7087_vm8 = vcmp.ge.f32.partialorder %v3319_v12, 0.0  ;;  %v7364_v32 = vmul.f32 %v12567_v36, %v3319_v12  ;;  %v3321_v43 = vpop.f32.mrb[218].mxu0  ;;  %vm7089_vm9 = vcmp.ge.f32.partialorder %v3672_v26, 0.0  ;;  %v7366_v34 = vmul.f32 %v12573_v31, %v3672_v26  ;;  %v3674_v45 = vpop.f32.mrb[218].mxu1 }
 0x4f6   : > { %v7619_v33 = vsel %vm7086_vm6, %v3317_v28, %v7363_v47  ;;  %vm7090_vm10 = vcmp.ge.f32.partialorder %v3321_v43, 0.0  ;;  %v3323_v44 = vpop.f32.mrb[219].mxu0  ;;  %v7621_v35 = vsel %vm7088_vm7, %v3670_v29, %v7365_v30  ;;  %v7367_v48 = vmul.f32 %v12544_v5, %v3321_v43  ;;  %v3676_v41 = vpop.f32.mrb[219].mxu1 }
 0x4f7   : > { %9135 = vst [vmem:[%s10045_s7 + $0x1d80] sm:$0xff] %v7619_v33  ;;  %v7620_v38 = vsel %vm7087_vm8, %v3319_v12, %v7364_v32  ;;  %vm7092_vm11 = vcmp.ge.f32.partialorder %v3674_v45, 0.0  ;;  %9137 = vst [vmem:[%s10045_s7 + $0x1d90] sm:$0xff] %v7621_v35  ;;  %v7622_v49 = vsel %vm7089_vm9, %v3672_v26, %v7366_v34  ;;  %v7369_v50 = vmul.f32 %v12547_v6, %v3674_v45 }
 0x4f8   : > { %9136 = vst [vmem:[%s10045_s7 + $0x1d88] sm:$0xff] %v7620_v38  ;;  %vm7091_vm12 = vcmp.ge.f32.partialorder %v3323_v44, 0.0  ;;  %v7368_v53 = vmul.f32 %v12567_v36, %v3323_v44  ;;  %9138 = vst [vmem:[%s10045_s7 + $0x1d98] sm:$0xff] %v7622_v49  ;;  %v7623_v54 = vsel %vm7090_vm10, %v3321_v43, %v7367_v48  ;;  %vm7093_vm13 = vcmp.ge.f32.partialorder %v3676_v41, 0.0 }
 0x4f9   : > { %v7370_v55 = vmul.f32 %v12573_v31, %v3676_v41  ;;  %9139 = vst [vmem:[%s10045_s7 + $0x1da0] sm:$0xff] %v7623_v54  ;;  %v7625_v56 = vsel %vm7092_vm11, %v3674_v45, %v7369_v50 }
 0x4fa   : > { %v7624_v58 = vsel %vm7091_vm12, %v3323_v44, %v7368_v53  ;;  %9141 = vst [vmem:[%s10045_s7 + $0x1db0] sm:$0xff] %v7625_v56 }
 0x4fb   : > { %9140 = vst [vmem:[%s10045_s7 + $0x1da8] sm:$0xff] %v7624_v58  ;;  %v7626_v59 = vsel %vm7093_vm13, %v3676_v41, %v7370_v55  ;;  %v3327_v51 = vpop.f32.mrb[220].mxu0  ;;  %v3680_v61 = vpop.f32.mrb[220].mxu1 }
 0x4fc   : > { %9142 = vst [vmem:[%s10045_s7 + $0x1db8] sm:$0xff] %v7626_v59  ;;  %vm7094_vm14 = vcmp.ge.f32.partialorder %v3327_v51, 0.0  ;;  %v7371_v52 = vmul.f32 %v12544_v5, %v3327_v51  ;;  %v3329_v60 = vpop.f32.mrb[221].mxu0  ;;  %vm7096_vm15 = vcmp.ge.f32.partialorder %v3680_v61, 0.0  ;;  %v7373_v20 = vmul.f32 %v12547_v6, %v3680_v61  ;;  %v3682_v57 = vpop.f32.mrb[221].mxu1 }
 0x4fd   : > { %vm7095_vm1 = vcmp.ge.f32.partialorder %v3329_v60, 0.0  ;;  %v7372_v11 = vmul.f32 %v12567_v36, %v3329_v60  ;;  %v3331_v46 = vpop.f32.mrb[222].mxu0  ;;  %vm7097_vm0 = vcmp.ge.f32.partialorder %v3682_v57, 0.0  ;;  %v7374_v21 = vmul.f32 %v12573_v31, %v3682_v57  ;;  %v3684_v37 = vpop.f32.mrb[222].mxu1 }
 0x4fe   : > { %v7627_v39 = vsel %vm7094_vm14, %v3327_v51, %v7371_v52  ;;  %vm7098_vm2 = vcmp.ge.f32.partialorder %v3331_v46, 0.0  ;;  %v3333_v23 = vpop.f32.mrb[223].mxu0  ;;  %v7629_v62 = vsel %vm7096_vm15, %v3680_v61, %v7373_v20  ;;  %v7375_v25 = vmul.f32 %v12544_v5, %v3331_v46  ;;  %v3686_v63 = vpop.f32.mrb[223].mxu1 }
 0x4ff   : > { %9143 = vst [vmem:[%s10045_s7 + $0x1dc0] sm:$0xff] %v7627_v39  ;;  %v7628_v22 = vsel %vm7095_vm1, %v3329_v60, %v7372_v11  ;;  %vm7100_vm3 = vcmp.ge.f32.partialorder %v3684_v37, 0.0  ;;  %9145 = vst [vmem:[%s10045_s7 + $0x1dd0] sm:$0xff] %v7629_v62  ;;  %v7630_v1 = vsel %vm7097_vm0, %v3682_v57, %v7374_v21  ;;  %v7377_v2 = vmul.f32 %v12547_v6, %v3684_v37 }
 0x500   : > { %9144 = vst [vmem:[%s10045_s7 + $0x1dc8] sm:$0xff] %v7628_v22  ;;  %vm7099_vm4 = vcmp.ge.f32.partialorder %v3333_v23, 0.0  ;;  %v7376_v3 = vmul.f32 %v12567_v36, %v3333_v23  ;;  %9146 = vst [vmem:[%s10045_s7 + $0x1dd8] sm:$0xff] %v7630_v1  ;;  %v7631_v4 = vsel %vm7098_vm2, %v3331_v46, %v7375_v25  ;;  %vm7101_vm5 = vcmp.ge.f32.partialorder %v3686_v63, 0.0 }
 0x501   : > { %v7378_v7 = vmul.f32 %v12573_v31, %v3686_v63  ;;  %9147 = vst [vmem:[%s10045_s7 + $0x1de0] sm:$0xff] %v7631_v4  ;;  %v7633_v8 = vsel %vm7100_vm3, %v3684_v37, %v7377_v2 }
 0x502   : > { %v7632_v9 = vsel %vm7099_vm4, %v3333_v23, %v7376_v3  ;;  %9149 = vst [vmem:[%s10045_s7 + $0x1df0] sm:$0xff] %v7633_v8 }
 0x503   : > { %9148 = vst [vmem:[%s10045_s7 + $0x1de8] sm:$0xff] %v7632_v9  ;;  %v7634_v10 = vsel %vm7101_vm5, %v3686_v63, %v7378_v7  ;;  %v3337_v13 = vpop.f32.mrb[224].mxu0  ;;  %v3690_v40 = vpop.f32.mrb[224].mxu1 }
 0x504   : > { %9150 = vst [vmem:[%s10045_s7 + $0x1df8] sm:$0xff] %v7634_v10  ;;  %vm7102_vm6 = vcmp.ge.f32.partialorder %v3337_v13, 0.0  ;;  %v7379_v14 = vmul.f32 %v12544_v5, %v3337_v13  ;;  %v3339_v15 = vpop.f32.mrb[225].mxu0  ;;  %vm7104_vm7 = vcmp.ge.f32.partialorder %v3690_v40, 0.0  ;;  %v7381_v42 = vmul.f32 %v12547_v6, %v3690_v40  ;;  %v3692_v16 = vpop.f32.mrb[225].mxu1 }
 0x505   : > { %vm7103_vm8 = vcmp.ge.f32.partialorder %v3339_v15, 0.0  ;;  %v7380_v0 = vmul.f32 %v12567_v36, %v3339_v15  ;;  %v3341_v17 = vpop.f32.mrb[226].mxu0  ;;  %vm7105_vm9 = vcmp.ge.f32.partialorder %v3692_v16, 0.0  ;;  %v7382_v19 = vmul.f32 %v12573_v31, %v3692_v16  ;;  %v3694_v24 = vpop.f32.mrb[226].mxu1 }
 0x506   : > { %v7635_v18 = vsel %vm7102_vm6, %v3337_v13, %v7379_v14  ;;  %vm7106_vm10 = vcmp.ge.f32.partialorder %v3341_v17, 0.0  ;;  %v3343_v27 = vpop.f32.mrb[227].mxu0  ;;  %v7637_v28 = vsel %vm7104_vm7, %v3690_v40, %v7381_v42  ;;  %v7383_v29 = vmul.f32 %v12544_v5, %v3341_v17  ;;  %v3696_v12 = vpop.f32.mrb[227].mxu1 }
 0x507   : > { %9151 = vst [vmem:[%s10045_s7 + $0x1e00] sm:$0xff] %v7635_v18  ;;  %v7636_v47 = vsel %vm7103_vm8, %v3339_v15, %v7380_v0  ;;  %vm7108_vm11 = vcmp.ge.f32.partialorder %v3694_v24, 0.0  ;;  %9153 = vst [vmem:[%s10045_s7 + $0x1e10] sm:$0xff] %v7637_v28  ;;  %v7638_v30 = vsel %vm7105_vm9, %v3692_v16, %v7382_v19  ;;  %v7385_v32 = vmul.f32 %v12547_v6, %v3694_v24 }
 0x508   : > { %9152 = vst [vmem:[%s10045_s7 + $0x1e08] sm:$0xff] %v7636_v47  ;;  %vm7107_vm12 = vcmp.ge.f32.partialorder %v3343_v27, 0.0  ;;  %v7384_v26 = vmul.f32 %v12567_v36, %v3343_v27  ;;  %9154 = vst [vmem:[%s10045_s7 + $0x1e18] sm:$0xff] %v7638_v30  ;;  %v7639_v43 = vsel %vm7106_vm10, %v3341_v17, %v7383_v29  ;;  %vm7109_vm13 = vcmp.ge.f32.partialorder %v3696_v12, 0.0 }
 0x509   : > { %v7386_v33 = vmul.f32 %v12573_v31, %v3696_v12  ;;  %9155 = vst [vmem:[%s10045_s7 + $0x1e20] sm:$0xff] %v7639_v43  ;;  %v7641_v34 = vsel %vm7108_vm11, %v3694_v24, %v7385_v32 }
 0x50a   : > { %v7640_v45 = vsel %vm7107_vm12, %v3343_v27, %v7384_v26  ;;  %9157 = vst [vmem:[%s10045_s7 + $0x1e30] sm:$0xff] %v7641_v34 }
 0x50b   : > { %9156 = vst [vmem:[%s10045_s7 + $0x1e28] sm:$0xff] %v7640_v45  ;;  %v7642_v44 = vsel %vm7109_vm13, %v3696_v12, %v7386_v33  ;;  %v3347_v35 = vpop.f32.mrb[228].mxu0  ;;  %v3700_v48 = vpop.f32.mrb[228].mxu1 }
 0x50c   : > { %9158 = vst [vmem:[%s10045_s7 + $0x1e38] sm:$0xff] %v7642_v44  ;;  %vm7110_vm14 = vcmp.ge.f32.partialorder %v3347_v35, 0.0  ;;  %v7387_v38 = vmul.f32 %v12544_v5, %v3347_v35  ;;  %v3349_v41 = vpop.f32.mrb[229].mxu0  ;;  %vm7112_vm15 = vcmp.ge.f32.partialorder %v3700_v48, 0.0  ;;  %v7389_v49 = vmul.f32 %v12547_v6, %v3700_v48  ;;  %v3702_v53 = vpop.f32.mrb[229].mxu1 }
 0x50d   : > { %vm7111_vm1 = vcmp.ge.f32.partialorder %v3349_v41, 0.0  ;;  %v7388_v50 = vmul.f32 %v12567_v36, %v3349_v41  ;;  %v3351_v54 = vpop.f32.mrb[230].mxu0  ;;  %vm7113_vm0 = vcmp.ge.f32.partialorder %v3702_v53, 0.0  ;;  %v7390_v56 = vmul.f32 %v12573_v31, %v3702_v53  ;;  %v3704_v58 = vpop.f32.mrb[230].mxu1 }
 0x50e   : > { %v7643_v55 = vsel %vm7110_vm14, %v3347_v35, %v7387_v38  ;;  %vm7114_vm2 = vcmp.ge.f32.partialorder %v3351_v54, 0.0  ;;  %v3353_v59 = vpop.f32.mrb[231].mxu0  ;;  %v7645_v51 = vsel %vm7112_vm15, %v3700_v48, %v7389_v49  ;;  %v7391_v61 = vmul.f32 %v12544_v5, %v3351_v54  ;;  %v3706_v60 = vpop.f32.mrb[231].mxu1 }
 0x50f   : > { %9159 = vst [vmem:[%s10045_s7 + $0x1e40] sm:$0xff] %v7643_v55  ;;  %v7644_v52 = vsel %vm7111_vm1, %v3349_v41, %v7388_v50  ;;  %vm7116_vm3 = vcmp.ge.f32.partialorder %v3704_v58, 0.0  ;;  %9161 = vst [vmem:[%s10045_s7 + $0x1e50] sm:$0xff] %v7645_v51  ;;  %v7646_v20 = vsel %vm7113_vm0, %v3702_v53, %v7390_v56  ;;  %v7393_v11 = vmul.f32 %v12547_v6, %v3704_v58 }
 0x510   : > { %9160 = vst [vmem:[%s10045_s7 + $0x1e48] sm:$0xff] %v7644_v52  ;;  %vm7115_vm4 = vcmp.ge.f32.partialorder %v3353_v59, 0.0  ;;  %v7392_v57 = vmul.f32 %v12567_v36, %v3353_v59  ;;  %9162 = vst [vmem:[%s10045_s7 + $0x1e58] sm:$0xff] %v7646_v20  ;;  %v7647_v46 = vsel %vm7114_vm2, %v3351_v54, %v7391_v61  ;;  %vm7117_vm5 = vcmp.ge.f32.partialorder %v3706_v60, 0.0 }
 0x511   : > { %v7394_v39 = vmul.f32 %v12573_v31, %v3706_v60  ;;  %9163 = vst [vmem:[%s10045_s7 + $0x1e60] sm:$0xff] %v7647_v46  ;;  %v7649_v21 = vsel %vm7116_vm3, %v3704_v58, %v7393_v11 }
 0x512   : > { %v7648_v37 = vsel %vm7115_vm4, %v3353_v59, %v7392_v57  ;;  %9165 = vst [vmem:[%s10045_s7 + $0x1e70] sm:$0xff] %v7649_v21 }
 0x513   : > { %9164 = vst [vmem:[%s10045_s7 + $0x1e68] sm:$0xff] %v7648_v37  ;;  %v7650_v23 = vsel %vm7117_vm5, %v3706_v60, %v7394_v39  ;;  %v3357_v62 = vpop.f32.mrb[232].mxu0  ;;  %v3710_v25 = vpop.f32.mrb[232].mxu1 }
 0x514   : > { %9166 = vst [vmem:[%s10045_s7 + $0x1e78] sm:$0xff] %v7650_v23  ;;  %vm7118_vm6 = vcmp.ge.f32.partialorder %v3357_v62, 0.0  ;;  %v7395_v22 = vmul.f32 %v12544_v5, %v3357_v62  ;;  %v3359_v63 = vpop.f32.mrb[233].mxu0  ;;  %vm7120_vm7 = vcmp.ge.f32.partialorder %v3710_v25, 0.0  ;;  %v7397_v1 = vmul.f32 %v12547_v6, %v3710_v25  ;;  %v3712_v3 = vpop.f32.mrb[233].mxu1 }
 0x515   : > { %vm7119_vm8 = vcmp.ge.f32.partialorder %v3359_v63, 0.0  ;;  %v7396_v2 = vmul.f32 %v12567_v36, %v3359_v63  ;;  %v3361_v4 = vpop.f32.mrb[234].mxu0  ;;  %vm7121_vm9 = vcmp.ge.f32.partialorder %v3712_v3, 0.0  ;;  %v7398_v8 = vmul.f32 %v12573_v31, %v3712_v3  ;;  %v3714_v9 = vpop.f32.mrb[234].mxu1 }
 0x516   : > { %v7651_v7 = vsel %vm7118_vm6, %v3357_v62, %v7395_v22  ;;  %vm7122_vm10 = vcmp.ge.f32.partialorder %v3361_v4, 0.0  ;;  %v3363_v10 = vpop.f32.mrb[235].mxu0  ;;  %v7653_v13 = vsel %vm7120_vm7, %v3710_v25, %v7397_v1  ;;  %v7399_v40 = vmul.f32 %v12544_v5, %v3361_v4  ;;  %v3716_v15 = vpop.f32.mrb[235].mxu1 }
 0x517   : > { %9167 = vst [vmem:[%s10045_s7 + $0x1e80] sm:$0xff] %v7651_v7  ;;  %v7652_v14 = vsel %vm7119_vm8, %v3359_v63, %v7396_v2  ;;  %vm7124_vm11 = vcmp.ge.f32.partialorder %v3714_v9, 0.0  ;;  %9169 = vst [vmem:[%s10045_s7 + $0x1e90] sm:$0xff] %v7653_v13  ;;  %v7654_v42 = vsel %vm7121_vm9, %v3712_v3, %v7398_v8  ;;  %v7401_v0 = vmul.f32 %v12547_v6, %v3714_v9 }
 0x518   : > { %9168 = vst [vmem:[%s10045_s7 + $0x1e88] sm:$0xff] %v7652_v14  ;;  %vm7123_vm12 = vcmp.ge.f32.partialorder %v3363_v10, 0.0  ;;  %v7400_v16 = vmul.f32 %v12567_v36, %v3363_v10  ;;  %9170 = vst [vmem:[%s10045_s7 + $0x1e98] sm:$0xff] %v7654_v42  ;;  %v7655_v17 = vsel %vm7122_vm10, %v3361_v4, %v7399_v40  ;;  %vm7125_vm13 = vcmp.ge.f32.partialorder %v3716_v15, 0.0 }
 0x519   : > { %v7402_v18 = vmul.f32 %v12573_v31, %v3716_v15  ;;  %9171 = vst [vmem:[%s10045_s7 + $0x1ea0] sm:$0xff] %v7655_v17  ;;  %v7657_v19 = vsel %vm7124_vm11, %v3714_v9, %v7401_v0 }
 0x51a   : > { %v7656_v24 = vsel %vm7123_vm12, %v3363_v10, %v7400_v16  ;;  %9173 = vst [vmem:[%s10045_s7 + $0x1eb0] sm:$0xff] %v7657_v19 }
 0x51b   : > { %9172 = vst [vmem:[%s10045_s7 + $0x1ea8] sm:$0xff] %v7656_v24  ;;  %v7658_v27 = vsel %vm7125_vm13, %v3716_v15, %v7402_v18  ;;  %v3367_v28 = vpop.f32.mrb[236].mxu0  ;;  %v3720_v29 = vpop.f32.mrb[236].mxu1 }
 0x51c   : > { %9174 = vst [vmem:[%s10045_s7 + $0x1eb8] sm:$0xff] %v7658_v27  ;;  %vm7126_vm14 = vcmp.ge.f32.partialorder %v3367_v28, 0.0  ;;  %v7403_v47 = vmul.f32 %v12544_v5, %v3367_v28  ;;  %v3369_v12 = vpop.f32.mrb[237].mxu0  ;;  %vm7128_vm15 = vcmp.ge.f32.partialorder %v3720_v29, 0.0  ;;  %v7405_v30 = vmul.f32 %v12547_v6, %v3720_v29  ;;  %v3722_v26 = vpop.f32.mrb[237].mxu1 }
 0x51d   : > { %vm7127_vm1 = vcmp.ge.f32.partialorder %v3369_v12, 0.0  ;;  %v7404_v32 = vmul.f32 %v12567_v36, %v3369_v12  ;;  %v3371_v43 = vpop.f32.mrb[238].mxu0  ;;  %vm7129_vm0 = vcmp.ge.f32.partialorder %v3722_v26, 0.0  ;;  %v7406_v34 = vmul.f32 %v12573_v31, %v3722_v26  ;;  %v3724_v45 = vpop.f32.mrb[238].mxu1 }
 0x51e   : > { %v7659_v33 = vsel %vm7126_vm14, %v3367_v28, %v7403_v47  ;;  %vm7130_vm2 = vcmp.ge.f32.partialorder %v3371_v43, 0.0  ;;  %v3373_v44 = vpop.f32.mrb[239].mxu0  ;;  %v7661_v35 = vsel %vm7128_vm15, %v3720_v29, %v7405_v30  ;;  %v7407_v48 = vmul.f32 %v12544_v5, %v3371_v43  ;;  %v3726_v41 = vpop.f32.mrb[239].mxu1 }
 0x51f   : > { %9175 = vst [vmem:[%s10045_s7 + $0x1ec0] sm:$0xff] %v7659_v33  ;;  %v7660_v38 = vsel %vm7127_vm1, %v3369_v12, %v7404_v32  ;;  %vm7132_vm3 = vcmp.ge.f32.partialorder %v3724_v45, 0.0  ;;  %9177 = vst [vmem:[%s10045_s7 + $0x1ed0] sm:$0xff] %v7661_v35  ;;  %v7662_v49 = vsel %vm7129_vm0, %v3722_v26, %v7406_v34  ;;  %v7409_v50 = vmul.f32 %v12547_v6, %v3724_v45 }
 0x520   : > { %9176 = vst [vmem:[%s10045_s7 + $0x1ec8] sm:$0xff] %v7660_v38  ;;  %vm7131_vm4 = vcmp.ge.f32.partialorder %v3373_v44, 0.0  ;;  %v7408_v53 = vmul.f32 %v12567_v36, %v3373_v44  ;;  %9178 = vst [vmem:[%s10045_s7 + $0x1ed8] sm:$0xff] %v7662_v49  ;;  %v7663_v54 = vsel %vm7130_vm2, %v3371_v43, %v7407_v48  ;;  %vm7133_vm5 = vcmp.ge.f32.partialorder %v3726_v41, 0.0 }
 0x521   : > { %v7410_v55 = vmul.f32 %v12573_v31, %v3726_v41  ;;  %9179 = vst [vmem:[%s10045_s7 + $0x1ee0] sm:$0xff] %v7663_v54  ;;  %v7665_v56 = vsel %vm7132_vm3, %v3724_v45, %v7409_v50 }
 0x522   : > { %v7664_v58 = vsel %vm7131_vm4, %v3373_v44, %v7408_v53  ;;  %9181 = vst [vmem:[%s10045_s7 + $0x1ef0] sm:$0xff] %v7665_v56 }
 0x523   : > { %9180 = vst [vmem:[%s10045_s7 + $0x1ee8] sm:$0xff] %v7664_v58  ;;  %v7666_v59 = vsel %vm7133_vm5, %v3726_v41, %v7410_v55  ;;  %v3377_v51 = vpop.f32.mrb[240].mxu0  ;;  %v3730_v61 = vpop.f32.mrb[240].mxu1 }
 0x524   : > { %9182 = vst [vmem:[%s10045_s7 + $0x1ef8] sm:$0xff] %v7666_v59  ;;  %vm7134_vm6 = vcmp.ge.f32.partialorder %v3377_v51, 0.0  ;;  %v7411_v52 = vmul.f32 %v12544_v5, %v3377_v51  ;;  %v3379_v60 = vpop.f32.mrb[241].mxu0  ;;  %vm7136_vm7 = vcmp.ge.f32.partialorder %v3730_v61, 0.0  ;;  %v7413_v20 = vmul.f32 %v12547_v6, %v3730_v61  ;;  %v3732_v57 = vpop.f32.mrb[241].mxu1 }
 0x525   : > { %vm7135_vm8 = vcmp.ge.f32.partialorder %v3379_v60, 0.0  ;;  %v7412_v11 = vmul.f32 %v12567_v36, %v3379_v60  ;;  %v3381_v46 = vpop.f32.mrb[242].mxu0  ;;  %vm7137_vm9 = vcmp.ge.f32.partialorder %v3732_v57, 0.0  ;;  %v7414_v21 = vmul.f32 %v12573_v31, %v3732_v57  ;;  %v3734_v37 = vpop.f32.mrb[242].mxu1 }
 0x526   : > { %v7667_v39 = vsel %vm7134_vm6, %v3377_v51, %v7411_v52  ;;  %vm7138_vm10 = vcmp.ge.f32.partialorder %v3381_v46, 0.0  ;;  %v3383_v23 = vpop.f32.mrb[243].mxu0  ;;  %v7669_v62 = vsel %vm7136_vm7, %v3730_v61, %v7413_v20  ;;  %v7415_v25 = vmul.f32 %v12544_v5, %v3381_v46  ;;  %v3736_v63 = vpop.f32.mrb[243].mxu1 }
 0x527   : > { %9183 = vst [vmem:[%s10045_s7 + $0x1f00] sm:$0xff] %v7667_v39  ;;  %v7668_v22 = vsel %vm7135_vm8, %v3379_v60, %v7412_v11  ;;  %vm7140_vm11 = vcmp.ge.f32.partialorder %v3734_v37, 0.0  ;;  %9185 = vst [vmem:[%s10045_s7 + $0x1f10] sm:$0xff] %v7669_v62  ;;  %v7670_v1 = vsel %vm7137_vm9, %v3732_v57, %v7414_v21  ;;  %v7417_v2 = vmul.f32 %v12547_v6, %v3734_v37 }
 0x528   : > { %9184 = vst [vmem:[%s10045_s7 + $0x1f08] sm:$0xff] %v7668_v22  ;;  %vm7139_vm12 = vcmp.ge.f32.partialorder %v3383_v23, 0.0  ;;  %v7416_v3 = vmul.f32 %v12567_v36, %v3383_v23  ;;  %9186 = vst [vmem:[%s10045_s7 + $0x1f18] sm:$0xff] %v7670_v1  ;;  %v7671_v4 = vsel %vm7138_vm10, %v3381_v46, %v7415_v25  ;;  %vm7141_vm13 = vcmp.ge.f32.partialorder %v3736_v63, 0.0 }
 0x529   : > { %v7418_v7 = vmul.f32 %v12573_v31, %v3736_v63  ;;  %9187 = vst [vmem:[%s10045_s7 + $0x1f20] sm:$0xff] %v7671_v4  ;;  %v7673_v8 = vsel %vm7140_vm11, %v3734_v37, %v7417_v2 }
 0x52a   : > { %v7672_v9 = vsel %vm7139_vm12, %v3383_v23, %v7416_v3  ;;  %9189 = vst [vmem:[%s10045_s7 + $0x1f30] sm:$0xff] %v7673_v8 }
 0x52b   : > { %9188 = vst [vmem:[%s10045_s7 + $0x1f28] sm:$0xff] %v7672_v9  ;;  %v7674_v10 = vsel %vm7141_vm13, %v3736_v63, %v7418_v7  ;;  %v3387_v13 = vpop.f32.mrb[244].mxu0  ;;  %v3740_v40 = vpop.f32.mrb[244].mxu1 }
 0x52c   : > { %9190 = vst [vmem:[%s10045_s7 + $0x1f38] sm:$0xff] %v7674_v10  ;;  %vm7142_vm14 = vcmp.ge.f32.partialorder %v3387_v13, 0.0  ;;  %v7419_v14 = vmul.f32 %v12544_v5, %v3387_v13  ;;  %v3389_v15 = vpop.f32.mrb[245].mxu0  ;;  %vm7144_vm15 = vcmp.ge.f32.partialorder %v3740_v40, 0.0  ;;  %v7421_v42 = vmul.f32 %v12547_v6, %v3740_v40  ;;  %v3742_v16 = vpop.f32.mrb[245].mxu1 }
 0x52d   : > { %vm7143_vm1 = vcmp.ge.f32.partialorder %v3389_v15, 0.0  ;;  %v7420_v0 = vmul.f32 %v12567_v36, %v3389_v15  ;;  %v3391_v17 = vpop.f32.mrb[246].mxu0  ;;  %vm7145_vm0 = vcmp.ge.f32.partialorder %v3742_v16, 0.0  ;;  %v7422_v19 = vmul.f32 %v12573_v31, %v3742_v16  ;;  %v3744_v24 = vpop.f32.mrb[246].mxu1 }
 0x52e   : > { %v7675_v18 = vsel %vm7142_vm14, %v3387_v13, %v7419_v14  ;;  %vm7146_vm2 = vcmp.ge.f32.partialorder %v3391_v17, 0.0  ;;  %v3393_v27 = vpop.f32.mrb[247].mxu0  ;;  %v7677_v28 = vsel %vm7144_vm15, %v3740_v40, %v7421_v42  ;;  %v7423_v29 = vmul.f32 %v12544_v5, %v3391_v17  ;;  %v3746_v12 = vpop.f32.mrb[247].mxu1 }
 0x52f   : > { %9191 = vst [vmem:[%s10045_s7 + $0x1f40] sm:$0xff] %v7675_v18  ;;  %v7676_v47 = vsel %vm7143_vm1, %v3389_v15, %v7420_v0  ;;  %vm7148_vm3 = vcmp.ge.f32.partialorder %v3744_v24, 0.0  ;;  %9193 = vst [vmem:[%s10045_s7 + $0x1f50] sm:$0xff] %v7677_v28  ;;  %v7678_v30 = vsel %vm7145_vm0, %v3742_v16, %v7422_v19  ;;  %v7425_v32 = vmul.f32 %v12547_v6, %v3744_v24 }
 0x530   : > { %9192 = vst [vmem:[%s10045_s7 + $0x1f48] sm:$0xff] %v7676_v47  ;;  %vm7147_vm4 = vcmp.ge.f32.partialorder %v3393_v27, 0.0  ;;  %v7424_v26 = vmul.f32 %v12567_v36, %v3393_v27  ;;  %9194 = vst [vmem:[%s10045_s7 + $0x1f58] sm:$0xff] %v7678_v30  ;;  %v7679_v43 = vsel %vm7146_vm2, %v3391_v17, %v7423_v29  ;;  %vm7149_vm5 = vcmp.ge.f32.partialorder %v3746_v12, 0.0 }
 0x531   : > { %v7426_v33 = vmul.f32 %v12573_v31, %v3746_v12  ;;  %9195 = vst [vmem:[%s10045_s7 + $0x1f60] sm:$0xff] %v7679_v43  ;;  %v7681_v34 = vsel %vm7148_vm3, %v3744_v24, %v7425_v32 }
 0x532   : > { %v7680_v45 = vsel %vm7147_vm4, %v3393_v27, %v7424_v26  ;;  %9197 = vst [vmem:[%s10045_s7 + $0x1f70] sm:$0xff] %v7681_v34 }
 0x533   : > { %9196 = vst [vmem:[%s10045_s7 + $0x1f68] sm:$0xff] %v7680_v45  ;;  %v7682_v44 = vsel %vm7149_vm5, %v3746_v12, %v7426_v33  ;;  %v3397_v35 = vpop.f32.mrb[248].mxu0  ;;  %v3750_v48 = vpop.f32.mrb[248].mxu1 }
 0x534   : > { %9198 = vst [vmem:[%s10045_s7 + $0x1f78] sm:$0xff] %v7682_v44  ;;  %vm7150_vm6 = vcmp.ge.f32.partialorder %v3397_v35, 0.0  ;;  %v7427_v38 = vmul.f32 %v12544_v5, %v3397_v35  ;;  %v3399_v41 = vpop.f32.mrb[249].mxu0  ;;  %vm7152_vm7 = vcmp.ge.f32.partialorder %v3750_v48, 0.0  ;;  %v7429_v49 = vmul.f32 %v12547_v6, %v3750_v48  ;;  %v3752_v53 = vpop.f32.mrb[249].mxu1 }
 0x535   : > { %vm7151_vm8 = vcmp.ge.f32.partialorder %v3399_v41, 0.0  ;;  %v7428_v50 = vmul.f32 %v12567_v36, %v3399_v41  ;;  %v3401_v54 = vpop.f32.mrb[250].mxu0  ;;  %vm7153_vm9 = vcmp.ge.f32.partialorder %v3752_v53, 0.0  ;;  %v7430_v56 = vmul.f32 %v12573_v31, %v3752_v53  ;;  %v3754_v58 = vpop.f32.mrb[250].mxu1 }
 0x536   : > { %v7683_v55 = vsel %vm7150_vm6, %v3397_v35, %v7427_v38  ;;  %vm7154_vm10 = vcmp.ge.f32.partialorder %v3401_v54, 0.0  ;;  %v3403_v59 = vpop.f32.mrb[251].mxu0  ;;  %v7685_v51 = vsel %vm7152_vm7, %v3750_v48, %v7429_v49  ;;  %v7431_v61 = vmul.f32 %v12544_v5, %v3401_v54  ;;  %v3756_v60 = vpop.f32.mrb[251].mxu1 }
 0x537   : > { %9199 = vst [vmem:[%s10045_s7 + $0x1f80] sm:$0xff] %v7683_v55  ;;  %v7684_v52 = vsel %vm7151_vm8, %v3399_v41, %v7428_v50  ;;  %vm7156_vm11 = vcmp.ge.f32.partialorder %v3754_v58, 0.0  ;;  %9201 = vst [vmem:[%s10045_s7 + $0x1f90] sm:$0xff] %v7685_v51  ;;  %v7686_v20 = vsel %vm7153_vm9, %v3752_v53, %v7430_v56  ;;  %v7433_v11 = vmul.f32 %v12547_v6, %v3754_v58 }
 0x538   : > { %9200 = vst [vmem:[%s10045_s7 + $0x1f88] sm:$0xff] %v7684_v52  ;;  %vm7155_vm12 = vcmp.ge.f32.partialorder %v3403_v59, 0.0  ;;  %v7432_v57 = vmul.f32 %v12567_v36, %v3403_v59  ;;  %9202 = vst [vmem:[%s10045_s7 + $0x1f98] sm:$0xff] %v7686_v20  ;;  %v7687_v46 = vsel %vm7154_vm10, %v3401_v54, %v7431_v61  ;;  %vm7157_vm13 = vcmp.ge.f32.partialorder %v3756_v60, 0.0 }
 0x539   : > { %v7434_v39 = vmul.f32 %v12573_v31, %v3756_v60  ;;  %9203 = vst [vmem:[%s10045_s7 + $0x1fa0] sm:$0xff] %v7687_v46  ;;  %v7689_v21 = vsel %vm7156_vm11, %v3754_v58, %v7433_v11 }
 0x53a   : > { %v7688_v37 = vsel %vm7155_vm12, %v3403_v59, %v7432_v57  ;;  %9205 = vst [vmem:[%s10045_s7 + $0x1fb0] sm:$0xff] %v7689_v21 }
 0x53b   : > { %9204 = vst [vmem:[%s10045_s7 + $0x1fa8] sm:$0xff] %v7688_v37  ;;  %v7690_v23 = vsel %vm7157_vm13, %v3756_v60, %v7434_v39  ;;  %v3407_v62 = vpop.f32.mrb[252].mxu0  ;;  %v3760_v25 = vpop.f32.mrb[252].mxu1 }
 0x53c   : > { %9206 = vst [vmem:[%s10045_s7 + $0x1fb8] sm:$0xff] %v7690_v23  ;;  %vm7158_vm14 = vcmp.ge.f32.partialorder %v3407_v62, 0.0  ;;  %v7435_v22 = vmul.f32 %v12544_v5, %v3407_v62  ;;  %v3409_v63 = vpop.f32.mrb[253].mxu0  ;;  %vm7160_vm15 = vcmp.ge.f32.partialorder %v3760_v25, 0.0  ;;  %v7437_v1 = vmul.f32 %v12547_v6, %v3760_v25  ;;  %v3762_v3 = vpop.f32.mrb[253].mxu1 }
 0x53d   : > { %vm7159_vm1 = vcmp.ge.f32.partialorder %v3409_v63, 0.0  ;;  %v7436_v2 = vmul.f32 %v12567_v36, %v3409_v63  ;;  %v3411_v4 = vpop.f32.mrb[254].mxu0  ;;  %vm7161_vm0 = vcmp.ge.f32.partialorder %v3762_v3, 0.0  ;;  %v7438_v8 = vmul.f32 %v12573_v31, %v3762_v3  ;;  %v3764_v9 = vpop.f32.mrb[254].mxu1 }
 0x53e   : > { %v7691_v7 = vsel %vm7158_vm14, %v3407_v62, %v7435_v22  ;;  %vm7162_vm2 = vcmp.ge.f32.partialorder %v3411_v4, 0.0  ;;  %v3413_v10 = vpop.f32.mrb[255].mxu0  ;;  %v7693_v13 = vsel %vm7160_vm15, %v3760_v25, %v7437_v1  ;;  %v7439_v40 = vmul.f32 %v12544_v5, %v3411_v4  ;;  %v3766_v15 = vpop.f32.mrb[255].mxu1 }
 0x53f   : > { %9207 = vst [vmem:[%s10045_s7 + $0x1fc0] sm:$0xff] %v7691_v7  ;;  %v7692_v14 = vsel %vm7159_vm1, %v3409_v63, %v7436_v2  ;;  %vm7164_vm3 = vcmp.ge.f32.partialorder %v3764_v9, 0.0  ;;  %9209 = vst [vmem:[%s10045_s7 + $0x1fd0] sm:$0xff] %v7693_v13  ;;  %v7694_v42 = vsel %vm7161_vm0, %v3762_v3, %v7438_v8  ;;  %v7441_v0 = vmul.f32 %v12547_v6, %v3764_v9 }
 0x540   : > { %9208 = vst [vmem:[%s10045_s7 + $0x1fc8] sm:$0xff] %v7692_v14  ;;  %vm7163_vm4 = vcmp.ge.f32.partialorder %v3413_v10, 0.0  ;;  %v7440_v16 = vmul.f32 %v12567_v36, %v3413_v10  ;;  %9210 = vst [vmem:[%s10045_s7 + $0x1fd8] sm:$0xff] %v7694_v42  ;;  %v7695_v17 = vsel %vm7162_vm2, %v3411_v4, %v7439_v40  ;;  %vm7165_vm5 = vcmp.ge.f32.partialorder %v3766_v15, 0.0 }
 0x541   : > { %v7442_v5 = vmul.f32 %v12573_v31, %v3766_v15  ;;  %9211 = vst [vmem:[%s10045_s7 + $0x1fe0] sm:$0xff] %v7695_v17  ;;  %v7697_v6 = vsel %vm7164_vm3, %v3764_v9, %v7441_v0 }
 0x542   : > { %v7696_v36 = vsel %vm7163_vm4, %v3413_v10, %v7440_v16  ;;  %9213 = vst [vmem:[%s10045_s7 + $0x1ff0] sm:$0xff] %v7697_v6 }
 0x543   : > { %9212 = vst [vmem:[%s10045_s7 + $0x1fe8] sm:$0xff] %v7696_v36  ;;  %v7698_v18 = vsel %vm7165_vm5, %v3766_v15, %v7442_v5 }
 0x544   : > { %9214 = vst [vmem:[%s10045_s7 + $0x1ff8] sm:$0xff] %v7698_v18 }
 0x545   : > { %9499 = shalt.err (!%p9496_p7)
}
 0x546   : > { %s9500_s7 = scalar_lea.hbm %s13162_s27, 131072  ;;  %s9504_s22 = scalar_lea.hbm %s13220_s3, 262144 }
 0x547   : > { %p9501_p13 = scmp.ne.s32.totalorder %s13162_s27, %s9500_s7  ;;  %p9505_p12 = scmp.lt.u32.totalorder %s13162_s27, %s13220_s3 }
 0x548   : > { %p9506_p4 = scmp.lt.u32.totalorder %s9504_s22, %s9500_s7  ;;  %p9508_p5 = scmp.lt.u32.totalorder %s9500_s7, %s13162_s27 }
 0x549   : > { %p9502_p2 = pnand %p9501_p13, %p13241_p10 }
 0x54a   : > { %p9507_p8 = por %p9506_p4, %p9505_p12 }
 0x54b   : > { %p9503_p6 = pneg %p9502_p2 }
 0x54c   : > { %p9509_p11 = por %p9508_p5, %p9507_p8 }
 0x54e   : > { %p9510_p1 = pnand %p9509_p11, %p9503_p6 }
 0x550   : > { %9513 = shalt.err (!%p9510_p1)
}
 0x551   : > { %s9580_s20 = smov 512   ;;  %s9581_s6 = smov 32  }
 0x552   : > { %9228 = dma.vmem_to_hbm [thread:$0]  (%p13241_p10), %s13164_s11, 131072, %s13162_s27, %s7957_s8, %s9580_s20, %s9580_s20, %s9581_s6  }
 0x553 PF: > { %s7988_s15 = sand.u32 1, %s9552_s12   ;;  %p13242_p0 = scmp.ne.s32.totalorder %s13231_s25, 0 }
 0x554   : > { %p13243_p9 = scmp.ge.s32.totalorder %s9572_s17, 2  ;;  %s7989_s19 = scalar_lea.sflag [#allocation4], %s7988_s15 }
 0x556   : > { %p9239_p3 = pnand %p13243_p9, %p13242_p0 }
 0x558   : > { %9547 = dma.done.wait (!%p9239_p3), %s7989_s19, 131072  }
 0x559   : > { %9549 = vsyncadd (!%p9239_p3), %s7989_s19, 4294836224  ;;  %s20_s17 = sadd.s32 1, %s9572_s17   ;;  %s13244_s12 = smov %s9556_s13 }
 0x55a   : > { %p17_p7 = scmp.ge.s32.totalorder %s20_s17, 4   ;;  %s13245_s13 = smov %s9560_s14 }
 0x55b   : > { %s13246_s14 = smov %s9721_s28  ;;  %s13247_s15 = smov %s9568_s16 }
 0x55c   : > { %s13248_s16 = smov %s13250_s4  ;;  %19 = sbr.rel (!%p17_p7) target bundleno = 7 (0x7), region = 87 }
 0x563   :  { %7994 = vsyncpa [#allocation3], 1 }
 0x564   :  { %7996 = vsyncpa [#allocation3 + $0x1], 1 }
 0x565   :  { %7997 = vsyncpa [#allocation6], 1 }
 0x566   :  { %7998 = vsyncpa [#allocation4], 1 }
 0x567   :  { %8000 = vsyncpa [#allocation4 + $0x1], 1 }

</bundles_post_ra>
